<compile_context>
chip_gen: v7x
topology: tpu7x:2x2x1
jax: 0.10.0
libtpu: 0.0.40
codegen_flags: <defaults>
</compile_context>

<pallas_src>
import functools
import math

import jax
import jax.numpy as jnp
from jax.experimental import pallas as pl
from jax.experimental.pallas import tpu as pltpu


# Generous but safe on every generation (<= 32 MiB scoped default on v7x,
# << 128 MiB physical on v5e/v6e, << 64 MiB physical on v7x).
_VMEM_LIMIT_BYTES = 32 * 1024 * 1024

# Memory-space enum (new name with fallback for older jax).
_MS_ENUM = getattr(pltpu, "MemorySpace", None) or getattr(pltpu, "TPUMemorySpace", None)
_VMEM_SPACE = _MS_ENUM.VMEM


# --------------------- fc1 / fc2: relu(x @ W^T + b), N-tiled, bf16 weights ---------------------


def _linear_relu_kernel(x_ref, w_ref, b_ref, o_ref):
    # x: (B, K) bf16, w: (K, tn) bf16 -> MXU bf16 matmul, f32 accumulate.
    y = jnp.dot(x_ref[...], w_ref[...], preferred_element_type=jnp.float32)
    y = y + b_ref[...]                       # f32 bias, broadcast over batch
    o_ref[...] = jnp.maximum(y, 0.0).astype(o_ref.dtype)


def linear_relu_tiled(x, w_blocks, b):
    """relu(x @ W + b) with W pre-blocked as (nb, K, tn) contiguous bf16 slabs.

    x: (B, K) bf16, b: (1, N) f32.  Grid over output tiles, 'parallel' so v7x
    shards the weight stream across its 2 TensorCores.
    """
    B, K = x.shape
    nb, K2, tn = w_blocks.shape
    assert K == K2
    N = nb * tn

    cost = pl.CostEstimate(
        flops=2 * B * K * N,
        transcendentals=0,
        bytes_accessed=2 * (w_blocks.size + x.size + B * N) + 4 * b.size,
    )
    return pl.pallas_call(
        _linear_relu_kernel,
        out_shape=jax.ShapeDtypeStruct((B, N), jnp.bfloat16),
        grid_spec=pltpu.PrefetchScalarGridSpec(
            num_scalar_prefetch=0,
            grid=(nb,),
            in_specs=[
                pl.BlockSpec((B, K), lambda j: (0, 0)),          # x resident across tiles
                pl.BlockSpec((None, K, tn), lambda j: (j, 0, 0)),  # contiguous bf16 weight slab
                pl.BlockSpec((1, tn), lambda j: (0, j)),
            ],
            out_specs=pl.BlockSpec((B, tn), lambda j: (0, j)),
        ),
        compiler_params=pltpu.CompilerParams(
            dimension_semantics=("parallel",),   # v7x: shard tiles across both TCs
            vmem_limit_bytes=_VMEM_LIMIT_BYTES,
        ),
        cost_estimate=cost,
    )(x, w_blocks, b)


# --------------- fc3+fc4 fused: sigmoid(relu(h @ W3 + b3) @ W4 + b4), VMEM-resident ---------------


def _tail_kernel(x_ref, w3_ref, b3_ref, w4_ref, b4_ref, o_ref):
    h = jnp.dot(x_ref[...], w3_ref[...], preferred_element_type=jnp.float32)
    h = jnp.maximum(h + b3_ref[...], 0.0).astype(jnp.bfloat16)
    y = jnp.dot(h, w4_ref[...], preferred_element_type=jnp.float32)
    o_ref[...] = jax.nn.sigmoid(y + b4_ref[...]).astype(o_ref.dtype)


def fc_tail(x, fc3, fc4):
    """Gridless call: fc3 + fc4 with ~2.25 MiB of bf16 weights pinned in VMEM."""
    B = x.shape[0]
    (w3, b3), (w4, b4) = fc3, fc4
    N4 = w4.shape[1]

    vmem_spec = pl.BlockSpec(memory_space=_VMEM_SPACE)
    cost = pl.CostEstimate(
        flops=2 * B * (w3.shape[0] * w3.shape[1] + w4.shape[0] * w4.shape[1]),
        transcendentals=B * N4,
        bytes_accessed=2 * (w3.size + w4.size + x.size) + 4 * (b3.size + b4.size + B * N4),
    )
    return pl.pallas_call(
        _tail_kernel,
        out_shape=jax.ShapeDtypeStruct((B, N4), jnp.float32),
        in_specs=[vmem_spec] * 5,
        out_specs=vmem_spec,
        compiler_params=pltpu.CompilerParams(vmem_limit_bytes=_VMEM_LIMIT_BYTES),
        cost_estimate=cost,
    )(x, w3, b3, w4, b4)


# ----------------------------------- params & forward ------------------------------------


def _pad_to(n, m):
    return ((n + m - 1) // m) * m


def init_linear_params(key, in_features, out_features, *, tn=None, pad_out_to=128):
    """PyTorch nn.Linear default init: U(-1/sqrt(in), 1/sqrt(in)).

    Weights are stored transposed (K, N), zero-padded along N to a lane
    multiple, cast to bf16, and (if tn is given) pre-reshaped once into
    contiguous per-tile slabs (N//tn, K, tn) so each grid step is one
    contiguous HBM DMA.  Biases stay f32 as (1, N).
    """
    k_w, k_b = jax.random.split(key)
    bound = 1.0 / math.sqrt(in_features)
    w = jax.random.uniform(k_w, (out_features, in_features), jnp.float32, -bound, bound)
    b = jax.random.uniform(k_b, (out_features,), jnp.float32, -bound, bound)

    n_pad = _pad_to(out_features, pad_out_to)
    w_t = jnp.zeros((in_features, n_pad), jnp.float32).at[:, :out_features].set(w.T)
    b_p = jnp.zeros((1, n_pad), jnp.float32).at[0, :out_features].set(b)

    w_bf = w_t.astype(jnp.bfloat16)
    if tn is not None:
        assert n_pad % tn == 0
        nb = n_pad // tn
        # block j == w_t[:, j*tn:(j+1)*tn], stored contiguously.
        w_bf = w_bf.reshape(in_features, nb, tn).transpose(1, 0, 2)
    return w_bf, b_p


def mlp_basic_init(key, n_out):
    keys = jax.random.split(key, 4)
    return {
        "fc1": init_linear_params(keys[0], 4096, 2048, tn=512),
        "fc2": init_linear_params(keys[1], 2048, 1024, tn=512),
        "fc3": init_linear_params(keys[2], 1024, 1024),
        "fc4": init_linear_params(keys[3], 1024, n_out),
    }


@functools.partial(jax.jit, static_argnames=("n_out",))
def mlp_basic_forward(params, x, n_out):
    B = x.shape[0]
    h = x.reshape(B, -1).astype(jnp.bfloat16)          # torch.flatten(x, start_dim=1)
    h = linear_relu_tiled(h, *params["fc1"])            # (B, 2048) bf16
    h = linear_relu_tiled(h, *params["fc2"])            # (B, 1024) bf16
    out = fc_tail(h, params["fc3"], params["fc4"])      # (B, 128)  f32, sigmoid
    return out[:, :n_out]                               # strip lane padding of fc4


# ------------------------------------- reference -----------------------------------------


def _unblock(w):
    if w.ndim == 3:
        nb, K, tn = w.shape
        return w.transpose(1, 0, 2).reshape(K, nb * tn)
    return w


def _reference_forward(params, x, n_out):
    """Pure-JAX reference mirroring the kernel math (bf16 weights/activations,
    f32 accumulation and bias)."""
    h = x.reshape(x.shape[0], -1).astype(jnp.bfloat16)
    for name in ("fc1", "fc2", "fc3"):
        w, b = params[name]
        y = jnp.dot(h, _unblock(w), preferred_element_type=jnp.float32) + b
        h = jnp.maximum(y, 0.0).astype(jnp.bfloat16)
    w, b = params["fc4"]
    y = jnp.dot(h, _unblock(w), preferred_element_type=jnp.float32) + b
    return jax.nn.sigmoid(y)[:, :n_out]


if __name__ == "__main__":
    n_out = 100
    key = jax.random.PRNGKey(0)
    k_params, k_x = jax.random.split(key)

    params = mlp_basic_init(k_params, n_out)
    # (B, C, H, W) with C*H*W = 4096, matching fc1's 4096 input features.
    x = jax.random.normal(k_x, (2, 4, 32, 32), jnp.float32)

    y = mlp_basic_forward(params, x, n_out)
    jax.block_until_ready(y)

    y_ref = _reference_forward(params, x, n_out)
    assert y.shape == (2, n_out)
    assert jnp.allclose(y, y_ref, atol=2e-3, rtol=2e-3), float(jnp.max(jnp.abs(y - y_ref)))

    print("KERNEL_OK")
</pallas_src>

<mosaic_0001>
module attributes {stable_mosaic.version = 11 : i64} {
  func.func @_linear_relu_kernel(%arg0: i32, %arg1: memref<2x4096xbf16, #tpu.memory_space<vmem>>, %arg2: memref<1x4096x512xbf16, #tpu.memory_space<vmem>>, %arg3: memref<1x512xf32, #tpu.memory_space<vmem>>, %arg4: memref<2x512xbf16, #tpu.memory_space<vmem>>) attributes {dimension_semantics = [#tpu.dimension_semantics<parallel>], iteration_bounds = array<i64: 4>, scalar_prefetch = 0 : i64, scratch_operands = 0 : i64, tpu.core_type = #tpu.core_type<tc>, window_params = [{pipeline_mode = #tpu.pipeline_mode<synchronous>, transform_indices = @transform_0, window_bounds = array<i64: 2, 4096>}, {transform_indices = @transform_1, window_bounds = array<i64: 1, 4096, 512>}, {transform_indices = @transform_2, window_bounds = array<i64: 1, 512>}, {transform_indices = @transform_3, window_bounds = array<i64: 2, 512>}]} {
    %c0 = arith.constant 0 : index
    %c0_0 = arith.constant 0 : index
    %0 = vector.load %arg1[%c0, %c0_0] : memref<2x4096xbf16, #tpu.memory_space<vmem>>, vector<2x4096xbf16>
    %c0_1 = arith.constant 0 : index
    %c0_2 = arith.constant 0 : index
    %c0_3 = arith.constant 0 : index
    %1 = vector.load %arg2[%c0_1, %c0_2, %c0_3] : memref<1x4096x512xbf16, #tpu.memory_space<vmem>>, vector<1x4096x512xbf16>
    %2 = vector.shape_cast %1 : vector<1x4096x512xbf16> to vector<4096x512xbf16>
    %cst = arith.constant dense<0.000000e+00> : vector<2x512xf32>
    %3 = tpu.matmul %0, %2, %cst {dimension_numbers = #tpu.dot_dimension_numbers<[1], [0], [0], [1], [0, 0, 1, 1], [], []>} : vector<2x4096xbf16>, vector<4096x512xbf16>, vector<2x512xf32> -> vector<2x512xf32>
    %c0_4 = arith.constant 0 : index
    %c0_5 = arith.constant 0 : index
    %4 = vector.load %arg3[%c0_4, %c0_5] : memref<1x512xf32, #tpu.memory_space<vmem>>, vector<1x512xf32>
    %5 = vector.broadcast %4 : vector<1x512xf32> to vector<2x512xf32>
    %6 = arith.addf %3, %5 : vector<2x512xf32>
    %cst_6 = arith.constant 0.000000e+00 : f32
    %7 = vector.broadcast %cst_6 : f32 to vector<2x512xf32>
    %8 = arith.maximumf %6, %7 : vector<2x512xf32>
    %9 = arith.truncf %8 : vector<2x512xf32> to vector<2x512xbf16>
    %c0_7 = arith.constant 0 : index
    %c0_8 = arith.constant 0 : index
    %10 = vector.load %arg4[%c0_7, %c0_8] : memref<2x512xbf16, #tpu.memory_space<vmem>>, vector<2x512xbf16>
    tpu.vector_store %arg4[%c0_7, %c0_8], %9 {strides = array<i32>} : memref<2x512xbf16, #tpu.memory_space<vmem>>, vector<2x512xbf16>,
    return
  }
  func.func @transform_0(%arg0: i32) -> (i32, i32) {
    %c0_i32 = arith.constant 0 : i32
    %c0_i32_0 = arith.constant 0 : i32
    %c0_i32_1 = arith.constant 0 : i32
    return %c0_i32, %c0_i32_0 : i32, i32
  }
  func.func @transform_1(%arg0: i32) -> (i32, i32, i32) {
    %c0_i32 = arith.constant 0 : i32
    %c0_i32_0 = arith.constant 0 : i32
    %c0_i32_1 = arith.constant 0 : i32
    return %arg0, %c0_i32, %c0_i32_0 : i32, i32, i32
  }
  func.func @transform_2(%arg0: i32) -> (i32, i32) {
    %c0_i32 = arith.constant 0 : i32
    %c0_i32_0 = arith.constant 0 : i32
    return %c0_i32, %arg0 : i32, i32
  }
  func.func @transform_3(%arg0: i32) -> (i32, i32) {
    %c0_i32 = arith.constant 0 : i32
    %c0_i32_0 = arith.constant 0 : i32
    return %c0_i32, %arg0 : i32, i32
  }
}

module attributes {stable_mosaic.version = 11 : i64} {
  func.func @_linear_relu_kernel(%arg0: i32, %arg1: memref<2x2048xbf16, #tpu.memory_space<vmem>>, %arg2: memref<1x2048x512xbf16, #tpu.memory_space<vmem>>, %arg3: memref<1x512xf32, #tpu.memory_space<vmem>>, %arg4: memref<2x512xbf16, #tpu.memory_space<vmem>>) attributes {dimension_semantics = [#tpu.dimension_semantics<parallel>], iteration_bounds = array<i64: 2>, scalar_prefetch = 0 : i64, scratch_operands = 0 : i64, tpu.core_type = #tpu.core_type<tc>, window_params = [{pipeline_mode = #tpu.pipeline_mode<synchronous>, transform_indices = @transform_0, window_bounds = array<i64: 2, 2048>}, {transform_indices = @transform_1, window_bounds = array<i64: 1, 2048, 512>}, {transform_indices = @transform_2, window_bounds = array<i64: 1, 512>}, {transform_indices = @transform_3, window_bounds = array<i64: 2, 512>}]} {
    %c0 = arith.constant 0 : index
    %c0_0 = arith.constant 0 : index
    %0 = vector.load %arg1[%c0, %c0_0] : memref<2x2048xbf16, #tpu.memory_space<vmem>>, vector<2x2048xbf16>
    %c0_1 = arith.constant 0 : index
    %c0_2 = arith.constant 0 : index
    %c0_3 = arith.constant 0 : index
    %1 = vector.load %arg2[%c0_1, %c0_2, %c0_3] : memref<1x2048x512xbf16, #tpu.memory_space<vmem>>, vector<1x2048x512xbf16>
    %2 = vector.shape_cast %1 : vector<1x2048x512xbf16> to vector<2048x512xbf16>
    %cst = arith.constant dense<0.000000e+00> : vector<2x512xf32>
    %3 = tpu.matmul %0, %2, %cst {dimension_numbers = #tpu.dot_dimension_numbers<[1], [0], [0], [1], [0, 0, 1, 1], [], []>} : vector<2x2048xbf16>, vector<2048x512xbf16>, vector<2x512xf32> -> vector<2x512xf32>
    %c0_4 = arith.constant 0 : index
    %c0_5 = arith.constant 0 : index
    %4 = vector.load %arg3[%c0_4, %c0_5] : memref<1x512xf32, #tpu.memory_space<vmem>>, vector<1x512xf32>
    %5 = vector.broadcast %4 : vector<1x512xf32> to vector<2x512xf32>
    %6 = arith.addf %3, %5 : vector<2x512xf32>
    %cst_6 = arith.constant 0.000000e+00 : f32
    %7 = vector.broadcast %cst_6 : f32 to vector<2x512xf32>
    %8 = arith.maximumf %6, %7 : vector<2x512xf32>
    %9 = arith.truncf %8 : vector<2x512xf32> to vector<2x512xbf16>
    %c0_7 = arith.constant 0 : index
    %c0_8 = arith.constant 0 : index
    %10 = vector.load %arg4[%c0_7, %c0_8] : memref<2x512xbf16, #tpu.memory_space<vmem>>, vector<2x512xbf16>
    tpu.vector_store %arg4[%c0_7, %c0_8], %9 {strides = array<i32>} : memref<2x512xbf16, #tpu.memory_space<vmem>>, vector<2x512xbf16>,
    return
  }
  func.func @transform_0(%arg0: i32) -> (i32, i32) {
    %c0_i32 = arith.constant 0 : i32
    %c0_i32_0 = arith.constant 0 : i32
    %c0_i32_1 = arith.constant 0 : i32
    return %c0_i32, %c0_i32_0 : i32, i32
  }
  func.func @transform_1(%arg0: i32) -> (i32, i32, i32) {
    %c0_i32 = arith.constant 0 : i32
    %c0_i32_0 = arith.constant 0 : i32
    %c0_i32_1 = arith.constant 0 : i32
    return %arg0, %c0_i32, %c0_i32_0 : i32, i32, i32
  }
  func.func @transform_2(%arg0: i32) -> (i32, i32) {
    %c0_i32 = arith.constant 0 : i32
    %c0_i32_0 = arith.constant 0 : i32
    return %c0_i32, %arg0 : i32, i32
  }
  func.func @transform_3(%arg0: i32) -> (i32, i32) {
    %c0_i32 = arith.constant 0 : i32
    %c0_i32_0 = arith.constant 0 : i32
    return %c0_i32, %arg0 : i32, i32
  }
}

module attributes {stable_mosaic.version = 11 : i64} {
  func.func @_tail_kernel(%arg0: memref<2x1024xbf16, #tpu.memory_space<vmem>>, %arg1: memref<1024x1024xbf16, #tpu.memory_space<vmem>>, %arg2: memref<1x1024xf32, #tpu.memory_space<vmem>>, %arg3: memref<1024x128xbf16, #tpu.memory_space<vmem>>, %arg4: memref<1x128xf32, #tpu.memory_space<vmem>>, %arg5: memref<2x128xf32, #tpu.memory_space<vmem>>) attributes {dimension_semantics = [], scalar_prefetch = 0 : i64, scratch_operands = 0 : i64, tpu.core_type = #tpu.core_type<tc>} {
    %c0 = arith.constant 0 : index
    %c0_0 = arith.constant 0 : index
    %0 = vector.load %arg0[%c0, %c0_0] : memref<2x1024xbf16, #tpu.memory_space<vmem>>, vector<2x1024xbf16>
    %c0_1 = arith.constant 0 : index
    %c0_2 = arith.constant 0 : index
    %1 = vector.load %arg1[%c0_1, %c0_2] : memref<1024x1024xbf16, #tpu.memory_space<vmem>>, vector<1024x1024xbf16>
    %cst = arith.constant dense<0.000000e+00> : vector<2x1024xf32>
    %2 = tpu.matmul %0, %1, %cst {dimension_numbers = #tpu.dot_dimension_numbers<[1], [0], [0], [1], [0, 0, 1, 1], [], []>} : vector<2x1024xbf16>, vector<1024x1024xbf16>, vector<2x1024xf32> -> vector<2x1024xf32>
    %c0_3 = arith.constant 0 : index
    %c0_4 = arith.constant 0 : index
    %3 = vector.load %arg2[%c0_3, %c0_4] : memref<1x1024xf32, #tpu.memory_space<vmem>>, vector<1x1024xf32>
    %4 = vector.broadcast %3 : vector<1x1024xf32> to vector<2x1024xf32>
    %5 = arith.addf %2, %4 : vector<2x1024xf32>
    %cst_5 = arith.constant 0.000000e+00 : f32
    %6 = vector.broadcast %cst_5 : f32 to vector<2x1024xf32>
    %7 = arith.maximumf %5, %6 : vector<2x1024xf32>
    %8 = arith.truncf %7 : vector<2x1024xf32> to vector<2x1024xbf16>
    %c0_6 = arith.constant 0 : index
    %c0_7 = arith.constant 0 : index
    %9 = vector.load %arg3[%c0_6, %c0_7] : memref<1024x128xbf16, #tpu.memory_space<vmem>>, vector<1024x128xbf16>
    %cst_8 = arith.constant dense<0.000000e+00> : vector<2x128xf32>
    %10 = tpu.matmul %8, %9, %cst_8 {dimension_numbers = #tpu.dot_dimension_numbers<[1], [0], [0], [1], [0, 0, 1, 1], [], []>} : vector<2x1024xbf16>, vector<1024x128xbf16>, vector<2x128xf32> -> vector<2x128xf32>
    %c0_9 = arith.constant 0 : index
    %c0_10 = arith.constant 0 : index
    %11 = vector.load %arg4[%c0_9, %c0_10] : memref<1x128xf32, #tpu.memory_space<vmem>>, vector<1x128xf32>
    %12 = vector.broadcast %11 : vector<1x128xf32> to vector<2x128xf32>
    %13 = arith.addf %10, %12 : vector<2x128xf32>
    %14 = arith.negf %13 : vector<2x128xf32>
    %15 = math.exp %14 : vector<2x128xf32>
    %cst_11 = arith.constant 1.000000e+00 : f32
    %16 = vector.broadcast %cst_11 : f32 to vector<2x128xf32>
    %17 = arith.addf %16, %15 : vector<2x128xf32>
    %18 = arith.divf %16, %17 : vector<2x128xf32>
    %c0_12 = arith.constant 0 : index
    %c0_13 = arith.constant 0 : index
    %19 = vector.load %arg5[%c0_12, %c0_13] : memref<2x128xf32, #tpu.memory_space<vmem>>, vector<2x128xf32>
    tpu.vector_store %arg5[%c0_12, %c0_13], %18 {strides = array<i32>} : memref<2x128xf32, #tpu.memory_space<vmem>>, vector<2x128xf32>,
    return
  }
}

</mosaic_0001>

<bundles_post_ra>
// kernel: mlp_basic_forward.4
= control target key start
LH: loop header
LB: loop body
LE: loop exit
PB: predicated region body
PF: predicated region fallthrough
CT: control target
= control target key end

     0   :  { %s5549_s12 = smov 0   ;;  %s6199_s0 = inlined_call_operand.vmem [shape: bf16[2,2048], index: 0, kind: input, shape index: {}]   ;;  %s6200_s1 = inlined_call_operand.vmem [shape: bf16[2,2048,512], index: 1, kind: input, shape index: {}]   ;;  %s6201_s2 = inlined_call_operand.vmem [shape: f32[1,1024], index: 2, kind: input, shape index: {}]   ;;  %s6202_s3 = inlined_call_operand.vmem [shape: bf16[2,1024], index: 3, kind: output, shape index: {}]  }
   0x1 LB: > { %s5555_s13 = sadd.s32 4294967295, %s5526_s12   ;;  %p4158_p0 = scmp.ge.s32.totalorder %s5526_s12, 1  ;;  %s5526_s12 = sphi %s5549_s12, %s13_s12  }
   0x2   : > { %p147_p1 = scmp.lt.s32.totalorder %s5526_s12, 3 }
   0x4   : > { %p148_p2 = pnand %p4158_p0, %p147_p1 }
   0x5   : > { %p174_p3 = scmp.lt.s32.totalorder (!%p148_p2), %s5555_s13, 1  ;;  %v705_v0 = vlaneseq (!%p148_p2)  ;;  %v5528_v1 = vmov (!%p148_p2), 1966171168   ;;  %v5566_v5 = vld [vmem:[%s6199_s0] sm:$0xff] (!%p148_p2)  ;;  %s4161_s23 = sshll.u32 (!%p148_p2), %s5555_s13, 2 }
   0x6   : > { %151 = sbr.rel (%p148_p2) target bundleno = 754 (0x2f2), region = 32  ;;  %v729_v2 = vunpack.c.l.s4 (!%p148_p2), %v5528_v1  ;;  %p180_p4 = scmp.lt.s32.totalorder (!%p148_p2), %s4161_s23, 7 }
   0x7   : > { %v5561_v3 = vshrl.u32 (!%p148_p2), %v705_v0, 7 }
   0x8   : > { %v730_v4 = vunpack.c.0.s8 (!%p148_p2), %v729_v2 }
   0xa   : > { %v5574_v6 = vsub.s32 (!%p148_p2), %v730_v4, %v5561_v3 }
   0xc   : > { %v5580_v9 = vrot.slane (!%p148_p2), %v5566_v5, %v5574_v6 }
   0xd   : > { %s175_s14 = scalar_select %p174_p3, %s5555_s13, 1 }
   0xe   : > { %v742_v13 = vcombine.high %v5580_v9, %v5580_v9  ;;  %s6204_s23 = smov (!%p180_p4, %s4161_s23), 7 }
   0xf   : > { %s4680_s15 = sshll.u32 %s175_s14, 12  ;;  %s182_s26 = scalar_lea.vmem %s6201_s2, %s6204_s23 }
  0x10   : > { %s5571_s20 = scalar_lea.vmem %s6200_s1, %s4680_s15  ;;  %v5591_v17 = vrot.slane %v742_v13, %v5574_v6  ;;  %s187_s29 = scalar_lea.vmem %s6202_s3, %s6204_s23 }
  0x11   : > { %v4750_v7 = vld [vmem:[%s5571_s20 + $0x4] ss:$16 sps:$4 sm:$0xff]   ;;  %v4752_v8 = vld [vmem:[%s5571_s20 + $0xc] ss:$16 sps:$4 sm:$0xff]   ;;  %v4754_v10 = vld [vmem:[%s5571_s20] ss:$16 sps:$4 sm:$0xff]  }
  0x12   : > { %3401 = vmatprep.subr.bf16.mxu0 %v4750_v7  ;;  %v4755_v11 = vld [vmem:[%s5571_s20 + $0x8] ss:$16 sps:$4 sm:$0xff]   ;;  %3729 = vmatprep.subr.bf16.mxu1 %v4752_v8  ;;  %v4756_v12 = vld [vmem:[%s5571_s20 + $0x24] ss:$16 sps:$4 sm:$0xff]   ;;  %v4758_v14 = vld [vmem:[%s5571_s20 + $0x2c] ss:$16 sps:$4 sm:$0xff]  }
  0x13   : > { %3402 = vmatpush1.bf16.msra.mxu0 %v4754_v10  ;;  %3730 = vmatpush1.bf16.msra.mxu1 %v4755_v11  ;;  %v4760_v15 = vld [vmem:[%s5571_s20 + $0x20] ss:$16 sps:$4 sm:$0xff]   ;;  %v4761_v16 = vld [vmem:[%s5571_s20 + $0x28] ss:$16 sps:$4 sm:$0xff]   ;;  %v4762_v18 = vld [vmem:[%s5571_s20 + $0x44] ss:$16 sps:$4 sm:$0xff]  }
  0x14   : > { %3403 = vmatprep.subr.bf16.mxu0 %v4756_v12  ;;  %3731 = vmatprep.subr.bf16.mxu1 %v4758_v14  ;;  %v4764_v19 = vld [vmem:[%s5571_s20 + $0x4c] ss:$16 sps:$4 sm:$0xff]   ;;  %v4766_v20 = vld [vmem:[%s5571_s20 + $0x40] ss:$16 sps:$4 sm:$0xff]   ;;  %v4767_v21 = vld [vmem:[%s5571_s20 + $0x48] ss:$16 sps:$4 sm:$0xff]  }
  0x15   : > { %3433 = vmatprep.mubr.bf16.mxu0 %v5591_v17  ;;  %3761 = vmatprep.mubr.bf16.mxu1 %v5591_v17  ;;  %v4768_v22 = vld [vmem:[%s5571_s20 + $0x64] ss:$16 sps:$4 sm:$0xff]   ;;  %v4770_v23 = vld [vmem:[%s5571_s20 + $0x6c] ss:$16 sps:$4 sm:$0xff]   ;;  %v4772_v24 = vld [vmem:[%s5571_s20 + $0x60] ss:$16 sps:$4 sm:$0xff]  }
  0x16   : > { %v4773_v25 = vld [vmem:[%s5571_s20 + $0x68] ss:$16 sps:$4 sm:$0xff]   ;;  %v4774_v26 = vld [vmem:[%s5571_s20 + $0x84] ss:$16 sps:$4 sm:$0xff]   ;;  %v4776_v27 = vld [vmem:[%s5571_s20 + $0x8c] ss:$16 sps:$4 sm:$0xff]  }
  0x17   : > { %3404 = vmatpush1.bf16.msra.mxu0 %v4760_v15  ;;  %3732 = vmatpush1.bf16.msra.mxu1 %v4761_v16  ;;  %v4778_v28 = vld [vmem:[%s5571_s20 + $0x80] ss:$16 sps:$4 sm:$0xff]   ;;  %v4779_v29 = vld [vmem:[%s5571_s20 + $0x88] ss:$16 sps:$4 sm:$0xff]   ;;  %v4780_v30 = vld [vmem:[%s5571_s20 + $0xa4] ss:$16 sps:$4 sm:$0xff]  }
  0x18   : > { %3405 = vmatprep.subr.bf16.mxu0 %v4762_v18  ;;  %3733 = vmatprep.subr.bf16.mxu1 %v4764_v19  ;;  %v4782_v31 = vld [vmem:[%s5571_s20 + $0xac] ss:$16 sps:$4 sm:$0xff]   ;;  %v4784_v32 = vld [vmem:[%s5571_s20 + $0xa0] ss:$16 sps:$4 sm:$0xff]   ;;  %v4785_v33 = vld [vmem:[%s5571_s20 + $0xa8] ss:$16 sps:$4 sm:$0xff]   ;;  %v5657_v19 = vrot.slane %v5580_v9, %v5574_v6 }
  0x19   : > { %v4786_v34 = vld [vmem:[%s5571_s20 + $0xc4] ss:$16 sps:$4 sm:$0xff]   ;;  %v4788_v35 = vld [vmem:[%s5571_s20 + $0xcc] ss:$16 sps:$4 sm:$0xff]   ;;  %v4790_v36 = vld [vmem:[%s5571_s20 + $0xc0] ss:$16 sps:$4 sm:$0xff]  }
  0x1a   : > { %v4791_v37 = vld [vmem:[%s5571_s20 + $0xc8] ss:$16 sps:$4 sm:$0xff]   ;;  %v4792_v38 = vld [vmem:[%s5571_s20 + $0xe4] ss:$16 sps:$4 sm:$0xff]   ;;  %v4794_v39 = vld [vmem:[%s5571_s20 + $0xec] ss:$16 sps:$4 sm:$0xff]  }
  0x1b   : > { %3406 = vmatpush1.bf16.msra.mxu0 %v4766_v20  ;;  %3734 = vmatpush1.bf16.msra.mxu1 %v4767_v21  ;;  %v4796_v40 = vld [vmem:[%s5571_s20 + $0xe0] ss:$16 sps:$4 sm:$0xff]   ;;  %v4797_v41 = vld [vmem:[%s5571_s20 + $0xe8] ss:$16 sps:$4 sm:$0xff]   ;;  %v4798_v42 = vld [vmem:[%s5571_s20 + $0x104] ss:$16 sps:$4 sm:$0xff]  }
  0x1c   : > { %3407 = vmatprep.subr.bf16.mxu0 %v4768_v22  ;;  %3735 = vmatprep.subr.bf16.mxu1 %v4770_v23  ;;  %v4800_v43 = vld [vmem:[%s5571_s20 + $0x10c] ss:$16 sps:$4 sm:$0xff]   ;;  %v4802_v44 = vld [vmem:[%s5571_s20 + $0x100] ss:$16 sps:$4 sm:$0xff]   ;;  %v4803_v45 = vld [vmem:[%s5571_s20 + $0x108] ss:$16 sps:$4 sm:$0xff]   ;;  %v774_v22 = vcombine.high %v5591_v17, %v5591_v17 }
  0x1d   : > { %v4804_v46 = vld [vmem:[%s5571_s20 + $0x124] ss:$16 sps:$4 sm:$0xff]   ;;  %v4806_v47 = vld [vmem:[%s5571_s20 + $0x12c] ss:$16 sps:$4 sm:$0xff]   ;;  %v4808_v48 = vld [vmem:[%s5571_s20 + $0x120] ss:$16 sps:$4 sm:$0xff]  }
  0x1e   : > { %v4809_v49 = vld [vmem:[%s5571_s20 + $0x128] ss:$16 sps:$4 sm:$0xff]   ;;  %v4810_v50 = vld [vmem:[%s5571_s20 + $0x144] ss:$16 sps:$4 sm:$0xff]   ;;  %v4812_v51 = vld [vmem:[%s5571_s20 + $0x14c] ss:$16 sps:$4 sm:$0xff]  }
  0x1f   : > { %3408 = vmatpush1.bf16.msra.mxu0 %v4772_v24  ;;  %3736 = vmatpush1.bf16.msra.mxu1 %v4773_v25  ;;  %v4814_v52 = vld [vmem:[%s5571_s20 + $0x140] ss:$16 sps:$4 sm:$0xff]   ;;  %v4815_v53 = vld [vmem:[%s5571_s20 + $0x148] ss:$16 sps:$4 sm:$0xff]   ;;  %v4816_v54 = vld [vmem:[%s5571_s20 + $0x164] ss:$16 sps:$4 sm:$0xff]  }
  0x20   : > { %3409 = vmatprep.subr.bf16.mxu0 %v4774_v26  ;;  %3737 = vmatprep.subr.bf16.mxu1 %v4776_v27  ;;  %v4818_v55 = vld [vmem:[%s5571_s20 + $0x16c] ss:$16 sps:$4 sm:$0xff]   ;;  %v4820_v56 = vld [vmem:[%s5571_s20 + $0x160] ss:$16 sps:$4 sm:$0xff]   ;;  %v4821_v57 = vld [vmem:[%s5571_s20 + $0x168] ss:$16 sps:$4 sm:$0xff]  }
  0x21   : > { %v4822_v58 = vld [vmem:[%s5571_s20 + $0x184] ss:$16 sps:$4 sm:$0xff]   ;;  %v4824_v59 = vld [vmem:[%s5571_s20 + $0x18c] ss:$16 sps:$4 sm:$0xff]   ;;  %v4826_v60 = vld [vmem:[%s5571_s20 + $0x180] ss:$16 sps:$4 sm:$0xff]  }
  0x22   : > { %v4827_v61 = vld [vmem:[%s5571_s20 + $0x188] ss:$16 sps:$4 sm:$0xff]   ;;  %v4828_v62 = vld [vmem:[%s5571_s20 + $0x1a4] ss:$16 sps:$4 sm:$0xff]   ;;  %v4830_v63 = vld [vmem:[%s5571_s20 + $0x1ac] ss:$16 sps:$4 sm:$0xff]  }
  0x23   : > { %3410 = vmatpush1.bf16.msra.mxu0 %v4778_v28  ;;  %3738 = vmatpush1.bf16.msra.mxu1 %v4779_v29  ;;  %v4832_v0 = vld [vmem:[%s5571_s20 + $0x1a0] ss:$16 sps:$4 sm:$0xff]   ;;  %v4833_v1 = vld [vmem:[%s5571_s20 + $0x1a8] ss:$16 sps:$4 sm:$0xff]   ;;  %v4834_v2 = vld [vmem:[%s5571_s20 + $0x1c4] ss:$16 sps:$4 sm:$0xff]  }
  0x24   : > { %3411 = vmatprep.subr.bf16.mxu0 %v4780_v30  ;;  %3739 = vmatprep.subr.bf16.mxu1 %v4782_v31  ;;  %v4836_v4 = vld [vmem:[%s5571_s20 + $0x1cc] ss:$16 sps:$4 sm:$0xff]   ;;  %v4838_v7 = vld [vmem:[%s5571_s20 + $0x1c0] ss:$16 sps:$4 sm:$0xff]   ;;  %v4839_v8 = vld [vmem:[%s5571_s20 + $0x1c8] ss:$16 sps:$4 sm:$0xff]  }
  0x25   : > { %v4840_v10 = vld [vmem:[%s5571_s20 + $0x1e4] ss:$16 sps:$4 sm:$0xff]   ;;  %v4842_v11 = vld [vmem:[%s5571_s20 + $0x1ec] ss:$16 sps:$4 sm:$0xff]   ;;  %v4844_v12 = vld [vmem:[%s5571_s20 + $0x1e0] ss:$16 sps:$4 sm:$0xff]  }
  0x26   : > { %v4845_v13 = vld [vmem:[%s5571_s20 + $0x1e8] ss:$16 sps:$4 sm:$0xff]   ;;  %v4848_v14 = vld [vmem:[%s5571_s20 + $0x204] ss:$16 sps:$4 sm:$0xff]   ;;  %v4851_v15 = vld [vmem:[%s5571_s20 + $0x20c] ss:$16 sps:$4 sm:$0xff]  }
  0x27   : > { %3412 = vmatpush1.bf16.msra.mxu0 %v4784_v32  ;;  %3740 = vmatpush1.bf16.msra.mxu1 %v4785_v33  ;;  %v4846_v16 = vld [vmem:[%s5571_s20 + $0x200] ss:$16 sps:$4 sm:$0xff]   ;;  %v4849_v18 = vld [vmem:[%s5571_s20 + $0x208] ss:$16 sps:$4 sm:$0xff]   ;;  %v4854_v20 = vld [vmem:[%s5571_s20 + $0x224] ss:$16 sps:$4 sm:$0xff]  }
  0x28   : > { %3413 = vmatprep.subr.bf16.mxu0 %v4786_v34  ;;  %3741 = vmatprep.subr.bf16.mxu1 %v4788_v35  ;;  %v4857_v21 = vld [vmem:[%s5571_s20 + $0x22c] ss:$16 sps:$4 sm:$0xff]   ;;  %v4852_v23 = vld [vmem:[%s5571_s20 + $0x220] ss:$16 sps:$4 sm:$0xff]   ;;  %v4855_v9 = vld [vmem:[%s5571_s20 + $0x228] ss:$16 sps:$4 sm:$0xff]  }
  0x29   : > { %v4860_v24 = vld [vmem:[%s5571_s20 + $0x244] ss:$16 sps:$4 sm:$0xff]   ;;  %v4863_v25 = vld [vmem:[%s5571_s20 + $0x24c] ss:$16 sps:$4 sm:$0xff]   ;;  %v4858_v17 = vld [vmem:[%s5571_s20 + $0x240] ss:$16 sps:$4 sm:$0xff]  }
  0x2a   : > { %v4861_v26 = vld [vmem:[%s5571_s20 + $0x248] ss:$16 sps:$4 sm:$0xff]   ;;  %v4866_v27 = vld [vmem:[%s5571_s20 + $0x264] ss:$16 sps:$4 sm:$0xff]   ;;  %v4869_v28 = vld [vmem:[%s5571_s20 + $0x26c] ss:$16 sps:$4 sm:$0xff]  }
  0x2b   : > { %3414 = vmatpush1.bf16.msra.mxu0 %v4790_v36  ;;  %3742 = vmatpush1.bf16.msra.mxu1 %v4791_v37  ;;  %v4864_v29 = vld [vmem:[%s5571_s20 + $0x260] ss:$16 sps:$4 sm:$0xff]   ;;  %v4867_v30 = vld [vmem:[%s5571_s20 + $0x268] ss:$16 sps:$4 sm:$0xff]   ;;  %v4872_v31 = vld [vmem:[%s5571_s20 + $0x284] ss:$16 sps:$4 sm:$0xff]  }
  0x2c   : > { %3415 = vmatprep.subr.bf16.mxu0 %v4792_v38  ;;  %3743 = vmatprep.subr.bf16.mxu1 %v4794_v39  ;;  %v4875_v32 = vld [vmem:[%s5571_s20 + $0x28c] ss:$16 sps:$4 sm:$0xff]   ;;  %v4870_v33 = vld [vmem:[%s5571_s20 + $0x280] ss:$16 sps:$4 sm:$0xff]   ;;  %v4873_v34 = vld [vmem:[%s5571_s20 + $0x288] ss:$16 sps:$4 sm:$0xff]  }
  0x2d   : > { %v4878_v35 = vld [vmem:[%s5571_s20 + $0x2a4] ss:$16 sps:$4 sm:$0xff]   ;;  %v4881_v36 = vld [vmem:[%s5571_s20 + $0x2ac] ss:$16 sps:$4 sm:$0xff]   ;;  %v4876_v37 = vld [vmem:[%s5571_s20 + $0x2a0] ss:$16 sps:$4 sm:$0xff]  }
  0x2e   : > { %v4879_v38 = vld [vmem:[%s5571_s20 + $0x2a8] ss:$16 sps:$4 sm:$0xff]   ;;  %v4884_v39 = vld [vmem:[%s5571_s20 + $0x2c4] ss:$16 sps:$4 sm:$0xff]  }
  0x2f   : > { %3416 = vmatpush1.bf16.msra.mxu0 %v4796_v40  ;;  %3744 = vmatpush1.bf16.msra.mxu1 %v4797_v41  ;;  %v4887_v40 = vld [vmem:[%s5571_s20 + $0x2cc] ss:$16 sps:$4 sm:$0xff]   ;;  %v4882_v41 = vld [vmem:[%s5571_s20 + $0x2c0] ss:$16 sps:$4 sm:$0xff]  }
  0x30   : > { %3417 = vmatprep.subr.bf16.mxu0 %v4798_v42  ;;  %3745 = vmatprep.subr.bf16.mxu1 %v4800_v43  ;;  %v4885_v42 = vld [vmem:[%s5571_s20 + $0x2c8] ss:$16 sps:$4 sm:$0xff]   ;;  %v4890_v43 = vld [vmem:[%s5571_s20 + $0x2e4] ss:$16 sps:$4 sm:$0xff]  }
  0x33   : > { %3418 = vmatpush1.bf16.msra.mxu0 %v4802_v44  ;;  %3746 = vmatpush1.bf16.msra.mxu1 %v4803_v45  ;;  %v4893_v44 = vld [vmem:[%s5571_s20 + $0x2ec] ss:$16 sps:$4 sm:$0xff]   ;;  %v4888_v45 = vld [vmem:[%s5571_s20 + $0x2e0] ss:$16 sps:$4 sm:$0xff]  }
  0x34   : > { %3419 = vmatprep.subr.bf16.mxu0 %v4804_v46  ;;  %3747 = vmatprep.subr.bf16.mxu1 %v4806_v47  ;;  %v4891_v46 = vld [vmem:[%s5571_s20 + $0x2e8] ss:$16 sps:$4 sm:$0xff]   ;;  %v4896_v47 = vld [vmem:[%s5571_s20 + $0x304] ss:$16 sps:$4 sm:$0xff]  }
  0x37   : > { %3420 = vmatpush1.bf16.msra.mxu0 %v4808_v48  ;;  %3748 = vmatpush1.bf16.msra.mxu1 %v4809_v49  ;;  %v4899_v48 = vld [vmem:[%s5571_s20 + $0x30c] ss:$16 sps:$4 sm:$0xff]   ;;  %v4894_v49 = vld [vmem:[%s5571_s20 + $0x300] ss:$16 sps:$4 sm:$0xff]  }
  0x38   : > { %3421 = vmatprep.subr.bf16.mxu0 %v4810_v50  ;;  %3749 = vmatprep.subr.bf16.mxu1 %v4812_v51  ;;  %v4897_v50 = vld [vmem:[%s5571_s20 + $0x308] ss:$16 sps:$4 sm:$0xff]   ;;  %v4902_v51 = vld [vmem:[%s5571_s20 + $0x324] ss:$16 sps:$4 sm:$0xff]  }
  0x3b   : > { %3422 = vmatpush1.bf16.msra.mxu0 %v4814_v52  ;;  %3750 = vmatpush1.bf16.msra.mxu1 %v4815_v53  ;;  %v4905_v52 = vld [vmem:[%s5571_s20 + $0x32c] ss:$16 sps:$4 sm:$0xff]   ;;  %v4900_v53 = vld [vmem:[%s5571_s20 + $0x320] ss:$16 sps:$4 sm:$0xff]  }
  0x3c   : > { %3423 = vmatprep.subr.bf16.mxu0 %v4816_v54  ;;  %3751 = vmatprep.subr.bf16.mxu1 %v4818_v55  ;;  %v4903_v54 = vld [vmem:[%s5571_s20 + $0x328] ss:$16 sps:$4 sm:$0xff]   ;;  %v4908_v55 = vld [vmem:[%s5571_s20 + $0x344] ss:$16 sps:$4 sm:$0xff]  }
  0x3f   : > { %3424 = vmatpush1.bf16.msra.mxu0 %v4820_v56  ;;  %3752 = vmatpush1.bf16.msra.mxu1 %v4821_v57  ;;  %v4911_v56 = vld [vmem:[%s5571_s20 + $0x34c] ss:$16 sps:$4 sm:$0xff]   ;;  %v4906_v57 = vld [vmem:[%s5571_s20 + $0x340] ss:$16 sps:$4 sm:$0xff]  }
  0x40   : > { %3425 = vmatprep.subr.bf16.mxu0 %v4822_v58  ;;  %3753 = vmatprep.subr.bf16.mxu1 %v4824_v59  ;;  %v4909_v58 = vld [vmem:[%s5571_s20 + $0x348] ss:$16 sps:$4 sm:$0xff]   ;;  %v4914_v59 = vld [vmem:[%s5571_s20 + $0x364] ss:$16 sps:$4 sm:$0xff]  }
  0x43   : > { %3426 = vmatpush1.bf16.msra.mxu0 %v4826_v60  ;;  %3754 = vmatpush1.bf16.msra.mxu1 %v4827_v61  ;;  %v4917_v60 = vld [vmem:[%s5571_s20 + $0x36c] ss:$16 sps:$4 sm:$0xff]   ;;  %v4912_v61 = vld [vmem:[%s5571_s20 + $0x360] ss:$16 sps:$4 sm:$0xff]  }
  0x44   : > { %3427 = vmatprep.subr.bf16.mxu0 %v4828_v62  ;;  %3755 = vmatprep.subr.bf16.mxu1 %v4830_v63  ;;  %v4915_v62 = vld [vmem:[%s5571_s20 + $0x368] ss:$16 sps:$4 sm:$0xff]   ;;  %v4920_v63 = vld [vmem:[%s5571_s20 + $0x384] ss:$16 sps:$4 sm:$0xff]  }
  0x47   : > { %3428 = vmatpush1.bf16.msra.mxu0 %v4832_v0  ;;  %3756 = vmatpush1.bf16.msra.mxu1 %v4833_v1  ;;  %v4923_v0 = vld [vmem:[%s5571_s20 + $0x38c] ss:$16 sps:$4 sm:$0xff]   ;;  %v4918_v1 = vld [vmem:[%s5571_s20 + $0x380] ss:$16 sps:$4 sm:$0xff]  }
  0x48   : > { %3429 = vmatprep.subr.bf16.mxu0 %v4834_v2  ;;  %3757 = vmatprep.subr.bf16.mxu1 %v4836_v4  ;;  %v4921_v2 = vld [vmem:[%s5571_s20 + $0x388] ss:$16 sps:$4 sm:$0xff]   ;;  %v4926_v4 = vld [vmem:[%s5571_s20 + $0x3a4] ss:$16 sps:$4 sm:$0xff]  }
  0x4b   : > { %3430 = vmatpush1.bf16.msra.mxu0 %v4838_v7  ;;  %3758 = vmatpush1.bf16.msra.mxu1 %v4839_v8  ;;  %v4929_v7 = vld [vmem:[%s5571_s20 + $0x3ac] ss:$16 sps:$4 sm:$0xff]   ;;  %v4924_v8 = vld [vmem:[%s5571_s20 + $0x3a0] ss:$16 sps:$4 sm:$0xff]  }
  0x4c   : > { %3431 = vmatprep.subr.bf16.mxu0 %v4840_v10  ;;  %3759 = vmatprep.subr.bf16.mxu1 %v4842_v11  ;;  %v4927_v10 = vld [vmem:[%s5571_s20 + $0x3a8] ss:$16 sps:$4 sm:$0xff]   ;;  %v4932_v11 = vld [vmem:[%s5571_s20 + $0x3c4] ss:$16 sps:$4 sm:$0xff]  }
  0x4f   : > { %3432 = vmatpush1.bf16.msra.mxu0 %v4844_v12  ;;  %3760 = vmatpush1.bf16.msra.mxu1 %v4845_v13  ;;  %v4935_v12 = vld [vmem:[%s5571_s20 + $0x3cc] ss:$16 sps:$4 sm:$0xff]   ;;  %v727_v13 = vcombine.high %v5566_v5, %v5566_v5  ;;  %v4944_v5 = vld [vmem:[%s5571_s20 + $0x404] ss:$16 sps:$4 sm:$0xff]  }
  0x50   : > { %3442 = vmatprep.subr.bf16.mxu0 %v4848_v14  ;;  %3770 = vmatprep.subr.bf16.mxu1 %v4851_v15  ;;  %v4930_v14 = vld [vmem:[%s5571_s20 + $0x3c0] ss:$16 sps:$4 sm:$0xff]   ;;  %v4933_v15 = vld [vmem:[%s5571_s20 + $0x3c8] ss:$16 sps:$4 sm:$0xff]  }
  0x52   : > { %3434 = vmatmul.mubr.bf16.vlgmr.msra.gmra.mrb[0].mxu0 %v5657_v19  ;;  %3762 = vmatmul.mubr.bf16.vlgmr.msra.gmra.mrb[0].mxu1 %v5657_v19 }
  0x53   : > { %3443 = vmatpush1.bf16.msra.mxu0 %v4846_v16  ;;  %3771 = vmatpush1.bf16.msra.mxu1 %v4849_v18  ;;  %v4938_v16 = vld [vmem:[%s5571_s20 + $0x3e4] ss:$16 sps:$4 sm:$0xff]   ;;  %v4941_v18 = vld [vmem:[%s5571_s20 + $0x3ec] ss:$16 sps:$4 sm:$0xff]  }
  0x54   : > { %3444 = vmatprep.subr.bf16.mxu0 %v4854_v20  ;;  %3772 = vmatprep.subr.bf16.mxu1 %v4857_v21  ;;  %v5724_v20 = vrot.slane %v727_v13, %v5574_v6  ;;  %v4936_v21 = vld [vmem:[%s5571_s20 + $0x3e0] ss:$16 sps:$4 sm:$0xff]   ;;  %v5017_v13 = vld [vmem:[%s5571_s20 + $0x588] ss:$16 sps:$4 sm:$0xff]  }
  0x55   : > { %3474 = vmatprep.mubr.bf16.mxu0 %v774_v22  ;;  %3802 = vmatprep.mubr.bf16.mxu1 %v774_v22  ;;  %v4939_v22 = vld [vmem:[%s5571_s20 + $0x3e8] ss:$16 sps:$4 sm:$0xff]  }
  0x57   : > { %3445 = vmatpush1.bf16.msra.mxu0 %v4852_v23  ;;  %3773 = vmatpush1.bf16.msra.mxu1 %v4855_v9  ;;  %v4947_v23 = vld [vmem:[%s5571_s20 + $0x40c] ss:$16 sps:$4 sm:$0xff]   ;;  %v743_v9 = vcombine.high %v5724_v20, %v5724_v20 }
  0x58   : > { %3446 = vmatprep.subr.bf16.mxu0 %v4860_v24  ;;  %3774 = vmatprep.subr.bf16.mxu1 %v4863_v25  ;;  %v4942_v24 = vld [vmem:[%s5571_s20 + $0x400] ss:$16 sps:$4 sm:$0xff]   ;;  %v4945_v25 = vld [vmem:[%s5571_s20 + $0x408] ss:$16 sps:$4 sm:$0xff]  }
  0x5b   : > { %3447 = vmatpush1.bf16.msra.mxu0 %v4858_v17  ;;  %3775 = vmatpush1.bf16.msra.mxu1 %v4861_v26  ;;  %v772_v17 = vcombine.high %v5657_v19, %v5657_v19  ;;  %v4950_v26 = vld [vmem:[%s5571_s20 + $0x424] ss:$16 sps:$4 sm:$0xff]  }
  0x5c   : > { %3448 = vmatprep.subr.bf16.mxu0 %v4866_v27  ;;  %3776 = vmatprep.subr.bf16.mxu1 %v4869_v28  ;;  %v4953_v27 = vld [vmem:[%s5571_s20 + $0x42c] ss:$16 sps:$4 sm:$0xff]   ;;  %v5739_v28 = vrot.slane %v743_v9, %v5574_v6  ;;  %v4956_v19 = vld [vmem:[%s5571_s20 + $0x444] ss:$16 sps:$4 sm:$0xff]  }
  0x5d   : > { %v5034_v9 = vld [vmem:[%s5571_s20 + $0x5e4] ss:$16 sps:$4 sm:$0xff]  }
  0x5f   : > { %3449 = vmatpush1.bf16.msra.mxu0 %v4864_v29  ;;  %3777 = vmatpush1.bf16.msra.mxu1 %v4867_v30  ;;  %v4948_v29 = vld [vmem:[%s5571_s20 + $0x420] ss:$16 sps:$4 sm:$0xff]   ;;  %v4951_v30 = vld [vmem:[%s5571_s20 + $0x428] ss:$16 sps:$4 sm:$0xff]  }
  0x60   : > { %3450 = vmatprep.subr.bf16.mxu0 %v4872_v31  ;;  %3778 = vmatprep.subr.bf16.mxu1 %v4875_v32  ;;  %v4959_v31 = vld [vmem:[%s5571_s20 + $0x44c] ss:$16 sps:$4 sm:$0xff]   ;;  %v4954_v32 = vld [vmem:[%s5571_s20 + $0x440] ss:$16 sps:$4 sm:$0xff]  }
  0x63   : > { %3451 = vmatpush1.bf16.msra.mxu0 %v4870_v33  ;;  %3779 = vmatpush1.bf16.msra.mxu1 %v4873_v34  ;;  %v4957_v33 = vld [vmem:[%s5571_s20 + $0x448] ss:$16 sps:$4 sm:$0xff]   ;;  %v4962_v34 = vld [vmem:[%s5571_s20 + $0x464] ss:$16 sps:$4 sm:$0xff]  }
  0x64   : > { %3452 = vmatprep.subr.bf16.mxu0 %v4878_v35  ;;  %3780 = vmatprep.subr.bf16.mxu1 %v4881_v36  ;;  %v4965_v35 = vld [vmem:[%s5571_s20 + $0x46c] ss:$16 sps:$4 sm:$0xff]   ;;  %v4960_v36 = vld [vmem:[%s5571_s20 + $0x460] ss:$16 sps:$4 sm:$0xff]  }
  0x67   : > { %3453 = vmatpush1.bf16.msra.mxu0 %v4876_v37  ;;  %3781 = vmatpush1.bf16.msra.mxu1 %v4879_v38  ;;  %v4963_v37 = vld [vmem:[%s5571_s20 + $0x468] ss:$16 sps:$4 sm:$0xff]   ;;  %v4968_v38 = vld [vmem:[%s5571_s20 + $0x484] ss:$16 sps:$4 sm:$0xff]  }
  0x68   : > { %3454 = vmatprep.subr.bf16.mxu0 %v4884_v39  ;;  %3782 = vmatprep.subr.bf16.mxu1 %v4887_v40  ;;  %v4971_v39 = vld [vmem:[%s5571_s20 + $0x48c] ss:$16 sps:$4 sm:$0xff]   ;;  %v4966_v40 = vld [vmem:[%s5571_s20 + $0x480] ss:$16 sps:$4 sm:$0xff]  }
  0x6b   : > { %3455 = vmatpush1.bf16.msra.mxu0 %v4882_v41  ;;  %3783 = vmatpush1.bf16.msra.mxu1 %v4885_v42  ;;  %v4969_v41 = vld [vmem:[%s5571_s20 + $0x488] ss:$16 sps:$4 sm:$0xff]   ;;  %v4974_v42 = vld [vmem:[%s5571_s20 + $0x4a4] ss:$16 sps:$4 sm:$0xff]  }
  0x6c   : > { %3456 = vmatprep.subr.bf16.mxu0 %v4890_v43  ;;  %3784 = vmatprep.subr.bf16.mxu1 %v4893_v44  ;;  %v4977_v43 = vld [vmem:[%s5571_s20 + $0x4ac] ss:$16 sps:$4 sm:$0xff]   ;;  %v4972_v44 = vld [vmem:[%s5571_s20 + $0x4a0] ss:$16 sps:$4 sm:$0xff]  }
  0x6f   : > { %3457 = vmatpush1.bf16.msra.mxu0 %v4888_v45  ;;  %3785 = vmatpush1.bf16.msra.mxu1 %v4891_v46  ;;  %v4975_v45 = vld [vmem:[%s5571_s20 + $0x4a8] ss:$16 sps:$4 sm:$0xff]   ;;  %v4980_v46 = vld [vmem:[%s5571_s20 + $0x4c4] ss:$16 sps:$4 sm:$0xff]  }
  0x70   : > { %3458 = vmatprep.subr.bf16.mxu0 %v4896_v47  ;;  %3786 = vmatprep.subr.bf16.mxu1 %v4899_v48  ;;  %v4983_v47 = vld [vmem:[%s5571_s20 + $0x4cc] ss:$16 sps:$4 sm:$0xff]   ;;  %v4978_v48 = vld [vmem:[%s5571_s20 + $0x4c0] ss:$16 sps:$4 sm:$0xff]  }
  0x73   : > { %3459 = vmatpush1.bf16.msra.mxu0 %v4894_v49  ;;  %3787 = vmatpush1.bf16.msra.mxu1 %v4897_v50  ;;  %v4981_v49 = vld [vmem:[%s5571_s20 + $0x4c8] ss:$16 sps:$4 sm:$0xff]   ;;  %v4986_v50 = vld [vmem:[%s5571_s20 + $0x4e4] ss:$16 sps:$4 sm:$0xff]  }
  0x74   : > { %3460 = vmatprep.subr.bf16.mxu0 %v4902_v51  ;;  %3788 = vmatprep.subr.bf16.mxu1 %v4905_v52  ;;  %v4989_v51 = vld [vmem:[%s5571_s20 + $0x4ec] ss:$16 sps:$4 sm:$0xff]   ;;  %v4984_v52 = vld [vmem:[%s5571_s20 + $0x4e0] ss:$16 sps:$4 sm:$0xff]  }
  0x77   : > { %3461 = vmatpush1.bf16.msra.mxu0 %v4900_v53  ;;  %3789 = vmatpush1.bf16.msra.mxu1 %v4903_v54  ;;  %v4987_v53 = vld [vmem:[%s5571_s20 + $0x4e8] ss:$16 sps:$4 sm:$0xff]   ;;  %v4992_v54 = vld [vmem:[%s5571_s20 + $0x504] ss:$16 sps:$4 sm:$0xff]  }
  0x78   : > { %3462 = vmatprep.subr.bf16.mxu0 %v4908_v55  ;;  %3790 = vmatprep.subr.bf16.mxu1 %v4911_v56  ;;  %v4995_v55 = vld [vmem:[%s5571_s20 + $0x50c] ss:$16 sps:$4 sm:$0xff]   ;;  %v4990_v56 = vld [vmem:[%s5571_s20 + $0x500] ss:$16 sps:$4 sm:$0xff]  }
  0x7b   : > { %3463 = vmatpush1.bf16.msra.mxu0 %v4906_v57  ;;  %3791 = vmatpush1.bf16.msra.mxu1 %v4909_v58  ;;  %v4993_v57 = vld [vmem:[%s5571_s20 + $0x508] ss:$16 sps:$4 sm:$0xff]   ;;  %v4998_v58 = vld [vmem:[%s5571_s20 + $0x524] ss:$16 sps:$4 sm:$0xff]  }
  0x7c   : > { %3464 = vmatprep.subr.bf16.mxu0 %v4914_v59  ;;  %3792 = vmatprep.subr.bf16.mxu1 %v4917_v60  ;;  %v5001_v59 = vld [vmem:[%s5571_s20 + $0x52c] ss:$16 sps:$4 sm:$0xff]   ;;  %v4996_v60 = vld [vmem:[%s5571_s20 + $0x520] ss:$16 sps:$4 sm:$0xff]  }
  0x7f   : > { %3465 = vmatpush1.bf16.msra.mxu0 %v4912_v61  ;;  %3793 = vmatpush1.bf16.msra.mxu1 %v4915_v62  ;;  %v4999_v61 = vld [vmem:[%s5571_s20 + $0x528] ss:$16 sps:$4 sm:$0xff]   ;;  %v5004_v62 = vld [vmem:[%s5571_s20 + $0x544] ss:$16 sps:$4 sm:$0xff]  }
  0x80   : > { %3466 = vmatprep.subr.bf16.mxu0 %v4920_v63  ;;  %3794 = vmatprep.subr.bf16.mxu1 %v4923_v0  ;;  %v5007_v63 = vld [vmem:[%s5571_s20 + $0x54c] ss:$16 sps:$4 sm:$0xff]   ;;  %v5002_v0 = vld [vmem:[%s5571_s20 + $0x540] ss:$16 sps:$4 sm:$0xff]  }
  0x83   : > { %3467 = vmatpush1.bf16.msra.mxu0 %v4918_v1  ;;  %3795 = vmatpush1.bf16.msra.mxu1 %v4921_v2  ;;  %v5005_v1 = vld [vmem:[%s5571_s20 + $0x548] ss:$16 sps:$4 sm:$0xff]   ;;  %v5010_v2 = vld [vmem:[%s5571_s20 + $0x564] ss:$16 sps:$4 sm:$0xff]  }
  0x84   : > { %3468 = vmatprep.subr.bf16.mxu0 %v4926_v4  ;;  %3796 = vmatprep.subr.bf16.mxu1 %v4929_v7  ;;  %v5013_v4 = vld [vmem:[%s5571_s20 + $0x56c] ss:$16 sps:$4 sm:$0xff]   ;;  %v5008_v7 = vld [vmem:[%s5571_s20 + $0x560] ss:$16 sps:$4 sm:$0xff]  }
  0x87   : > { %3469 = vmatpush1.bf16.msra.mxu0 %v4924_v8  ;;  %3797 = vmatpush1.bf16.msra.mxu1 %v4927_v10  ;;  %v5011_v8 = vld [vmem:[%s5571_s20 + $0x568] ss:$16 sps:$4 sm:$0xff]   ;;  %v5016_v10 = vld [vmem:[%s5571_s20 + $0x584] ss:$16 sps:$4 sm:$0xff]  }
  0x88   : > { %3470 = vmatprep.subr.bf16.mxu0 %v4932_v11  ;;  %3798 = vmatprep.subr.bf16.mxu1 %v4935_v12  ;;  %v5019_v11 = vld [vmem:[%s5571_s20 + $0x58c] ss:$16 sps:$4 sm:$0xff]   ;;  %v5014_v12 = vld [vmem:[%s5571_s20 + $0x580] ss:$16 sps:$4 sm:$0xff]  }
  0x8b   : > { %3471 = vmatpush1.bf16.msra.mxu0 %v4930_v14  ;;  %3799 = vmatpush1.bf16.msra.mxu1 %v4933_v15  ;;  %v5022_v14 = vld [vmem:[%s5571_s20 + $0x5a4] ss:$16 sps:$4 sm:$0xff]   ;;  %v5025_v15 = vld [vmem:[%s5571_s20 + $0x5ac] ss:$16 sps:$4 sm:$0xff]  }
  0x8c   : > { %3472 = vmatprep.subr.bf16.mxu0 %v4938_v16  ;;  %3800 = vmatprep.subr.bf16.mxu1 %v4941_v18  ;;  %v5020_v16 = vld [vmem:[%s5571_s20 + $0x5a0] ss:$16 sps:$4 sm:$0xff]   ;;  %v5023_v18 = vld [vmem:[%s5571_s20 + $0x5a8] ss:$16 sps:$4 sm:$0xff]  }
  0x8f   : > { %3473 = vmatpush1.bf16.msra.mxu0 %v4936_v21  ;;  %3801 = vmatpush1.bf16.msra.mxu1 %v4939_v22  ;;  %v5028_v21 = vld [vmem:[%s5571_s20 + $0x5c4] ss:$16 sps:$4 sm:$0xff]   ;;  %v5031_v22 = vld [vmem:[%s5571_s20 + $0x5cc] ss:$16 sps:$4 sm:$0xff]  }
  0x90   : > { %3483 = vmatprep.subr.bf16.mxu0 %v4944_v5  ;;  %3811 = vmatprep.subr.bf16.mxu1 %v4947_v23  ;;  %v5026_v5 = vld [vmem:[%s5571_s20 + $0x5c0] ss:$16 sps:$4 sm:$0xff]   ;;  %v5029_v23 = vld [vmem:[%s5571_s20 + $0x5c8] ss:$16 sps:$4 sm:$0xff]  }
  0x92   : > { %3475 = vmatmul.mubr.bf16.vlgmr.msra.gmra.mrb[0].mxu0 %v772_v17  ;;  %3803 = vmatmul.mubr.bf16.vlgmr.msra.gmra.mrb[0].mxu1 %v772_v17  ;;  %v5035_v17 = vld [vmem:[%s5571_s20 + $0x5e8] ss:$16 sps:$4 sm:$0xff]  }
  0x93   : > { %3484 = vmatpush1.bf16.msra.mxu0 %v4942_v24  ;;  %3812 = vmatpush1.bf16.msra.mxu1 %v4945_v25  ;;  %v5037_v24 = vld [vmem:[%s5571_s20 + $0x5ec] ss:$16 sps:$4 sm:$0xff]   ;;  %v5032_v25 = vld [vmem:[%s5571_s20 + $0x5e0] ss:$16 sps:$4 sm:$0xff]  }
  0x94   : > { %3485 = vmatprep.subr.bf16.mxu0 %v4950_v26  ;;  %3813 = vmatprep.subr.bf16.mxu1 %v4953_v27  ;;  %v5041_v26 = vld [vmem:[%s5571_s20 + $0x604] ss:$16 sps:$4 sm:$0xff]   ;;  %v5044_v27 = vld [vmem:[%s5571_s20 + $0x60c] ss:$16 sps:$4 sm:$0xff]  }
  0x95   : > { %3515 = vmatprep.mubr.bf16.mxu0 %v5739_v28  ;;  %3843 = vmatprep.mubr.bf16.mxu1 %v5739_v28 }
  0x97   : > { %3486 = vmatpush1.bf16.msra.mxu0 %v4948_v29  ;;  %3814 = vmatpush1.bf16.msra.mxu1 %v4951_v30  ;;  %v5039_v29 = vld [vmem:[%s5571_s20 + $0x600] ss:$16 sps:$4 sm:$0xff]   ;;  %v5042_v30 = vld [vmem:[%s5571_s20 + $0x608] ss:$16 sps:$4 sm:$0xff]  }
  0x98   : > { %3487 = vmatprep.subr.bf16.mxu0 %v4956_v19  ;;  %3815 = vmatprep.subr.bf16.mxu1 %v4959_v31  ;;  %v5807_v19 = vrot.slane %v5724_v20, %v5574_v6  ;;  %v5047_v31 = vld [vmem:[%s5571_s20 + $0x624] ss:$16 sps:$4 sm:$0xff]   ;;  %v5048_v20 = vld [vmem:[%s5571_s20 + $0x628] ss:$16 sps:$4 sm:$0xff]  }
  0x9b   : > { %3488 = vmatpush1.bf16.msra.mxu0 %v4954_v32  ;;  %3816 = vmatpush1.bf16.msra.mxu1 %v4957_v33  ;;  %v5050_v32 = vld [vmem:[%s5571_s20 + $0x62c] ss:$16 sps:$4 sm:$0xff]   ;;  %v775_v33 = vcombine.high %v5739_v28, %v5739_v28  ;;  %v5051_v28 = vld [vmem:[%s5571_s20 + $0x640] ss:$16 sps:$4 sm:$0xff]  }
  0x9c   : > { %3489 = vmatprep.subr.bf16.mxu0 %v4962_v34  ;;  %3817 = vmatprep.subr.bf16.mxu1 %v4965_v35  ;;  %v5045_v34 = vld [vmem:[%s5571_s20 + $0x620] ss:$16 sps:$4 sm:$0xff]   ;;  %v5053_v35 = vld [vmem:[%s5571_s20 + $0x644] ss:$16 sps:$4 sm:$0xff]  }
  0x9f   : > { %3490 = vmatpush1.bf16.msra.mxu0 %v4960_v36  ;;  %3818 = vmatpush1.bf16.msra.mxu1 %v4963_v37  ;;  %v5056_v36 = vld [vmem:[%s5571_s20 + $0x64c] ss:$16 sps:$4 sm:$0xff]   ;;  %v5054_v37 = vld [vmem:[%s5571_s20 + $0x648] ss:$16 sps:$4 sm:$0xff]  }
  0xa0   : > { %3491 = vmatprep.subr.bf16.mxu0 %v4968_v38  ;;  %3819 = vmatprep.subr.bf16.mxu1 %v4971_v39  ;;  %v5059_v38 = vld [vmem:[%s5571_s20 + $0x664] ss:$16 sps:$4 sm:$0xff]   ;;  %v5062_v39 = vld [vmem:[%s5571_s20 + $0x66c] ss:$16 sps:$4 sm:$0xff]  }
  0xa3   : > { %3492 = vmatpush1.bf16.msra.mxu0 %v4966_v40  ;;  %3820 = vmatpush1.bf16.msra.mxu1 %v4969_v41  ;;  %v5057_v40 = vld [vmem:[%s5571_s20 + $0x660] ss:$16 sps:$4 sm:$0xff]   ;;  %v5060_v41 = vld [vmem:[%s5571_s20 + $0x668] ss:$16 sps:$4 sm:$0xff]  }
  0xa4   : > { %3493 = vmatprep.subr.bf16.mxu0 %v4974_v42  ;;  %3821 = vmatprep.subr.bf16.mxu1 %v4977_v43  ;;  %v5065_v42 = vld [vmem:[%s5571_s20 + $0x684] ss:$16 sps:$4 sm:$0xff]   ;;  %v5068_v43 = vld [vmem:[%s5571_s20 + $0x68c] ss:$16 sps:$4 sm:$0xff]  }
  0xa7   : > { %3494 = vmatpush1.bf16.msra.mxu0 %v4972_v44  ;;  %3822 = vmatpush1.bf16.msra.mxu1 %v4975_v45  ;;  %v5063_v44 = vld [vmem:[%s5571_s20 + $0x680] ss:$16 sps:$4 sm:$0xff]   ;;  %v5066_v45 = vld [vmem:[%s5571_s20 + $0x688] ss:$16 sps:$4 sm:$0xff]  }
  0xa8   : > { %3495 = vmatprep.subr.bf16.mxu0 %v4980_v46  ;;  %3823 = vmatprep.subr.bf16.mxu1 %v4983_v47  ;;  %v5071_v46 = vld [vmem:[%s5571_s20 + $0x6a4] ss:$16 sps:$4 sm:$0xff]   ;;  %v5074_v47 = vld [vmem:[%s5571_s20 + $0x6ac] ss:$16 sps:$4 sm:$0xff]  }
  0xab   : > { %3496 = vmatpush1.bf16.msra.mxu0 %v4978_v48  ;;  %3824 = vmatpush1.bf16.msra.mxu1 %v4981_v49  ;;  %v5069_v48 = vld [vmem:[%s5571_s20 + $0x6a0] ss:$16 sps:$4 sm:$0xff]   ;;  %v5072_v49 = vld [vmem:[%s5571_s20 + $0x6a8] ss:$16 sps:$4 sm:$0xff]  }
  0xac   : > { %3497 = vmatprep.subr.bf16.mxu0 %v4986_v50  ;;  %3825 = vmatprep.subr.bf16.mxu1 %v4989_v51  ;;  %v5077_v50 = vld [vmem:[%s5571_s20 + $0x6c4] ss:$16 sps:$4 sm:$0xff]   ;;  %v5080_v51 = vld [vmem:[%s5571_s20 + $0x6cc] ss:$16 sps:$4 sm:$0xff]  }
  0xaf   : > { %3498 = vmatpush1.bf16.msra.mxu0 %v4984_v52  ;;  %3826 = vmatpush1.bf16.msra.mxu1 %v4987_v53  ;;  %v5075_v52 = vld [vmem:[%s5571_s20 + $0x6c0] ss:$16 sps:$4 sm:$0xff]   ;;  %v5078_v53 = vld [vmem:[%s5571_s20 + $0x6c8] ss:$16 sps:$4 sm:$0xff]  }
  0xb0   : > { %3499 = vmatprep.subr.bf16.mxu0 %v4992_v54  ;;  %3827 = vmatprep.subr.bf16.mxu1 %v4995_v55  ;;  %v5083_v54 = vld [vmem:[%s5571_s20 + $0x6e4] ss:$16 sps:$4 sm:$0xff]   ;;  %v5086_v55 = vld [vmem:[%s5571_s20 + $0x6ec] ss:$16 sps:$4 sm:$0xff]  }
  0xb3   : > { %3500 = vmatpush1.bf16.msra.mxu0 %v4990_v56  ;;  %3828 = vmatpush1.bf16.msra.mxu1 %v4993_v57  ;;  %v5081_v56 = vld [vmem:[%s5571_s20 + $0x6e0] ss:$16 sps:$4 sm:$0xff]   ;;  %v5084_v57 = vld [vmem:[%s5571_s20 + $0x6e8] ss:$16 sps:$4 sm:$0xff]  }
  0xb4   : > { %3501 = vmatprep.subr.bf16.mxu0 %v4998_v58  ;;  %3829 = vmatprep.subr.bf16.mxu1 %v5001_v59  ;;  %v5089_v58 = vld [vmem:[%s5571_s20 + $0x704] ss:$16 sps:$4 sm:$0xff]   ;;  %v5092_v59 = vld [vmem:[%s5571_s20 + $0x70c] ss:$16 sps:$4 sm:$0xff]  }
  0xb7   : > { %3502 = vmatpush1.bf16.msra.mxu0 %v4996_v60  ;;  %3830 = vmatpush1.bf16.msra.mxu1 %v4999_v61  ;;  %v5087_v60 = vld [vmem:[%s5571_s20 + $0x700] ss:$16 sps:$4 sm:$0xff]   ;;  %v5090_v61 = vld [vmem:[%s5571_s20 + $0x708] ss:$16 sps:$4 sm:$0xff]  }
  0xb8   : > { %3503 = vmatprep.subr.bf16.mxu0 %v5004_v62  ;;  %3831 = vmatprep.subr.bf16.mxu1 %v5007_v63  ;;  %v5095_v62 = vld [vmem:[%s5571_s20 + $0x724] ss:$16 sps:$4 sm:$0xff]   ;;  %v5098_v63 = vld [vmem:[%s5571_s20 + $0x72c] ss:$16 sps:$4 sm:$0xff]  }
  0xbb   : > { %3504 = vmatpush1.bf16.msra.mxu0 %v5002_v0  ;;  %3832 = vmatpush1.bf16.msra.mxu1 %v5005_v1  ;;  %v5093_v0 = vld [vmem:[%s5571_s20 + $0x720] ss:$16 sps:$4 sm:$0xff]   ;;  %v5096_v1 = vld [vmem:[%s5571_s20 + $0x728] ss:$16 sps:$4 sm:$0xff]  }
  0xbc   : > { %3505 = vmatprep.subr.bf16.mxu0 %v5010_v2  ;;  %3833 = vmatprep.subr.bf16.mxu1 %v5013_v4  ;;  %v5101_v2 = vld [vmem:[%s5571_s20 + $0x744] ss:$16 sps:$4 sm:$0xff]   ;;  %v5104_v4 = vld [vmem:[%s5571_s20 + $0x74c] ss:$16 sps:$4 sm:$0xff]  }
  0xbf   : > { %3506 = vmatpush1.bf16.msra.mxu0 %v5008_v7  ;;  %3834 = vmatpush1.bf16.msra.mxu1 %v5011_v8  ;;  %v5099_v7 = vld [vmem:[%s5571_s20 + $0x740] ss:$16 sps:$4 sm:$0xff]   ;;  %v5102_v8 = vld [vmem:[%s5571_s20 + $0x748] ss:$16 sps:$4 sm:$0xff]  }
  0xc0   : > { %3507 = vmatprep.subr.bf16.mxu0 %v5016_v10  ;;  %3835 = vmatprep.subr.bf16.mxu1 %v5019_v11  ;;  %v5107_v10 = vld [vmem:[%s5571_s20 + $0x764] ss:$16 sps:$4 sm:$0xff]   ;;  %v5110_v11 = vld [vmem:[%s5571_s20 + $0x76c] ss:$16 sps:$4 sm:$0xff]  }
  0xc3   : > { %3508 = vmatpush1.bf16.msra.mxu0 %v5014_v12  ;;  %3836 = vmatpush1.bf16.msra.mxu1 %v5017_v13  ;;  %v5105_v12 = vld [vmem:[%s5571_s20 + $0x760] ss:$16 sps:$4 sm:$0xff]   ;;  %v5108_v13 = vld [vmem:[%s5571_s20 + $0x768] ss:$16 sps:$4 sm:$0xff]  }
  0xc4   : > { %3509 = vmatprep.subr.bf16.mxu0 %v5022_v14  ;;  %3837 = vmatprep.subr.bf16.mxu1 %v5025_v15  ;;  %v5113_v14 = vld [vmem:[%s5571_s20 + $0x784] ss:$16 sps:$4 sm:$0xff]   ;;  %v5116_v15 = vld [vmem:[%s5571_s20 + $0x78c] ss:$16 sps:$4 sm:$0xff]  }
  0xc7   : > { %3510 = vmatpush1.bf16.msra.mxu0 %v5020_v16  ;;  %3838 = vmatpush1.bf16.msra.mxu1 %v5023_v18  ;;  %v5111_v16 = vld [vmem:[%s5571_s20 + $0x780] ss:$16 sps:$4 sm:$0xff]   ;;  %v5114_v18 = vld [vmem:[%s5571_s20 + $0x788] ss:$16 sps:$4 sm:$0xff]  }
  0xc8   : > { %3511 = vmatprep.subr.bf16.mxu0 %v5028_v21  ;;  %3839 = vmatprep.subr.bf16.mxu1 %v5031_v22  ;;  %v5119_v21 = vld [vmem:[%s5571_s20 + $0x7a4] ss:$16 sps:$4 sm:$0xff]   ;;  %v5122_v22 = vld [vmem:[%s5571_s20 + $0x7ac] ss:$16 sps:$4 sm:$0xff]  }
  0xcb   : > { %3512 = vmatpush1.bf16.msra.mxu0 %v5026_v5  ;;  %3840 = vmatpush1.bf16.msra.mxu1 %v5029_v23  ;;  %v5117_v5 = vld [vmem:[%s5571_s20 + $0x7a0] ss:$16 sps:$4 sm:$0xff]   ;;  %v5120_v23 = vld [vmem:[%s5571_s20 + $0x7a8] ss:$16 sps:$4 sm:$0xff]  }
  0xcc   : > { %3513 = vmatprep.subr.bf16.mxu0 %v5034_v9  ;;  %3841 = vmatprep.subr.bf16.mxu1 %v5037_v24  ;;  %v5125_v9 = vld [vmem:[%s5571_s20 + $0x7c4] ss:$16 sps:$4 sm:$0xff]   ;;  %v5128_v24 = vld [vmem:[%s5571_s20 + $0x7cc] ss:$16 sps:$4 sm:$0xff]  }
  0xcf   : > { %3514 = vmatpush1.bf16.msra.mxu0 %v5032_v25  ;;  %3842 = vmatpush1.bf16.msra.mxu1 %v5035_v17  ;;  %v5123_v25 = vld [vmem:[%s5571_s20 + $0x7c0] ss:$16 sps:$4 sm:$0xff]   ;;  %v5871_v17 = vld [vmem:[%s6199_s0 + $0x8] sm:$0xff] }
  0xd0   : > { %3524 = vmatprep.subr.bf16.mxu0 %v5041_v26  ;;  %3852 = vmatprep.subr.bf16.mxu1 %v5044_v27  ;;  %v5126_v26 = vld [vmem:[%s5571_s20 + $0x7c8] ss:$16 sps:$4 sm:$0xff]   ;;  %v5131_v27 = vld [vmem:[%s5571_s20 + $0x7e4] ss:$16 sps:$4 sm:$0xff]  }
  0xd2   : > { %3516 = vmatmul.mubr.bf16.vlgmr.msra.gmra.mrb[0].mxu0 %v5807_v19  ;;  %3844 = vmatmul.mubr.bf16.vlgmr.msra.gmra.mrb[0].mxu1 %v5807_v19 }
  0xd3   : > { %3525 = vmatpush1.bf16.msra.mxu0 %v5039_v29  ;;  %3853 = vmatpush1.bf16.msra.mxu1 %v5042_v30  ;;  %v5134_v29 = vld [vmem:[%s5571_s20 + $0x7ec] ss:$16 sps:$4 sm:$0xff]   ;;  %v5878_v30 = vrot.slane %v5871_v17, %v5574_v6 }
  0xd4   : > { %3526 = vmatprep.subr.bf16.mxu0 %v5047_v31  ;;  %3854 = vmatprep.subr.bf16.mxu1 %v5050_v32  ;;  %v5129_v31 = vld [vmem:[%s5571_s20 + $0x7e0] ss:$16 sps:$4 sm:$0xff]   ;;  %v5132_v32 = vld [vmem:[%s5571_s20 + $0x7e8] ss:$16 sps:$4 sm:$0xff]  }
  0xd5   : > { %3556 = vmatprep.mubr.bf16.mxu0 %v775_v33  ;;  %3884 = vmatprep.mubr.bf16.mxu1 %v775_v33  ;;  %v5137_v33 = vld [vmem:[%s5571_s20 + $0x804] ss:$16 sps:$4 sm:$0xff]  }
  0xd7   : > { %3527 = vmatpush1.bf16.msra.mxu0 %v5045_v34  ;;  %3855 = vmatpush1.bf16.msra.mxu1 %v5048_v20  ;;  %v5140_v34 = vld [vmem:[%s5571_s20 + $0x80c] ss:$16 sps:$4 sm:$0xff]   ;;  %v791_v20 = vcombine.high %v5878_v30, %v5878_v30 }
  0xd8   : > { %3528 = vmatprep.subr.bf16.mxu0 %v5053_v35  ;;  %3856 = vmatprep.subr.bf16.mxu1 %v5056_v36  ;;  %v5135_v35 = vld [vmem:[%s5571_s20 + $0x800] ss:$16 sps:$4 sm:$0xff]   ;;  %v773_v36 = vcombine.high %v5807_v19, %v5807_v19 }
  0xd9   : > { %v5141_v19 = vld [vmem:[%s5571_s20 + $0x820] ss:$16 sps:$4 sm:$0xff]  }
  0xdb   : > { %3529 = vmatpush1.bf16.msra.mxu0 %v5051_v28  ;;  %3857 = vmatpush1.bf16.msra.mxu1 %v5054_v37  ;;  %v5138_v28 = vld [vmem:[%s5571_s20 + $0x808] ss:$16 sps:$4 sm:$0xff]   ;;  %v5143_v37 = vld [vmem:[%s5571_s20 + $0x824] ss:$16 sps:$4 sm:$0xff]  }
  0xdc   : > { %3530 = vmatprep.subr.bf16.mxu0 %v5059_v38  ;;  %3858 = vmatprep.subr.bf16.mxu1 %v5062_v39  ;;  %v5146_v38 = vld [vmem:[%s5571_s20 + $0x82c] ss:$16 sps:$4 sm:$0xff]   ;;  %v5893_v39 = vrot.slane %v791_v20, %v5574_v6  ;;  %v5222_v20 = vld [vmem:[%s5571_s20 + $0x9c8] ss:$16 sps:$4 sm:$0xff]  }
  0xdf   : > { %3531 = vmatpush1.bf16.msra.mxu0 %v5057_v40  ;;  %3859 = vmatpush1.bf16.msra.mxu1 %v5060_v41  ;;  %v5144_v40 = vld [vmem:[%s5571_s20 + $0x828] ss:$16 sps:$4 sm:$0xff]   ;;  %v5149_v41 = vld [vmem:[%s5571_s20 + $0x844] ss:$16 sps:$4 sm:$0xff]  }
  0xe0   : > { %3532 = vmatprep.subr.bf16.mxu0 %v5065_v42  ;;  %3860 = vmatprep.subr.bf16.mxu1 %v5068_v43  ;;  %v5152_v42 = vld [vmem:[%s5571_s20 + $0x84c] ss:$16 sps:$4 sm:$0xff]   ;;  %v5147_v43 = vld [vmem:[%s5571_s20 + $0x840] ss:$16 sps:$4 sm:$0xff]  }
  0xe3   : > { %3533 = vmatpush1.bf16.msra.mxu0 %v5063_v44  ;;  %3861 = vmatpush1.bf16.msra.mxu1 %v5066_v45  ;;  %v5150_v44 = vld [vmem:[%s5571_s20 + $0x848] ss:$16 sps:$4 sm:$0xff]   ;;  %v5155_v45 = vld [vmem:[%s5571_s20 + $0x864] ss:$16 sps:$4 sm:$0xff]  }
  0xe4   : > { %3534 = vmatprep.subr.bf16.mxu0 %v5071_v46  ;;  %3862 = vmatprep.subr.bf16.mxu1 %v5074_v47  ;;  %v5158_v46 = vld [vmem:[%s5571_s20 + $0x86c] ss:$16 sps:$4 sm:$0xff]   ;;  %v5153_v47 = vld [vmem:[%s5571_s20 + $0x860] ss:$16 sps:$4 sm:$0xff]  }
  0xe7   : > { %3535 = vmatpush1.bf16.msra.mxu0 %v5069_v48  ;;  %3863 = vmatpush1.bf16.msra.mxu1 %v5072_v49  ;;  %v5156_v48 = vld [vmem:[%s5571_s20 + $0x868] ss:$16 sps:$4 sm:$0xff]   ;;  %v5161_v49 = vld [vmem:[%s5571_s20 + $0x884] ss:$16 sps:$4 sm:$0xff]  }
  0xe8   : > { %3536 = vmatprep.subr.bf16.mxu0 %v5077_v50  ;;  %3864 = vmatprep.subr.bf16.mxu1 %v5080_v51  ;;  %v5164_v50 = vld [vmem:[%s5571_s20 + $0x88c] ss:$16 sps:$4 sm:$0xff]   ;;  %v5159_v51 = vld [vmem:[%s5571_s20 + $0x880] ss:$16 sps:$4 sm:$0xff]  }
  0xeb   : > { %3537 = vmatpush1.bf16.msra.mxu0 %v5075_v52  ;;  %3865 = vmatpush1.bf16.msra.mxu1 %v5078_v53  ;;  %v5162_v52 = vld [vmem:[%s5571_s20 + $0x888] ss:$16 sps:$4 sm:$0xff]   ;;  %v5167_v53 = vld [vmem:[%s5571_s20 + $0x8a4] ss:$16 sps:$4 sm:$0xff]  }
  0xec   : > { %3538 = vmatprep.subr.bf16.mxu0 %v5083_v54  ;;  %3866 = vmatprep.subr.bf16.mxu1 %v5086_v55  ;;  %v5170_v54 = vld [vmem:[%s5571_s20 + $0x8ac] ss:$16 sps:$4 sm:$0xff]   ;;  %v5165_v55 = vld [vmem:[%s5571_s20 + $0x8a0] ss:$16 sps:$4 sm:$0xff]  }
  0xef   : > { %3539 = vmatpush1.bf16.msra.mxu0 %v5081_v56  ;;  %3867 = vmatpush1.bf16.msra.mxu1 %v5084_v57  ;;  %v5168_v56 = vld [vmem:[%s5571_s20 + $0x8a8] ss:$16 sps:$4 sm:$0xff]   ;;  %v5173_v57 = vld [vmem:[%s5571_s20 + $0x8c4] ss:$16 sps:$4 sm:$0xff]  }
  0xf0   : > { %3540 = vmatprep.subr.bf16.mxu0 %v5089_v58  ;;  %3868 = vmatprep.subr.bf16.mxu1 %v5092_v59  ;;  %v5176_v58 = vld [vmem:[%s5571_s20 + $0x8cc] ss:$16 sps:$4 sm:$0xff]   ;;  %v5171_v59 = vld [vmem:[%s5571_s20 + $0x8c0] ss:$16 sps:$4 sm:$0xff]  }
  0xf3   : > { %3541 = vmatpush1.bf16.msra.mxu0 %v5087_v60  ;;  %3869 = vmatpush1.bf16.msra.mxu1 %v5090_v61  ;;  %v5174_v60 = vld [vmem:[%s5571_s20 + $0x8c8] ss:$16 sps:$4 sm:$0xff]   ;;  %v5179_v61 = vld [vmem:[%s5571_s20 + $0x8e4] ss:$16 sps:$4 sm:$0xff]  }
  0xf4   : > { %3542 = vmatprep.subr.bf16.mxu0 %v5095_v62  ;;  %3870 = vmatprep.subr.bf16.mxu1 %v5098_v63  ;;  %v5182_v62 = vld [vmem:[%s5571_s20 + $0x8ec] ss:$16 sps:$4 sm:$0xff]   ;;  %v5177_v63 = vld [vmem:[%s5571_s20 + $0x8e0] ss:$16 sps:$4 sm:$0xff]  }
  0xf7   : > { %3543 = vmatpush1.bf16.msra.mxu0 %v5093_v0  ;;  %3871 = vmatpush1.bf16.msra.mxu1 %v5096_v1  ;;  %v5180_v0 = vld [vmem:[%s5571_s20 + $0x8e8] ss:$16 sps:$4 sm:$0xff]   ;;  %v5185_v1 = vld [vmem:[%s5571_s20 + $0x904] ss:$16 sps:$4 sm:$0xff]  }
  0xf8   : > { %3544 = vmatprep.subr.bf16.mxu0 %v5101_v2  ;;  %3872 = vmatprep.subr.bf16.mxu1 %v5104_v4  ;;  %v5188_v2 = vld [vmem:[%s5571_s20 + $0x90c] ss:$16 sps:$4 sm:$0xff]   ;;  %v5183_v4 = vld [vmem:[%s5571_s20 + $0x900] ss:$16 sps:$4 sm:$0xff]  }
  0xfb   : > { %3545 = vmatpush1.bf16.msra.mxu0 %v5099_v7  ;;  %3873 = vmatpush1.bf16.msra.mxu1 %v5102_v8  ;;  %v5186_v7 = vld [vmem:[%s5571_s20 + $0x908] ss:$16 sps:$4 sm:$0xff]   ;;  %v5191_v8 = vld [vmem:[%s5571_s20 + $0x924] ss:$16 sps:$4 sm:$0xff]  }
  0xfc   : > { %3546 = vmatprep.subr.bf16.mxu0 %v5107_v10  ;;  %3874 = vmatprep.subr.bf16.mxu1 %v5110_v11  ;;  %v5194_v10 = vld [vmem:[%s5571_s20 + $0x92c] ss:$16 sps:$4 sm:$0xff]   ;;  %v5189_v11 = vld [vmem:[%s5571_s20 + $0x920] ss:$16 sps:$4 sm:$0xff]  }
  0xff   : > { %3547 = vmatpush1.bf16.msra.mxu0 %v5105_v12  ;;  %3875 = vmatpush1.bf16.msra.mxu1 %v5108_v13  ;;  %v5192_v12 = vld [vmem:[%s5571_s20 + $0x928] ss:$16 sps:$4 sm:$0xff]   ;;  %v5197_v13 = vld [vmem:[%s5571_s20 + $0x944] ss:$16 sps:$4 sm:$0xff]  }
 0x100   : > { %3548 = vmatprep.subr.bf16.mxu0 %v5113_v14  ;;  %3876 = vmatprep.subr.bf16.mxu1 %v5116_v15  ;;  %v5200_v14 = vld [vmem:[%s5571_s20 + $0x94c] ss:$16 sps:$4 sm:$0xff]   ;;  %v5195_v15 = vld [vmem:[%s5571_s20 + $0x940] ss:$16 sps:$4 sm:$0xff]  }
 0x103   : > { %3549 = vmatpush1.bf16.msra.mxu0 %v5111_v16  ;;  %3877 = vmatpush1.bf16.msra.mxu1 %v5114_v18  ;;  %v5198_v16 = vld [vmem:[%s5571_s20 + $0x948] ss:$16 sps:$4 sm:$0xff]   ;;  %v5203_v18 = vld [vmem:[%s5571_s20 + $0x964] ss:$16 sps:$4 sm:$0xff]  }
 0x104   : > { %3550 = vmatprep.subr.bf16.mxu0 %v5119_v21  ;;  %3878 = vmatprep.subr.bf16.mxu1 %v5122_v22  ;;  %v5206_v21 = vld [vmem:[%s5571_s20 + $0x96c] ss:$16 sps:$4 sm:$0xff]   ;;  %v5201_v22 = vld [vmem:[%s5571_s20 + $0x960] ss:$16 sps:$4 sm:$0xff]  }
 0x107   : > { %3551 = vmatpush1.bf16.msra.mxu0 %v5117_v5  ;;  %3879 = vmatpush1.bf16.msra.mxu1 %v5120_v23  ;;  %v5204_v5 = vld [vmem:[%s5571_s20 + $0x968] ss:$16 sps:$4 sm:$0xff]   ;;  %v5209_v23 = vld [vmem:[%s5571_s20 + $0x984] ss:$16 sps:$4 sm:$0xff]  }
 0x108   : > { %3552 = vmatprep.subr.bf16.mxu0 %v5125_v9  ;;  %3880 = vmatprep.subr.bf16.mxu1 %v5128_v24  ;;  %v5212_v9 = vld [vmem:[%s5571_s20 + $0x98c] ss:$16 sps:$4 sm:$0xff]   ;;  %v5207_v24 = vld [vmem:[%s5571_s20 + $0x980] ss:$16 sps:$4 sm:$0xff]  }
 0x10b   : > { %3553 = vmatpush1.bf16.msra.mxu0 %v5123_v25  ;;  %3881 = vmatpush1.bf16.msra.mxu1 %v5126_v26  ;;  %v5210_v25 = vld [vmem:[%s5571_s20 + $0x988] ss:$16 sps:$4 sm:$0xff]   ;;  %v5215_v26 = vld [vmem:[%s5571_s20 + $0x9a4] ss:$16 sps:$4 sm:$0xff]  }
 0x10c   : > { %3554 = vmatprep.subr.bf16.mxu0 %v5131_v27  ;;  %3882 = vmatprep.subr.bf16.mxu1 %v5134_v29  ;;  %v5218_v27 = vld [vmem:[%s5571_s20 + $0x9ac] ss:$16 sps:$4 sm:$0xff]   ;;  %v5213_v29 = vld [vmem:[%s5571_s20 + $0x9a0] ss:$16 sps:$4 sm:$0xff]  }
 0x10f   : > { %3555 = vmatpush1.bf16.msra.mxu0 %v5129_v31  ;;  %3883 = vmatpush1.bf16.msra.mxu1 %v5132_v32  ;;  %v5216_v31 = vld [vmem:[%s5571_s20 + $0x9a8] ss:$16 sps:$4 sm:$0xff]   ;;  %v5221_v32 = vld [vmem:[%s5571_s20 + $0x9c4] ss:$16 sps:$4 sm:$0xff]  }
 0x110   : > { %3565 = vmatprep.subr.bf16.mxu0 %v5137_v33  ;;  %3893 = vmatprep.subr.bf16.mxu1 %v5140_v34  ;;  %v5224_v33 = vld [vmem:[%s5571_s20 + $0x9cc] ss:$16 sps:$4 sm:$0xff]   ;;  %v5219_v34 = vld [vmem:[%s5571_s20 + $0x9c0] ss:$16 sps:$4 sm:$0xff]  }
 0x112   : > { %3557 = vmatmul.mubr.bf16.vlgmr.msra.gmra.mrb[0].mxu0 %v773_v36  ;;  %3885 = vmatmul.mubr.bf16.vlgmr.msra.gmra.mrb[0].mxu1 %v773_v36  ;;  %v5230_v36 = vld [vmem:[%s5571_s20 + $0x9ec] ss:$16 sps:$4 sm:$0xff]  }
 0x113   : > { %3566 = vmatpush1.bf16.msra.mxu0 %v5135_v35  ;;  %3894 = vmatpush1.bf16.msra.mxu1 %v5138_v28  ;;  %v5227_v35 = vld [vmem:[%s5571_s20 + $0x9e4] ss:$16 sps:$4 sm:$0xff]   ;;  %v5225_v28 = vld [vmem:[%s5571_s20 + $0x9e0] ss:$16 sps:$4 sm:$0xff]  }
 0x114   : > { %3567 = vmatprep.subr.bf16.mxu0 %v5143_v37  ;;  %3895 = vmatprep.subr.bf16.mxu1 %v5146_v38  ;;  %v5228_v37 = vld [vmem:[%s5571_s20 + $0x9e8] ss:$16 sps:$4 sm:$0xff]   ;;  %v5233_v38 = vld [vmem:[%s5571_s20 + $0xa04] ss:$16 sps:$4 sm:$0xff]  }
 0x115   : > { %3597 = vmatprep.mubr.bf16.mxu0 %v5893_v39  ;;  %3925 = vmatprep.mubr.bf16.mxu1 %v5893_v39 }
 0x117   : > { %3568 = vmatpush1.bf16.msra.mxu0 %v5141_v19  ;;  %3896 = vmatpush1.bf16.msra.mxu1 %v5144_v40  ;;  %v5236_v19 = vld [vmem:[%s5571_s20 + $0xa0c] ss:$16 sps:$4 sm:$0xff]   ;;  %v5959_v40 = vrot.slane %v5878_v30, %v5574_v6  ;;  %v5237_v30 = vld [vmem:[%s5571_s20 + $0xa20] ss:$16 sps:$4 sm:$0xff]  }
 0x118   : > { %3569 = vmatprep.subr.bf16.mxu0 %v5149_v41  ;;  %3897 = vmatprep.subr.bf16.mxu1 %v5152_v42  ;;  %v5231_v41 = vld [vmem:[%s5571_s20 + $0xa00] ss:$16 sps:$4 sm:$0xff]   ;;  %v5234_v42 = vld [vmem:[%s5571_s20 + $0xa08] ss:$16 sps:$4 sm:$0xff]  }
 0x11b   : > { %3570 = vmatpush1.bf16.msra.mxu0 %v5147_v43  ;;  %3898 = vmatpush1.bf16.msra.mxu1 %v5150_v44  ;;  %v5239_v43 = vld [vmem:[%s5571_s20 + $0xa24] ss:$16 sps:$4 sm:$0xff]   ;;  %v5242_v44 = vld [vmem:[%s5571_s20 + $0xa2c] ss:$16 sps:$4 sm:$0xff]  }
 0x11c   : > { %3571 = vmatprep.subr.bf16.mxu0 %v5155_v45  ;;  %3899 = vmatprep.subr.bf16.mxu1 %v5158_v46  ;;  %v823_v45 = vcombine.high %v5893_v39, %v5893_v39  ;;  %v5240_v46 = vld [vmem:[%s5571_s20 + $0xa28] ss:$16 sps:$4 sm:$0xff]   ;;  %v5243_v39 = vld [vmem:[%s5571_s20 + $0xa40] ss:$16 sps:$4 sm:$0xff]  }
 0x11f   : > { %3572 = vmatpush1.bf16.msra.mxu0 %v5153_v47  ;;  %3900 = vmatpush1.bf16.msra.mxu1 %v5156_v48  ;;  %v5245_v47 = vld [vmem:[%s5571_s20 + $0xa44] ss:$16 sps:$4 sm:$0xff]   ;;  %v5248_v48 = vld [vmem:[%s5571_s20 + $0xa4c] ss:$16 sps:$4 sm:$0xff]  }
 0x120   : > { %3573 = vmatprep.subr.bf16.mxu0 %v5161_v49  ;;  %3901 = vmatprep.subr.bf16.mxu1 %v5164_v50  ;;  %v5246_v49 = vld [vmem:[%s5571_s20 + $0xa48] ss:$16 sps:$4 sm:$0xff]   ;;  %v5251_v50 = vld [vmem:[%s5571_s20 + $0xa64] ss:$16 sps:$4 sm:$0xff]  }
 0x123   : > { %3574 = vmatpush1.bf16.msra.mxu0 %v5159_v51  ;;  %3902 = vmatpush1.bf16.msra.mxu1 %v5162_v52  ;;  %v5254_v51 = vld [vmem:[%s5571_s20 + $0xa6c] ss:$16 sps:$4 sm:$0xff]   ;;  %v5249_v52 = vld [vmem:[%s5571_s20 + $0xa60] ss:$16 sps:$4 sm:$0xff]  }
 0x124   : > { %3575 = vmatprep.subr.bf16.mxu0 %v5167_v53  ;;  %3903 = vmatprep.subr.bf16.mxu1 %v5170_v54  ;;  %v5252_v53 = vld [vmem:[%s5571_s20 + $0xa68] ss:$16 sps:$4 sm:$0xff]   ;;  %v5257_v54 = vld [vmem:[%s5571_s20 + $0xa84] ss:$16 sps:$4 sm:$0xff]  }
 0x127   : > { %3576 = vmatpush1.bf16.msra.mxu0 %v5165_v55  ;;  %3904 = vmatpush1.bf16.msra.mxu1 %v5168_v56  ;;  %v5260_v55 = vld [vmem:[%s5571_s20 + $0xa8c] ss:$16 sps:$4 sm:$0xff]   ;;  %v5255_v56 = vld [vmem:[%s5571_s20 + $0xa80] ss:$16 sps:$4 sm:$0xff]  }
 0x128   : > { %3577 = vmatprep.subr.bf16.mxu0 %v5173_v57  ;;  %3905 = vmatprep.subr.bf16.mxu1 %v5176_v58  ;;  %v5258_v57 = vld [vmem:[%s5571_s20 + $0xa88] ss:$16 sps:$4 sm:$0xff]   ;;  %v5263_v58 = vld [vmem:[%s5571_s20 + $0xaa4] ss:$16 sps:$4 sm:$0xff]  }
 0x12b   : > { %3578 = vmatpush1.bf16.msra.mxu0 %v5171_v59  ;;  %3906 = vmatpush1.bf16.msra.mxu1 %v5174_v60  ;;  %v5266_v59 = vld [vmem:[%s5571_s20 + $0xaac] ss:$16 sps:$4 sm:$0xff]   ;;  %v5261_v60 = vld [vmem:[%s5571_s20 + $0xaa0] ss:$16 sps:$4 sm:$0xff]  }
 0x12c   : > { %3579 = vmatprep.subr.bf16.mxu0 %v5179_v61  ;;  %3907 = vmatprep.subr.bf16.mxu1 %v5182_v62  ;;  %v5264_v61 = vld [vmem:[%s5571_s20 + $0xaa8] ss:$16 sps:$4 sm:$0xff]   ;;  %v5269_v62 = vld [vmem:[%s5571_s20 + $0xac4] ss:$16 sps:$4 sm:$0xff]  }
 0x12f   : > { %3580 = vmatpush1.bf16.msra.mxu0 %v5177_v63  ;;  %3908 = vmatpush1.bf16.msra.mxu1 %v5180_v0  ;;  %v5272_v63 = vld [vmem:[%s5571_s20 + $0xacc] ss:$16 sps:$4 sm:$0xff]   ;;  %v5267_v0 = vld [vmem:[%s5571_s20 + $0xac0] ss:$16 sps:$4 sm:$0xff]  }
 0x130   : > { %3581 = vmatprep.subr.bf16.mxu0 %v5185_v1  ;;  %3909 = vmatprep.subr.bf16.mxu1 %v5188_v2  ;;  %v5270_v1 = vld [vmem:[%s5571_s20 + $0xac8] ss:$16 sps:$4 sm:$0xff]   ;;  %v5275_v2 = vld [vmem:[%s5571_s20 + $0xae4] ss:$16 sps:$4 sm:$0xff]  }
 0x133   : > { %3582 = vmatpush1.bf16.msra.mxu0 %v5183_v4  ;;  %3910 = vmatpush1.bf16.msra.mxu1 %v5186_v7  ;;  %v5278_v4 = vld [vmem:[%s5571_s20 + $0xaec] ss:$16 sps:$4 sm:$0xff]   ;;  %v5273_v7 = vld [vmem:[%s5571_s20 + $0xae0] ss:$16 sps:$4 sm:$0xff]  }
 0x134   : > { %3583 = vmatprep.subr.bf16.mxu0 %v5191_v8  ;;  %3911 = vmatprep.subr.bf16.mxu1 %v5194_v10  ;;  %v5276_v8 = vld [vmem:[%s5571_s20 + $0xae8] ss:$16 sps:$4 sm:$0xff]   ;;  %v5281_v10 = vld [vmem:[%s5571_s20 + $0xb04] ss:$16 sps:$4 sm:$0xff]  }
 0x137   : > { %3584 = vmatpush1.bf16.msra.mxu0 %v5189_v11  ;;  %3912 = vmatpush1.bf16.msra.mxu1 %v5192_v12  ;;  %v5284_v11 = vld [vmem:[%s5571_s20 + $0xb0c] ss:$16 sps:$4 sm:$0xff]   ;;  %v5279_v12 = vld [vmem:[%s5571_s20 + $0xb00] ss:$16 sps:$4 sm:$0xff]  }
 0x138   : > { %3585 = vmatprep.subr.bf16.mxu0 %v5197_v13  ;;  %3913 = vmatprep.subr.bf16.mxu1 %v5200_v14  ;;  %v5282_v13 = vld [vmem:[%s5571_s20 + $0xb08] ss:$16 sps:$4 sm:$0xff]   ;;  %v5287_v14 = vld [vmem:[%s5571_s20 + $0xb24] ss:$16 sps:$4 sm:$0xff]  }
 0x13b   : > { %3586 = vmatpush1.bf16.msra.mxu0 %v5195_v15  ;;  %3914 = vmatpush1.bf16.msra.mxu1 %v5198_v16  ;;  %v5290_v15 = vld [vmem:[%s5571_s20 + $0xb2c] ss:$16 sps:$4 sm:$0xff]   ;;  %v5285_v16 = vld [vmem:[%s5571_s20 + $0xb20] ss:$16 sps:$4 sm:$0xff]  }
 0x13c   : > { %3587 = vmatprep.subr.bf16.mxu0 %v5203_v18  ;;  %3915 = vmatprep.subr.bf16.mxu1 %v5206_v21  ;;  %v5288_v18 = vld [vmem:[%s5571_s20 + $0xb28] ss:$16 sps:$4 sm:$0xff]   ;;  %v5293_v21 = vld [vmem:[%s5571_s20 + $0xb44] ss:$16 sps:$4 sm:$0xff]  }
 0x13f   : > { %3588 = vmatpush1.bf16.msra.mxu0 %v5201_v22  ;;  %3916 = vmatpush1.bf16.msra.mxu1 %v5204_v5  ;;  %v5296_v22 = vld [vmem:[%s5571_s20 + $0xb4c] ss:$16 sps:$4 sm:$0xff]   ;;  %v5291_v5 = vld [vmem:[%s5571_s20 + $0xb40] ss:$16 sps:$4 sm:$0xff]  }
 0x140   : > { %3589 = vmatprep.subr.bf16.mxu0 %v5209_v23  ;;  %3917 = vmatprep.subr.bf16.mxu1 %v5212_v9  ;;  %v5294_v23 = vld [vmem:[%s5571_s20 + $0xb48] ss:$16 sps:$4 sm:$0xff]   ;;  %v5299_v9 = vld [vmem:[%s5571_s20 + $0xb64] ss:$16 sps:$4 sm:$0xff]  }
 0x143   : > { %3590 = vmatpush1.bf16.msra.mxu0 %v5207_v24  ;;  %3918 = vmatpush1.bf16.msra.mxu1 %v5210_v25  ;;  %v5302_v24 = vld [vmem:[%s5571_s20 + $0xb6c] ss:$16 sps:$4 sm:$0xff]   ;;  %v5297_v25 = vld [vmem:[%s5571_s20 + $0xb60] ss:$16 sps:$4 sm:$0xff]  }
 0x144   : > { %3591 = vmatprep.subr.bf16.mxu0 %v5215_v26  ;;  %3919 = vmatprep.subr.bf16.mxu1 %v5218_v27  ;;  %v5300_v26 = vld [vmem:[%s5571_s20 + $0xb68] ss:$16 sps:$4 sm:$0xff]   ;;  %v5305_v27 = vld [vmem:[%s5571_s20 + $0xb84] ss:$16 sps:$4 sm:$0xff]  }
 0x147   : > { %3592 = vmatpush1.bf16.msra.mxu0 %v5213_v29  ;;  %3920 = vmatpush1.bf16.msra.mxu1 %v5216_v31  ;;  %v5308_v29 = vld [vmem:[%s5571_s20 + $0xb8c] ss:$16 sps:$4 sm:$0xff]   ;;  %v5303_v31 = vld [vmem:[%s5571_s20 + $0xb80] ss:$16 sps:$4 sm:$0xff]  }
 0x148   : > { %3593 = vmatprep.subr.bf16.mxu0 %v5221_v32  ;;  %3921 = vmatprep.subr.bf16.mxu1 %v5224_v33  ;;  %v5306_v32 = vld [vmem:[%s5571_s20 + $0xb88] ss:$16 sps:$4 sm:$0xff]   ;;  %v5311_v33 = vld [vmem:[%s5571_s20 + $0xba4] ss:$16 sps:$4 sm:$0xff]  }
 0x14b   : > { %3594 = vmatpush1.bf16.msra.mxu0 %v5219_v34  ;;  %3922 = vmatpush1.bf16.msra.mxu1 %v5222_v20  ;;  %v5314_v34 = vld [vmem:[%s5571_s20 + $0xbac] ss:$16 sps:$4 sm:$0xff]   ;;  %v5309_v20 = vld [vmem:[%s5571_s20 + $0xba0] ss:$16 sps:$4 sm:$0xff]  }
 0x14c   : > { %3595 = vmatprep.subr.bf16.mxu0 %v5227_v35  ;;  %3923 = vmatprep.subr.bf16.mxu1 %v5230_v36  ;;  %v5312_v35 = vld [vmem:[%s5571_s20 + $0xba8] ss:$16 sps:$4 sm:$0xff]   ;;  %v5317_v36 = vld [vmem:[%s5571_s20 + $0xbc4] ss:$16 sps:$4 sm:$0xff]  }
 0x14f   : > { %3596 = vmatpush1.bf16.msra.mxu0 %v5225_v28  ;;  %3924 = vmatpush1.bf16.msra.mxu1 %v5228_v37  ;;  %v5320_v28 = vld [vmem:[%s5571_s20 + $0xbcc] ss:$16 sps:$4 sm:$0xff]   ;;  %v776_v37 = vcombine.high %v5871_v17, %v5871_v17  ;;  %v5321_v17 = vld [vmem:[%s5571_s20 + $0xbe0] ss:$16 sps:$4 sm:$0xff]  }
 0x150   : > { %3606 = vmatprep.subr.bf16.mxu0 %v5233_v38  ;;  %3934 = vmatprep.subr.bf16.mxu1 %v5236_v19  ;;  %v5315_v38 = vld [vmem:[%s5571_s20 + $0xbc0] ss:$16 sps:$4 sm:$0xff]   ;;  %v5318_v19 = vld [vmem:[%s5571_s20 + $0xbc8] ss:$16 sps:$4 sm:$0xff]  }
 0x152   : > { %3598 = vmatmul.mubr.bf16.vlgmr.msra.gmra.mrb[0].mxu0 %v5959_v40  ;;  %3926 = vmatmul.mubr.bf16.vlgmr.msra.gmra.mrb[0].mxu1 %v5959_v40 }
 0x153   : > { %3607 = vmatpush1.bf16.msra.mxu0 %v5231_v41  ;;  %3935 = vmatpush1.bf16.msra.mxu1 %v5234_v42  ;;  %v5323_v41 = vld [vmem:[%s5571_s20 + $0xbe4] ss:$16 sps:$4 sm:$0xff]   ;;  %v5326_v42 = vld [vmem:[%s5571_s20 + $0xbec] ss:$16 sps:$4 sm:$0xff]  }
 0x154   : > { %3608 = vmatprep.subr.bf16.mxu0 %v5239_v43  ;;  %3936 = vmatprep.subr.bf16.mxu1 %v5242_v44  ;;  %v6028_v43 = vrot.slane %v776_v37, %v5574_v6  ;;  %v5324_v44 = vld [vmem:[%s5571_s20 + $0xbe8] ss:$16 sps:$4 sm:$0xff]  }
 0x155   : > { %3638 = vmatprep.mubr.bf16.mxu0 %v823_v45  ;;  %3966 = vmatprep.mubr.bf16.mxu1 %v823_v45  ;;  %v5329_v45 = vld [vmem:[%s5571_s20 + $0xc04] ss:$16 sps:$4 sm:$0xff]   ;;  %v5402_v37 = vld [vmem:[%s5571_s20 + $0xd88] ss:$16 sps:$4 sm:$0xff]  }
 0x157   : > { %3609 = vmatpush1.bf16.msra.mxu0 %v5237_v30  ;;  %3937 = vmatpush1.bf16.msra.mxu1 %v5240_v46  ;;  %v5332_v30 = vld [vmem:[%s5571_s20 + $0xc0c] ss:$16 sps:$4 sm:$0xff]   ;;  %v792_v46 = vcombine.high %v6028_v43, %v6028_v43 }
 0x158   : > { %3610 = vmatprep.subr.bf16.mxu0 %v5245_v47  ;;  %3938 = vmatprep.subr.bf16.mxu1 %v5248_v48  ;;  %v821_v47 = vcombine.high %v5959_v40, %v5959_v40  ;;  %v5327_v48 = vld [vmem:[%s5571_s20 + $0xc00] ss:$16 sps:$4 sm:$0xff]  }
 0x159   : > { %v5333_v40 = vld [vmem:[%s5571_s20 + $0xc20] ss:$16 sps:$4 sm:$0xff]  }
 0x15b   : > { %3611 = vmatpush1.bf16.msra.mxu0 %v5243_v39  ;;  %3939 = vmatpush1.bf16.msra.mxu1 %v5246_v49  ;;  %v5330_v39 = vld [vmem:[%s5571_s20 + $0xc08] ss:$16 sps:$4 sm:$0xff]   ;;  %v5335_v49 = vld [vmem:[%s5571_s20 + $0xc24] ss:$16 sps:$4 sm:$0xff]  }
 0x15c   : > { %3612 = vmatprep.subr.bf16.mxu0 %v5251_v50  ;;  %3940 = vmatprep.subr.bf16.mxu1 %v5254_v51  ;;  %v5338_v50 = vld [vmem:[%s5571_s20 + $0xc2c] ss:$16 sps:$4 sm:$0xff]   ;;  %v6043_v51 = vrot.slane %v792_v46, %v5574_v6  ;;  %v5419_v46 = vld [vmem:[%s5571_s20 + $0xde4] ss:$16 sps:$4 sm:$0xff]  }
 0x15f   : > { %3613 = vmatpush1.bf16.msra.mxu0 %v5249_v52  ;;  %3941 = vmatpush1.bf16.msra.mxu1 %v5252_v53  ;;  %v5336_v52 = vld [vmem:[%s5571_s20 + $0xc28] ss:$16 sps:$4 sm:$0xff]   ;;  %v5341_v53 = vld [vmem:[%s5571_s20 + $0xc44] ss:$16 sps:$4 sm:$0xff]  }
 0x160   : > { %3614 = vmatprep.subr.bf16.mxu0 %v5257_v54  ;;  %3942 = vmatprep.subr.bf16.mxu1 %v5260_v55  ;;  %v5344_v54 = vld [vmem:[%s5571_s20 + $0xc4c] ss:$16 sps:$4 sm:$0xff]   ;;  %v5339_v55 = vld [vmem:[%s5571_s20 + $0xc40] ss:$16 sps:$4 sm:$0xff]  }
 0x163   : > { %3615 = vmatpush1.bf16.msra.mxu0 %v5255_v56  ;;  %3943 = vmatpush1.bf16.msra.mxu1 %v5258_v57  ;;  %v5342_v56 = vld [vmem:[%s5571_s20 + $0xc48] ss:$16 sps:$4 sm:$0xff]   ;;  %v5347_v57 = vld [vmem:[%s5571_s20 + $0xc64] ss:$16 sps:$4 sm:$0xff]  }
 0x164   : > { %3616 = vmatprep.subr.bf16.mxu0 %v5263_v58  ;;  %3944 = vmatprep.subr.bf16.mxu1 %v5266_v59  ;;  %v5350_v58 = vld [vmem:[%s5571_s20 + $0xc6c] ss:$16 sps:$4 sm:$0xff]   ;;  %v5345_v59 = vld [vmem:[%s5571_s20 + $0xc60] ss:$16 sps:$4 sm:$0xff]  }
 0x167   : > { %3617 = vmatpush1.bf16.msra.mxu0 %v5261_v60  ;;  %3945 = vmatpush1.bf16.msra.mxu1 %v5264_v61  ;;  %v5348_v60 = vld [vmem:[%s5571_s20 + $0xc68] ss:$16 sps:$4 sm:$0xff]   ;;  %v5353_v61 = vld [vmem:[%s5571_s20 + $0xc84] ss:$16 sps:$4 sm:$0xff]  }
 0x168   : > { %3618 = vmatprep.subr.bf16.mxu0 %v5269_v62  ;;  %3946 = vmatprep.subr.bf16.mxu1 %v5272_v63  ;;  %v5356_v62 = vld [vmem:[%s5571_s20 + $0xc8c] ss:$16 sps:$4 sm:$0xff]   ;;  %v5351_v63 = vld [vmem:[%s5571_s20 + $0xc80] ss:$16 sps:$4 sm:$0xff]  }
 0x16b   : > { %3619 = vmatpush1.bf16.msra.mxu0 %v5267_v0  ;;  %3947 = vmatpush1.bf16.msra.mxu1 %v5270_v1  ;;  %v5354_v0 = vld [vmem:[%s5571_s20 + $0xc88] ss:$16 sps:$4 sm:$0xff]   ;;  %v5359_v1 = vld [vmem:[%s5571_s20 + $0xca4] ss:$16 sps:$4 sm:$0xff]  }
 0x16c   : > { %3620 = vmatprep.subr.bf16.mxu0 %v5275_v2  ;;  %3948 = vmatprep.subr.bf16.mxu1 %v5278_v4  ;;  %v5362_v2 = vld [vmem:[%s5571_s20 + $0xcac] ss:$16 sps:$4 sm:$0xff]   ;;  %v5357_v4 = vld [vmem:[%s5571_s20 + $0xca0] ss:$16 sps:$4 sm:$0xff]  }
 0x16f   : > { %3621 = vmatpush1.bf16.msra.mxu0 %v5273_v7  ;;  %3949 = vmatpush1.bf16.msra.mxu1 %v5276_v8  ;;  %v5360_v7 = vld [vmem:[%s5571_s20 + $0xca8] ss:$16 sps:$4 sm:$0xff]   ;;  %v5365_v8 = vld [vmem:[%s5571_s20 + $0xcc4] ss:$16 sps:$4 sm:$0xff]  }
 0x170   : > { %3622 = vmatprep.subr.bf16.mxu0 %v5281_v10  ;;  %3950 = vmatprep.subr.bf16.mxu1 %v5284_v11  ;;  %v5368_v10 = vld [vmem:[%s5571_s20 + $0xccc] ss:$16 sps:$4 sm:$0xff]   ;;  %v5363_v11 = vld [vmem:[%s5571_s20 + $0xcc0] ss:$16 sps:$4 sm:$0xff]  }
 0x173   : > { %3623 = vmatpush1.bf16.msra.mxu0 %v5279_v12  ;;  %3951 = vmatpush1.bf16.msra.mxu1 %v5282_v13  ;;  %v5366_v12 = vld [vmem:[%s5571_s20 + $0xcc8] ss:$16 sps:$4 sm:$0xff]   ;;  %v5371_v13 = vld [vmem:[%s5571_s20 + $0xce4] ss:$16 sps:$4 sm:$0xff]  }
 0x174   : > { %3624 = vmatprep.subr.bf16.mxu0 %v5287_v14  ;;  %3952 = vmatprep.subr.bf16.mxu1 %v5290_v15  ;;  %v5374_v14 = vld [vmem:[%s5571_s20 + $0xcec] ss:$16 sps:$4 sm:$0xff]   ;;  %v5369_v15 = vld [vmem:[%s5571_s20 + $0xce0] ss:$16 sps:$4 sm:$0xff]  }
 0x177   : > { %3625 = vmatpush1.bf16.msra.mxu0 %v5285_v16  ;;  %3953 = vmatpush1.bf16.msra.mxu1 %v5288_v18  ;;  %v5372_v16 = vld [vmem:[%s5571_s20 + $0xce8] ss:$16 sps:$4 sm:$0xff]   ;;  %v5377_v18 = vld [vmem:[%s5571_s20 + $0xd04] ss:$16 sps:$4 sm:$0xff]  }
 0x178   : > { %3626 = vmatprep.subr.bf16.mxu0 %v5293_v21  ;;  %3954 = vmatprep.subr.bf16.mxu1 %v5296_v22  ;;  %v5380_v21 = vld [vmem:[%s5571_s20 + $0xd0c] ss:$16 sps:$4 sm:$0xff]   ;;  %v5375_v22 = vld [vmem:[%s5571_s20 + $0xd00] ss:$16 sps:$4 sm:$0xff]  }
 0x17b   : > { %3627 = vmatpush1.bf16.msra.mxu0 %v5291_v5  ;;  %3955 = vmatpush1.bf16.msra.mxu1 %v5294_v23  ;;  %v5378_v5 = vld [vmem:[%s5571_s20 + $0xd08] ss:$16 sps:$4 sm:$0xff]   ;;  %v5383_v23 = vld [vmem:[%s5571_s20 + $0xd24] ss:$16 sps:$4 sm:$0xff]  }
 0x17c   : > { %3628 = vmatprep.subr.bf16.mxu0 %v5299_v9  ;;  %3956 = vmatprep.subr.bf16.mxu1 %v5302_v24  ;;  %v5386_v9 = vld [vmem:[%s5571_s20 + $0xd2c] ss:$16 sps:$4 sm:$0xff]   ;;  %v5381_v24 = vld [vmem:[%s5571_s20 + $0xd20] ss:$16 sps:$4 sm:$0xff]  }
 0x17f   : > { %3629 = vmatpush1.bf16.msra.mxu0 %v5297_v25  ;;  %3957 = vmatpush1.bf16.msra.mxu1 %v5300_v26  ;;  %v5384_v25 = vld [vmem:[%s5571_s20 + $0xd28] ss:$16 sps:$4 sm:$0xff]   ;;  %v5389_v26 = vld [vmem:[%s5571_s20 + $0xd44] ss:$16 sps:$4 sm:$0xff]  }
 0x180   : > { %3630 = vmatprep.subr.bf16.mxu0 %v5305_v27  ;;  %3958 = vmatprep.subr.bf16.mxu1 %v5308_v29  ;;  %v5392_v27 = vld [vmem:[%s5571_s20 + $0xd4c] ss:$16 sps:$4 sm:$0xff]   ;;  %v5387_v29 = vld [vmem:[%s5571_s20 + $0xd40] ss:$16 sps:$4 sm:$0xff]  }
 0x183   : > { %3631 = vmatpush1.bf16.msra.mxu0 %v5303_v31  ;;  %3959 = vmatpush1.bf16.msra.mxu1 %v5306_v32  ;;  %v5390_v31 = vld [vmem:[%s5571_s20 + $0xd48] ss:$16 sps:$4 sm:$0xff]   ;;  %v5395_v32 = vld [vmem:[%s5571_s20 + $0xd64] ss:$16 sps:$4 sm:$0xff]  }
 0x184   : > { %3632 = vmatprep.subr.bf16.mxu0 %v5311_v33  ;;  %3960 = vmatprep.subr.bf16.mxu1 %v5314_v34  ;;  %v5398_v33 = vld [vmem:[%s5571_s20 + $0xd6c] ss:$16 sps:$4 sm:$0xff]   ;;  %v5393_v34 = vld [vmem:[%s5571_s20 + $0xd60] ss:$16 sps:$4 sm:$0xff]  }
 0x187   : > { %3633 = vmatpush1.bf16.msra.mxu0 %v5309_v20  ;;  %3961 = vmatpush1.bf16.msra.mxu1 %v5312_v35  ;;  %v5396_v20 = vld [vmem:[%s5571_s20 + $0xd68] ss:$16 sps:$4 sm:$0xff]   ;;  %v5401_v35 = vld [vmem:[%s5571_s20 + $0xd84] ss:$16 sps:$4 sm:$0xff]  }
 0x188   : > { %3634 = vmatprep.subr.bf16.mxu0 %v5317_v36  ;;  %3962 = vmatprep.subr.bf16.mxu1 %v5320_v28  ;;  %v5404_v36 = vld [vmem:[%s5571_s20 + $0xd8c] ss:$16 sps:$4 sm:$0xff]   ;;  %v5399_v28 = vld [vmem:[%s5571_s20 + $0xd80] ss:$16 sps:$4 sm:$0xff]  }
 0x18b   : > { %3635 = vmatpush1.bf16.msra.mxu0 %v5315_v38  ;;  %3963 = vmatpush1.bf16.msra.mxu1 %v5318_v19  ;;  %v5407_v38 = vld [vmem:[%s5571_s20 + $0xda4] ss:$16 sps:$4 sm:$0xff]   ;;  %v5410_v19 = vld [vmem:[%s5571_s20 + $0xdac] ss:$16 sps:$4 sm:$0xff]  }
 0x18c   : > { %3636 = vmatprep.subr.bf16.mxu0 %v5323_v41  ;;  %3964 = vmatprep.subr.bf16.mxu1 %v5326_v42  ;;  %v5405_v41 = vld [vmem:[%s5571_s20 + $0xda0] ss:$16 sps:$4 sm:$0xff]   ;;  %v5408_v42 = vld [vmem:[%s5571_s20 + $0xda8] ss:$16 sps:$4 sm:$0xff]  }
 0x18f   : > { %3637 = vmatpush1.bf16.msra.mxu0 %v5321_v17  ;;  %3965 = vmatpush1.bf16.msra.mxu1 %v5324_v44  ;;  %v5413_v17 = vld [vmem:[%s5571_s20 + $0xdc4] ss:$16 sps:$4 sm:$0xff]   ;;  %v5416_v44 = vld [vmem:[%s5571_s20 + $0xdcc] ss:$16 sps:$4 sm:$0xff]  }
 0x190   : > { %3647 = vmatprep.subr.bf16.mxu0 %v5329_v45  ;;  %3975 = vmatprep.subr.bf16.mxu1 %v5332_v30  ;;  %v5411_v45 = vld [vmem:[%s5571_s20 + $0xdc0] ss:$16 sps:$4 sm:$0xff]   ;;  %v5414_v30 = vld [vmem:[%s5571_s20 + $0xdc8] ss:$16 sps:$4 sm:$0xff]  }
 0x192   : > { %3639 = vmatmul.mubr.bf16.vlgmr.msra.gmra.mrb[0].mxu0 %v821_v47  ;;  %3967 = vmatmul.mubr.bf16.vlgmr.msra.gmra.mrb[0].mxu1 %v821_v47  ;;  %v5422_v47 = vld [vmem:[%s5571_s20 + $0xdec] ss:$16 sps:$4 sm:$0xff]  }
 0x193   : > { %3648 = vmatpush1.bf16.msra.mxu0 %v5327_v48  ;;  %3976 = vmatpush1.bf16.msra.mxu1 %v5330_v39  ;;  %v5417_v48 = vld [vmem:[%s5571_s20 + $0xde0] ss:$16 sps:$4 sm:$0xff]   ;;  %v5420_v39 = vld [vmem:[%s5571_s20 + $0xde8] ss:$16 sps:$4 sm:$0xff]  }
 0x194   : > { %3649 = vmatprep.subr.bf16.mxu0 %v5335_v49  ;;  %3977 = vmatprep.subr.bf16.mxu1 %v5338_v50  ;;  %v5426_v49 = vld [vmem:[%s5571_s20 + $0xe04] ss:$16 sps:$4 sm:$0xff]   ;;  %v5429_v50 = vld [vmem:[%s5571_s20 + $0xe0c] ss:$16 sps:$4 sm:$0xff]  }
 0x195   : > { %3679 = vmatprep.mubr.bf16.mxu0 %v6043_v51  ;;  %4007 = vmatprep.mubr.bf16.mxu1 %v6043_v51 }
 0x197   : > { %3650 = vmatpush1.bf16.msra.mxu0 %v5333_v40  ;;  %3978 = vmatpush1.bf16.msra.mxu1 %v5336_v52  ;;  %v6109_v40 = vrot.slane %v6028_v43, %v5574_v6  ;;  %v5424_v52 = vld [vmem:[%s5571_s20 + $0xe00] ss:$16 sps:$4 sm:$0xff]  }
 0x198   : > { %3651 = vmatprep.subr.bf16.mxu0 %v5341_v53  ;;  %3979 = vmatprep.subr.bf16.mxu1 %v5344_v54  ;;  %v5427_v53 = vld [vmem:[%s5571_s20 + $0xe08] ss:$16 sps:$4 sm:$0xff]   ;;  %v5432_v54 = vld [vmem:[%s5571_s20 + $0xe24] ss:$16 sps:$4 sm:$0xff]   ;;  %v5430_v43 = vld [vmem:[%s5571_s20 + $0xe20] ss:$16 sps:$4 sm:$0xff]  }
 0x19b   : > { %3652 = vmatpush1.bf16.msra.mxu0 %v5339_v55  ;;  %3980 = vmatpush1.bf16.msra.mxu1 %v5342_v56  ;;  %v5435_v55 = vld [vmem:[%s5571_s20 + $0xe2c] ss:$16 sps:$4 sm:$0xff]   ;;  %v824_v56 = vcombine.high %v6043_v51, %v6043_v51  ;;  %v5436_v51 = vld [vmem:[%s5571_s20 + $0xe40] ss:$16 sps:$4 sm:$0xff]  }
 0x19c   : > { %3653 = vmatprep.subr.bf16.mxu0 %v5347_v57  ;;  %3981 = vmatprep.subr.bf16.mxu1 %v5350_v58  ;;  %v5433_v57 = vld [vmem:[%s5571_s20 + $0xe28] ss:$16 sps:$4 sm:$0xff]   ;;  %v5438_v58 = vld [vmem:[%s5571_s20 + $0xe44] ss:$16 sps:$4 sm:$0xff]  }
 0x19f   : > { %3654 = vmatpush1.bf16.msra.mxu0 %v5345_v59  ;;  %3982 = vmatpush1.bf16.msra.mxu1 %v5348_v60  ;;  %v5441_v59 = vld [vmem:[%s5571_s20 + $0xe4c] ss:$16 sps:$4 sm:$0xff]   ;;  %v5439_v60 = vld [vmem:[%s5571_s20 + $0xe48] ss:$16 sps:$4 sm:$0xff]  }
 0x1a0   : > { %3655 = vmatprep.subr.bf16.mxu0 %v5353_v61  ;;  %3983 = vmatprep.subr.bf16.mxu1 %v5356_v62  ;;  %v5444_v61 = vld [vmem:[%s5571_s20 + $0xe64] ss:$16 sps:$4 sm:$0xff]   ;;  %v5447_v62 = vld [vmem:[%s5571_s20 + $0xe6c] ss:$16 sps:$4 sm:$0xff]  }
 0x1a3   : > { %3656 = vmatpush1.bf16.msra.mxu0 %v5351_v63  ;;  %3984 = vmatpush1.bf16.msra.mxu1 %v5354_v0  ;;  %v5442_v63 = vld [vmem:[%s5571_s20 + $0xe60] ss:$16 sps:$4 sm:$0xff]   ;;  %v5445_v0 = vld [vmem:[%s5571_s20 + $0xe68] ss:$16 sps:$4 sm:$0xff]  }
 0x1a4   : > { %3657 = vmatprep.subr.bf16.mxu0 %v5359_v1  ;;  %3985 = vmatprep.subr.bf16.mxu1 %v5362_v2  ;;  %v5450_v1 = vld [vmem:[%s5571_s20 + $0xe84] ss:$16 sps:$4 sm:$0xff]   ;;  %v5453_v2 = vld [vmem:[%s5571_s20 + $0xe8c] ss:$16 sps:$4 sm:$0xff]  }
 0x1a7   : > { %3658 = vmatpush1.bf16.msra.mxu0 %v5357_v4  ;;  %3986 = vmatpush1.bf16.msra.mxu1 %v5360_v7  ;;  %v5448_v4 = vld [vmem:[%s5571_s20 + $0xe80] ss:$16 sps:$4 sm:$0xff]   ;;  %v5451_v7 = vld [vmem:[%s5571_s20 + $0xe88] ss:$16 sps:$4 sm:$0xff]  }
 0x1a8   : > { %3659 = vmatprep.subr.bf16.mxu0 %v5365_v8  ;;  %3987 = vmatprep.subr.bf16.mxu1 %v5368_v10  ;;  %v5456_v8 = vld [vmem:[%s5571_s20 + $0xea4] ss:$16 sps:$4 sm:$0xff]   ;;  %v5459_v10 = vld [vmem:[%s5571_s20 + $0xeac] ss:$16 sps:$4 sm:$0xff]  }
 0x1ab   : > { %3660 = vmatpush1.bf16.msra.mxu0 %v5363_v11  ;;  %3988 = vmatpush1.bf16.msra.mxu1 %v5366_v12  ;;  %v5454_v11 = vld [vmem:[%s5571_s20 + $0xea0] ss:$16 sps:$4 sm:$0xff]   ;;  %v5457_v12 = vld [vmem:[%s5571_s20 + $0xea8] ss:$16 sps:$4 sm:$0xff]  }
 0x1ac   : > { %3661 = vmatprep.subr.bf16.mxu0 %v5371_v13  ;;  %3989 = vmatprep.subr.bf16.mxu1 %v5374_v14  ;;  %v5462_v13 = vld [vmem:[%s5571_s20 + $0xec4] ss:$16 sps:$4 sm:$0xff]   ;;  %v5465_v14 = vld [vmem:[%s5571_s20 + $0xecc] ss:$16 sps:$4 sm:$0xff]  }
 0x1af   : > { %3662 = vmatpush1.bf16.msra.mxu0 %v5369_v15  ;;  %3990 = vmatpush1.bf16.msra.mxu1 %v5372_v16  ;;  %v5460_v15 = vld [vmem:[%s5571_s20 + $0xec0] ss:$16 sps:$4 sm:$0xff]   ;;  %v5463_v16 = vld [vmem:[%s5571_s20 + $0xec8] ss:$16 sps:$4 sm:$0xff]  }
 0x1b0   : > { %3663 = vmatprep.subr.bf16.mxu0 %v5377_v18  ;;  %3991 = vmatprep.subr.bf16.mxu1 %v5380_v21  ;;  %v5468_v18 = vld [vmem:[%s5571_s20 + $0xee4] ss:$16 sps:$4 sm:$0xff]   ;;  %v5471_v21 = vld [vmem:[%s5571_s20 + $0xeec] ss:$16 sps:$4 sm:$0xff]  }
 0x1b3   : > { %3664 = vmatpush1.bf16.msra.mxu0 %v5375_v22  ;;  %3992 = vmatpush1.bf16.msra.mxu1 %v5378_v5  ;;  %v5466_v22 = vld [vmem:[%s5571_s20 + $0xee0] ss:$16 sps:$4 sm:$0xff]   ;;  %v5469_v5 = vld [vmem:[%s5571_s20 + $0xee8] ss:$16 sps:$4 sm:$0xff]  }
 0x1b4   : > { %3665 = vmatprep.subr.bf16.mxu0 %v5383_v23  ;;  %3993 = vmatprep.subr.bf16.mxu1 %v5386_v9  ;;  %v5474_v23 = vld [vmem:[%s5571_s20 + $0xf04] ss:$16 sps:$4 sm:$0xff]   ;;  %v5477_v9 = vld [vmem:[%s5571_s20 + $0xf0c] ss:$16 sps:$4 sm:$0xff]  }
 0x1b7   : > { %3666 = vmatpush1.bf16.msra.mxu0 %v5381_v24  ;;  %3994 = vmatpush1.bf16.msra.mxu1 %v5384_v25  ;;  %v5472_v24 = vld [vmem:[%s5571_s20 + $0xf00] ss:$16 sps:$4 sm:$0xff]   ;;  %v5475_v25 = vld [vmem:[%s5571_s20 + $0xf08] ss:$16 sps:$4 sm:$0xff]  }
 0x1b8   : > { %3667 = vmatprep.subr.bf16.mxu0 %v5389_v26  ;;  %3995 = vmatprep.subr.bf16.mxu1 %v5392_v27  ;;  %v5480_v26 = vld [vmem:[%s5571_s20 + $0xf24] ss:$16 sps:$4 sm:$0xff]   ;;  %v5483_v27 = vld [vmem:[%s5571_s20 + $0xf2c] ss:$16 sps:$4 sm:$0xff]  }
 0x1bb   : > { %3668 = vmatpush1.bf16.msra.mxu0 %v5387_v29  ;;  %3996 = vmatpush1.bf16.msra.mxu1 %v5390_v31  ;;  %v5478_v29 = vld [vmem:[%s5571_s20 + $0xf20] ss:$16 sps:$4 sm:$0xff]   ;;  %v5481_v31 = vld [vmem:[%s5571_s20 + $0xf28] ss:$16 sps:$4 sm:$0xff]  }
 0x1bc   : > { %3669 = vmatprep.subr.bf16.mxu0 %v5395_v32  ;;  %3997 = vmatprep.subr.bf16.mxu1 %v5398_v33  ;;  %v5486_v32 = vld [vmem:[%s5571_s20 + $0xf44] ss:$16 sps:$4 sm:$0xff]   ;;  %v5489_v33 = vld [vmem:[%s5571_s20 + $0xf4c] ss:$16 sps:$4 sm:$0xff]  }
 0x1bf   : > { %3670 = vmatpush1.bf16.msra.mxu0 %v5393_v34  ;;  %3998 = vmatpush1.bf16.msra.mxu1 %v5396_v20  ;;  %v5484_v34 = vld [vmem:[%s5571_s20 + $0xf40] ss:$16 sps:$4 sm:$0xff]   ;;  %v5487_v20 = vld [vmem:[%s5571_s20 + $0xf48] ss:$16 sps:$4 sm:$0xff]  }
 0x1c0   : > { %3671 = vmatprep.subr.bf16.mxu0 %v5401_v35  ;;  %3999 = vmatprep.subr.bf16.mxu1 %v5404_v36  ;;  %v5492_v35 = vld [vmem:[%s5571_s20 + $0xf64] ss:$16 sps:$4 sm:$0xff]   ;;  %v5495_v36 = vld [vmem:[%s5571_s20 + $0xf6c] ss:$16 sps:$4 sm:$0xff]  }
 0x1c3   : > { %3672 = vmatpush1.bf16.msra.mxu0 %v5399_v28  ;;  %4000 = vmatpush1.bf16.msra.mxu1 %v5402_v37  ;;  %v5490_v28 = vld [vmem:[%s5571_s20 + $0xf60] ss:$16 sps:$4 sm:$0xff]   ;;  %v5493_v37 = vld [vmem:[%s5571_s20 + $0xf68] ss:$16 sps:$4 sm:$0xff]  }
 0x1c4   : > { %3673 = vmatprep.subr.bf16.mxu0 %v5407_v38  ;;  %4001 = vmatprep.subr.bf16.mxu1 %v5410_v19  ;;  %v5498_v38 = vld [vmem:[%s5571_s20 + $0xf84] ss:$16 sps:$4 sm:$0xff]   ;;  %v5501_v19 = vld [vmem:[%s5571_s20 + $0xf8c] ss:$16 sps:$4 sm:$0xff]  }
 0x1c7   : > { %3674 = vmatpush1.bf16.msra.mxu0 %v5405_v41  ;;  %4002 = vmatpush1.bf16.msra.mxu1 %v5408_v42  ;;  %v5496_v41 = vld [vmem:[%s5571_s20 + $0xf80] ss:$16 sps:$4 sm:$0xff]   ;;  %v5499_v42 = vld [vmem:[%s5571_s20 + $0xf88] ss:$16 sps:$4 sm:$0xff]  }
 0x1c8   : > { %3675 = vmatprep.subr.bf16.mxu0 %v5413_v17  ;;  %4003 = vmatprep.subr.bf16.mxu1 %v5416_v44  ;;  %v5504_v17 = vld [vmem:[%s5571_s20 + $0xfa4] ss:$16 sps:$4 sm:$0xff]   ;;  %v5507_v44 = vld [vmem:[%s5571_s20 + $0xfac] ss:$16 sps:$4 sm:$0xff]  }
 0x1cb   : > { %3676 = vmatpush1.bf16.msra.mxu0 %v5411_v45  ;;  %4004 = vmatpush1.bf16.msra.mxu1 %v5414_v30  ;;  %v5502_v45 = vld [vmem:[%s5571_s20 + $0xfa0] ss:$16 sps:$4 sm:$0xff]   ;;  %v5505_v30 = vld [vmem:[%s5571_s20 + $0xfa8] ss:$16 sps:$4 sm:$0xff]  }
 0x1cc   : > { %3677 = vmatprep.subr.bf16.mxu0 %v5419_v46  ;;  %4005 = vmatprep.subr.bf16.mxu1 %v5422_v47  ;;  %v5510_v46 = vld [vmem:[%s5571_s20 + $0xfc4] ss:$16 sps:$4 sm:$0xff]   ;;  %v5513_v47 = vld [vmem:[%s5571_s20 + $0xfcc] ss:$16 sps:$4 sm:$0xff]  }
 0x1cf   : > { %3678 = vmatpush1.bf16.msra.mxu0 %v5417_v48  ;;  %4006 = vmatpush1.bf16.msra.mxu1 %v5420_v39  ;;  %v5508_v48 = vld [vmem:[%s5571_s20 + $0xfc0] ss:$16 sps:$4 sm:$0xff]   ;;  %v5511_v39 = vld [vmem:[%s5571_s20 + $0xfc8] ss:$16 sps:$4 sm:$0xff]  }
 0x1d0   : > { %3688 = vmatprep.subr.bf16.mxu0 %v5426_v49  ;;  %4016 = vmatprep.subr.bf16.mxu1 %v5429_v50  ;;  %v5516_v49 = vld [vmem:[%s5571_s20 + $0xfe4] ss:$16 sps:$4 sm:$0xff]   ;;  %v5519_v50 = vld [vmem:[%s5571_s20 + $0xfec] ss:$16 sps:$4 sm:$0xff]  }
 0x1d2   : > { %3680 = vmatmul.mubr.bf16.vlgmr.msra.gmra.mrb[0].mxu0 %v6109_v40  ;;  %4008 = vmatmul.mubr.bf16.vlgmr.msra.gmra.mrb[0].mxu1 %v6109_v40 }
 0x1d3   : > { %3689 = vmatpush1.bf16.msra.mxu0 %v5424_v52  ;;  %4017 = vmatpush1.bf16.msra.mxu1 %v5427_v53  ;;  %v5514_v52 = vld [vmem:[%s5571_s20 + $0xfe0] ss:$16 sps:$4 sm:$0xff]   ;;  %v5517_v53 = vld [vmem:[%s5571_s20 + $0xfe8] ss:$16 sps:$4 sm:$0xff]  }
 0x1d4   : > { %3690 = vmatprep.subr.bf16.mxu0 %v5432_v54  ;;  %4018 = vmatprep.subr.bf16.mxu1 %v5435_v55  ;;  %v822_v54 = vcombine.high %v6109_v40, %v6109_v40  ;;  %v707_v55 = vsub.s32 0, %v5561_v3  ;;  %v711_v40 = vsub.s32 1, %v5561_v3 }
 0x1d5   : > { %3720 = vmatprep.mubr.bf16.mxu0 %v824_v56  ;;  %4048 = vmatprep.mubr.bf16.mxu1 %v824_v56  ;;  %v715_v56 = vsub.s32 2, %v5561_v3 }
 0x1d7   : > { %3691 = vmatpush1.bf16.msra.mxu0 %v5430_v43  ;;  %4019 = vmatpush1.bf16.msra.mxu1 %v5433_v57  ;;  %v703_v43 = vld [vmem:[%s182_s26] sm:$0xf]  ;;  %v719_v57 = vsub.s32 3, %v5561_v3 }
 0x1d8   : > { %3692 = vmatprep.subr.bf16.mxu0 %v5438_v58  ;;  %4020 = vmatprep.subr.bf16.mxu1 %v5441_v59  ;;  %v708_v58 = vrot.slane %v703_v43, %v707_v55  ;;  %v716_v59 = vrot.slane %v703_v43, %v715_v56 }
 0x1db   : > { %3693 = vmatpush1.bf16.msra.mxu0 %v5436_v51  ;;  %4021 = vmatpush1.bf16.msra.mxu1 %v5439_v60  ;;  %v712_v51 = vrot.slane %v703_v43, %v711_v40  ;;  %v720_v60 = vrot.slane %v703_v43, %v719_v57 }
 0x1dc   : > { %3694 = vmatprep.subr.bf16.mxu0 %v5444_v61  ;;  %4022 = vmatprep.subr.bf16.mxu1 %v5447_v62 }
 0x1df   : > { %3695 = vmatpush1.bf16.msra.mxu0 %v5442_v63  ;;  %4023 = vmatpush1.bf16.msra.mxu1 %v5445_v0 }
 0x1e0   : > { %3696 = vmatprep.subr.bf16.mxu0 %v5450_v1  ;;  %4024 = vmatprep.subr.bf16.mxu1 %v5453_v2 }
 0x1e3   : > { %3697 = vmatpush1.bf16.msra.mxu0 %v5448_v4  ;;  %4025 = vmatpush1.bf16.msra.mxu1 %v5451_v7 }
 0x1e4   : > { %3698 = vmatprep.subr.bf16.mxu0 %v5456_v8  ;;  %4026 = vmatprep.subr.bf16.mxu1 %v5459_v10 }
 0x1e7   : > { %3699 = vmatpush1.bf16.msra.mxu0 %v5454_v11  ;;  %4027 = vmatpush1.bf16.msra.mxu1 %v5457_v12 }
 0x1e8   : > { %3700 = vmatprep.subr.bf16.mxu0 %v5462_v13  ;;  %4028 = vmatprep.subr.bf16.mxu1 %v5465_v14 }
 0x1eb   : > { %3701 = vmatpush1.bf16.msra.mxu0 %v5460_v15  ;;  %4029 = vmatpush1.bf16.msra.mxu1 %v5463_v16 }
 0x1ec   : > { %3702 = vmatprep.subr.bf16.mxu0 %v5468_v18  ;;  %4030 = vmatprep.subr.bf16.mxu1 %v5471_v21 }
 0x1ef   : > { %3703 = vmatpush1.bf16.msra.mxu0 %v5466_v22  ;;  %4031 = vmatpush1.bf16.msra.mxu1 %v5469_v5 }
 0x1f0   : > { %3704 = vmatprep.subr.bf16.mxu0 %v5474_v23  ;;  %4032 = vmatprep.subr.bf16.mxu1 %v5477_v9 }
 0x1f3   : > { %3705 = vmatpush1.bf16.msra.mxu0 %v5472_v24  ;;  %4033 = vmatpush1.bf16.msra.mxu1 %v5475_v25 }
 0x1f4   : > { %3706 = vmatprep.subr.bf16.mxu0 %v5480_v26  ;;  %4034 = vmatprep.subr.bf16.mxu1 %v5483_v27 }
 0x1f7   : > { %3707 = vmatpush1.bf16.msra.mxu0 %v5478_v29  ;;  %4035 = vmatpush1.bf16.msra.mxu1 %v5481_v31 }
 0x1f8   : > { %3708 = vmatprep.subr.bf16.mxu0 %v5486_v32  ;;  %4036 = vmatprep.subr.bf16.mxu1 %v5489_v33 }
 0x1fb   : > { %3709 = vmatpush1.bf16.msra.mxu0 %v5484_v34  ;;  %4037 = vmatpush1.bf16.msra.mxu1 %v5487_v20 }
 0x1fc   : > { %3710 = vmatprep.subr.bf16.mxu0 %v5492_v35  ;;  %4038 = vmatprep.subr.bf16.mxu1 %v5495_v36 }
 0x1ff   : > { %3711 = vmatpush1.bf16.msra.mxu0 %v5490_v28  ;;  %4039 = vmatpush1.bf16.msra.mxu1 %v5493_v37 }
 0x200   : > { %3712 = vmatprep.subr.bf16.mxu0 %v5498_v38  ;;  %4040 = vmatprep.subr.bf16.mxu1 %v5501_v19 }
 0x203   : > { %3713 = vmatpush1.bf16.msra.mxu0 %v5496_v41  ;;  %4041 = vmatpush1.bf16.msra.mxu1 %v5499_v42 }
 0x204   : > { %3714 = vmatprep.subr.bf16.mxu0 %v5504_v17  ;;  %4042 = vmatprep.subr.bf16.mxu1 %v5507_v44 }
 0x207   : > { %3715 = vmatpush1.bf16.msra.mxu0 %v5502_v45  ;;  %4043 = vmatpush1.bf16.msra.mxu1 %v5505_v30 }
 0x208   : > { %3716 = vmatprep.subr.bf16.mxu0 %v5510_v46  ;;  %4044 = vmatprep.subr.bf16.mxu1 %v5513_v47 }
 0x20b   : > { %3717 = vmatpush1.bf16.msra.mxu0 %v5508_v48  ;;  %4045 = vmatpush1.bf16.msra.mxu1 %v5511_v39 }
 0x20c   : > { %3718 = vmatprep.subr.bf16.mxu0 %v5516_v49  ;;  %4046 = vmatprep.subr.bf16.mxu1 %v5519_v50 }
 0x20f   : > { %3719 = vmatpush1.bf16.msra.mxu0 %v5514_v52  ;;  %4047 = vmatpush1.bf16.msra.mxu1 %v5517_v53 }
 0x212   : > { %3721 = vmatmul.mubr.bf16.vlgmr.msra.gmra.mrb[0].mxu0 %v822_v54  ;;  %4049 = vmatmul.mubr.bf16.vlgmr.msra.gmra.mrb[0].mxu1 %v822_v54 }
 0x2e5   : > { %v3722_v61 = vpop.f32.mrb[0].mxu0  ;;  %v4050_v62 = vpop.f32.mrb[0].mxu1 }
 0x2e6   : > { %v4681_v63 = vadd.f32 %v3722_v61, %v708_v58  ;;  %v4683_v0 = vadd.f32 %v4050_v62, %v716_v59  ;;  %v3724_v1 = vpop.f32.mrb[1].mxu0  ;;  %v4052_v2 = vpop.f32.mrb[1].mxu1 }
 0x2e7   : > { %v4682_v4 = vadd.f32 %v3724_v1, %v712_v51  ;;  %v4684_v7 = vadd.f32 %v4052_v2, %v720_v60  ;;  %v3726_v8 = vpop.f32.mrb[2].mxu0  ;;  %v4054_v10 = vpop.f32.mrb[2].mxu1 }
 0x2e8   : > { %v4057_v11 = vmax.f32 %v4681_v63, 0.0  ;;  %v4059_v12 = vmax.f32 %v4683_v0, 0.0  ;;  %v3727_v13 = vpop.f32.mrb[3].mxu0  ;;  %v4055_v14 = vpop.f32.mrb[3].mxu1 }
 0x2e9   : > { %v4058_v3 = vmax.f32 %v4682_v4, 0.0  ;;  %v4060_v15 = vmax.f32 %v4684_v7, 0.0 }
 0x2eb   : > { %v4675_v16 = vpack.c.bf16 %v4058_v3, %v4057_v11  ;;  %v4676_v18 = vpack.c.bf16 %v4060_v15, %v4059_v12 }
 0x2ed   : > { %v4077_v21 = vrot.slane %v4675_v16, %v5574_v6  ;;  %v4084_v22 = vrot.slane %v4676_v18, %v5574_v6 }
 0x2ef   : > { %v4085_v5 = vcombine.low %v4077_v21, %v4084_v22 }
 0x2f1   : > { %4677 = vst.sshfl [vmem:[%s187_s29] sm:$0x55 pattern:$0x73625140] %v4085_v5 }
 0x2f2 PF: > { %s13_s12 = sadd.s32 1, %s5526_s12  }
 0x2f3   : > { %p10_p5 = scmp.ge.s32.totalorder %s13_s12, 4  }
 0x2f5   :  { %12 = sbr.rel (!%p10_p5) target bundleno = 1 (0x1), region = 65 }

// kernel: mlp_basic_forward.5
= control target key start
LH: loop header
LB: loop body
LE: loop exit
PB: predicated region body
PF: predicated region fallthrough
CT: control target
= control target key end

     0   :  { %v537_v32 = vlaneseq  ;;  %v5384_v33 = vmov 1966171168   ;;  %s7272_s0 = inlined_call_operand.vmem [shape: bf16[2,1024], index: 0, kind: input, shape index: {}]   ;;  %s7273_s1 = inlined_call_operand.vmem [shape: bf16[1024,1024], index: 1, kind: input, shape index: {}]   ;;  %s7274_s2 = inlined_call_operand.vmem [shape: f32[1,1024], index: 2, kind: input, shape index: {}]   ;;  %s7275_s3 = inlined_call_operand.vmem [shape: bf16[1024,128], index: 3, kind: input, shape index: {}]   ;;  %s7276_s4 = inlined_call_operand.vmem [shape: f32[1,128], index: 4, kind: input, shape index: {}]   ;;  %s7277_s5 = inlined_call_operand.hbm [shape: f32[2,128], index: 5, kind: output, shape index: {}]  }
   0x1   :  { %v23_v0 = vld [vmem:[%s7273_s1] sm:$0xff]  ;;  %v24_v2 = vld [vmem:[%s7273_s1 + $0x8] sm:$0xff]  ;;  %v580_v34 = vunpack.c.l.s4 %v5384_v33 }
   0x2   :  { %v27_v1 = vld [vmem:[%s7273_s1 + $0x20] sm:$0xff]  ;;  %v28_v4 = vld [vmem:[%s7273_s1 + $0x28] sm:$0xff]  ;;  %v5482_v43 = vshrl.u32 %v537_v32, 7 }
   0x3   :  { %v4568_v3 = vcombine.high %v23_v0, %v27_v1  ;;  %v4567_v5 = vcombine.low %v23_v0, %v27_v1  ;;  %v31_v6 = vld [vmem:[%s7273_s1 + $0x40] sm:$0xff]  ;;  %v4570_v8 = vcombine.high %v24_v2, %v28_v4  ;;  %v4569_v9 = vcombine.low %v24_v2, %v28_v4  ;;  %v32_v11 = vld [vmem:[%s7273_s1 + $0x48] sm:$0xff] }
   0x4   :  { %v35_v7 = vld [vmem:[%s7273_s1 + $0x60] sm:$0xff]  ;;  %v36_v12 = vld [vmem:[%s7273_s1 + $0x68] sm:$0xff]  ;;  %v581_v44 = vunpack.c.0.s8 %v580_v34 }
   0x5   :  { %v4576_v10 = vcombine.high %v31_v6, %v35_v7  ;;  %v39_v13 = vld [vmem:[%s7273_s1 + $0x80] sm:$0xff]  ;;  %3195 = vmatprep.subr.bf16.mxu0 %v4568_v3  ;;  %v4578_v14 = vcombine.high %v32_v11, %v36_v12  ;;  %v40_v16 = vld [vmem:[%s7273_s1 + $0x88] sm:$0xff]  ;;  %3359 = vmatprep.subr.bf16.mxu1 %v4570_v8  ;;  %v4575_v18 = vcombine.low %v31_v6, %v35_v7 }
   0x6   :  { %v43_v15 = vld [vmem:[%s7273_s1 + $0xa0] sm:$0xff]  ;;  %v44_v17 = vld [vmem:[%s7273_s1 + $0xa8] sm:$0xff]  ;;  %3196 = vmatpush1.bf16.msra.mxu0 %v4567_v5  ;;  %3360 = vmatpush1.bf16.msra.mxu1 %v4569_v9  ;;  %v4577_v19 = vcombine.low %v32_v11, %v36_v12  ;;  %v5497_v53 = vsub.s32 %v581_v44, %v5482_v43 }
   0x7   :  { %3197 = vmatprep.subr.bf16.mxu0 %v4576_v10  ;;  %v4584_v20 = vcombine.high %v39_v13, %v43_v15  ;;  %3361 = vmatprep.subr.bf16.mxu1 %v4578_v14  ;;  %v4586_v21 = vcombine.high %v40_v16, %v44_v17  ;;  %v47_v22 = vld [vmem:[%s7273_s1 + $0xc0] sm:$0xff]  ;;  %v48_v24 = vld [vmem:[%s7273_s1 + $0xc8] sm:$0xff]  ;;  %v4583_v26 = vcombine.low %v39_v13, %v43_v15 }
   0x8   :  { %v51_v23 = vld [vmem:[%s7273_s1 + $0xe0] sm:$0xff]  ;;  %v52_v25 = vld [vmem:[%s7273_s1 + $0xe8] sm:$0xff]  ;;  %v4585_v27 = vcombine.low %v40_v16, %v44_v17 }
   0x9   :  { %v4592_v28 = vcombine.high %v47_v22, %v51_v23  ;;  %v4594_v29 = vcombine.high %v48_v24, %v52_v25  ;;  %v55_v30 = vld [vmem:[%s7273_s1 + $0x100] sm:$0xff]  ;;  %v56_v35 = vld [vmem:[%s7273_s1 + $0x108] sm:$0xff]  ;;  %v4591_v37 = vcombine.low %v47_v22, %v51_v23  ;;  %v4593_v38 = vcombine.low %v48_v24, %v52_v25 }
   0xa   :  { %3198 = vmatpush1.bf16.msra.mxu0 %v4575_v18  ;;  %3362 = vmatpush1.bf16.msra.mxu1 %v4577_v19  ;;  %v59_v31 = vld [vmem:[%s7273_s1 + $0x120] sm:$0xff]  ;;  %v60_v36 = vld [vmem:[%s7273_s1 + $0x128] sm:$0xff] }
   0xb   :  { %3199 = vmatprep.subr.bf16.mxu0 %v4584_v20  ;;  %3363 = vmatprep.subr.bf16.mxu1 %v4586_v21  ;;  %v4600_v39 = vcombine.high %v55_v30, %v59_v31  ;;  %v4602_v40 = vcombine.high %v56_v35, %v60_v36  ;;  %v63_v41 = vld [vmem:[%s7273_s1 + $0x140] sm:$0xff]  ;;  %v64_v45 = vld [vmem:[%s7273_s1 + $0x148] sm:$0xff]  ;;  %v4599_v47 = vcombine.low %v55_v30, %v59_v31 }
   0xc   :  { %v67_v42 = vld [vmem:[%s7273_s1 + $0x160] sm:$0xff]  ;;  %v68_v46 = vld [vmem:[%s7273_s1 + $0x168] sm:$0xff]  ;;  %v4601_v48 = vcombine.low %v56_v35, %v60_v36 }
   0xd   :  { %v4608_v49 = vcombine.high %v63_v41, %v67_v42  ;;  %v4610_v50 = vcombine.high %v64_v45, %v68_v46  ;;  %v71_v51 = vld [vmem:[%s7273_s1 + $0x180] sm:$0xff]  ;;  %v72_v54 = vld [vmem:[%s7273_s1 + $0x188] sm:$0xff]  ;;  %v4607_v56 = vcombine.low %v63_v41, %v67_v42  ;;  %v4609_v57 = vcombine.low %v64_v45, %v68_v46 }
   0xe   :  { %3200 = vmatpush1.bf16.msra.mxu0 %v4583_v26  ;;  %3364 = vmatpush1.bf16.msra.mxu1 %v4585_v27  ;;  %v75_v52 = vld [vmem:[%s7273_s1 + $0x1a0] sm:$0xff]  ;;  %v76_v55 = vld [vmem:[%s7273_s1 + $0x1a8] sm:$0xff] }
   0xf   :  { %3201 = vmatprep.subr.bf16.mxu0 %v4592_v28  ;;  %3365 = vmatprep.subr.bf16.mxu1 %v4594_v29  ;;  %v4616_v58 = vcombine.high %v71_v51, %v75_v52  ;;  %v5508_v59 = vld [vmem:[%s7272_s0] sm:$0xff]  ;;  %v4618_v60 = vcombine.high %v72_v54, %v76_v55  ;;  %v80_v0 = vld [vmem:[%s7273_s1 + $0x1c8] sm:$0xff]  ;;  %v4615_v2 = vcombine.low %v71_v51, %v75_v52 }
  0x10   :  { %v79_v61 = vld [vmem:[%s7273_s1 + $0x1c0] sm:$0xff]  ;;  %v5518_v63 = vrot.slane %v5508_v59, %v5497_v53  ;;  %v84_v1 = vld [vmem:[%s7273_s1 + $0x1e8] sm:$0xff]  ;;  %v4617_v4 = vcombine.low %v72_v54, %v76_v55 }
  0x11   :  { %v83_v62 = vld [vmem:[%s7273_s1 + $0x1e0] sm:$0xff]  ;;  %v4626_v6 = vcombine.high %v80_v0, %v84_v1  ;;  %v88_v10 = vld [vmem:[%s7273_s1 + $0x208] sm:$0xff]  ;;  %v4625_v13 = vcombine.low %v80_v0, %v84_v1 }
  0x12   :  { %3202 = vmatpush1.bf16.msra.mxu0 %v4591_v37  ;;  %3366 = vmatpush1.bf16.msra.mxu1 %v4593_v38  ;;  %v593_v3 = vcombine.high %v5518_v63, %v5518_v63  ;;  %v4624_v5 = vcombine.high %v79_v61, %v83_v62  ;;  %v87_v7 = vld [vmem:[%s7273_s1 + $0x200] sm:$0xff]  ;;  %v92_v11 = vld [vmem:[%s7273_s1 + $0x228] sm:$0xff]  ;;  %v4623_v12 = vcombine.low %v79_v61, %v83_v62 }
  0x13   :  { %3203 = vmatprep.subr.bf16.mxu0 %v4600_v39  ;;  %3367 = vmatprep.subr.bf16.mxu1 %v4602_v40  ;;  %v91_v8 = vld [vmem:[%s7273_s1 + $0x220] sm:$0xff]  ;;  %v4634_v15 = vcombine.high %v88_v10, %v92_v11  ;;  %v96_v18 = vld [vmem:[%s7273_s1 + $0x248] sm:$0xff]  ;;  %v4633_v21 = vcombine.low %v88_v10, %v92_v11 }
  0x14   :  { %v5535_v9 = vrot.slane %v593_v3, %v5497_v53  ;;  %v4632_v14 = vcombine.high %v87_v7, %v91_v8  ;;  %v95_v16 = vld [vmem:[%s7273_s1 + $0x240] sm:$0xff]  ;;  %v100_v19 = vld [vmem:[%s7273_s1 + $0x268] sm:$0xff]  ;;  %v4631_v20 = vcombine.low %v87_v7, %v91_v8 }
  0x15   :  { %v99_v17 = vld [vmem:[%s7273_s1 + $0x260] sm:$0xff]  ;;  %v4642_v23 = vcombine.high %v96_v18, %v100_v19  ;;  %v104_v26 = vld [vmem:[%s7273_s1 + $0x288] sm:$0xff]  ;;  %v4641_v29 = vcombine.low %v96_v18, %v100_v19  ;;  %v578_v18 = vcombine.high %v5508_v59, %v5508_v59 }
  0x16   :  { %3204 = vmatpush1.bf16.msra.mxu0 %v4599_v47  ;;  %3368 = vmatpush1.bf16.msra.mxu1 %v4601_v48  ;;  %v4640_v22 = vcombine.high %v95_v16, %v99_v17  ;;  %v103_v24 = vld [vmem:[%s7273_s1 + $0x280] sm:$0xff]  ;;  %v108_v27 = vld [vmem:[%s7273_s1 + $0x2a8] sm:$0xff]  ;;  %v4639_v28 = vcombine.low %v95_v16, %v99_v17 }
  0x17   :  { %3205 = vmatprep.subr.bf16.mxu0 %v4608_v49  ;;  %3369 = vmatprep.subr.bf16.mxu1 %v4610_v50  ;;  %v107_v25 = vld [vmem:[%s7273_s1 + $0x2a0] sm:$0xff]  ;;  %v4650_v31 = vcombine.high %v104_v26, %v108_v27  ;;  %v112_v34 = vld [vmem:[%s7273_s1 + $0x2c8] sm:$0xff]  ;;  %v4649_v37 = vcombine.low %v104_v26, %v108_v27 }
  0x18   :  { %3227 = vmatprep.mubr.bf16.mxu0 %v5535_v9  ;;  %3391 = vmatprep.mubr.bf16.mxu1 %v5535_v9  ;;  %v4648_v30 = vcombine.high %v103_v24, %v107_v25  ;;  %v111_v32 = vld [vmem:[%s7273_s1 + $0x2c0] sm:$0xff]  ;;  %v116_v35 = vld [vmem:[%s7273_s1 + $0x2e8] sm:$0xff]  ;;  %v4647_v36 = vcombine.low %v103_v24, %v107_v25  ;;  %v592_v24 = vrot.slane %v578_v18, %v5497_v53 }
  0x19   :  { %v115_v33 = vld [vmem:[%s7273_s1 + $0x2e0] sm:$0xff]  ;;  %v4658_v39 = vcombine.high %v112_v34, %v116_v35  ;;  %v120_v42 = vld [vmem:[%s7273_s1 + $0x308] sm:$0xff]  ;;  %v4657_v46 = vcombine.low %v112_v34, %v116_v35  ;;  %v5652_v25 = vrot.slane %v5518_v63, %v5497_v53  ;;  %v5674_v35 = vcombine.high %v5535_v9, %v5535_v9 }
  0x1a   :  { %3206 = vmatpush1.bf16.msra.mxu0 %v4607_v56  ;;  %3370 = vmatpush1.bf16.msra.mxu1 %v4609_v57  ;;  %v4656_v38 = vcombine.high %v111_v32, %v115_v33  ;;  %v119_v40 = vld [vmem:[%s7273_s1 + $0x300] sm:$0xff]  ;;  %v124_v44 = vld [vmem:[%s7273_s1 + $0x328] sm:$0xff]  ;;  %v4655_v45 = vcombine.low %v111_v32, %v115_v33 }
  0x1b   :  { %3207 = vmatprep.subr.bf16.mxu0 %v4616_v58  ;;  %3371 = vmatprep.subr.bf16.mxu1 %v4618_v60  ;;  %v123_v41 = vld [vmem:[%s7273_s1 + $0x320] sm:$0xff]  ;;  %v4666_v48 = vcombine.high %v120_v42, %v124_v44  ;;  %v128_v51 = vld [vmem:[%s7273_s1 + $0x348] sm:$0xff]  ;;  %v4665_v55 = vcombine.low %v120_v42, %v124_v44 }
  0x1c   :  { %v4664_v47 = vcombine.high %v119_v40, %v123_v41  ;;  %v127_v49 = vld [vmem:[%s7273_s1 + $0x340] sm:$0xff]  ;;  %v132_v52 = vld [vmem:[%s7273_s1 + $0x368] sm:$0xff]  ;;  %v4663_v54 = vcombine.low %v119_v40, %v123_v41 }
  0x1d   :  { %v131_v50 = vld [vmem:[%s7273_s1 + $0x360] sm:$0xff]  ;;  %v4674_v57 = vcombine.high %v128_v51, %v132_v52  ;;  %v136_v61 = vld [vmem:[%s7273_s1 + $0x388] sm:$0xff]  ;;  %v4673_v1 = vcombine.low %v128_v51, %v132_v52 }
  0x1e   :  { %3208 = vmatpush1.bf16.msra.mxu0 %v4615_v2  ;;  %3372 = vmatpush1.bf16.msra.mxu1 %v4617_v4  ;;  %v4672_v56 = vcombine.high %v127_v49, %v131_v50  ;;  %v135_v58 = vld [vmem:[%s7273_s1 + $0x380] sm:$0xff]  ;;  %v140_v62 = vld [vmem:[%s7273_s1 + $0x3a8] sm:$0xff]  ;;  %v4671_v0 = vcombine.low %v127_v49, %v131_v50 }
  0x1f   :  { %3209 = vmatprep.subr.bf16.mxu0 %v4624_v5  ;;  %3373 = vmatprep.subr.bf16.mxu1 %v4626_v6  ;;  %v139_v60 = vld [vmem:[%s7273_s1 + $0x3a0] sm:$0xff]  ;;  %v4682_v3 = vcombine.high %v136_v61, %v140_v62  ;;  %v144_v6 = vld [vmem:[%s7273_s1 + $0x3c8] sm:$0xff]  ;;  %v4681_v10 = vcombine.low %v136_v61, %v140_v62 }
  0x20   :  { %v4680_v2 = vcombine.high %v135_v58, %v139_v60  ;;  %v143_v4 = vld [vmem:[%s7273_s1 + $0x3c0] sm:$0xff]  ;;  %v148_v7 = vld [vmem:[%s7273_s1 + $0x3e8] sm:$0xff]  ;;  %v4679_v8 = vcombine.low %v135_v58, %v139_v60 }
  0x21   :  { %v147_v5 = vld [vmem:[%s7273_s1 + $0x3e0] sm:$0xff]  ;;  %v156_v16 = vld [vmem:[%s7273_s1 + $0x428] sm:$0xff]  ;;  %v4689_v19 = vcombine.low %v144_v6, %v148_v7 }
  0x22   :  { %3210 = vmatpush1.bf16.msra.mxu0 %v4623_v12  ;;  %3374 = vmatpush1.bf16.msra.mxu1 %v4625_v13  ;;  %v4688_v11 = vcombine.high %v143_v4, %v147_v5  ;;  %v4690_v12 = vcombine.high %v144_v6, %v148_v7  ;;  %v151_v13 = vld [vmem:[%s7273_s1 + $0x400] sm:$0xff]  ;;  %v4687_v17 = vcombine.low %v143_v4, %v147_v5  ;;  %v160_v59 = vld [vmem:[%s7273_s1 + $0x448] sm:$0xff] }
  0x23   :  { %3211 = vmatprep.subr.bf16.mxu0 %v4632_v14  ;;  %3375 = vmatprep.subr.bf16.mxu1 %v4634_v15  ;;  %v155_v14 = vld [vmem:[%s7273_s1 + $0x420] sm:$0xff]  ;;  %v152_v15 = vld [vmem:[%s7273_s1 + $0x408] sm:$0xff] }
  0x24   :  { %v164_v26 = vld [vmem:[%s7273_s1 + $0x468] sm:$0xff]  ;;  %v4695_v27 = vcombine.low %v151_v13, %v155_v14  ;;  %v167_v63 = vld [vmem:[%s7273_s1 + $0x480] sm:$0xff] }
  0x25   :  { %v168_v32 = vld [vmem:[%s7273_s1 + $0x488] sm:$0xff]  ;;  %v4706_v33 = vcombine.high %v160_v59, %v164_v26  ;;  %v175_v41 = vld [vmem:[%s7273_s1 + $0x4c0] sm:$0xff] }
  0x26   :  { %3212 = vmatpush1.bf16.msra.mxu0 %v4631_v20  ;;  %3376 = vmatpush1.bf16.msra.mxu1 %v4633_v21  ;;  %v4696_v20 = vcombine.high %v151_v13, %v155_v14  ;;  %v4698_v21 = vcombine.high %v152_v15, %v156_v16  ;;  %v172_v34 = vld [vmem:[%s7273_s1 + $0x4a8] sm:$0xff]  ;;  %v179_v42 = vld [vmem:[%s7273_s1 + $0x4e0] sm:$0xff] }
  0x27   :  { %3213 = vmatprep.subr.bf16.mxu0 %v4640_v22  ;;  %3377 = vmatprep.subr.bf16.mxu1 %v4642_v23  ;;  %v159_v22 = vld [vmem:[%s7273_s1 + $0x440] sm:$0xff]  ;;  %v4714_v44 = vcombine.high %v168_v32, %v172_v34  ;;  %v184_v51 = vld [vmem:[%s7273_s1 + $0x508] sm:$0xff] }
  0x28   :  { %v163_v23 = vld [vmem:[%s7273_s1 + $0x460] sm:$0xff]  ;;  %v192_v61 = vld [vmem:[%s7273_s1 + $0x548] sm:$0xff] }
  0x29   :  { %v183_v49 = vld [vmem:[%s7273_s1 + $0x500] sm:$0xff]  ;;  %v200_v6 = vld [vmem:[%s7273_s1 + $0x588] sm:$0xff] }
  0x2a   :  { %3214 = vmatpush1.bf16.msra.mxu0 %v4639_v28  ;;  %3378 = vmatpush1.bf16.msra.mxu1 %v4641_v29  ;;  %v594_v28 = vcombine.high %v592_v24, %v592_v24  ;;  %v4697_v29 = vcombine.low %v152_v15, %v156_v16  ;;  %v187_v50 = vld [vmem:[%s7273_s1 + $0x520] sm:$0xff]  ;;  %v208_v15 = vld [vmem:[%s7273_s1 + $0x5c8] sm:$0xff] }
  0x2b   :  { %3215 = vmatprep.subr.bf16.mxu0 %v4648_v30  ;;  %3379 = vmatprep.subr.bf16.mxu1 %v4650_v31  ;;  %v4704_v30 = vcombine.high %v159_v22, %v163_v23  ;;  %v171_v31 = vld [vmem:[%s7273_s1 + $0x4a0] sm:$0xff] }
  0x2c   :  { %v4712_v40 = vcombine.high %v167_v63, %v171_v31  ;;  %v191_v58 = vld [vmem:[%s7273_s1 + $0x540] sm:$0xff] }
  0x2d   :  { %v195_v60 = vld [vmem:[%s7273_s1 + $0x560] sm:$0xff] }
  0x2e   :  { %3216 = vmatpush1.bf16.msra.mxu0 %v4647_v36  ;;  %3380 = vmatpush1.bf16.msra.mxu1 %v4649_v37  ;;  %v5677_v36 = vrot.slane %v594_v28, %v5497_v53  ;;  %v5680_v37 = vrot.slane %v592_v24, %v5497_v53  ;;  %v176_v53 = vld [vmem:[%s7273_s1 + $0x4c8] sm:$0xff]  ;;  %v199_v4 = vld [vmem:[%s7273_s1 + $0x580] sm:$0xff] }
  0x2f   :  { %3217 = vmatprep.subr.bf16.mxu0 %v4656_v38  ;;  %3381 = vmatprep.subr.bf16.mxu1 %v4658_v39  ;;  %v4703_v38 = vcombine.low %v159_v22, %v163_v23  ;;  %v4705_v39 = vcombine.low %v160_v59, %v164_v26  ;;  %v203_v5 = vld [vmem:[%s7273_s1 + $0x5a0] sm:$0xff]  ;;  %v216_v23 = vld [vmem:[%s7273_s1 + $0x608] sm:$0xff] }
  0x30   :  { %v207_v13 = vld [vmem:[%s7273_s1 + $0x5c0] sm:$0xff]  ;;  %v4743_v18 = vcombine.low %v199_v4, %v203_v5  ;;  %v220_v59 = vld [vmem:[%s7273_s1 + $0x628] sm:$0xff] }
  0x31   :  { %v211_v14 = vld [vmem:[%s7273_s1 + $0x5e0] sm:$0xff] }
  0x32   :  { %3218 = vmatpush1.bf16.msra.mxu0 %v4655_v45  ;;  %3382 = vmatpush1.bf16.msra.mxu1 %v4657_v46  ;;  %v180_v45 = vld [vmem:[%s7273_s1 + $0x4e8] sm:$0xff]  ;;  %v4711_v46 = vcombine.low %v167_v63, %v171_v31  ;;  %v219_v22 = vld [vmem:[%s7273_s1 + $0x620] sm:$0xff]  ;;  %v4751_v26 = vcombine.low %v207_v13, %v211_v14  ;;  %v4762_v31 = vcombine.high %v216_v23, %v220_v59 }
  0x33   :  { %3219 = vmatprep.subr.bf16.mxu0 %v4664_v47  ;;  %3383 = vmatprep.subr.bf16.mxu1 %v4666_v48  ;;  %v4713_v47 = vcombine.low %v168_v32, %v172_v34  ;;  %v4720_v48 = vcombine.high %v175_v41, %v179_v42  ;;  %v4722_v52 = vcombine.high %v176_v53, %v180_v45  ;;  %v224_v63 = vld [vmem:[%s7273_s1 + $0x648] sm:$0xff] }
  0x34   :  { %v228_v32 = vld [vmem:[%s7273_s1 + $0x668] sm:$0xff]  ;;  %v4761_v34 = vcombine.low %v216_v23, %v220_v59 }
  0x35   :  { %v276_v23 = vld [vmem:[%s7273_s1 + $0x7e8] sm:$0xff] }
  0x36   :  { %3220 = vmatpush1.bf16.msra.mxu0 %v4663_v54  ;;  %3384 = vmatpush1.bf16.msra.mxu1 %v4665_v55  ;;  %v188_v54 = vld [vmem:[%s7273_s1 + $0x528] sm:$0xff]  ;;  %v4719_v55 = vcombine.low %v175_v41, %v179_v42  ;;  %v4770_v42 = vcombine.high %v224_v63, %v228_v32 }
  0x37   :  { %3221 = vmatprep.subr.bf16.mxu0 %v4672_v56  ;;  %3385 = vmatprep.subr.bf16.mxu1 %v4674_v57  ;;  %v4721_v56 = vcombine.low %v176_v53, %v180_v45  ;;  %v4728_v57 = vcombine.high %v183_v49, %v187_v50  ;;  %v4730_v62 = vcombine.high %v184_v51, %v188_v54  ;;  %v232_v41 = vld [vmem:[%s7273_s1 + $0x688] sm:$0xff] }
  0x38   :  { %v236_v53 = vld [vmem:[%s7273_s1 + $0x6a8] sm:$0xff]  ;;  %v4769_v45 = vcombine.low %v224_v63, %v228_v32 }
  0x39   :  { %v284_v63 = vld [vmem:[%s7273_s1 + $0x828] sm:$0xff] }
  0x3a   :  { %3222 = vmatpush1.bf16.msra.mxu0 %v4671_v0  ;;  %3386 = vmatpush1.bf16.msra.mxu1 %v4673_v1  ;;  %v196_v0 = vld [vmem:[%s7273_s1 + $0x568] sm:$0xff]  ;;  %v4727_v1 = vcombine.low %v183_v49, %v187_v50  ;;  %v4778_v50 = vcombine.high %v232_v41, %v236_v53 }
  0x3b   :  { %3223 = vmatprep.subr.bf16.mxu0 %v4680_v2  ;;  %3387 = vmatprep.subr.bf16.mxu1 %v4682_v3  ;;  %v4729_v2 = vcombine.low %v184_v51, %v188_v54  ;;  %v4736_v3 = vcombine.high %v191_v58, %v195_v60  ;;  %v4738_v7 = vcombine.high %v192_v61, %v196_v0  ;;  %v240_v49 = vld [vmem:[%s7273_s1 + $0x6c8] sm:$0xff] }
  0x3c   :  { %v244_v51 = vld [vmem:[%s7273_s1 + $0x6e8] sm:$0xff]  ;;  %v4777_v54 = vcombine.low %v232_v41, %v236_v53 }
  0x3d   :  { %v292_v41 = vld [vmem:[%s7273_s1 + $0x868] sm:$0xff] }
  0x3e   :  { %3224 = vmatpush1.bf16.msra.mxu0 %v4679_v8  ;;  %3388 = vmatpush1.bf16.msra.mxu1 %v4681_v10  ;;  %v204_v8 = vld [vmem:[%s7273_s1 + $0x5a8] sm:$0xff]  ;;  %v4735_v10 = vcombine.low %v191_v58, %v195_v60  ;;  %v4786_v60 = vcombine.high %v240_v49, %v244_v51 }
  0x3f   :  { %3225 = vmatprep.subr.bf16.mxu0 %v4688_v11  ;;  %3389 = vmatprep.subr.bf16.mxu1 %v4690_v12  ;;  %v4737_v11 = vcombine.low %v192_v61, %v196_v0  ;;  %v4744_v12 = vcombine.high %v199_v4, %v203_v5  ;;  %v4746_v16 = vcombine.high %v200_v6, %v204_v8  ;;  %v248_v58 = vld [vmem:[%s7273_s1 + $0x708] sm:$0xff] }
  0x40   :  { %v252_v61 = vld [vmem:[%s7273_s1 + $0x728] sm:$0xff]  ;;  %v4785_v0 = vcombine.low %v240_v49, %v244_v51 }
  0x41   :  { %v256_v4 = vld [vmem:[%s7273_s1 + $0x748] sm:$0xff]  ;;  %v4794_v5 = vcombine.high %v248_v58, %v252_v61 }
  0x42   :  { %3226 = vmatpush1.bf16.msra.mxu0 %v4687_v17  ;;  %3390 = vmatpush1.bf16.msra.mxu1 %v4689_v19  ;;  %v212_v17 = vld [vmem:[%s7273_s1 + $0x5e8] sm:$0xff]  ;;  %v4745_v19 = vcombine.low %v200_v6, %v204_v8  ;;  %v4793_v8 = vcombine.low %v248_v58, %v252_v61 }
  0x43   :  { %3236 = vmatprep.subr.bf16.mxu0 %v4696_v20  ;;  %3400 = vmatprep.subr.bf16.mxu1 %v4698_v21  ;;  %v4752_v20 = vcombine.high %v207_v13, %v211_v14  ;;  %v215_v21 = vld [vmem:[%s7273_s1 + $0x600] sm:$0xff]  ;;  %v4754_v24 = vcombine.high %v208_v15, %v212_v17  ;;  %v260_v6 = vld [vmem:[%s7273_s1 + $0x768] sm:$0xff] }
  0x44   :  { %v4760_v28 = vcombine.high %v215_v21, %v219_v22  ;;  %v264_v13 = vld [vmem:[%s7273_s1 + $0x788] sm:$0xff]  ;;  %v4802_v14 = vcombine.high %v256_v4, %v260_v6 }
  0x45   :  { %3228 = vmatmul.mubr.bf16.vlgmr.msra.gmra.mrb[0].mxu0 %v5652_v25  ;;  %3392 = vmatmul.mubr.bf16.vlgmr.msra.gmra.mrb[0].mxu1 %v5652_v25 }
  0x46   :  { %3237 = vmatpush1.bf16.msra.mxu0 %v4695_v27  ;;  %3401 = vmatpush1.bf16.msra.mxu1 %v4697_v29  ;;  %v4753_v27 = vcombine.low %v208_v15, %v212_v17  ;;  %v223_v29 = vld [vmem:[%s7273_s1 + $0x640] sm:$0xff]  ;;  %v268_v15 = vld [vmem:[%s7273_s1 + $0x7a8] sm:$0xff]  ;;  %v4801_v17 = vcombine.low %v256_v4, %v260_v6 }
  0x47   :  { %3238 = vmatprep.subr.bf16.mxu0 %v4704_v30  ;;  %3402 = vmatprep.subr.bf16.mxu1 %v4706_v33  ;;  %v227_v30 = vld [vmem:[%s7273_s1 + $0x660] sm:$0xff]  ;;  %v4759_v33 = vcombine.low %v215_v21, %v219_v22  ;;  %v272_v21 = vld [vmem:[%s7273_s1 + $0x7c8] sm:$0xff]  ;;  %v4810_v22 = vcombine.high %v264_v13, %v268_v15  ;;  %v4809_v59 = vcombine.low %v264_v13, %v268_v15 }
  0x48   :  { %3268 = vmatprep.mubr.bf16.mxu0 %v5674_v35  ;;  %3432 = vmatprep.mubr.bf16.mxu1 %v5674_v35  ;;  %v4817_v32 = vcombine.low %v272_v21, %v276_v23 }
  0x4a   :  { %3239 = vmatpush1.bf16.msra.mxu0 %v4703_v38  ;;  %3403 = vmatpush1.bf16.msra.mxu1 %v4705_v39  ;;  %v4768_v38 = vcombine.high %v223_v29, %v227_v30  ;;  %v231_v39 = vld [vmem:[%s7273_s1 + $0x680] sm:$0xff] }
  0x4b   :  { %3240 = vmatprep.subr.bf16.mxu0 %v4712_v40  ;;  %3404 = vmatprep.subr.bf16.mxu1 %v4714_v44  ;;  %v235_v40 = vld [vmem:[%s7273_s1 + $0x6a0] sm:$0xff]  ;;  %v4767_v44 = vcombine.low %v223_v29, %v227_v30  ;;  %v280_v29 = vld [vmem:[%s7273_s1 + $0x808] sm:$0xff]  ;;  %v4818_v30 = vcombine.high %v272_v21, %v276_v23 }
  0x4e   :  { %3241 = vmatpush1.bf16.msra.mxu0 %v4711_v46  ;;  %3405 = vmatpush1.bf16.msra.mxu1 %v4713_v47  ;;  %v4776_v46 = vcombine.high %v231_v39, %v235_v40  ;;  %v239_v47 = vld [vmem:[%s7273_s1 + $0x6c0] sm:$0xff] }
  0x4f   :  { %3242 = vmatprep.subr.bf16.mxu0 %v4720_v48  ;;  %3406 = vmatprep.subr.bf16.mxu1 %v4722_v52  ;;  %v243_v48 = vld [vmem:[%s7273_s1 + $0x6e0] sm:$0xff]  ;;  %v4775_v52 = vcombine.low %v231_v39, %v235_v40  ;;  %v288_v39 = vld [vmem:[%s7273_s1 + $0x848] sm:$0xff]  ;;  %v4826_v40 = vcombine.high %v280_v29, %v284_v63 }
  0x52   :  { %3243 = vmatpush1.bf16.msra.mxu0 %v4719_v55  ;;  %3407 = vmatpush1.bf16.msra.mxu1 %v4721_v56  ;;  %v4784_v55 = vcombine.high %v239_v47, %v243_v48  ;;  %v247_v56 = vld [vmem:[%s7273_s1 + $0x700] sm:$0xff] }
  0x53   :  { %3244 = vmatprep.subr.bf16.mxu0 %v4728_v57  ;;  %3408 = vmatprep.subr.bf16.mxu1 %v4730_v62  ;;  %v251_v57 = vld [vmem:[%s7273_s1 + $0x720] sm:$0xff]  ;;  %v4783_v62 = vcombine.low %v239_v47, %v243_v48 }
  0x56   :  { %3245 = vmatpush1.bf16.msra.mxu0 %v4727_v1  ;;  %3409 = vmatpush1.bf16.msra.mxu1 %v4729_v2  ;;  %v4792_v1 = vcombine.high %v247_v56, %v251_v57  ;;  %v255_v2 = vld [vmem:[%s7273_s1 + $0x740] sm:$0xff] }
  0x57   :  { %3246 = vmatprep.subr.bf16.mxu0 %v4736_v3  ;;  %3410 = vmatprep.subr.bf16.mxu1 %v4738_v7  ;;  %v259_v3 = vld [vmem:[%s7273_s1 + $0x760] sm:$0xff]  ;;  %v4791_v7 = vcombine.low %v247_v56, %v251_v57 }
  0x5a   :  { %3247 = vmatpush1.bf16.msra.mxu0 %v4735_v10  ;;  %3411 = vmatpush1.bf16.msra.mxu1 %v4737_v11  ;;  %v4800_v10 = vcombine.high %v255_v2, %v259_v3  ;;  %v263_v11 = vld [vmem:[%s7273_s1 + $0x780] sm:$0xff] }
  0x5b   :  { %3248 = vmatprep.subr.bf16.mxu0 %v4744_v12  ;;  %3412 = vmatprep.subr.bf16.mxu1 %v4746_v16  ;;  %v267_v12 = vld [vmem:[%s7273_s1 + $0x7a0] sm:$0xff]  ;;  %v4799_v16 = vcombine.low %v255_v2, %v259_v3 }
  0x5e   :  { %3249 = vmatpush1.bf16.msra.mxu0 %v4743_v18  ;;  %3413 = vmatpush1.bf16.msra.mxu1 %v4745_v19  ;;  %v4808_v18 = vcombine.high %v263_v11, %v267_v12  ;;  %v271_v19 = vld [vmem:[%s7273_s1 + $0x7c0] sm:$0xff] }
  0x5f   :  { %3250 = vmatprep.subr.bf16.mxu0 %v4752_v20  ;;  %3414 = vmatprep.subr.bf16.mxu1 %v4754_v24  ;;  %v275_v20 = vld [vmem:[%s7273_s1 + $0x7e0] sm:$0xff]  ;;  %v4807_v24 = vcombine.low %v263_v11, %v267_v12 }
  0x62   :  { %3251 = vmatpush1.bf16.msra.mxu0 %v4751_v26  ;;  %3415 = vmatpush1.bf16.msra.mxu1 %v4753_v27  ;;  %v4816_v26 = vcombine.high %v271_v19, %v275_v20  ;;  %v279_v27 = vld [vmem:[%s7273_s1 + $0x800] sm:$0xff] }
  0x63   :  { %3252 = vmatprep.subr.bf16.mxu0 %v4760_v28  ;;  %3416 = vmatprep.subr.bf16.mxu1 %v4762_v31  ;;  %v283_v28 = vld [vmem:[%s7273_s1 + $0x820] sm:$0xff]  ;;  %v4815_v31 = vcombine.low %v271_v19, %v275_v20 }
  0x64   :  { %v4823_v53 = vcombine.low %v279_v27, %v283_v28 }
  0x66   :  { %3253 = vmatpush1.bf16.msra.mxu0 %v4759_v33  ;;  %3417 = vmatpush1.bf16.msra.mxu1 %v4761_v34  ;;  %v4824_v33 = vcombine.high %v279_v27, %v283_v28  ;;  %v287_v34 = vld [vmem:[%s7273_s1 + $0x840] sm:$0xff] }
  0x67   :  { %3254 = vmatprep.subr.bf16.mxu0 %v4768_v38  ;;  %3418 = vmatprep.subr.bf16.mxu1 %v4770_v42  ;;  %v291_v38 = vld [vmem:[%s7273_s1 + $0x860] sm:$0xff]  ;;  %v5868_v42 = vcombine.high %v5652_v25, %v5652_v25 }
  0x6a   :  { %3255 = vmatpush1.bf16.msra.mxu0 %v4767_v44  ;;  %3419 = vmatpush1.bf16.msra.mxu1 %v4769_v45 }
  0x6b   :  { %3256 = vmatprep.subr.bf16.mxu0 %v4776_v46  ;;  %3420 = vmatprep.subr.bf16.mxu1 %v4778_v50 }
  0x6e   :  { %3257 = vmatpush1.bf16.msra.mxu0 %v4775_v52  ;;  %3421 = vmatpush1.bf16.msra.mxu1 %v4777_v54 }
  0x6f   :  { %3258 = vmatprep.subr.bf16.mxu0 %v4784_v55  ;;  %3422 = vmatprep.subr.bf16.mxu1 %v4786_v60 }
  0x72   :  { %3259 = vmatpush1.bf16.msra.mxu0 %v4783_v62  ;;  %3423 = vmatpush1.bf16.msra.mxu1 %v4785_v0 }
  0x73   :  { %3260 = vmatprep.subr.bf16.mxu0 %v4792_v1  ;;  %3424 = vmatprep.subr.bf16.mxu1 %v4794_v5 }
  0x76   :  { %3261 = vmatpush1.bf16.msra.mxu0 %v4791_v7  ;;  %3425 = vmatpush1.bf16.msra.mxu1 %v4793_v8 }
  0x77   :  { %3262 = vmatprep.subr.bf16.mxu0 %v4800_v10  ;;  %3426 = vmatprep.subr.bf16.mxu1 %v4802_v14 }
  0x7a   :  { %3263 = vmatpush1.bf16.msra.mxu0 %v4799_v16  ;;  %3427 = vmatpush1.bf16.msra.mxu1 %v4801_v17 }
  0x7b   :  { %3264 = vmatprep.subr.bf16.mxu0 %v4808_v18  ;;  %3428 = vmatprep.subr.bf16.mxu1 %v4810_v22 }
  0x7e   :  { %3265 = vmatpush1.bf16.msra.mxu0 %v4807_v24  ;;  %3429 = vmatpush1.bf16.msra.mxu1 %v4809_v59 }
  0x7f   :  { %3266 = vmatprep.subr.bf16.mxu0 %v4816_v26  ;;  %3430 = vmatprep.subr.bf16.mxu1 %v4818_v30 }
  0x82   :  { %3267 = vmatpush1.bf16.msra.mxu0 %v4815_v31 }
  0x83   :  { %10 = vsyncpa [#allocation3], 0  ;;  %3431 = vmatpush1.bf16.msra.mxu1 %v4817_v32  ;;  %3277 = vmatprep.subr.bf16.mxu0 %v4824_v33  ;;  %v4825_v44 = vcombine.low %v280_v29, %v284_v63  ;;  %v4832_v45 = vcombine.high %v287_v34, %v291_v38  ;;  %v4834_v46 = vcombine.high %v288_v39, %v292_v41  ;;  %v295_v47 = vld [vmem:[%s7273_s1 + $0x880] sm:$0xff]  ;;  %v296_v49 = vld [vmem:[%s7273_s1 + $0x888] sm:$0xff] }
  0x84   :  { %3441 = vmatprep.subr.bf16.mxu1 %v4826_v40  ;;  %v299_v48 = vld [vmem:[%s7273_s1 + $0x8a0] sm:$0xff]  ;;  %v300_v50 = vld [vmem:[%s7273_s1 + $0x8a8] sm:$0xff]  ;;  %v4831_v51 = vcombine.low %v287_v34, %v291_v38  ;;  %v4833_v52 = vcombine.low %v288_v39, %v292_v41 }
  0x85   :  { %3269 = vmatmul.mubr.bf16.vlgmr.msra.gmra.mrb[0].mxu0 %v5868_v42  ;;  %v4840_v54 = vcombine.high %v295_v47, %v299_v48  ;;  %v4842_v55 = vcombine.high %v296_v49, %v300_v50  ;;  %v303_v56 = vld [vmem:[%s7273_s1 + $0x8c0] sm:$0xff]  ;;  %v304_v58 = vld [vmem:[%s7273_s1 + $0x8c8] sm:$0xff]  ;;  %v4839_v61 = vcombine.low %v295_v47, %v299_v48  ;;  %v4841_v62 = vcombine.low %v296_v49, %v300_v50 }
  0x86   :  { %3278 = vmatpush1.bf16.msra.mxu0 %v4823_v53  ;;  %3433 = vmatmul.mubr.bf16.vlgmr.msra.gmra.mrb[0].mxu1 %v5868_v42  ;;  %v307_v57 = vld [vmem:[%s7273_s1 + $0x8e0] sm:$0xff]  ;;  %v308_v60 = vld [vmem:[%s7273_s1 + $0x8e8] sm:$0xff] }
  0x87   :  { %3442 = vmatpush1.bf16.msra.mxu1 %v4825_v44  ;;  %3279 = vmatprep.subr.bf16.mxu0 %v4832_v45  ;;  %v4848_v0 = vcombine.high %v303_v56, %v307_v57  ;;  %v4850_v1 = vcombine.high %v304_v58, %v308_v60  ;;  %v311_v2 = vld [vmem:[%s7273_s1 + $0x900] sm:$0xff]  ;;  %v312_v4 = vld [vmem:[%s7273_s1 + $0x908] sm:$0xff]  ;;  %v4847_v6 = vcombine.low %v303_v56, %v307_v57 }
  0x88   :  { %3443 = vmatprep.subr.bf16.mxu1 %v4834_v46  ;;  %3309 = vmatprep.mubr.bf16.mxu0 %v5677_v36  ;;  %v315_v3 = vld [vmem:[%s7273_s1 + $0x920] sm:$0xff]  ;;  %v316_v5 = vld [vmem:[%s7273_s1 + $0x928] sm:$0xff]  ;;  %v4849_v7 = vcombine.low %v304_v58, %v308_v60 }
  0x89   :  { %3473 = vmatprep.mubr.bf16.mxu1 %v5677_v36  ;;  %v4856_v8 = vcombine.high %v311_v2, %v315_v3  ;;  %v4858_v10 = vcombine.high %v312_v4, %v316_v5  ;;  %v319_v11 = vld [vmem:[%s7273_s1 + $0x940] sm:$0xff]  ;;  %v320_v13 = vld [vmem:[%s7273_s1 + $0x948] sm:$0xff]  ;;  %v4855_v15 = vcombine.low %v311_v2, %v315_v3  ;;  %v4857_v16 = vcombine.low %v312_v4, %v316_v5 }
  0x8a   :  { %3280 = vmatpush1.bf16.msra.mxu0 %v4831_v51  ;;  %v323_v12 = vld [vmem:[%s7273_s1 + $0x960] sm:$0xff]  ;;  %v324_v14 = vld [vmem:[%s7273_s1 + $0x968] sm:$0xff] }
  0x8b   :  { %3444 = vmatpush1.bf16.msra.mxu1 %v4833_v52  ;;  %3281 = vmatprep.subr.bf16.mxu0 %v4840_v54  ;;  %v4864_v17 = vcombine.high %v319_v11, %v323_v12  ;;  %v4866_v18 = vcombine.high %v320_v13, %v324_v14  ;;  %v327_v19 = vld [vmem:[%s7273_s1 + $0x980] sm:$0xff]  ;;  %v328_v21 = vld [vmem:[%s7273_s1 + $0x988] sm:$0xff]  ;;  %v4863_v23 = vcombine.low %v319_v11, %v323_v12 }
  0x8c   :  { %3445 = vmatprep.subr.bf16.mxu1 %v4842_v55  ;;  %v331_v20 = vld [vmem:[%s7273_s1 + $0x9a0] sm:$0xff]  ;;  %v332_v22 = vld [vmem:[%s7273_s1 + $0x9a8] sm:$0xff]  ;;  %v4865_v24 = vcombine.low %v320_v13, %v324_v14 }
  0x8d   :  { %v4872_v59 = vcombine.high %v327_v19, %v331_v20  ;;  %v4874_v26 = vcombine.high %v328_v21, %v332_v22  ;;  %v335_v27 = vld [vmem:[%s7273_s1 + $0x9c0] sm:$0xff]  ;;  %v336_v29 = vld [vmem:[%s7273_s1 + $0x9c8] sm:$0xff]  ;;  %v4871_v63 = vcombine.low %v327_v19, %v331_v20  ;;  %v4873_v31 = vcombine.low %v328_v21, %v332_v22 }
  0x8e   :  { %3282 = vmatpush1.bf16.msra.mxu0 %v4839_v61  ;;  %v339_v28 = vld [vmem:[%s7273_s1 + $0x9e0] sm:$0xff]  ;;  %v340_v30 = vld [vmem:[%s7273_s1 + $0x9e8] sm:$0xff] }
  0x8f   :  { %3446 = vmatpush1.bf16.msra.mxu1 %v4841_v62  ;;  %3283 = vmatprep.subr.bf16.mxu0 %v4848_v0  ;;  %v4880_v32 = vcombine.high %v335_v27, %v339_v28  ;;  %v4882_v33 = vcombine.high %v336_v29, %v340_v30  ;;  %v343_v34 = vld [vmem:[%s7273_s1 + $0xa00] sm:$0xff]  ;;  %v344_v39 = vld [vmem:[%s7273_s1 + $0xa08] sm:$0xff]  ;;  %v4879_v41 = vcombine.low %v335_v27, %v339_v28 }
  0x90   :  { %3447 = vmatprep.subr.bf16.mxu1 %v4850_v1  ;;  %v347_v38 = vld [vmem:[%s7273_s1 + $0xa20] sm:$0xff]  ;;  %v348_v40 = vld [vmem:[%s7273_s1 + $0xa28] sm:$0xff]  ;;  %v4881_v53 = vcombine.low %v336_v29, %v340_v30 }
  0x91   :  { %v4888_v44 = vcombine.high %v343_v34, %v347_v38  ;;  %v4890_v45 = vcombine.high %v344_v39, %v348_v40  ;;  %v351_v46 = vld [vmem:[%s7273_s1 + $0xa40] sm:$0xff]  ;;  %v352_v48 = vld [vmem:[%s7273_s1 + $0xa48] sm:$0xff]  ;;  %v4887_v50 = vcombine.low %v343_v34, %v347_v38  ;;  %v4889_v51 = vcombine.low %v344_v39, %v348_v40 }
  0x92   :  { %3284 = vmatpush1.bf16.msra.mxu0 %v4847_v6  ;;  %v355_v47 = vld [vmem:[%s7273_s1 + $0xa60] sm:$0xff]  ;;  %v356_v49 = vld [vmem:[%s7273_s1 + $0xa68] sm:$0xff] }
  0x93   :  { %3448 = vmatpush1.bf16.msra.mxu1 %v4849_v7  ;;  %3285 = vmatprep.subr.bf16.mxu0 %v4856_v8  ;;  %v4896_v52 = vcombine.high %v351_v46, %v355_v47  ;;  %v4898_v54 = vcombine.high %v352_v48, %v356_v49  ;;  %v359_v55 = vld [vmem:[%s7273_s1 + $0xa80] sm:$0xff]  ;;  %v360_v57 = vld [vmem:[%s7273_s1 + $0xa88] sm:$0xff]  ;;  %v4895_v60 = vcombine.low %v351_v46, %v355_v47 }
  0x94   :  { %3449 = vmatprep.subr.bf16.mxu1 %v4858_v10  ;;  %v363_v56 = vld [vmem:[%s7273_s1 + $0xaa0] sm:$0xff]  ;;  %v364_v58 = vld [vmem:[%s7273_s1 + $0xaa8] sm:$0xff]  ;;  %v4897_v61 = vcombine.low %v352_v48, %v356_v49 }
  0x95   :  { %v4904_v62 = vcombine.high %v359_v55, %v363_v56  ;;  %v4906_v0 = vcombine.high %v360_v57, %v364_v58  ;;  %v367_v1 = vld [vmem:[%s7273_s1 + $0xac0] sm:$0xff]  ;;  %v368_v3 = vld [vmem:[%s7273_s1 + $0xac8] sm:$0xff]  ;;  %v4903_v5 = vcombine.low %v359_v55, %v363_v56  ;;  %v4905_v6 = vcombine.low %v360_v57, %v364_v58 }
  0x96   :  { %3286 = vmatpush1.bf16.msra.mxu0 %v4855_v15  ;;  %v371_v2 = vld [vmem:[%s7273_s1 + $0xae0] sm:$0xff]  ;;  %v372_v4 = vld [vmem:[%s7273_s1 + $0xae8] sm:$0xff] }
  0x97   :  { %3450 = vmatpush1.bf16.msra.mxu1 %v4857_v16  ;;  %3287 = vmatprep.subr.bf16.mxu0 %v4864_v17  ;;  %v4912_v7 = vcombine.high %v367_v1, %v371_v2  ;;  %v4914_v8 = vcombine.high %v368_v3, %v372_v4  ;;  %v375_v10 = vld [vmem:[%s7273_s1 + $0xb00] sm:$0xff]  ;;  %v376_v12 = vld [vmem:[%s7273_s1 + $0xb08] sm:$0xff]  ;;  %v4911_v14 = vcombine.low %v367_v1, %v371_v2 }
  0x98   :  { %3451 = vmatprep.subr.bf16.mxu1 %v4866_v18  ;;  %v379_v11 = vld [vmem:[%s7273_s1 + $0xb20] sm:$0xff]  ;;  %v380_v13 = vld [vmem:[%s7273_s1 + $0xb28] sm:$0xff]  ;;  %v4913_v15 = vcombine.low %v368_v3, %v372_v4  ;;  %v6074_v2 = vcombine.high %v5677_v36, %v5677_v36 }
  0x99   :  { %v4920_v16 = vcombine.high %v375_v10, %v379_v11  ;;  %v4922_v17 = vcombine.high %v376_v12, %v380_v13  ;;  %v383_v18 = vld [vmem:[%s7273_s1 + $0xb40] sm:$0xff]  ;;  %v384_v20 = vld [vmem:[%s7273_s1 + $0xb48] sm:$0xff]  ;;  %v4919_v22 = vcombine.low %v375_v10, %v379_v11 }
  0x9a   :  { %3288 = vmatpush1.bf16.msra.mxu0 %v4863_v23  ;;  %v387_v19 = vld [vmem:[%s7273_s1 + $0xb60] sm:$0xff]  ;;  %v388_v21 = vld [vmem:[%s7273_s1 + $0xb68] sm:$0xff]  ;;  %v4921_v23 = vcombine.low %v376_v12, %v380_v13 }
  0x9b   :  { %3452 = vmatpush1.bf16.msra.mxu1 %v4865_v24  ;;  %3289 = vmatprep.subr.bf16.mxu0 %v4872_v59  ;;  %v4928_v24 = vcombine.high %v383_v18, %v387_v19  ;;  %v4930_v59 = vcombine.high %v384_v20, %v388_v21  ;;  %v395_v27 = vld [vmem:[%s7273_s1 + $0xba0] sm:$0xff]  ;;  %v392_v28 = vld [vmem:[%s7273_s1 + $0xb88] sm:$0xff]  ;;  %v4927_v30 = vcombine.low %v383_v18, %v387_v19 }
  0x9c   :  { %3453 = vmatprep.subr.bf16.mxu1 %v4874_v26  ;;  %v391_v26 = vld [vmem:[%s7273_s1 + $0xb80] sm:$0xff]  ;;  %v396_v29 = vld [vmem:[%s7273_s1 + $0xba8] sm:$0xff] }
  0x9d   :  { %v403_v34 = vld [vmem:[%s7273_s1 + $0xbe0] sm:$0xff]  ;;  %v400_v38 = vld [vmem:[%s7273_s1 + $0xbc8] sm:$0xff]  ;;  %v4935_v40 = vcombine.low %v391_v26, %v395_v27 }
  0x9e   :  { %3290 = vmatpush1.bf16.msra.mxu0 %v4871_v63  ;;  %v4929_v63 = vcombine.low %v384_v20, %v388_v21  ;;  %v404_v39 = vld [vmem:[%s7273_s1 + $0xbe8] sm:$0xff]  ;;  %v411_v46 = vld [vmem:[%s7273_s1 + $0xc20] sm:$0xff] }
  0x9f   :  { %3454 = vmatpush1.bf16.msra.mxu1 %v4873_v31  ;;  %3291 = vmatprep.subr.bf16.mxu0 %v4880_v32  ;;  %v4936_v31 = vcombine.high %v391_v26, %v395_v27  ;;  %v4938_v32 = vcombine.high %v392_v28, %v396_v29  ;;  %v408_v47 = vld [vmem:[%s7273_s1 + $0xc08] sm:$0xff]  ;;  %v419_v55 = vld [vmem:[%s7273_s1 + $0xc60] sm:$0xff] }
  0xa0   :  { %3455 = vmatprep.subr.bf16.mxu1 %v4882_v33  ;;  %v399_v33 = vld [vmem:[%s7273_s1 + $0xbc0] sm:$0xff]  ;;  %v412_v48 = vld [vmem:[%s7273_s1 + $0xc28] sm:$0xff] }
  0xa1   :  { %v4943_v49 = vcombine.low %v399_v33, %v403_v34  ;;  %v416_v56 = vld [vmem:[%s7273_s1 + $0xc48] sm:$0xff]  ;;  %v427_v1 = vld [vmem:[%s7273_s1 + $0xca0] sm:$0xff] }
  0xa2   :  { %3292 = vmatpush1.bf16.msra.mxu0 %v4879_v41  ;;  %v4937_v41 = vcombine.low %v392_v28, %v396_v29  ;;  %v420_v57 = vld [vmem:[%s7273_s1 + $0xc68] sm:$0xff]  ;;  %v431_v10 = vld [vmem:[%s7273_s1 + $0xcc0] sm:$0xff] }
  0xa3   :  { %3456 = vmatpush1.bf16.msra.mxu1 %v4881_v53  ;;  %3293 = vmatprep.subr.bf16.mxu0 %v4888_v44  ;;  %v4944_v53 = vcombine.high %v399_v33, %v403_v34  ;;  %v4946_v44 = vcombine.high %v400_v38, %v404_v39  ;;  %v424_v3 = vld [vmem:[%s7273_s1 + $0xc88] sm:$0xff]  ;;  %v435_v11 = vld [vmem:[%s7273_s1 + $0xce0] sm:$0xff] }
  0xa4   :  { %3457 = vmatprep.subr.bf16.mxu1 %v4890_v45  ;;  %v407_v45 = vld [vmem:[%s7273_s1 + $0xc00] sm:$0xff]  ;;  %v428_v4 = vld [vmem:[%s7273_s1 + $0xca8] sm:$0xff] }
  0xa5   :  { %v4951_v58 = vcombine.low %v407_v45, %v411_v46  ;;  %v432_v12 = vld [vmem:[%s7273_s1 + $0xcc8] sm:$0xff]  ;;  %v439_v18 = vld [vmem:[%s7273_s1 + $0xd00] sm:$0xff] }
  0xa6   :  { %3294 = vmatpush1.bf16.msra.mxu0 %v4887_v50  ;;  %v4945_v50 = vcombine.low %v400_v38, %v404_v39  ;;  %v436_v13 = vld [vmem:[%s7273_s1 + $0xce8] sm:$0xff]  ;;  %v443_v19 = vld [vmem:[%s7273_s1 + $0xd20] sm:$0xff] }
  0xa7   :  { %3458 = vmatpush1.bf16.msra.mxu1 %v4889_v51  ;;  %3295 = vmatprep.subr.bf16.mxu0 %v4896_v52  ;;  %v4952_v51 = vcombine.high %v407_v45, %v411_v46  ;;  %v4954_v52 = vcombine.high %v408_v47, %v412_v48  ;;  %v440_v20 = vld [vmem:[%s7273_s1 + $0xd08] sm:$0xff]  ;;  %v447_v26 = vld [vmem:[%s7273_s1 + $0xd40] sm:$0xff] }
  0xa8   :  { %3459 = vmatprep.subr.bf16.mxu1 %v4898_v54  ;;  %v415_v54 = vld [vmem:[%s7273_s1 + $0xc40] sm:$0xff]  ;;  %v444_v21 = vld [vmem:[%s7273_s1 + $0xd28] sm:$0xff] }
  0xa9   :  { %v451_v27 = vld [vmem:[%s7273_s1 + $0xd60] sm:$0xff]  ;;  %v448_v28 = vld [vmem:[%s7273_s1 + $0xd48] sm:$0xff] }
  0xaa   :  { %3296 = vmatpush1.bf16.msra.mxu0 %v4895_v60  ;;  %v4953_v60 = vcombine.low %v408_v47, %v412_v48  ;;  %v452_v29 = vld [vmem:[%s7273_s1 + $0xd68] sm:$0xff]  ;;  %v455_v33 = vld [vmem:[%s7273_s1 + $0xd80] sm:$0xff] }
  0xab   :  { %3460 = vmatpush1.bf16.msra.mxu1 %v4897_v61  ;;  %3297 = vmatprep.subr.bf16.mxu0 %v4904_v62  ;;  %v4960_v61 = vcombine.high %v415_v54, %v419_v55  ;;  %v4962_v62 = vcombine.high %v416_v56, %v420_v57  ;;  %v459_v34 = vld [vmem:[%s7273_s1 + $0xda0] sm:$0xff]  ;;  %v456_v38 = vld [vmem:[%s7273_s1 + $0xd88] sm:$0xff] }
  0xac   :  { %3461 = vmatprep.subr.bf16.mxu1 %v4906_v0  ;;  %v423_v0 = vld [vmem:[%s7273_s1 + $0xc80] sm:$0xff]  ;;  %v460_v39 = vld [vmem:[%s7273_s1 + $0xda8] sm:$0xff] }
  0xad   :  { %v463_v45 = vld [vmem:[%s7273_s1 + $0xdc0] sm:$0xff]  ;;  %v464_v47 = vld [vmem:[%s7273_s1 + $0xdc8] sm:$0xff] }
  0xae   :  { %3298 = vmatpush1.bf16.msra.mxu0 %v4903_v5  ;;  %v4959_v5 = vcombine.low %v415_v54, %v419_v55  ;;  %v467_v46 = vld [vmem:[%s7273_s1 + $0xde0] sm:$0xff]  ;;  %v468_v48 = vld [vmem:[%s7273_s1 + $0xde8] sm:$0xff] }
  0xaf   :  { %3462 = vmatpush1.bf16.msra.mxu1 %v4905_v6  ;;  %3299 = vmatprep.subr.bf16.mxu0 %v4912_v7  ;;  %v4961_v6 = vcombine.low %v416_v56, %v420_v57  ;;  %v4968_v7 = vcombine.high %v423_v0, %v427_v1  ;;  %v471_v54 = vld [vmem:[%s7273_s1 + $0xe00] sm:$0xff]  ;;  %v472_v56 = vld [vmem:[%s7273_s1 + $0xe08] sm:$0xff] }
  0xb0   :  { %3463 = vmatprep.subr.bf16.mxu1 %v4914_v8  ;;  %v4970_v8 = vcombine.high %v424_v3, %v428_v4  ;;  %v475_v55 = vld [vmem:[%s7273_s1 + $0xe20] sm:$0xff]  ;;  %v476_v57 = vld [vmem:[%s7273_s1 + $0xe28] sm:$0xff] }
  0xb2   :  { %3300 = vmatpush1.bf16.msra.mxu0 %v4911_v14  ;;  %v4967_v14 = vcombine.low %v423_v0, %v427_v1  ;;  %v479_v0 = vld [vmem:[%s7273_s1 + $0xe40] sm:$0xff] }
  0xb3   :  { %3464 = vmatpush1.bf16.msra.mxu1 %v4913_v15  ;;  %3301 = vmatprep.subr.bf16.mxu0 %v4920_v16  ;;  %v4969_v15 = vcombine.low %v424_v3, %v428_v4  ;;  %v4976_v16 = vcombine.high %v431_v10, %v435_v11  ;;  %v483_v1 = vld [vmem:[%s7273_s1 + $0xe60] sm:$0xff]  ;;  %v480_v3 = vld [vmem:[%s7273_s1 + $0xe48] sm:$0xff] }
  0xb4   :  { %3465 = vmatprep.subr.bf16.mxu1 %v4922_v17  ;;  %v4978_v17 = vcombine.high %v432_v12, %v436_v13  ;;  %v484_v4 = vld [vmem:[%s7273_s1 + $0xe68] sm:$0xff] }
  0xb6   :  { %3302 = vmatpush1.bf16.msra.mxu0 %v4919_v22  ;;  %v4975_v22 = vcombine.low %v431_v10, %v435_v11  ;;  %v487_v10 = vld [vmem:[%s7273_s1 + $0xe80] sm:$0xff] }
  0xb7   :  { %3466 = vmatpush1.bf16.msra.mxu1 %v4921_v23  ;;  %3303 = vmatprep.subr.bf16.mxu0 %v4928_v24  ;;  %v4977_v23 = vcombine.low %v432_v12, %v436_v13  ;;  %v4984_v24 = vcombine.high %v439_v18, %v443_v19  ;;  %v491_v11 = vld [vmem:[%s7273_s1 + $0xea0] sm:$0xff]  ;;  %v488_v12 = vld [vmem:[%s7273_s1 + $0xe88] sm:$0xff] }
  0xb8   :  { %3467 = vmatprep.subr.bf16.mxu1 %v4930_v59  ;;  %v4986_v59 = vcombine.high %v440_v20, %v444_v21  ;;  %v492_v13 = vld [vmem:[%s7273_s1 + $0xea8] sm:$0xff] }
  0xba   :  { %3304 = vmatpush1.bf16.msra.mxu0 %v4927_v30  ;;  %v4983_v30 = vcombine.low %v439_v18, %v443_v19  ;;  %v495_v18 = vld [vmem:[%s7273_s1 + $0xec0] sm:$0xff] }
  0xbb   :  { %3468 = vmatpush1.bf16.msra.mxu1 %v4929_v63  ;;  %3305 = vmatprep.subr.bf16.mxu0 %v4936_v31  ;;  %v4985_v63 = vcombine.low %v440_v20, %v444_v21  ;;  %v4992_v31 = vcombine.high %v447_v26, %v451_v27  ;;  %v499_v19 = vld [vmem:[%s7273_s1 + $0xee0] sm:$0xff]  ;;  %v496_v20 = vld [vmem:[%s7273_s1 + $0xec8] sm:$0xff] }
  0xbc   :  { %3469 = vmatprep.subr.bf16.mxu1 %v4938_v32  ;;  %v4994_v32 = vcombine.high %v448_v28, %v452_v29  ;;  %v500_v21 = vld [vmem:[%s7273_s1 + $0xee8] sm:$0xff] }
  0xbe   :  { %3306 = vmatpush1.bf16.msra.mxu0 %v4935_v40  ;;  %v4991_v40 = vcombine.low %v447_v26, %v451_v27  ;;  %v503_v26 = vld [vmem:[%s7273_s1 + $0xf00] sm:$0xff] }
  0xbf   :  { %3470 = vmatpush1.bf16.msra.mxu1 %v4937_v41  ;;  %3307 = vmatprep.subr.bf16.mxu0 %v4944_v53  ;;  %v4993_v41 = vcombine.low %v448_v28, %v452_v29  ;;  %v5000_v53 = vcombine.high %v455_v33, %v459_v34  ;;  %v507_v27 = vld [vmem:[%s7273_s1 + $0xf20] sm:$0xff]  ;;  %v504_v28 = vld [vmem:[%s7273_s1 + $0xf08] sm:$0xff] }
  0xc0   :  { %3471 = vmatprep.subr.bf16.mxu1 %v4946_v44  ;;  %v5002_v44 = vcombine.high %v456_v38, %v460_v39  ;;  %v508_v29 = vld [vmem:[%s7273_s1 + $0xf28] sm:$0xff] }
  0xc2   :  { %3308 = vmatpush1.bf16.msra.mxu0 %v4943_v49  ;;  %v4999_v49 = vcombine.low %v455_v33, %v459_v34  ;;  %v511_v33 = vld [vmem:[%s7273_s1 + $0xf40] sm:$0xff] }
  0xc3   :  { %3472 = vmatpush1.bf16.msra.mxu1 %v4945_v50  ;;  %3318 = vmatprep.subr.bf16.mxu0 %v4952_v51  ;;  %v5001_v50 = vcombine.low %v456_v38, %v460_v39  ;;  %v5008_v51 = vcombine.high %v463_v45, %v467_v46  ;;  %v515_v34 = vld [vmem:[%s7273_s1 + $0xf60] sm:$0xff]  ;;  %v512_v38 = vld [vmem:[%s7273_s1 + $0xf48] sm:$0xff] }
  0xc4   :  { %3482 = vmatprep.subr.bf16.mxu1 %v4954_v52  ;;  %v5010_v52 = vcombine.high %v464_v47, %v468_v48  ;;  %v516_v39 = vld [vmem:[%s7273_s1 + $0xf68] sm:$0xff] }
  0xc5   :  { %3310 = vmatmul.mubr.bf16.vlgmr.msra.gmra.mrb[0].mxu0 %v5680_v37 }
  0xc6   :  { %3319 = vmatpush1.bf16.msra.mxu0 %v4951_v58  ;;  %3474 = vmatmul.mubr.bf16.vlgmr.msra.gmra.mrb[0].mxu1 %v5680_v37  ;;  %v5007_v58 = vcombine.low %v463_v45, %v467_v46  ;;  %v519_v45 = vld [vmem:[%s7273_s1 + $0xf80] sm:$0xff] }
  0xc7   :  { %3483 = vmatpush1.bf16.msra.mxu1 %v4953_v60  ;;  %3320 = vmatprep.subr.bf16.mxu0 %v4960_v61  ;;  %v5009_v60 = vcombine.low %v464_v47, %v468_v48  ;;  %v5016_v61 = vcombine.high %v471_v54, %v475_v55  ;;  %v523_v46 = vld [vmem:[%s7273_s1 + $0xfa0] sm:$0xff]  ;;  %v520_v47 = vld [vmem:[%s7273_s1 + $0xf88] sm:$0xff] }
  0xc8   :  { %3484 = vmatprep.subr.bf16.mxu1 %v4962_v62  ;;  %3350 = vmatprep.mubr.bf16.mxu0 %v6074_v2  ;;  %v5018_v62 = vcombine.high %v472_v56, %v476_v57  ;;  %v524_v48 = vld [vmem:[%s7273_s1 + $0xfa8] sm:$0xff] }
  0xc9   :  { %3514 = vmatprep.mubr.bf16.mxu1 %v6074_v2 }
  0xca   :  { %3321 = vmatpush1.bf16.msra.mxu0 %v4959_v5  ;;  %v5015_v5 = vcombine.low %v471_v54, %v475_v55  ;;  %v527_v54 = vld [vmem:[%s7273_s1 + $0xfc0] sm:$0xff] }
  0xcb   :  { %3485 = vmatpush1.bf16.msra.mxu1 %v4961_v6  ;;  %3322 = vmatprep.subr.bf16.mxu0 %v4968_v7  ;;  %v5017_v6 = vcombine.low %v472_v56, %v476_v57  ;;  %v5024_v7 = vcombine.high %v479_v0, %v483_v1  ;;  %v531_v55 = vld [vmem:[%s7273_s1 + $0xfe0] sm:$0xff]  ;;  %v528_v56 = vld [vmem:[%s7273_s1 + $0xfc8] sm:$0xff] }
  0xcc   :  { %3486 = vmatprep.subr.bf16.mxu1 %v4970_v8  ;;  %v5026_v8 = vcombine.high %v480_v3, %v484_v4  ;;  %v532_v57 = vld [vmem:[%s7273_s1 + $0xfe8] sm:$0xff] }
  0xce   :  { %3323 = vmatpush1.bf16.msra.mxu0 %v4967_v14  ;;  %v5023_v14 = vcombine.low %v479_v0, %v483_v1  ;;  %v25_v0 = vld [vmem:[%s7273_s1 + $0x10] sm:$0xff] }
  0xcf   :  { %3487 = vmatpush1.bf16.msra.mxu1 %v4969_v15  ;;  %3324 = vmatprep.subr.bf16.mxu0 %v4976_v16  ;;  %v5025_v15 = vcombine.low %v480_v3, %v484_v4  ;;  %v5032_v16 = vcombine.high %v487_v10, %v491_v11  ;;  %v29_v1 = vld [vmem:[%s7273_s1 + $0x30] sm:$0xff]  ;;  %v26_v3 = vld [vmem:[%s7273_s1 + $0x18] sm:$0xff] }
  0xd0   :  { %3488 = vmatprep.subr.bf16.mxu1 %v4978_v17  ;;  %v5034_v17 = vcombine.high %v488_v12, %v492_v13  ;;  %v30_v4 = vld [vmem:[%s7273_s1 + $0x38] sm:$0xff] }
  0xd2   :  { %3325 = vmatpush1.bf16.msra.mxu0 %v4975_v22  ;;  %v5031_v22 = vcombine.low %v487_v10, %v491_v11  ;;  %v33_v10 = vld [vmem:[%s7273_s1 + $0x50] sm:$0xff] }
  0xd3   :  { %3489 = vmatpush1.bf16.msra.mxu1 %v4977_v23  ;;  %3326 = vmatprep.subr.bf16.mxu0 %v4984_v24  ;;  %v5033_v23 = vcombine.low %v488_v12, %v492_v13  ;;  %v5040_v24 = vcombine.high %v495_v18, %v499_v19  ;;  %v37_v11 = vld [vmem:[%s7273_s1 + $0x70] sm:$0xff]  ;;  %v6262_v12 = vcombine.high %v5680_v37, %v5680_v37  ;;  %v34_v13 = vld [vmem:[%s7273_s1 + $0x58] sm:$0xff] }
  0xd4   :  { %3490 = vmatprep.subr.bf16.mxu1 %v4986_v59  ;;  %v5042_v59 = vcombine.high %v496_v20, %v500_v21 }
  0xd6   :  { %3327 = vmatpush1.bf16.msra.mxu0 %v4983_v30  ;;  %v5039_v30 = vcombine.low %v495_v18, %v499_v19  ;;  %v41_v19 = vld [vmem:[%s7273_s1 + $0x90] sm:$0xff] }
  0xd7   :  { %3491 = vmatpush1.bf16.msra.mxu1 %v4985_v63  ;;  %3328 = vmatprep.subr.bf16.mxu0 %v4992_v31  ;;  %v5041_v63 = vcombine.low %v496_v20, %v500_v21  ;;  %v5048_v31 = vcombine.high %v503_v26, %v507_v27  ;;  %v45_v20 = vld [vmem:[%s7273_s1 + $0xb0] sm:$0xff]  ;;  %v42_v21 = vld [vmem:[%s7273_s1 + $0x98] sm:$0xff] }
  0xd8   :  { %3492 = vmatprep.subr.bf16.mxu1 %v4994_v32  ;;  %v5050_v32 = vcombine.high %v504_v28, %v508_v29 }
  0xda   :  { %3329 = vmatpush1.bf16.msra.mxu0 %v4991_v40  ;;  %v5047_v40 = vcombine.low %v503_v26, %v507_v27  ;;  %v49_v27 = vld [vmem:[%s7273_s1 + $0xd0] sm:$0xff] }
  0xdb   :  { %3493 = vmatpush1.bf16.msra.mxu1 %v4993_v41  ;;  %3330 = vmatprep.subr.bf16.mxu0 %v5000_v53  ;;  %v5049_v41 = vcombine.low %v504_v28, %v508_v29  ;;  %v5056_v53 = vcombine.high %v511_v33, %v515_v34  ;;  %v53_v28 = vld [vmem:[%s7273_s1 + $0xf0] sm:$0xff]  ;;  %v50_v29 = vld [vmem:[%s7273_s1 + $0xd8] sm:$0xff] }
  0xdc   :  { %3494 = vmatprep.subr.bf16.mxu1 %v5002_v44  ;;  %v5058_v44 = vcombine.high %v512_v38, %v516_v39 }
  0xde   :  { %3331 = vmatpush1.bf16.msra.mxu0 %v4999_v49  ;;  %v5055_v49 = vcombine.low %v511_v33, %v515_v34  ;;  %v57_v34 = vld [vmem:[%s7273_s1 + $0x110] sm:$0xff] }
  0xdf   :  { %3495 = vmatpush1.bf16.msra.mxu1 %v5001_v50  ;;  %3332 = vmatprep.subr.bf16.mxu0 %v5008_v51  ;;  %v5057_v50 = vcombine.low %v512_v38, %v516_v39  ;;  %v5064_v51 = vcombine.high %v519_v45, %v523_v46  ;;  %v61_v38 = vld [vmem:[%s7273_s1 + $0x130] sm:$0xff]  ;;  %v62_v39 = vld [vmem:[%s7273_s1 + $0x138] sm:$0xff] }
  0xe0   :  { %3496 = vmatprep.subr.bf16.mxu1 %v5010_v52  ;;  %v5066_v52 = vcombine.high %v520_v47, %v524_v48 }
  0xe2   :  { %3333 = vmatpush1.bf16.msra.mxu0 %v5007_v58  ;;  %v5063_v58 = vcombine.low %v519_v45, %v523_v46  ;;  %v65_v45 = vld [vmem:[%s7273_s1 + $0x150] sm:$0xff] }
  0xe3   :  { %3497 = vmatpush1.bf16.msra.mxu1 %v5009_v60  ;;  %3334 = vmatprep.subr.bf16.mxu0 %v5016_v61  ;;  %v5065_v60 = vcombine.low %v520_v47, %v524_v48  ;;  %v5072_v61 = vcombine.high %v527_v54, %v531_v55  ;;  %v69_v46 = vld [vmem:[%s7273_s1 + $0x170] sm:$0xff]  ;;  %v66_v47 = vld [vmem:[%s7273_s1 + $0x158] sm:$0xff] }
  0xe4   :  { %3498 = vmatprep.subr.bf16.mxu1 %v5018_v62  ;;  %v5074_v62 = vcombine.high %v528_v56, %v532_v57  ;;  %v70_v48 = vld [vmem:[%s7273_s1 + $0x178] sm:$0xff] }
  0xe6   :  { %3335 = vmatpush1.bf16.msra.mxu0 %v5015_v5  ;;  %v5071_v5 = vcombine.low %v527_v54, %v531_v55  ;;  %v73_v54 = vld [vmem:[%s7273_s1 + $0x190] sm:$0xff] }
  0xe7   :  { %3499 = vmatpush1.bf16.msra.mxu1 %v5017_v6  ;;  %3336 = vmatprep.subr.bf16.mxu0 %v5024_v7  ;;  %v5073_v6 = vcombine.low %v528_v56, %v532_v57  ;;  %v4572_v7 = vcombine.high %v25_v0, %v29_v1  ;;  %v77_v55 = vld [vmem:[%s7273_s1 + $0x1b0] sm:$0xff]  ;;  %v74_v56 = vld [vmem:[%s7273_s1 + $0x198] sm:$0xff] }
  0xe8   :  { %3500 = vmatprep.subr.bf16.mxu1 %v5026_v8  ;;  %v4574_v8 = vcombine.high %v26_v3, %v30_v4  ;;  %v78_v57 = vld [vmem:[%s7273_s1 + $0x1b8] sm:$0xff] }
  0xea   :  { %3337 = vmatpush1.bf16.msra.mxu0 %v5023_v14  ;;  %v38_v14 = vld [vmem:[%s7273_s1 + $0x78] sm:$0xff] }
  0xeb   :  { %3501 = vmatpush1.bf16.msra.mxu1 %v5025_v15  ;;  %3338 = vmatprep.subr.bf16.mxu0 %v5032_v16  ;;  %v4571_v15 = vcombine.low %v25_v0, %v29_v1  ;;  %v4573_v16 = vcombine.low %v26_v3, %v30_v4  ;;  %v4582_v18 = vcombine.high %v34_v13, %v38_v14  ;;  %v81_v0 = vld [vmem:[%s7273_s1 + $0x1d0] sm:$0xff]  ;;  %v82_v3 = vld [vmem:[%s7273_s1 + $0x1d8] sm:$0xff] }
  0xec   :  { %3502 = vmatprep.subr.bf16.mxu1 %v5034_v17  ;;  %v4580_v17 = vcombine.high %v33_v10, %v37_v11  ;;  %v85_v1 = vld [vmem:[%s7273_s1 + $0x1f0] sm:$0xff]  ;;  %v86_v4 = vld [vmem:[%s7273_s1 + $0x1f8] sm:$0xff] }
  0xee   :  { %3339 = vmatpush1.bf16.msra.mxu0 %v5031_v22  ;;  %v46_v22 = vld [vmem:[%s7273_s1 + $0xb8] sm:$0xff] }
  0xef   :  { %3503 = vmatpush1.bf16.msra.mxu1 %v5033_v23  ;;  %3340 = vmatprep.subr.bf16.mxu0 %v5040_v24  ;;  %v4579_v23 = vcombine.low %v33_v10, %v37_v11  ;;  %v4581_v24 = vcombine.low %v34_v13, %v38_v14  ;;  %v4590_v26 = vcombine.high %v42_v21, %v46_v22  ;;  %v89_v10 = vld [vmem:[%s7273_s1 + $0x210] sm:$0xff]  ;;  %v90_v13 = vld [vmem:[%s7273_s1 + $0x218] sm:$0xff] }
  0xf0   :  { %3504 = vmatprep.subr.bf16.mxu1 %v5042_v59  ;;  %v4588_v59 = vcombine.high %v41_v19, %v45_v20  ;;  %v93_v11 = vld [vmem:[%s7273_s1 + $0x230] sm:$0xff]  ;;  %v94_v14 = vld [vmem:[%s7273_s1 + $0x238] sm:$0xff] }
  0xf2   :  { %3341 = vmatpush1.bf16.msra.mxu0 %v5039_v30  ;;  %v54_v30 = vld [vmem:[%s7273_s1 + $0xf8] sm:$0xff] }
  0xf3   :  { %3505 = vmatpush1.bf16.msra.mxu1 %v5041_v63  ;;  %3342 = vmatprep.subr.bf16.mxu0 %v5048_v31  ;;  %v4587_v63 = vcombine.low %v41_v19, %v45_v20  ;;  %v4589_v31 = vcombine.low %v42_v21, %v46_v22  ;;  %v4598_v33 = vcombine.high %v50_v29, %v54_v30  ;;  %v97_v19 = vld [vmem:[%s7273_s1 + $0x250] sm:$0xff]  ;;  %v98_v21 = vld [vmem:[%s7273_s1 + $0x258] sm:$0xff] }
  0xf4   :  { %3506 = vmatprep.subr.bf16.mxu1 %v5050_v32  ;;  %v4596_v32 = vcombine.high %v49_v27, %v53_v28  ;;  %v101_v20 = vld [vmem:[%s7273_s1 + $0x270] sm:$0xff]  ;;  %v102_v22 = vld [vmem:[%s7273_s1 + $0x278] sm:$0xff] }
  0xf6   :  { %3343 = vmatpush1.bf16.msra.mxu0 %v5047_v40  ;;  %v4595_v40 = vcombine.low %v49_v27, %v53_v28  ;;  %v105_v27 = vld [vmem:[%s7273_s1 + $0x290] sm:$0xff] }
  0xf7   :  { %3507 = vmatpush1.bf16.msra.mxu1 %v5049_v41  ;;  %3344 = vmatprep.subr.bf16.mxu0 %v5056_v53  ;;  %v4597_v41 = vcombine.low %v50_v29, %v54_v30  ;;  %v4604_v53 = vcombine.high %v57_v34, %v61_v38  ;;  %v109_v28 = vld [vmem:[%s7273_s1 + $0x2b0] sm:$0xff]  ;;  %v106_v29 = vld [vmem:[%s7273_s1 + $0x298] sm:$0xff] }
  0xf8   :  { %3508 = vmatprep.subr.bf16.mxu1 %v5058_v44  ;;  %v110_v30 = vld [vmem:[%s7273_s1 + $0x2b8] sm:$0xff] }
  0xfa   :  { %3345 = vmatpush1.bf16.msra.mxu0 %v5055_v49  ;;  %v4603_v49 = vcombine.low %v57_v34, %v61_v38  ;;  %v113_v34 = vld [vmem:[%s7273_s1 + $0x2d0] sm:$0xff] }
  0xfb   :  { %3509 = vmatpush1.bf16.msra.mxu1 %v5057_v50  ;;  %3346 = vmatprep.subr.bf16.mxu0 %v5064_v51  ;;  %v4612_v51 = vcombine.high %v65_v45, %v69_v46  ;;  %v117_v38 = vld [vmem:[%s7273_s1 + $0x2f0] sm:$0xff] }
  0xfc   :  { %3510 = vmatprep.subr.bf16.mxu1 %v5066_v52  ;;  %v4614_v52 = vcombine.high %v66_v47, %v70_v48 }
  0xfe   :  { %3347 = vmatpush1.bf16.msra.mxu0 %v5063_v58  ;;  %v4611_v58 = vcombine.low %v65_v45, %v69_v46  ;;  %v121_v45 = vld [vmem:[%s7273_s1 + $0x310] sm:$0xff] }
  0xff   :  { %3511 = vmatpush1.bf16.msra.mxu1 %v5065_v60  ;;  %3348 = vmatprep.subr.bf16.mxu0 %v5072_v61  ;;  %v4613_v60 = vcombine.low %v66_v47, %v70_v48  ;;  %v4620_v61 = vcombine.high %v73_v54, %v77_v55  ;;  %v125_v46 = vld [vmem:[%s7273_s1 + $0x330] sm:$0xff]  ;;  %v122_v47 = vld [vmem:[%s7273_s1 + $0x318] sm:$0xff] }
 0x100   :  { %3512 = vmatprep.subr.bf16.mxu1 %v5074_v62  ;;  %v4622_v62 = vcombine.high %v74_v56, %v78_v57  ;;  %v126_v48 = vld [vmem:[%s7273_s1 + $0x338] sm:$0xff] }
 0x102   :  { %3349 = vmatpush1.bf16.msra.mxu0 %v5071_v5  ;;  %v4619_v5 = vcombine.low %v73_v54, %v77_v55  ;;  %v129_v54 = vld [vmem:[%s7273_s1 + $0x350] sm:$0xff] }
 0x103   :  { %3513 = vmatpush1.bf16.msra.mxu1 %v5073_v6  ;;  %3523 = vmatprep.subr.bf16.mxu0 %v4572_v7  ;;  %v4621_v6 = vcombine.low %v74_v56, %v78_v57  ;;  %v4628_v7 = vcombine.high %v81_v0, %v85_v1  ;;  %v133_v55 = vld [vmem:[%s7273_s1 + $0x370] sm:$0xff]  ;;  %v130_v56 = vld [vmem:[%s7273_s1 + $0x358] sm:$0xff] }
 0x104   :  { %3687 = vmatprep.subr.bf16.mxu1 %v4574_v8  ;;  %v4630_v8 = vcombine.high %v82_v3, %v86_v4  ;;  %v134_v57 = vld [vmem:[%s7273_s1 + $0x378] sm:$0xff] }
 0x105   :  { %3351 = vmatmul.mubr.bf16.vlgmr.msra.gmra.mrb[0].mxu0 %v6262_v12 }
 0x106   :  { %3515 = vmatmul.mubr.bf16.vlgmr.msra.gmra.mrb[0].mxu1 %v6262_v12  ;;  %3524 = vmatpush1.bf16.msra.mxu0 %v4571_v15  ;;  %v4627_v15 = vcombine.low %v81_v0, %v85_v1  ;;  %v137_v0 = vld [vmem:[%s7273_s1 + $0x390] sm:$0xff] }
 0x107   :  { %3688 = vmatpush1.bf16.msra.mxu1 %v4573_v16  ;;  %3525 = vmatprep.subr.bf16.mxu0 %v4580_v17  ;;  %v4629_v16 = vcombine.low %v82_v3, %v86_v4  ;;  %v4636_v17 = vcombine.high %v89_v10, %v93_v11  ;;  %v141_v1 = vld [vmem:[%s7273_s1 + $0x3b0] sm:$0xff]  ;;  %v138_v3 = vld [vmem:[%s7273_s1 + $0x398] sm:$0xff] }
 0x108   :  { %3689 = vmatprep.subr.bf16.mxu1 %v4582_v18  ;;  %3555 = vmatprep.mubr.bf16.mxu0 %v5535_v9  ;;  %v4638_v18 = vcombine.high %v90_v13, %v94_v14  ;;  %v142_v4 = vld [vmem:[%s7273_s1 + $0x3b8] sm:$0xff] }
 0x109   :  { %3719 = vmatprep.mubr.bf16.mxu1 %v5535_v9  ;;  %v58_v9 = vld [vmem:[%s7273_s1 + $0x118] sm:$0xff] }
 0x10a   :  { %3526 = vmatpush1.bf16.msra.mxu0 %v4579_v23  ;;  %v4606_v44 = vcombine.high %v58_v9, %v62_v39  ;;  %v4605_v50 = vcombine.low %v58_v9, %v62_v39  ;;  %v4635_v23 = vcombine.low %v89_v10, %v93_v11  ;;  %v114_v9 = vld [vmem:[%s7273_s1 + $0x2d8] sm:$0xff]  ;;  %v145_v10 = vld [vmem:[%s7273_s1 + $0x3d0] sm:$0xff] }
 0x10b   :  { %3690 = vmatpush1.bf16.msra.mxu1 %v4581_v24  ;;  %3527 = vmatprep.subr.bf16.mxu0 %v4588_v59  ;;  %v4637_v24 = vcombine.low %v90_v13, %v94_v14  ;;  %v4644_v59 = vcombine.high %v97_v19, %v101_v20  ;;  %v118_v39 = vld [vmem:[%s7273_s1 + $0x2f8] sm:$0xff]  ;;  %v149_v11 = vld [vmem:[%s7273_s1 + $0x3f0] sm:$0xff] }
 0x10c   :  { %3691 = vmatprep.subr.bf16.mxu1 %v4590_v26  ;;  %v4646_v26 = vcombine.high %v98_v21, %v102_v22  ;;  %v146_v13 = vld [vmem:[%s7273_s1 + $0x3d8] sm:$0xff] }
 0x10d   :  { %v150_v14 = vld [vmem:[%s7273_s1 + $0x3f8] sm:$0xff] }
 0x10e   :  { %3528 = vmatpush1.bf16.msra.mxu0 %v4587_v63  ;;  %v4643_v63 = vcombine.low %v97_v19, %v101_v20  ;;  %v153_v19 = vld [vmem:[%s7273_s1 + $0x410] sm:$0xff] }
 0x10f   :  { %3692 = vmatpush1.bf16.msra.mxu1 %v4589_v31  ;;  %3529 = vmatprep.subr.bf16.mxu0 %v4596_v32  ;;  %v4645_v31 = vcombine.low %v98_v21, %v102_v22  ;;  %v4652_v32 = vcombine.high %v105_v27, %v109_v28  ;;  %v157_v20 = vld [vmem:[%s7273_s1 + $0x430] sm:$0xff]  ;;  %v154_v21 = vld [vmem:[%s7273_s1 + $0x418] sm:$0xff] }
 0x110   :  { %3693 = vmatprep.subr.bf16.mxu1 %v4598_v33  ;;  %v4654_v33 = vcombine.high %v106_v29, %v110_v30  ;;  %v158_v22 = vld [vmem:[%s7273_s1 + $0x438] sm:$0xff] }
 0x112   :  { %3530 = vmatpush1.bf16.msra.mxu0 %v4595_v40  ;;  %v4651_v40 = vcombine.low %v105_v27, %v109_v28  ;;  %v161_v27 = vld [vmem:[%s7273_s1 + $0x450] sm:$0xff] }
 0x113   :  { %3694 = vmatpush1.bf16.msra.mxu1 %v4597_v41  ;;  %3531 = vmatprep.subr.bf16.mxu0 %v4604_v53  ;;  %v4653_v41 = vcombine.low %v106_v29, %v110_v30  ;;  %v4660_v53 = vcombine.high %v113_v34, %v117_v38  ;;  %v165_v28 = vld [vmem:[%s7273_s1 + $0x470] sm:$0xff]  ;;  %v162_v29 = vld [vmem:[%s7273_s1 + $0x458] sm:$0xff] }
 0x114   :  { %3695 = vmatprep.subr.bf16.mxu1 %v4606_v44  ;;  %v4662_v44 = vcombine.high %v114_v9, %v118_v39  ;;  %v166_v30 = vld [vmem:[%s7273_s1 + $0x478] sm:$0xff] }
 0x116   :  { %3532 = vmatpush1.bf16.msra.mxu0 %v4603_v49  ;;  %v4659_v49 = vcombine.low %v113_v34, %v117_v38  ;;  %v169_v34 = vld [vmem:[%s7273_s1 + $0x490] sm:$0xff] }
 0x117   :  { %3696 = vmatpush1.bf16.msra.mxu1 %v4605_v50  ;;  %3533 = vmatprep.subr.bf16.mxu0 %v4612_v51  ;;  %v4661_v50 = vcombine.low %v114_v9, %v118_v39  ;;  %v4668_v51 = vcombine.high %v121_v45, %v125_v46  ;;  %v173_v38 = vld [vmem:[%s7273_s1 + $0x4b0] sm:$0xff]  ;;  %v170_v9 = vld [vmem:[%s7273_s1 + $0x498] sm:$0xff] }
 0x118   :  { %3697 = vmatprep.subr.bf16.mxu1 %v4614_v52  ;;  %v4670_v52 = vcombine.high %v122_v47, %v126_v48  ;;  %v174_v39 = vld [vmem:[%s7273_s1 + $0x4b8] sm:$0xff] }
 0x11a   :  { %3534 = vmatpush1.bf16.msra.mxu0 %v4611_v58  ;;  %v4667_v58 = vcombine.low %v121_v45, %v125_v46  ;;  %v177_v45 = vld [vmem:[%s7273_s1 + $0x4d0] sm:$0xff] }
 0x11b   :  { %3698 = vmatpush1.bf16.msra.mxu1 %v4613_v60  ;;  %3535 = vmatprep.subr.bf16.mxu0 %v4620_v61  ;;  %v4669_v60 = vcombine.low %v122_v47, %v126_v48  ;;  %v4676_v61 = vcombine.high %v129_v54, %v133_v55  ;;  %v181_v46 = vld [vmem:[%s7273_s1 + $0x4f0] sm:$0xff]  ;;  %v182_v47 = vld [vmem:[%s7273_s1 + $0x4f8] sm:$0xff]  ;;  %v4715_v48 = vcombine.low %v169_v34, %v173_v38 }
 0x11c   :  { %3699 = vmatprep.subr.bf16.mxu1 %v4622_v62  ;;  %v4678_v62 = vcombine.high %v130_v56, %v134_v57 }
 0x11e   :  { %3536 = vmatpush1.bf16.msra.mxu0 %v4619_v5  ;;  %v4675_v5 = vcombine.low %v129_v54, %v133_v55  ;;  %v189_v54 = vld [vmem:[%s7273_s1 + $0x530] sm:$0xff]  ;;  %v190_v55 = vld [vmem:[%s7273_s1 + $0x538] sm:$0xff] }
 0x11f   :  { %3700 = vmatpush1.bf16.msra.mxu1 %v4621_v6  ;;  %3537 = vmatprep.subr.bf16.mxu0 %v4628_v7  ;;  %v4677_v6 = vcombine.low %v130_v56, %v134_v57  ;;  %v4684_v7 = vcombine.high %v137_v0, %v141_v1  ;;  %v4723_v56 = vcombine.low %v177_v45, %v181_v46 }
 0x120   :  { %3701 = vmatprep.subr.bf16.mxu1 %v4630_v8  ;;  %v4686_v8 = vcombine.high %v138_v3, %v142_v4 }
 0x122   :  { %3538 = vmatpush1.bf16.msra.mxu0 %v4627_v15  ;;  %v4683_v15 = vcombine.low %v137_v0, %v141_v1  ;;  %v194_v0 = vld [vmem:[%s7273_s1 + $0x558] sm:$0xff] }
 0x123   :  { %3702 = vmatpush1.bf16.msra.mxu1 %v4629_v16  ;;  %3539 = vmatprep.subr.bf16.mxu0 %v4636_v17  ;;  %v4685_v16 = vcombine.low %v138_v3, %v142_v4  ;;  %v4692_v17 = vcombine.high %v145_v10, %v149_v11  ;;  %v198_v1 = vld [vmem:[%s7273_s1 + $0x578] sm:$0xff] }
 0x124   :  { %3703 = vmatprep.subr.bf16.mxu1 %v4638_v18  ;;  %v4694_v18 = vcombine.high %v146_v13, %v150_v14 }
 0x126   :  { %3540 = vmatpush1.bf16.msra.mxu0 %v4635_v23  ;;  %v4691_v23 = vcombine.low %v145_v10, %v149_v11  ;;  %v202_v10 = vld [vmem:[%s7273_s1 + $0x598] sm:$0xff] }
 0x127   :  { %3704 = vmatpush1.bf16.msra.mxu1 %v4637_v24  ;;  %3541 = vmatprep.subr.bf16.mxu0 %v4644_v59  ;;  %v4693_v24 = vcombine.low %v146_v13, %v150_v14  ;;  %v4700_v59 = vcombine.high %v153_v19, %v157_v20  ;;  %v206_v11 = vld [vmem:[%s7273_s1 + $0x5b8] sm:$0xff]  ;;  %v4741_v14 = vcombine.low %v194_v0, %v198_v1 }
 0x128   :  { %3705 = vmatprep.subr.bf16.mxu1 %v4646_v26  ;;  %v4702_v26 = vcombine.high %v154_v21, %v158_v22 }
 0x12a   :  { %3542 = vmatpush1.bf16.msra.mxu0 %v4643_v63  ;;  %v4699_v63 = vcombine.low %v153_v19, %v157_v20  ;;  %v210_v19 = vld [vmem:[%s7273_s1 + $0x5d8] sm:$0xff] }
 0x12b   :  { %3706 = vmatpush1.bf16.msra.mxu1 %v4645_v31  ;;  %3543 = vmatprep.subr.bf16.mxu0 %v4652_v32  ;;  %v4701_v31 = vcombine.low %v154_v21, %v158_v22  ;;  %v4708_v32 = vcombine.high %v161_v27, %v165_v28  ;;  %v214_v20 = vld [vmem:[%s7273_s1 + $0x5f8] sm:$0xff]  ;;  %v4749_v22 = vcombine.low %v202_v10, %v206_v11 }
 0x12c   :  { %3707 = vmatprep.subr.bf16.mxu1 %v4654_v33  ;;  %v4710_v33 = vcombine.high %v162_v29, %v166_v30 }
 0x12e   :  { %3544 = vmatpush1.bf16.msra.mxu0 %v4651_v40  ;;  %v4707_v40 = vcombine.low %v161_v27, %v165_v28  ;;  %v218_v27 = vld [vmem:[%s7273_s1 + $0x618] sm:$0xff] }
 0x12f   :  { %3708 = vmatpush1.bf16.msra.mxu1 %v4653_v41  ;;  %3545 = vmatprep.subr.bf16.mxu0 %v4660_v53  ;;  %v4709_v41 = vcombine.low %v162_v29, %v166_v30  ;;  %v4716_v53 = vcombine.high %v169_v34, %v173_v38  ;;  %v222_v28 = vld [vmem:[%s7273_s1 + $0x638] sm:$0xff]  ;;  %v4757_v30 = vcombine.low %v210_v19, %v214_v20 }
 0x130   :  { %3709 = vmatprep.subr.bf16.mxu1 %v4662_v44  ;;  %v4718_v44 = vcombine.high %v170_v9, %v174_v39  ;;  %v226_v34 = vld [vmem:[%s7273_s1 + $0x658] sm:$0xff] }
 0x131   :  { %v230_v38 = vld [vmem:[%s7273_s1 + $0x678] sm:$0xff] }
 0x132   :  { %3546 = vmatpush1.bf16.msra.mxu0 %v4659_v49  ;;  %v4717_v49 = vcombine.low %v170_v9, %v174_v39  ;;  %v4765_v39 = vcombine.low %v218_v27, %v222_v28 }
 0x133   :  { %3710 = vmatpush1.bf16.msra.mxu1 %v4661_v50  ;;  %3547 = vmatprep.subr.bf16.mxu0 %v4668_v51  ;;  %v4724_v50 = vcombine.high %v177_v45, %v181_v46  ;;  %v234_v45 = vld [vmem:[%s7273_s1 + $0x698] sm:$0xff] }
 0x134   :  { %3711 = vmatprep.subr.bf16.mxu1 %v4670_v52  ;;  %v185_v52 = vld [vmem:[%s7273_s1 + $0x510] sm:$0xff]  ;;  %v238_v46 = vld [vmem:[%s7273_s1 + $0x6b8] sm:$0xff] }
 0x135   :  { %v4731_v3 = vcombine.low %v185_v52, %v189_v54 }
 0x136   :  { %3548 = vmatpush1.bf16.msra.mxu0 %v4667_v58  ;;  %v4732_v58 = vcombine.high %v185_v52, %v189_v54  ;;  %v242_v52 = vld [vmem:[%s7273_s1 + $0x6d8] sm:$0xff] }
 0x137   :  { %3712 = vmatpush1.bf16.msra.mxu1 %v4669_v60  ;;  %3549 = vmatprep.subr.bf16.mxu0 %v4676_v61  ;;  %v193_v61 = vld [vmem:[%s7273_s1 + $0x550] sm:$0xff]  ;;  %v246_v54 = vld [vmem:[%s7273_s1 + $0x6f8] sm:$0xff] }
 0x138   :  { %3713 = vmatprep.subr.bf16.mxu1 %v4678_v62  ;;  %v197_v62 = vld [vmem:[%s7273_s1 + $0x570] sm:$0xff] }
 0x139   :  { %v4739_v13 = vcombine.low %v193_v61, %v197_v62 }
 0x13a   :  { %3550 = vmatpush1.bf16.msra.mxu0 %v4675_v5  ;;  %v4740_v5 = vcombine.high %v193_v61, %v197_v62  ;;  %v250_v61 = vld [vmem:[%s7273_s1 + $0x718] sm:$0xff] }
 0x13b   :  { %3714 = vmatpush1.bf16.msra.mxu1 %v4677_v6  ;;  %3551 = vmatprep.subr.bf16.mxu0 %v4684_v7  ;;  %v4742_v6 = vcombine.high %v194_v0, %v198_v1  ;;  %v201_v7 = vld [vmem:[%s7273_s1 + $0x590] sm:$0xff]  ;;  %v254_v62 = vld [vmem:[%s7273_s1 + $0x738] sm:$0xff]  ;;  %v4789_v1 = vcombine.low %v242_v52, %v246_v54 }
 0x13c   :  { %3715 = vmatprep.subr.bf16.mxu1 %v4686_v8  ;;  %v205_v8 = vld [vmem:[%s7273_s1 + $0x5b0] sm:$0xff] }
 0x13d   :  { %v4747_v21 = vcombine.low %v201_v7, %v205_v8 }
 0x13e   :  { %3552 = vmatpush1.bf16.msra.mxu0 %v4683_v15  ;;  %v4748_v15 = vcombine.high %v201_v7, %v205_v8  ;;  %v258_v7 = vld [vmem:[%s7273_s1 + $0x758] sm:$0xff] }
 0x13f   :  { %3716 = vmatpush1.bf16.msra.mxu1 %v4685_v16  ;;  %3553 = vmatprep.subr.bf16.mxu0 %v4692_v17  ;;  %v4750_v16 = vcombine.high %v202_v10, %v206_v11  ;;  %v209_v17 = vld [vmem:[%s7273_s1 + $0x5d0] sm:$0xff]  ;;  %v262_v8 = vld [vmem:[%s7273_s1 + $0x778] sm:$0xff]  ;;  %v4797_v11 = vcombine.low %v250_v61, %v254_v62 }
 0x140   :  { %3717 = vmatprep.subr.bf16.mxu1 %v4694_v18  ;;  %v213_v18 = vld [vmem:[%s7273_s1 + $0x5f0] sm:$0xff] }
 0x141   :  { %v4755_v29 = vcombine.low %v209_v17, %v213_v18 }
 0x142   :  { %3554 = vmatpush1.bf16.msra.mxu0 %v4691_v23  ;;  %v4756_v23 = vcombine.high %v209_v17, %v213_v18  ;;  %v266_v17 = vld [vmem:[%s7273_s1 + $0x798] sm:$0xff] }
 0x143   :  { %3718 = vmatpush1.bf16.msra.mxu1 %v4693_v24  ;;  %3564 = vmatprep.subr.bf16.mxu0 %v4700_v59  ;;  %v4758_v24 = vcombine.high %v210_v19, %v214_v20  ;;  %v217_v59 = vld [vmem:[%s7273_s1 + $0x610] sm:$0xff]  ;;  %v270_v18 = vld [vmem:[%s7273_s1 + $0x7b8] sm:$0xff]  ;;  %v4805_v20 = vcombine.low %v258_v7, %v262_v8 }
 0x144   :  { %3728 = vmatprep.subr.bf16.mxu1 %v4702_v26  ;;  %v221_v26 = vld [vmem:[%s7273_s1 + $0x630] sm:$0xff] }
 0x145   :  { %3556 = vmatmul.mubr.bf16.vlgmr.msra.gmra.mrb[4].mxu0 %v5652_v25  ;;  %v4763_v9 = vcombine.low %v217_v59, %v221_v26 }
 0x146   :  { %3565 = vmatpush1.bf16.msra.mxu0 %v4699_v63  ;;  %3720 = vmatmul.mubr.bf16.vlgmr.msra.gmra.mrb[4].mxu1 %v5652_v25  ;;  %v178_v25 = vld [vmem:[%s7273_s1 + $0x4d8] sm:$0xff]  ;;  %v4764_v63 = vcombine.high %v217_v59, %v221_v26 }
 0x147   :  { %3729 = vmatpush1.bf16.msra.mxu1 %v4701_v31  ;;  %3566 = vmatprep.subr.bf16.mxu0 %v4708_v32  ;;  %v4726_v51 = vcombine.high %v178_v25, %v182_v47  ;;  %v4725_v57 = vcombine.low %v178_v25, %v182_v47  ;;  %v4766_v31 = vcombine.high %v218_v27, %v222_v28  ;;  %v225_v32 = vld [vmem:[%s7273_s1 + $0x650] sm:$0xff]  ;;  %v274_v59 = vld [vmem:[%s7273_s1 + $0x7d8] sm:$0xff] }
 0x148   :  { %3730 = vmatprep.subr.bf16.mxu1 %v4710_v33  ;;  %3596 = vmatprep.mubr.bf16.mxu0 %v5674_v35  ;;  %v229_v33 = vld [vmem:[%s7273_s1 + $0x670] sm:$0xff]  ;;  %v4773_v47 = vcombine.low %v226_v34, %v230_v38  ;;  %v278_v26 = vld [vmem:[%s7273_s1 + $0x7f8] sm:$0xff]  ;;  %v4813_v28 = vcombine.low %v266_v17, %v270_v18 }
 0x149   :  { %3760 = vmatprep.mubr.bf16.mxu1 %v5674_v35  ;;  %v186_v35 = vld [vmem:[%s7273_s1 + $0x518] sm:$0xff]  ;;  %v4771_v25 = vcombine.low %v225_v32, %v229_v33 }
 0x14a   :  { %3567 = vmatpush1.bf16.msra.mxu0 %v4707_v40  ;;  %v4734_v60 = vcombine.high %v186_v35, %v190_v55  ;;  %v4733_v4 = vcombine.low %v186_v35, %v190_v55  ;;  %v4772_v40 = vcombine.high %v225_v32, %v229_v33  ;;  %v4781_v55 = vcombine.low %v234_v45, %v238_v46  ;;  %v282_v32 = vld [vmem:[%s7273_s1 + $0x818] sm:$0xff] }
 0x14b   :  { %3731 = vmatpush1.bf16.msra.mxu1 %v4709_v41  ;;  %3568 = vmatprep.subr.bf16.mxu0 %v4716_v53  ;;  %v4774_v41 = vcombine.high %v226_v34, %v230_v38  ;;  %v233_v53 = vld [vmem:[%s7273_s1 + $0x690] sm:$0xff]  ;;  %v286_v33 = vld [vmem:[%s7273_s1 + $0x838] sm:$0xff]  ;;  %v4821_v38 = vcombine.low %v274_v59, %v278_v26 }
 0x14c   :  { %3732 = vmatprep.subr.bf16.mxu1 %v4718_v44  ;;  %v237_v44 = vld [vmem:[%s7273_s1 + $0x6b0] sm:$0xff] }
 0x14d   :  { %v4779_v35 = vcombine.low %v233_v53, %v237_v44 }
 0x14e   :  { %3569 = vmatpush1.bf16.msra.mxu0 %v4715_v48  ;;  %v4780_v48 = vcombine.high %v233_v53, %v237_v44  ;;  %v290_v53 = vld [vmem:[%s7273_s1 + $0x858] sm:$0xff] }
 0x14f   :  { %3733 = vmatpush1.bf16.msra.mxu1 %v4717_v49  ;;  %3570 = vmatprep.subr.bf16.mxu0 %v4724_v50  ;;  %v4782_v49 = vcombine.high %v234_v45, %v238_v46  ;;  %v241_v50 = vld [vmem:[%s7273_s1 + $0x6d0] sm:$0xff]  ;;  %v294_v44 = vld [vmem:[%s7273_s1 + $0x878] sm:$0xff]  ;;  %v4829_v46 = vcombine.low %v282_v32, %v286_v33 }
 0x150   :  { %3734 = vmatprep.subr.bf16.mxu1 %v4726_v51  ;;  %v245_v51 = vld [vmem:[%s7273_s1 + $0x6f0] sm:$0xff] }
 0x151   :  { %v4787_v0 = vcombine.low %v241_v50, %v245_v51 }
 0x152   :  { %3571 = vmatpush1.bf16.msra.mxu0 %v4723_v56  ;;  %v4788_v56 = vcombine.high %v241_v50, %v245_v51  ;;  %v298_v50 = vld [vmem:[%s7273_s1 + $0x898] sm:$0xff] }
 0x153   :  { %3735 = vmatpush1.bf16.msra.mxu1 %v4725_v57  ;;  %3572 = vmatprep.subr.bf16.mxu0 %v4732_v58  ;;  %v4790_v57 = vcombine.high %v242_v52, %v246_v54  ;;  %v249_v58 = vld [vmem:[%s7273_s1 + $0x710] sm:$0xff]  ;;  %v302_v51 = vld [vmem:[%s7273_s1 + $0x8b8] sm:$0xff]  ;;  %v4837_v54 = vcombine.low %v290_v53, %v294_v44 }
 0x154   :  { %3736 = vmatprep.subr.bf16.mxu1 %v4734_v60  ;;  %v253_v60 = vld [vmem:[%s7273_s1 + $0x730] sm:$0xff] }
 0x155   :  { %v4795_v10 = vcombine.low %v249_v58, %v253_v60 }
 0x156   :  { %3573 = vmatpush1.bf16.msra.mxu0 %v4731_v3  ;;  %v4796_v3 = vcombine.high %v249_v58, %v253_v60  ;;  %v310_v58 = vld [vmem:[%s7273_s1 + $0x8f8] sm:$0xff] }
 0x157   :  { %3737 = vmatpush1.bf16.msra.mxu1 %v4733_v4  ;;  %3574 = vmatprep.subr.bf16.mxu0 %v4740_v5  ;;  %v4798_v4 = vcombine.high %v250_v61, %v254_v62  ;;  %v257_v5 = vld [vmem:[%s7273_s1 + $0x750] sm:$0xff]  ;;  %v4845_v61 = vcombine.low %v298_v50, %v302_v51 }
 0x158   :  { %3738 = vmatprep.subr.bf16.mxu1 %v4742_v6  ;;  %v261_v6 = vld [vmem:[%s7273_s1 + $0x770] sm:$0xff] }
 0x159   :  { %v4803_v19 = vcombine.low %v257_v5, %v261_v6 }
 0x15a   :  { %3575 = vmatpush1.bf16.msra.mxu0 %v4739_v13  ;;  %v4804_v13 = vcombine.high %v257_v5, %v261_v6 }
 0x15b   :  { %3739 = vmatpush1.bf16.msra.mxu1 %v4741_v14  ;;  %3576 = vmatprep.subr.bf16.mxu0 %v4748_v15  ;;  %v4806_v14 = vcombine.high %v258_v7, %v262_v8  ;;  %v265_v15 = vld [vmem:[%s7273_s1 + $0x790] sm:$0xff] }
 0x15c   :  { %3740 = vmatprep.subr.bf16.mxu1 %v4750_v16  ;;  %v269_v16 = vld [vmem:[%s7273_s1 + $0x7b0] sm:$0xff] }
 0x15d   :  { %v4811_v27 = vcombine.low %v265_v15, %v269_v16 }
 0x15e   :  { %3577 = vmatpush1.bf16.msra.mxu0 %v4747_v21  ;;  %v4812_v21 = vcombine.high %v265_v15, %v269_v16 }
 0x15f   :  { %3741 = vmatpush1.bf16.msra.mxu1 %v4749_v22  ;;  %3578 = vmatprep.subr.bf16.mxu0 %v4756_v23  ;;  %v4814_v22 = vcombine.high %v266_v17, %v270_v18  ;;  %v273_v23 = vld [vmem:[%s7273_s1 + $0x7d0] sm:$0xff] }
 0x160   :  { %3742 = vmatprep.subr.bf16.mxu1 %v4758_v24  ;;  %v277_v24 = vld [vmem:[%s7273_s1 + $0x7f0] sm:$0xff] }
 0x161   :  { %v4819_v34 = vcombine.low %v273_v23, %v277_v24 }
 0x162   :  { %3579 = vmatpush1.bf16.msra.mxu0 %v4755_v29  ;;  %v4820_v29 = vcombine.high %v273_v23, %v277_v24 }
 0x163   :  { %3743 = vmatpush1.bf16.msra.mxu1 %v4757_v30  ;;  %3580 = vmatprep.subr.bf16.mxu0 %v4764_v63  ;;  %v4822_v30 = vcombine.high %v274_v59, %v278_v26  ;;  %v281_v63 = vld [vmem:[%s7273_s1 + $0x810] sm:$0xff] }
 0x164   :  { %3744 = vmatprep.subr.bf16.mxu1 %v4766_v31  ;;  %v285_v31 = vld [vmem:[%s7273_s1 + $0x830] sm:$0xff] }
 0x165   :  { %v4827_v45 = vcombine.low %v281_v63, %v285_v31 }
 0x166   :  { %3581 = vmatpush1.bf16.msra.mxu0 %v4763_v9  ;;  %v4828_v9 = vcombine.high %v281_v63, %v285_v31 }
 0x167   :  { %3745 = vmatpush1.bf16.msra.mxu1 %v4765_v39  ;;  %3582 = vmatprep.subr.bf16.mxu0 %v4772_v40  ;;  %v4830_v39 = vcombine.high %v282_v32, %v286_v33  ;;  %v289_v40 = vld [vmem:[%s7273_s1 + $0x850] sm:$0xff] }
 0x168   :  { %3746 = vmatprep.subr.bf16.mxu1 %v4774_v41  ;;  %v293_v41 = vld [vmem:[%s7273_s1 + $0x870] sm:$0xff] }
 0x169   :  { %v4835_v52 = vcombine.low %v289_v40, %v293_v41 }
 0x16a   :  { %3583 = vmatpush1.bf16.msra.mxu0 %v4771_v25  ;;  %v4836_v25 = vcombine.high %v289_v40, %v293_v41 }
 0x16b   :  { %3747 = vmatpush1.bf16.msra.mxu1 %v4773_v47  ;;  %3584 = vmatprep.subr.bf16.mxu0 %v4780_v48  ;;  %v4838_v47 = vcombine.high %v290_v53, %v294_v44  ;;  %v297_v48 = vld [vmem:[%s7273_s1 + $0x890] sm:$0xff] }
 0x16c   :  { %3748 = vmatprep.subr.bf16.mxu1 %v4782_v49  ;;  %v301_v49 = vld [vmem:[%s7273_s1 + $0x8b0] sm:$0xff] }
 0x16d   :  { %v4843_v60 = vcombine.low %v297_v48, %v301_v49 }
 0x16e   :  { %3585 = vmatpush1.bf16.msra.mxu0 %v4779_v35  ;;  %v4844_v35 = vcombine.high %v297_v48, %v301_v49 }
 0x16f   :  { %3749 = vmatpush1.bf16.msra.mxu1 %v4781_v55  ;;  %3586 = vmatprep.subr.bf16.mxu0 %v4788_v56  ;;  %v4846_v55 = vcombine.high %v298_v50, %v302_v51  ;;  %v305_v56 = vld [vmem:[%s7273_s1 + $0x8d0] sm:$0xff] }
 0x170   :  { %3750 = vmatprep.subr.bf16.mxu1 %v4790_v57  ;;  %v309_v57 = vld [vmem:[%s7273_s1 + $0x8f0] sm:$0xff] }
 0x171   :  { %v4852_v62 = vcombine.high %v305_v56, %v309_v57  ;;  %v4851_v5 = vcombine.low %v305_v56, %v309_v57 }
 0x172   :  { %3587 = vmatpush1.bf16.msra.mxu0 %v4787_v0 }
 0x173   :  { %3751 = vmatpush1.bf16.msra.mxu1 %v4789_v1  ;;  %3588 = vmatprep.subr.bf16.mxu0 %v4796_v3  ;;  %v313_v1 = vld [vmem:[%s7273_s1 + $0x910] sm:$0xff] }
 0x174   :  { %3752 = vmatprep.subr.bf16.mxu1 %v4798_v4  ;;  %v317_v3 = vld [vmem:[%s7273_s1 + $0x930] sm:$0xff]  ;;  %v318_v4 = vld [vmem:[%s7273_s1 + $0x938] sm:$0xff] }
 0x175   :  { %v4860_v7 = vcombine.high %v313_v1, %v317_v3  ;;  %v4859_v15 = vcombine.low %v313_v1, %v317_v3 }
 0x176   :  { %3589 = vmatpush1.bf16.msra.mxu0 %v4795_v10  ;;  %v321_v10 = vld [vmem:[%s7273_s1 + $0x950] sm:$0xff] }
 0x177   :  { %3753 = vmatpush1.bf16.msra.mxu1 %v4797_v11  ;;  %3590 = vmatprep.subr.bf16.mxu0 %v4804_v13  ;;  %v325_v11 = vld [vmem:[%s7273_s1 + $0x970] sm:$0xff]  ;;  %v322_v13 = vld [vmem:[%s7273_s1 + $0x958] sm:$0xff] }
 0x178   :  { %3754 = vmatprep.subr.bf16.mxu1 %v4806_v14  ;;  %v326_v14 = vld [vmem:[%s7273_s1 + $0x978] sm:$0xff]  ;;  %v4868_v17 = vcombine.high %v321_v10, %v325_v11  ;;  %v4867_v23 = vcombine.low %v321_v10, %v325_v11 }
 0x179   :  { %v4870_v18 = vcombine.high %v322_v13, %v326_v14  ;;  %v4869_v24 = vcombine.low %v322_v13, %v326_v14 }
 0x17a   :  { %3591 = vmatpush1.bf16.msra.mxu0 %v4803_v19  ;;  %v329_v19 = vld [vmem:[%s7273_s1 + $0x990] sm:$0xff] }
 0x17b   :  { %3755 = vmatpush1.bf16.msra.mxu1 %v4805_v20  ;;  %3592 = vmatprep.subr.bf16.mxu0 %v4812_v21  ;;  %v333_v20 = vld [vmem:[%s7273_s1 + $0x9b0] sm:$0xff]  ;;  %v330_v21 = vld [vmem:[%s7273_s1 + $0x998] sm:$0xff] }
 0x17c   :  { %3756 = vmatprep.subr.bf16.mxu1 %v4814_v22  ;;  %v334_v22 = vld [vmem:[%s7273_s1 + $0x9b8] sm:$0xff]  ;;  %v4876_v59 = vcombine.high %v329_v19, %v333_v20  ;;  %v4875_v63 = vcombine.low %v329_v19, %v333_v20 }
 0x17d   :  { %v4878_v26 = vcombine.high %v330_v21, %v334_v22  ;;  %v4877_v31 = vcombine.low %v330_v21, %v334_v22 }
 0x17e   :  { %3593 = vmatpush1.bf16.msra.mxu0 %v4811_v27  ;;  %v337_v27 = vld [vmem:[%s7273_s1 + $0x9d0] sm:$0xff] }
 0x17f   :  { %3757 = vmatpush1.bf16.msra.mxu1 %v4813_v28  ;;  %3594 = vmatprep.subr.bf16.mxu0 %v4820_v29  ;;  %v341_v28 = vld [vmem:[%s7273_s1 + $0x9f0] sm:$0xff]  ;;  %v338_v29 = vld [vmem:[%s7273_s1 + $0x9d8] sm:$0xff] }
 0x180   :  { %3758 = vmatprep.subr.bf16.mxu1 %v4822_v30  ;;  %v342_v30 = vld [vmem:[%s7273_s1 + $0x9f8] sm:$0xff]  ;;  %v4884_v32 = vcombine.high %v337_v27, %v341_v28  ;;  %v4883_v40 = vcombine.low %v337_v27, %v341_v28 }
 0x181   :  { %v4886_v33 = vcombine.high %v338_v29, %v342_v30  ;;  %v4885_v41 = vcombine.low %v338_v29, %v342_v30 }
 0x182   :  { %3595 = vmatpush1.bf16.msra.mxu0 %v4819_v34  ;;  %v345_v34 = vld [vmem:[%s7273_s1 + $0xa10] sm:$0xff] }
 0x183   :  { %3759 = vmatpush1.bf16.msra.mxu1 %v4821_v38  ;;  %3605 = vmatprep.subr.bf16.mxu0 %v4828_v9  ;;  %v349_v38 = vld [vmem:[%s7273_s1 + $0xa30] sm:$0xff]  ;;  %v346_v9 = vld [vmem:[%s7273_s1 + $0xa18] sm:$0xff] }
 0x184   :  { %3769 = vmatprep.subr.bf16.mxu1 %v4830_v39  ;;  %v350_v39 = vld [vmem:[%s7273_s1 + $0xa38] sm:$0xff]  ;;  %v4892_v53 = vcombine.high %v345_v34, %v349_v38  ;;  %v4891_v48 = vcombine.low %v345_v34, %v349_v38 }
 0x185   :  { %3597 = vmatmul.mubr.bf16.vlgmr.msra.gmra.mrb[4].mxu0 %v5868_v42  ;;  %v4894_v44 = vcombine.high %v346_v9, %v350_v39  ;;  %v4893_v49 = vcombine.low %v346_v9, %v350_v39 }
 0x186   :  { %3606 = vmatpush1.bf16.msra.mxu0 %v4827_v45  ;;  %3761 = vmatmul.mubr.bf16.vlgmr.msra.gmra.mrb[4].mxu1 %v5868_v42  ;;  %v306_v42 = vld [vmem:[%s7273_s1 + $0x8d8] sm:$0xff]  ;;  %v353_v45 = vld [vmem:[%s7273_s1 + $0xa50] sm:$0xff] }
 0x187   :  { %3770 = vmatpush1.bf16.msra.mxu1 %v4829_v46  ;;  %3607 = vmatprep.subr.bf16.mxu0 %v4836_v25  ;;  %v4854_v0 = vcombine.high %v306_v42, %v310_v58  ;;  %v4853_v6 = vcombine.low %v306_v42, %v310_v58  ;;  %v357_v46 = vld [vmem:[%s7273_s1 + $0xa70] sm:$0xff]  ;;  %v354_v25 = vld [vmem:[%s7273_s1 + $0xa58] sm:$0xff] }
 0x188   :  { %3771 = vmatprep.subr.bf16.mxu1 %v4838_v47  ;;  %3637 = vmatprep.mubr.bf16.mxu0 %v5677_v36  ;;  %v358_v47 = vld [vmem:[%s7273_s1 + $0xa78] sm:$0xff]  ;;  %v4900_v50 = vcombine.high %v353_v45, %v357_v46  ;;  %v4899_v56 = vcombine.low %v353_v45, %v357_v46 }
 0x189   :  { %3801 = vmatprep.mubr.bf16.mxu1 %v5677_v36  ;;  %v314_v36 = vld [vmem:[%s7273_s1 + $0x918] sm:$0xff]  ;;  %v4902_v51 = vcombine.high %v354_v25, %v358_v47  ;;  %v4901_v57 = vcombine.low %v354_v25, %v358_v47 }
 0x18a   :  { %3608 = vmatpush1.bf16.msra.mxu0 %v4835_v52  ;;  %v4862_v8 = vcombine.high %v314_v36, %v318_v4  ;;  %v4861_v16 = vcombine.low %v314_v36, %v318_v4  ;;  %v361_v52 = vld [vmem:[%s7273_s1 + $0xa90] sm:$0xff] }
 0x18b   :  { %3772 = vmatpush1.bf16.msra.mxu1 %v4837_v54  ;;  %3609 = vmatprep.subr.bf16.mxu0 %v4844_v35  ;;  %v365_v54 = vld [vmem:[%s7273_s1 + $0xab0] sm:$0xff]  ;;  %v362_v35 = vld [vmem:[%s7273_s1 + $0xa98] sm:$0xff] }
 0x18c   :  { %3773 = vmatprep.subr.bf16.mxu1 %v4846_v55  ;;  %v366_v55 = vld [vmem:[%s7273_s1 + $0xab8] sm:$0xff]  ;;  %v4908_v42 = vcombine.high %v361_v52, %v365_v54  ;;  %v4907_v1 = vcombine.low %v361_v52, %v365_v54 }
 0x18d   :  { %v4910_v58 = vcombine.high %v362_v35, %v366_v55  ;;  %v4909_v3 = vcombine.low %v362_v35, %v366_v55 }
 0x18e   :  { %3610 = vmatpush1.bf16.msra.mxu0 %v4843_v60  ;;  %v369_v60 = vld [vmem:[%s7273_s1 + $0xad0] sm:$0xff] }
 0x18f   :  { %3774 = vmatpush1.bf16.msra.mxu1 %v4845_v61  ;;  %3611 = vmatprep.subr.bf16.mxu0 %v4852_v62  ;;  %v373_v61 = vld [vmem:[%s7273_s1 + $0xaf0] sm:$0xff]  ;;  %v370_v62 = vld [vmem:[%s7273_s1 + $0xad8] sm:$0xff] }
 0x190   :  { %3775 = vmatprep.subr.bf16.mxu1 %v4854_v0  ;;  %v374_v0 = vld [vmem:[%s7273_s1 + $0xaf8] sm:$0xff]  ;;  %v4916_v36 = vcombine.high %v369_v60, %v373_v61  ;;  %v4915_v10 = vcombine.low %v369_v60, %v373_v61 }
 0x191   :  { %v4918_v4 = vcombine.high %v370_v62, %v374_v0  ;;  %v4917_v11 = vcombine.low %v370_v62, %v374_v0 }
 0x192   :  { %3612 = vmatpush1.bf16.msra.mxu0 %v4851_v5  ;;  %v377_v5 = vld [vmem:[%s7273_s1 + $0xb10] sm:$0xff] }
 0x193   :  { %3776 = vmatpush1.bf16.msra.mxu1 %v4853_v6  ;;  %3613 = vmatprep.subr.bf16.mxu0 %v4860_v7  ;;  %v381_v6 = vld [vmem:[%s7273_s1 + $0xb30] sm:$0xff]  ;;  %v378_v7 = vld [vmem:[%s7273_s1 + $0xb18] sm:$0xff] }
 0x194   :  { %3777 = vmatprep.subr.bf16.mxu1 %v4862_v8  ;;  %v382_v8 = vld [vmem:[%s7273_s1 + $0xb38] sm:$0xff]  ;;  %v4924_v13 = vcombine.high %v377_v5, %v381_v6  ;;  %v4923_v19 = vcombine.low %v377_v5, %v381_v6 }
 0x195   :  { %v4926_v14 = vcombine.high %v378_v7, %v382_v8  ;;  %v4925_v20 = vcombine.low %v378_v7, %v382_v8  ;;  %v441_v8 = vld [vmem:[%s7273_s1 + $0xd10] sm:$0xff] }
 0x196   :  { %3614 = vmatpush1.bf16.msra.mxu0 %v4859_v15  ;;  %v385_v15 = vld [vmem:[%s7273_s1 + $0xb50] sm:$0xff] }
 0x197   :  { %3778 = vmatpush1.bf16.msra.mxu1 %v4861_v16  ;;  %3615 = vmatprep.subr.bf16.mxu0 %v4868_v17  ;;  %v389_v16 = vld [vmem:[%s7273_s1 + $0xb70] sm:$0xff]  ;;  %v386_v17 = vld [vmem:[%s7273_s1 + $0xb58] sm:$0xff] }
 0x198   :  { %3779 = vmatprep.subr.bf16.mxu1 %v4870_v18  ;;  %v390_v18 = vld [vmem:[%s7273_s1 + $0xb78] sm:$0xff]  ;;  %v4932_v21 = vcombine.high %v385_v15, %v389_v16  ;;  %v4931_v27 = vcombine.low %v385_v15, %v389_v16 }
 0x199   :  { %v4934_v22 = vcombine.high %v386_v17, %v390_v18  ;;  %v4933_v28 = vcombine.low %v386_v17, %v390_v18  ;;  %v449_v17 = vld [vmem:[%s7273_s1 + $0xd50] sm:$0xff] }
 0x19a   :  { %3616 = vmatpush1.bf16.msra.mxu0 %v4867_v23  ;;  %v393_v23 = vld [vmem:[%s7273_s1 + $0xb90] sm:$0xff] }
 0x19b   :  { %3780 = vmatpush1.bf16.msra.mxu1 %v4869_v24  ;;  %3617 = vmatprep.subr.bf16.mxu0 %v4876_v59  ;;  %v397_v24 = vld [vmem:[%s7273_s1 + $0xbb0] sm:$0xff]  ;;  %v394_v59 = vld [vmem:[%s7273_s1 + $0xb98] sm:$0xff] }
 0x19c   :  { %3781 = vmatprep.subr.bf16.mxu1 %v4878_v26  ;;  %v398_v26 = vld [vmem:[%s7273_s1 + $0xbb8] sm:$0xff]  ;;  %v4940_v29 = vcombine.high %v393_v23, %v397_v24  ;;  %v4939_v34 = vcombine.low %v393_v23, %v397_v24  ;;  %v453_v18 = vld [vmem:[%s7273_s1 + $0xd70] sm:$0xff] }
 0x19d   :  { %v4942_v30 = vcombine.high %v394_v59, %v398_v26  ;;  %v4941_v38 = vcombine.low %v394_v59, %v398_v26  ;;  %v4996_v23 = vcombine.high %v449_v17, %v453_v18  ;;  %v457_v59 = vld [vmem:[%s7273_s1 + $0xd90] sm:$0xff] }
 0x19e   :  { %3618 = vmatpush1.bf16.msra.mxu0 %v4875_v63  ;;  %v401_v63 = vld [vmem:[%s7273_s1 + $0xbd0] sm:$0xff] }
 0x19f   :  { %3782 = vmatpush1.bf16.msra.mxu1 %v4877_v31  ;;  %3619 = vmatprep.subr.bf16.mxu0 %v4884_v32  ;;  %v405_v31 = vld [vmem:[%s7273_s1 + $0xbf0] sm:$0xff]  ;;  %v402_v32 = vld [vmem:[%s7273_s1 + $0xbd8] sm:$0xff] }
 0x1a0   :  { %3783 = vmatprep.subr.bf16.mxu1 %v4886_v33  ;;  %v406_v33 = vld [vmem:[%s7273_s1 + $0xbf8] sm:$0xff]  ;;  %v4948_v9 = vcombine.high %v401_v63, %v405_v31  ;;  %v4947_v45 = vcombine.low %v401_v63, %v405_v31  ;;  %v461_v26 = vld [vmem:[%s7273_s1 + $0xdb0] sm:$0xff] }
 0x1a1   :  { %v4950_v39 = vcombine.high %v402_v32, %v406_v33  ;;  %v4949_v46 = vcombine.low %v402_v32, %v406_v33  ;;  %v5004_v63 = vcombine.high %v457_v59, %v461_v26  ;;  %v465_v33 = vld [vmem:[%s7273_s1 + $0xdd0] sm:$0xff] }
 0x1a2   :  { %3620 = vmatpush1.bf16.msra.mxu0 %v4883_v40  ;;  %v409_v40 = vld [vmem:[%s7273_s1 + $0xc10] sm:$0xff] }
 0x1a3   :  { %3784 = vmatpush1.bf16.msra.mxu1 %v4885_v41  ;;  %3621 = vmatprep.subr.bf16.mxu0 %v4892_v53  ;;  %v413_v41 = vld [vmem:[%s7273_s1 + $0xc30] sm:$0xff]  ;;  %v410_v53 = vld [vmem:[%s7273_s1 + $0xc18] sm:$0xff] }
 0x1a4   :  { %3785 = vmatprep.subr.bf16.mxu1 %v4894_v44  ;;  %v414_v44 = vld [vmem:[%s7273_s1 + $0xc38] sm:$0xff]  ;;  %v4956_v25 = vcombine.high %v409_v40, %v413_v41  ;;  %v4955_v52 = vcombine.low %v409_v40, %v413_v41 }
 0x1a5   :  { %v4958_v47 = vcombine.high %v410_v53, %v414_v44  ;;  %v4957_v54 = vcombine.low %v410_v53, %v414_v44  ;;  %v470_v40 = vld [vmem:[%s7273_s1 + $0xdf8] sm:$0xff]  ;;  %v5003_v44 = vcombine.low %v457_v59, %v461_v26 }
 0x1a6   :  { %3622 = vmatpush1.bf16.msra.mxu0 %v4891_v48  ;;  %v417_v48 = vld [vmem:[%s7273_s1 + $0xc50] sm:$0xff] }
 0x1a7   :  { %3786 = vmatpush1.bf16.msra.mxu1 %v4893_v49  ;;  %3623 = vmatprep.subr.bf16.mxu0 %v4900_v50  ;;  %v421_v49 = vld [vmem:[%s7273_s1 + $0xc70] sm:$0xff]  ;;  %v418_v50 = vld [vmem:[%s7273_s1 + $0xc58] sm:$0xff] }
 0x1a8   :  { %3787 = vmatprep.subr.bf16.mxu1 %v4902_v51  ;;  %v422_v51 = vld [vmem:[%s7273_s1 + $0xc78] sm:$0xff]  ;;  %v4964_v35 = vcombine.high %v417_v48, %v421_v49  ;;  %v4963_v60 = vcombine.low %v417_v48, %v421_v49 }
 0x1a9   :  { %v4966_v55 = vcombine.high %v418_v50, %v422_v51  ;;  %v4965_v61 = vcombine.low %v418_v50, %v422_v51  ;;  %v473_v50 = vld [vmem:[%s7273_s1 + $0xe10] sm:$0xff] }
 0x1aa   :  { %3624 = vmatpush1.bf16.msra.mxu0 %v4899_v56  ;;  %v425_v56 = vld [vmem:[%s7273_s1 + $0xc90] sm:$0xff] }
 0x1ab   :  { %3788 = vmatpush1.bf16.msra.mxu1 %v4901_v57  ;;  %3625 = vmatprep.subr.bf16.mxu0 %v4908_v42  ;;  %v429_v57 = vld [vmem:[%s7273_s1 + $0xcb0] sm:$0xff]  ;;  %v426_v42 = vld [vmem:[%s7273_s1 + $0xc98] sm:$0xff] }
 0x1ac   :  { %3789 = vmatprep.subr.bf16.mxu1 %v4910_v58  ;;  %v430_v58 = vld [vmem:[%s7273_s1 + $0xcb8] sm:$0xff]  ;;  %v4972_v62 = vcombine.high %v425_v56, %v429_v57  ;;  %v477_v51 = vld [vmem:[%s7273_s1 + $0xe30] sm:$0xff] }
 0x1ad   :  { %v4974_v0 = vcombine.high %v426_v42, %v430_v58  ;;  %v4973_v5 = vcombine.low %v426_v42, %v430_v58  ;;  %v481_v42 = vld [vmem:[%s7273_s1 + $0xe50] sm:$0xff] }
 0x1ae   :  { %3626 = vmatpush1.bf16.msra.mxu0 %v4907_v1  ;;  %v433_v1 = vld [vmem:[%s7273_s1 + $0xcd0] sm:$0xff] }
 0x1af   :  { %3790 = vmatpush1.bf16.msra.mxu1 %v4909_v3  ;;  %3627 = vmatprep.subr.bf16.mxu0 %v4916_v36  ;;  %v437_v3 = vld [vmem:[%s7273_s1 + $0xcf0] sm:$0xff]  ;;  %v438_v36 = vld [vmem:[%s7273_s1 + $0xcf8] sm:$0xff] }
 0x1b0   :  { %3791 = vmatprep.subr.bf16.mxu1 %v4918_v4  ;;  %v4971_v4 = vcombine.low %v425_v56, %v429_v57  ;;  %v4980_v6 = vcombine.high %v433_v1, %v437_v3  ;;  %v5020_v56 = vcombine.high %v473_v50, %v477_v51  ;;  %v485_v58 = vld [vmem:[%s7273_s1 + $0xe70] sm:$0xff] }
 0x1b2   :  { %3628 = vmatpush1.bf16.msra.mxu0 %v4915_v10  ;;  %v445_v10 = vld [vmem:[%s7273_s1 + $0xd30] sm:$0xff] }
 0x1b3   :  { %3792 = vmatpush1.bf16.msra.mxu1 %v4917_v11  ;;  %3629 = vmatprep.subr.bf16.mxu0 %v4924_v13  ;;  %v446_v11 = vld [vmem:[%s7273_s1 + $0xd38] sm:$0xff]  ;;  %v4979_v13 = vcombine.low %v433_v1, %v437_v3  ;;  %v4988_v15 = vcombine.high %v441_v8, %v445_v10  ;;  %v5028_v1 = vcombine.high %v481_v42, %v485_v58 }
 0x1b4   :  { %3793 = vmatprep.subr.bf16.mxu1 %v4926_v14 }
 0x1b6   :  { %3630 = vmatpush1.bf16.msra.mxu0 %v4923_v19  ;;  %v450_v19 = vld [vmem:[%s7273_s1 + $0xd58] sm:$0xff] }
 0x1b7   :  { %3794 = vmatpush1.bf16.msra.mxu1 %v4925_v20  ;;  %3631 = vmatprep.subr.bf16.mxu0 %v4932_v21  ;;  %v454_v20 = vld [vmem:[%s7273_s1 + $0xd78] sm:$0xff]  ;;  %v4987_v21 = vcombine.low %v441_v8, %v445_v10 }
 0x1b8   :  { %3795 = vmatprep.subr.bf16.mxu1 %v4934_v22  ;;  %v4998_v24 = vcombine.high %v450_v19, %v454_v20 }
 0x1ba   :  { %3632 = vmatpush1.bf16.msra.mxu0 %v4931_v27  ;;  %v458_v27 = vld [vmem:[%s7273_s1 + $0xd98] sm:$0xff] }
 0x1bb   :  { %3796 = vmatpush1.bf16.msra.mxu1 %v4933_v28  ;;  %3633 = vmatprep.subr.bf16.mxu0 %v4940_v29  ;;  %v462_v28 = vld [vmem:[%s7273_s1 + $0xdb8] sm:$0xff]  ;;  %v4995_v29 = vcombine.low %v449_v17, %v453_v18 }
 0x1bc   :  { %3797 = vmatprep.subr.bf16.mxu1 %v4942_v30  ;;  %v4997_v30 = vcombine.low %v450_v19, %v454_v20  ;;  %v5006_v32 = vcombine.high %v458_v27, %v462_v28  ;;  %v505_v19 = vld [vmem:[%s7273_s1 + $0xf10] sm:$0xff] }
 0x1bd   :  { %v509_v20 = vld [vmem:[%s7273_s1 + $0xf30] sm:$0xff] }
 0x1be   :  { %3634 = vmatpush1.bf16.msra.mxu0 %v4939_v34  ;;  %v469_v34 = vld [vmem:[%s7273_s1 + $0xdf0] sm:$0xff]  ;;  %v5052_v59 = vcombine.high %v505_v19, %v509_v20 }
 0x1bf   :  { %3798 = vmatpush1.bf16.msra.mxu1 %v4941_v38  ;;  %3635 = vmatprep.subr.bf16.mxu0 %v4948_v9 }
 0x1c0   :  { %3799 = vmatprep.subr.bf16.mxu1 %v4950_v39  ;;  %v466_v39 = vld [vmem:[%s7273_s1 + $0xdd8] sm:$0xff] }
 0x1c1   :  { %v5014_v49 = vcombine.high %v466_v39, %v470_v40 }
 0x1c2   :  { %3636 = vmatpush1.bf16.msra.mxu0 %v4947_v45 }
 0x1c3   :  { %3800 = vmatpush1.bf16.msra.mxu1 %v4949_v46  ;;  %3646 = vmatprep.subr.bf16.mxu0 %v4956_v25  ;;  %v5005_v25 = vcombine.low %v458_v27, %v462_v28  ;;  %v513_v27 = vld [vmem:[%s7273_s1 + $0xf50] sm:$0xff] }
 0x1c4   :  { %3810 = vmatprep.subr.bf16.mxu1 %v4958_v47  ;;  %v5012_v47 = vcombine.high %v465_v33, %v469_v34  ;;  %v517_v28 = vld [vmem:[%s7273_s1 + $0xf70] sm:$0xff] }
 0x1c5   :  { %3638 = vmatmul.mubr.bf16.vlgmr.msra.gmra.mrb[4].mxu0 %v5680_v37 }
 0x1c6   :  { %3647 = vmatpush1.bf16.msra.mxu0 %v4955_v52  ;;  %3802 = vmatmul.mubr.bf16.vlgmr.msra.gmra.mrb[4].mxu1 %v5680_v37  ;;  %v434_v37 = vld [vmem:[%s7273_s1 + $0xcd8] sm:$0xff] }
 0x1c7   :  { %3811 = vmatpush1.bf16.msra.mxu1 %v4957_v54  ;;  %3648 = vmatprep.subr.bf16.mxu0 %v4964_v35  ;;  %v4982_v7 = vcombine.high %v434_v37, %v438_v36  ;;  %v4981_v14 = vcombine.low %v434_v37, %v438_v36  ;;  %v474_v52 = vld [vmem:[%s7273_s1 + $0xe18] sm:$0xff]  ;;  %v5011_v35 = vcombine.low %v465_v33, %v469_v34  ;;  %v489_v37 = vld [vmem:[%s7273_s1 + $0xe90] sm:$0xff] }
 0x1c8   :  { %3812 = vmatprep.subr.bf16.mxu1 %v4966_v55  ;;  %3678 = vmatprep.mubr.bf16.mxu0 %v6074_v2  ;;  %v478_v54 = vld [vmem:[%s7273_s1 + $0xe38] sm:$0xff]  ;;  %v5013_v55 = vcombine.low %v466_v39, %v470_v40  ;;  %v493_v36 = vld [vmem:[%s7273_s1 + $0xeb0] sm:$0xff]  ;;  %v5060_v33 = vcombine.high %v513_v27, %v517_v28 }
 0x1c9   :  { %3842 = vmatprep.mubr.bf16.mxu1 %v6074_v2  ;;  %v442_v2 = vld [vmem:[%s7273_s1 + $0xd18] sm:$0xff]  ;;  %v5022_v57 = vcombine.high %v474_v52, %v478_v54  ;;  %v5036_v8 = vcombine.high %v489_v37, %v493_v36  ;;  %v521_v39 = vld [vmem:[%s7273_s1 + $0xf90] sm:$0xff] }
 0x1ca   :  { %3649 = vmatpush1.bf16.msra.mxu0 %v4963_v60  ;;  %v4990_v16 = vcombine.high %v442_v2, %v446_v11  ;;  %v4989_v22 = vcombine.low %v442_v2, %v446_v11  ;;  %v482_v60 = vld [vmem:[%s7273_s1 + $0xe58] sm:$0xff]  ;;  %v497_v2 = vld [vmem:[%s7273_s1 + $0xed0] sm:$0xff] }
 0x1cb   :  { %3813 = vmatpush1.bf16.msra.mxu1 %v4965_v61  ;;  %3650 = vmatprep.subr.bf16.mxu0 %v4972_v62  ;;  %v486_v61 = vld [vmem:[%s7273_s1 + $0xe78] sm:$0xff]  ;;  %v5019_v62 = vcombine.low %v473_v50, %v477_v51  ;;  %v501_v11 = vld [vmem:[%s7273_s1 + $0xef0] sm:$0xff] }
 0x1cc   :  { %3814 = vmatprep.subr.bf16.mxu1 %v4974_v0  ;;  %v5021_v0 = vcombine.low %v474_v52, %v478_v54  ;;  %v5030_v3 = vcombine.high %v482_v60, %v486_v61  ;;  %v5044_v17 = vcombine.high %v497_v2, %v501_v11  ;;  %v525_v40 = vld [vmem:[%s7273_s1 + $0xfb0] sm:$0xff] }
 0x1cd   :  { %v529_v51 = vld [vmem:[%s7273_s1 + $0xfd0] sm:$0xff] }
 0x1ce   :  { %3651 = vmatpush1.bf16.msra.mxu0 %v4971_v4  ;;  %v490_v4 = vld [vmem:[%s7273_s1 + $0xe98] sm:$0xff]  ;;  %v533_v52 = vld [vmem:[%s7273_s1 + $0xff0] sm:$0xff] }
 0x1cf   :  { %3815 = vmatpush1.bf16.msra.mxu1 %v4973_v5  ;;  %3652 = vmatprep.subr.bf16.mxu0 %v4980_v6  ;;  %v494_v5 = vld [vmem:[%s7273_s1 + $0xeb8] sm:$0xff]  ;;  %v5027_v6 = vcombine.low %v481_v42, %v485_v58  ;;  %v5076_v58 = vcombine.high %v529_v51, %v533_v52 }
 0x1d0   :  { %3816 = vmatprep.subr.bf16.mxu1 %v4982_v7  ;;  %v5029_v7 = vcombine.low %v482_v60, %v486_v61  ;;  %v5038_v10 = vcombine.high %v490_v4, %v494_v5 }
 0x1d2   :  { %3653 = vmatpush1.bf16.msra.mxu0 %v4979_v13  ;;  %v498_v13 = vld [vmem:[%s7273_s1 + $0xed8] sm:$0xff] }
 0x1d3   :  { %3817 = vmatpush1.bf16.msra.mxu1 %v4981_v14  ;;  %3654 = vmatprep.subr.bf16.mxu0 %v4988_v15  ;;  %v502_v14 = vld [vmem:[%s7273_s1 + $0xef8] sm:$0xff]  ;;  %v5035_v15 = vcombine.low %v489_v37, %v493_v36  ;;  %v5293_v37 = vld [vmem:[%s7275_s3 + $0xc0] sm:$0xff]  }
 0x1d4   :  { %3818 = vmatprep.subr.bf16.mxu1 %v4990_v16  ;;  %v5037_v16 = vcombine.low %v490_v4, %v494_v5  ;;  %v5046_v18 = vcombine.high %v498_v13, %v502_v14  ;;  %v5296_v5 = vld [vmem:[%s7275_s3 + $0x48] sm:$0xff]  }
 0x1d6   :  { %3655 = vmatpush1.bf16.msra.mxu0 %v4987_v21  ;;  %v506_v21 = vld [vmem:[%s7273_s1 + $0xf18] sm:$0xff] }
 0x1d7   :  { %3819 = vmatpush1.bf16.msra.mxu1 %v4989_v22  ;;  %3656 = vmatprep.subr.bf16.mxu0 %v4996_v23  ;;  %v510_v22 = vld [vmem:[%s7273_s1 + $0xf38] sm:$0xff]  ;;  %v5043_v23 = vcombine.low %v497_v2, %v501_v11  ;;  %v5299_v2 = vld [vmem:[%s7275_s3 + $0x88] sm:$0xff]   ;;  %v5300_v11 = vld [vmem:[%s7275_s3 + $0x50] sm:$0xff]  }
 0x1d8   :  { %v6922_v31 = vpop.f32.mrb[0].mxu0  ;;  %3820 = vmatprep.subr.bf16.mxu1 %v4998_v24  ;;  %v5045_v24 = vcombine.low %v498_v13, %v502_v14  ;;  %v5054_v26 = vcombine.high %v506_v21, %v510_v22  ;;  %v5302_v13 = vld [vmem:[%s7275_s3 + $0x10] sm:$0xff]  }
 0x1d9   :  { %v6930_v38 = vpop.f32.mrb[0].mxu1  ;;  %v6932_v9 = vpop.f32.mrb[1].mxu0  ;;  %v5303_v14 = vld [vmem:[%s7275_s3 + $0x90] sm:$0xff]  }
 0x1da   :  { %v6940_v41 = vpop.f32.mrb[1].mxu1  ;;  %v3356_v53 = vpop.f32.mrb[2].mxu0  ;;  %3657 = vmatpush1.bf16.msra.mxu0 %v4995_v29  ;;  %v514_v29 = vld [vmem:[%s7273_s1 + $0xf58] sm:$0xff] }
 0x1db   :  { %v3520_v45 = vpop.f32.mrb[2].mxu1  ;;  %3821 = vmatpush1.bf16.msra.mxu1 %v4997_v30  ;;  %v3357_v46 = vpop.f32.mrb[3].mxu0  ;;  %3658 = vmatprep.subr.bf16.mxu0 %v5004_v63  ;;  %v518_v30 = vld [vmem:[%s7273_s1 + $0xf78] sm:$0xff]  ;;  %v5051_v63 = vcombine.low %v505_v19, %v509_v20  ;;  %v543_v53 = vsub.s32 1, %v5482_v43  ;;  %v5308_v19 = vld [vmem:[%s7275_s3 + $0x60] sm:$0xff]  }
 0x1dc   :  { %v3521_v48 = vpop.f32.mrb[3].mxu1  ;;  %3822 = vmatprep.subr.bf16.mxu1 %v5006_v32  ;;  %v5053_v32 = vcombine.low %v506_v21, %v510_v22  ;;  %v5062_v34 = vcombine.high %v514_v29, %v518_v30  ;;  %v526_v45 = vld [vmem:[%s7273_s1 + $0xfb8] sm:$0xff]  ;;  %v7030_v46 = vld [vmem:[%s7274_s2] sm:$0xff]  ;;  %v539_v22 = vsub.s32 0, %v5482_v43 }
 0x1dd   :  { %v5061_v48 = vcombine.low %v514_v29, %v518_v30  ;;  %v544_v54 = vrot.slane %v7030_v46, %v543_v53  ;;  %v5309_v20 = vld [vmem:[%s7275_s3 + $0xe0] sm:$0xff]   ;;  %v5315_v29 = vld [vmem:[%s7275_s3 + $0xa8] sm:$0xff]   ;;  %v5316_v30 = vld [vmem:[%s7275_s3 + $0x70] sm:$0xff]  }
 0x1de   :  { %3659 = vmatpush1.bf16.msra.mxu0 %v5003_v44  ;;  %v522_v44 = vld [vmem:[%s7273_s1 + $0xf98] sm:$0xff]  ;;  %v5310_v21 = vld [vmem:[%s7275_s3 + $0x20] sm:$0xff]  }
 0x1df   :  { %3823 = vmatpush1.bf16.msra.mxu1 %v5005_v25  ;;  %3660 = vmatprep.subr.bf16.mxu0 %v5012_v47  ;;  %v551_v25 = vsub.s32 3, %v5482_v43  ;;  %v5059_v47 = vcombine.low %v513_v27, %v517_v28  ;;  %v5070_v50 = vcombine.high %v522_v44, %v526_v45  ;;  %v5069_v42 = vcombine.low %v522_v44, %v526_v45  ;;  %v5314_v27 = vld [vmem:[%s7275_s3 + $0x28] sm:$0xff]   ;;  %v5321_v44 = vld [vmem:[%s7275_s3 + $0xf8] sm:$0xff]  }
 0x1e0   :  { %3824 = vmatprep.subr.bf16.mxu1 %v5014_v49  ;;  %v5068_v49 = vcombine.high %v521_v39, %v525_v40  ;;  %v5234_v61 = vadd.f32 %v6932_v9, %v544_v54  ;;  %v5294_v9 = vld [vmem:[%s7275_s3] sm:$0xff]   ;;  %v540_v28 = vrot.slane %v7030_v46, %v539_v22 }
 0x1e2   :  { %3661 = vmatpush1.bf16.msra.mxu0 %v5011_v35  ;;  %v530_v35 = vld [vmem:[%s7273_s1 + $0xfd8] sm:$0xff]  ;;  %v3852_v36 = vmax.f32 %v5234_v61, 0.0 }
 0x1e3   :  { %3825 = vmatpush1.bf16.msra.mxu1 %v5013_v55  ;;  %3662 = vmatprep.subr.bf16.mxu0 %v5020_v56  ;;  %v534_v55 = vld [vmem:[%s7273_s1 + $0xff8] sm:$0xff]  ;;  %v552_v56 = vrot.slane %v7030_v46, %v551_v25 }
 0x1e4   :  { %3826 = vmatprep.subr.bf16.mxu1 %v5022_v57  ;;  %v5067_v57 = vcombine.low %v521_v39, %v525_v40  ;;  %v5078_v60 = vcombine.high %v530_v35, %v534_v55  ;;  %v5319_v39 = vld [vmem:[%s7275_s3 + $0xb0] sm:$0xff]   ;;  %v5320_v40 = vld [vmem:[%s7275_s3 + $0x78] sm:$0xff]  }
 0x1e5   :  { %v5323_v25 = vld [vmem:[%s7275_s3 + $0xb8] sm:$0xff]  }
 0x1e6   :  { %3663 = vmatpush1.bf16.msra.mxu0 %v5019_v62  ;;  %v5236_v62 = vadd.f32 %v6940_v41, %v552_v56  ;;  %v5295_v41 = vld [vmem:[%s7275_s3 + $0x80] sm:$0xff]   ;;  %v5331_v56 = vld [vmem:[%s7275_s3 + $0x188] sm:$0xff]   ;;  %v5336_v61 = vld [vmem:[%s7275_s3 + $0x158] sm:$0xff]  }
 0x1e7   :  { %3827 = vmatpush1.bf16.msra.mxu1 %v5021_v0  ;;  %3664 = vmatprep.subr.bf16.mxu0 %v5028_v1  ;;  %v5075_v0 = vcombine.low %v529_v51, %v533_v52  ;;  %v5077_v1 = vcombine.low %v530_v35, %v534_v55  ;;  %v5327_v51 = vld [vmem:[%s7275_s3 + $0x180] sm:$0xff]   ;;  %v5328_v52 = vld [vmem:[%s7275_s3 + $0x148] sm:$0xff]  }
 0x1e8   :  { %3828 = vmatprep.subr.bf16.mxu1 %v5030_v3  ;;  %v5292_v3 = vld [vmem:[%s7275_s3 + $0x40] sm:$0xff]   ;;  %v3854_v4 = vmax.f32 %v5236_v62, 0.0  ;;  %v5329_v35 = vld [vmem:[%s7275_s3 + $0x1c8] sm:$0xff]   ;;  %v5337_v62 = vld [vmem:[%s7275_s3 + $0x1d8] sm:$0xff]  }
 0x1e9   :  { %v5330_v55 = vld [vmem:[%s7275_s3 + $0x108] sm:$0xff]  }
 0x1ea   :  { %3665 = vmatpush1.bf16.msra.mxu0 %v5027_v6  ;;  %v3860_v6 = vpack.c.bf16 %v3852_v36, %v3852_v36  ;;  %v5342_v36 = vld [vmem:[%s7275_s3 + $0x120] sm:$0xff]  }
 0x1eb   :  { %3829 = vmatpush1.bf16.msra.mxu1 %v5029_v7  ;;  %3666 = vmatprep.subr.bf16.mxu0 %v5036_v8  ;;  %v5297_v7 = vld [vmem:[%s7275_s3 + $0xc8] sm:$0xff]   ;;  %v3862_v8 = vpack.c.bf16 %v3854_v4, %v3854_v4  ;;  %v5343_v4 = vld [vmem:[%s7275_s3 + $0x1a0] sm:$0xff]  }
 0x1ec   :  { %3830 = vmatprep.subr.bf16.mxu1 %v5038_v10  ;;  %v5298_v10 = vld [vmem:[%s7275_s3 + $0x8] sm:$0xff]  }
 0x1ee   :  { %3667 = vmatpush1.bf16.msra.mxu0 %v5035_v15  ;;  %v5304_v15 = vld [vmem:[%s7275_s3 + $0x58] sm:$0xff]  }
 0x1ef   :  { %3831 = vmatpush1.bf16.msra.mxu1 %v5037_v16  ;;  %3668 = vmatprep.subr.bf16.mxu0 %v5044_v17  ;;  %v5305_v16 = vld [vmem:[%s7275_s3 + $0xd8] sm:$0xff]  }
 0x1f0   :  { %3832 = vmatprep.subr.bf16.mxu1 %v5046_v18  ;;  %v5306_v17 = vld [vmem:[%s7275_s3 + $0x18] sm:$0xff]  }
 0x1f1   :  { %v5307_v18 = vld [vmem:[%s7275_s3 + $0x98] sm:$0xff]  }
 0x1f2   :  { %3669 = vmatpush1.bf16.msra.mxu0 %v5043_v23  ;;  %v5311_v23 = vld [vmem:[%s7275_s3 + $0xa0] sm:$0xff]  }
 0x1f3   :  { %3833 = vmatpush1.bf16.msra.mxu1 %v5045_v24  ;;  %3670 = vmatprep.subr.bf16.mxu0 %v5052_v59  ;;  %v5312_v24 = vld [vmem:[%s7275_s3 + $0x68] sm:$0xff]   ;;  %v547_v59 = vsub.s32 2, %v5482_v43 }
 0x1f4   :  { %3834 = vmatprep.subr.bf16.mxu1 %v5054_v26  ;;  %v5313_v26 = vld [vmem:[%s7275_s3 + $0xe8] sm:$0xff]  }
 0x1f6   :  { %3671 = vmatpush1.bf16.msra.mxu0 %v5051_v63  ;;  %v548_v63 = vrot.slane %v7030_v46, %v547_v59 }
 0x1f7   :  { %3835 = vmatpush1.bf16.msra.mxu1 %v5053_v32  ;;  %3672 = vmatprep.subr.bf16.mxu0 %v5060_v33  ;;  %v5317_v32 = vld [vmem:[%s7275_s3 + $0xf0] sm:$0xff]  }
 0x1f8   :  { %3836 = vmatprep.subr.bf16.mxu1 %v5062_v34  ;;  %v5318_v33 = vld [vmem:[%s7275_s3 + $0x30] sm:$0xff]   ;;  %v5233_v34 = vadd.f32 %v6922_v31, %v540_v28  ;;  %v5235_v53 = vadd.f32 %v6930_v38, %v548_v63  ;;  %v5322_v31 = vld [vmem:[%s7275_s3 + $0x38] sm:$0xff]   ;;  %v5324_v38 = vld [vmem:[%s7275_s3 + $0x140] sm:$0xff]  }
 0x1fa   :  { %3673 = vmatpush1.bf16.msra.mxu0 %v5059_v47  ;;  %v3851_v45 = vmax.f32 %v5233_v34, 0.0  ;;  %v3853_v47 = vmax.f32 %v5235_v53, 0.0 }
 0x1fb   :  { %3837 = vmatpush1.bf16.msra.mxu1 %v5061_v48  ;;  %3674 = vmatprep.subr.bf16.mxu0 %v5068_v49  ;;  %v5325_v48 = vld [vmem:[%s7275_s3 + $0x1c0] sm:$0xff]  }
 0x1fc   :  { %3838 = vmatprep.subr.bf16.mxu1 %v5070_v50  ;;  %v5326_v49 = vld [vmem:[%s7275_s3 + $0x100] sm:$0xff]   ;;  %v3859_v50 = vpack.c.bf16 %v3851_v45, %v3851_v45  ;;  %v3861_v54 = vpack.c.bf16 %v3853_v47, %v3853_v47 }
 0x1fd   :  { %v5079_v47 = vld [vmem:[%s7276_s4] ss:$0 sm:$0xff]  ;;  %s5385_s4 = smov [#allocation2]  }
 0x1fe   :  { %3675 = vmatpush1.bf16.msra.mxu0 %v5067_v57  ;;  %v5332_v57 = vld [vmem:[%s7275_s3 + $0x150] sm:$0xff]   ;;  %s4559_s23 = sshll.u32 %s5385_s4, 4  ;;  %s4560_s23 = int_to_ptr.vmem [resolvable:$true] %s4559_s23 }
 0x1ff   :  { %3839 = vmatpush1.bf16.msra.mxu1 %v5069_v42  ;;  %3676 = vmatprep.subr.bf16.mxu0 %v5076_v58  ;;  %v5333_v42 = vld [vmem:[%s7275_s3 + $0x1d0] sm:$0xff]   ;;  %s5360_s24 = scalar_lea.vmem %s4560_s23, 32  ;;  %p5365_p1 = scmp.lt.s32.totalorder %s4560_s23, %s4560_s23 }
 0x200   :  { %3840 = vmatprep.subr.bf16.mxu1 %v5078_v60  ;;  %v5334_v58 = vld [vmem:[%s7275_s3 + $0x110] sm:$0xff]   ;;  %p5361_p0 = scmp.ne.s32.totalorder %s4560_s23, %s5360_s24  ;;  %p5366_p2 = scmp.lt.s32.totalorder %s5360_s24, %s5360_s24 }
 0x201   :  { %v5335_v60 = vld [vmem:[%s7275_s3 + $0x190] sm:$0xff]  }
 0x202   :  { %3677 = vmatpush1.bf16.msra.mxu0 %v5075_v0  ;;  %v5338_v0 = vld [vmem:[%s7275_s3 + $0x118] sm:$0xff]   ;;  %p5367_p3 = por %p5366_p2, %p5365_p1 }
 0x203   :  { %3841 = vmatpush1.bf16.msra.mxu1 %v5077_v1  ;;  %5145 = vmatprep.subr.bf16.mxu0 %v5292_v3  ;;  %v5339_v1 = vld [vmem:[%s7275_s3 + $0x198] sm:$0xff]   ;;  %v5340_v3 = vld [vmem:[%s7275_s3 + $0x160] sm:$0xff]  }
 0x204   :  { %5167 = vmatprep.subr.bf16.mxu1 %v5293_v37  ;;  %v5341_v37 = vld [vmem:[%s7275_s3 + $0x1e0] sm:$0xff]   ;;  %p5368_p4 = pnand %p5367_p3, %p5361_p0 }
 0x205   :  { %3679 = vmatmul.mubr.bf16.vlgmr.msra.gmra.mrb[4].mxu0 %v6262_v12 }
 0x206   :  { %3843 = vmatmul.mubr.bf16.vlgmr.msra.gmra.mrb[4].mxu1 %v6262_v12  ;;  %5146 = vmatpush3.bf16.msra.mxu0 %v5294_v9  ;;  %v5301_v12 = vld [vmem:[%s7275_s3 + $0xd0] sm:$0xff]   ;;  %v5344_v9 = vld [vmem:[%s7275_s3 + $0x168] sm:$0xff]  }
 0x207   :  { %4418 = vmatprep.mubr.bf16.mxu0 %v3860_v6  ;;  %5168 = vmatpush3.bf16.msra.mxu1 %v5295_v41  ;;  %v5345_v41 = vld [vmem:[%s7275_s3 + $0x1e8] sm:$0xff]  }
 0x208   :  { %4458 = vmatprep.mubr.bf16.mxu1 %v3862_v8  ;;  %5147 = vmatprep.subr.bf16.mxu0 %v5296_v5  ;;  %v5346_v5 = vld [vmem:[%s7275_s3 + $0x128] sm:$0xff]   ;;  %v5349_v8 = vld [vmem:[%s7275_s3 + $0x1f0] sm:$0xff]  }
 0x209   :  { %5169 = vmatprep.subr.bf16.mxu1 %v5297_v7  ;;  %v5347_v6 = vld [vmem:[%s7275_s3 + $0x1a8] sm:$0xff]   ;;  %v5348_v7 = vld [vmem:[%s7275_s3 + $0x170] sm:$0xff]  }
 0x20a   :  { %5148 = vmatpush3.bf16.msra.mxu0 %v5298_v10  ;;  %v5350_v10 = vld [vmem:[%s7275_s3 + $0x130] sm:$0xff]  }
 0x20b   :  { %5170 = vmatpush3.bf16.msra.mxu1 %v5299_v2  ;;  %5149 = vmatprep.subr.bf16.mxu0 %v5300_v11  ;;  %v5351_v2 = vld [vmem:[%s7275_s3 + $0x1b0] sm:$0xff]   ;;  %v5352_v11 = vld [vmem:[%s7275_s3 + $0x178] sm:$0xff]  }
 0x20c   :  { %5171 = vmatprep.subr.bf16.mxu1 %v5301_v12  ;;  %v5353_v12 = vld [vmem:[%s7275_s3 + $0x1f8] sm:$0xff]  }
 0x20e   :  { %5150 = vmatpush3.bf16.msra.mxu0 %v5302_v13  ;;  %v5354_v13 = vld [vmem:[%s7275_s3 + $0x138] sm:$0xff]  }
 0x20f   :  { %5172 = vmatpush3.bf16.msra.mxu1 %v5303_v14  ;;  %5151 = vmatprep.subr.bf16.mxu0 %v5304_v15  ;;  %v5355_v14 = vld [vmem:[%s7275_s3 + $0x1b8] sm:$0xff]   ;;  %v555_v15 = vsub.s32 4, %v5482_v43 }
 0x210   :  { %5173 = vmatprep.subr.bf16.mxu1 %v5305_v16  ;;  %v563_v16 = vsub.s32 6, %v5482_v43 }
 0x212   :  { %5152 = vmatpush3.bf16.msra.mxu0 %v5306_v17  ;;  %v559_v17 = vsub.s32 5, %v5482_v43 }
 0x213   :  { %5174 = vmatpush3.bf16.msra.mxu1 %v5307_v18  ;;  %5153 = vmatprep.subr.bf16.mxu0 %v5308_v19  ;;  %v567_v18 = vsub.s32 7, %v5482_v43  ;;  %v556_v19 = vrot.slane %v7030_v46, %v555_v15 }
 0x214   :  { %5175 = vmatprep.subr.bf16.mxu1 %v5309_v20  ;;  %v564_v20 = vrot.slane %v7030_v46, %v563_v16 }
 0x215   :  { %v568_v22 = vrot.slane %v7030_v46, %v567_v18 }
 0x216   :  { %5154 = vmatpush3.bf16.msra.mxu0 %v5310_v21  ;;  %v560_v21 = vrot.slane %v7030_v46, %v559_v17 }
 0x217   :  { %5176 = vmatpush3.bf16.msra.mxu1 %v5311_v23  ;;  %5155 = vmatprep.subr.bf16.mxu0 %v5312_v24 }
 0x218   :  { %5177 = vmatprep.subr.bf16.mxu1 %v5313_v26 }
 0x21a   :  { %5156 = vmatpush3.bf16.msra.mxu0 %v5314_v27 }
 0x21b   :  { %5178 = vmatpush3.bf16.msra.mxu1 %v5315_v29  ;;  %5157 = vmatprep.subr.bf16.mxu0 %v5316_v30 }
 0x21c   :  { %5179 = vmatprep.subr.bf16.mxu1 %v5317_v32 }
 0x21e   :  { %5158 = vmatpush3.bf16.msra.mxu0 %v5318_v33 }
 0x21f   :  { %5180 = vmatpush3.bf16.msra.mxu1 %v5319_v39  ;;  %5159 = vmatprep.subr.bf16.mxu0 %v5320_v40 }
 0x220   :  { %5181 = vmatprep.subr.bf16.mxu1 %v5321_v44 }
 0x222   :  { %5160 = vmatpush3.bf16.msra.mxu0 %v5322_v31 }
 0x223   :  { %5182 = vmatpush3.bf16.msra.mxu1 %v5323_v25  ;;  %5189 = vmatprep.subr.bf16.mxu0 %v5324_v38 }
 0x224   :  { %5211 = vmatprep.subr.bf16.mxu1 %v5325_v48 }
 0x225   :  { %4419 = vmatmul.mubr.bf16.vlgmr.msra.gmra.mrb[8].mxu0 %v3859_v50 }
 0x226   :  { %4459 = vmatmul.mubr.bf16.vlgmr.msra.gmra.mrb[8].mxu1 %v3861_v54  ;;  %5190 = vmatpush3.bf16.msra.mxu0 %v5326_v49 }
 0x227   :  { %5212 = vmatpush3.bf16.msra.mxu1 %v5327_v51  ;;  %5191 = vmatprep.subr.bf16.mxu0 %v5328_v52 }
 0x228   :  { %5213 = vmatprep.subr.bf16.mxu1 %v5329_v35 }
 0x22a   :  { %5192 = vmatpush3.bf16.msra.mxu0 %v5330_v55 }
 0x22b   :  { %5214 = vmatpush3.bf16.msra.mxu1 %v5331_v56  ;;  %5193 = vmatprep.subr.bf16.mxu0 %v5332_v57 }
 0x22c   :  { %5215 = vmatprep.subr.bf16.mxu1 %v5333_v42 }
 0x22e   :  { %5194 = vmatpush3.bf16.msra.mxu0 %v5334_v58 }
 0x22f   :  { %5216 = vmatpush3.bf16.msra.mxu1 %v5335_v60  ;;  %5195 = vmatprep.subr.bf16.mxu0 %v5336_v61 }
 0x230   :  { %5217 = vmatprep.subr.bf16.mxu1 %v5337_v62 }
 0x232   :  { %5196 = vmatpush3.bf16.msra.mxu0 %v5338_v0 }
 0x233   :  { %5218 = vmatpush3.bf16.msra.mxu1 %v5339_v1  ;;  %5197 = vmatprep.subr.bf16.mxu0 %v5340_v3 }
 0x234   :  { %5219 = vmatprep.subr.bf16.mxu1 %v5341_v37 }
 0x236   :  { %5198 = vmatpush3.bf16.msra.mxu0 %v5342_v36 }
 0x237   :  { %5220 = vmatpush3.bf16.msra.mxu1 %v5343_v4  ;;  %5199 = vmatprep.subr.bf16.mxu0 %v5344_v9 }
 0x238   :  { %5221 = vmatprep.subr.bf16.mxu1 %v5345_v41 }
 0x23a   :  { %5200 = vmatpush3.bf16.msra.mxu0 %v5346_v5 }
 0x23b   :  { %5222 = vmatpush3.bf16.msra.mxu1 %v5347_v6  ;;  %5201 = vmatprep.subr.bf16.mxu0 %v5348_v7 }
 0x23c   :  { %5223 = vmatprep.subr.bf16.mxu1 %v5349_v8 }
 0x23e   :  { %5202 = vmatpush3.bf16.msra.mxu0 %v5350_v10 }
 0x23f   :  { %5224 = vmatpush3.bf16.msra.mxu1 %v5351_v2  ;;  %5203 = vmatprep.subr.bf16.mxu0 %v5352_v11 }
 0x240   :  { %5225 = vmatprep.subr.bf16.mxu1 %v5353_v12 }
 0x242   :  { %5204 = vmatpush3.bf16.msra.mxu0 %v5354_v13 }
 0x243   :  { %5226 = vmatpush3.bf16.msra.mxu1 %v5355_v14 }
 0x2d8   :  { %v3680_v23 = vpop.f32.mrb[4].mxu0 }
 0x2d9   :  { %v5237_v24 = vadd.f32 %v3680_v23, %v556_v19  ;;  %v3844_v59 = vpop.f32.mrb[4].mxu1  ;;  %v3682_v26 = vpop.f32.mrb[5].mxu0 }
 0x2da   :  { %v5239_v27 = vadd.f32 %v3844_v59, %v564_v20  ;;  %v5238_v28 = vadd.f32 %v3682_v26, %v560_v21  ;;  %v3846_v29 = vpop.f32.mrb[5].mxu1  ;;  %v3684_v30 = vpop.f32.mrb[6].mxu0 }
 0x2db   :  { %v3855_v63 = vmax.f32 %v5237_v24, 0.0  ;;  %v5240_v32 = vadd.f32 %v3846_v29, %v568_v22  ;;  %v3848_v33 = vpop.f32.mrb[6].mxu1  ;;  %v3685_v43 = vpop.f32.mrb[7].mxu0 }
 0x2dc   :  { %v3857_v34 = vmax.f32 %v5239_v27, 0.0  ;;  %v3856_v39 = vmax.f32 %v5238_v28, 0.0  ;;  %v3849_v40 = vpop.f32.mrb[7].mxu1 }
 0x2dd   :  { %v3858_v53 = vmax.f32 %v5240_v32, 0.0  ;;  %v3863_v31 = vpack.c.bf16 %v3855_v63, %v3855_v63 }
 0x2de   :  { %v3864_v44 = vpack.c.bf16 %v3856_v39, %v3856_v39  ;;  %v3865_v46 = vpack.c.bf16 %v3857_v34, %v3857_v34 }
 0x2df   :  { %v3866_v45 = vpack.c.bf16 %v3858_v53, %v3858_v53 }
 0x2e0   :  { %4498 = vmatprep.mubr.bf16.mxu0 %v3864_v44 }
 0x2e1   :  { %4538 = vmatprep.mubr.bf16.mxu1 %v3866_v45  ;;  %4499 = vmatmul.mubr.bf16.vlgmr.msra.gmra.mrb[12].mxu0 %v3863_v31 }
 0x2e2   :  { %4539 = vmatmul.mubr.bf16.vlgmr.msra.gmra.mrb[12].mxu1 %v3865_v46 }
 0x2f8   :  { %v5161_v25 = vpop.f32.mrb[8].mxu0 }
 0x2f9   :  { %v5183_v38 = vpop.f32.mrb[8].mxu1  ;;  %v5162_v48 = vpop.f32.mrb[9].mxu0 }
 0x2fa   :  { %v5163_v49 = vadd.f32 %v5162_v48, %v5161_v25  ;;  %v5184_v50 = vpop.f32.mrb[9].mxu1  ;;  %v5164_v51 = vpop.f32.mrb[10].mxu0 }
 0x2fb   :  { %v5185_v52 = vadd.f32 %v5184_v50, %v5183_v38  ;;  %v5186_v54 = vpop.f32.mrb[10].mxu1  ;;  %v5165_v35 = vpop.f32.mrb[11].mxu0 }
 0x2fc   :  { %v4421_v55 = vadd.f32 %v5163_v49, %v5079_v47  ;;  %v5187_v56 = vpop.f32.mrb[11].mxu1 }
 0x2fe   :  { %v4461_v57 = vadd.f32 %v5185_v52, %v4421_v55 }
 0x3b4   :  { %v5205_v42 = vpop.f32.mrb[12].mxu0 }
 0x3b5   :  { %v5227_v58 = vpop.f32.mrb[12].mxu1  ;;  %v5206_v60 = vpop.f32.mrb[13].mxu0 }
 0x3b6   :  { %v5207_v61 = vadd.f32 %v5206_v60, %v5205_v42  ;;  %v5228_v62 = vpop.f32.mrb[13].mxu1  ;;  %v5208_v0 = vpop.f32.mrb[14].mxu0 }
 0x3b7   :  { %v5229_v1 = vadd.f32 %v5228_v62, %v5227_v58  ;;  %v5230_v3 = vpop.f32.mrb[14].mxu1  ;;  %v5209_v37 = vpop.f32.mrb[15].mxu0 }
 0x3b8   :  { %v4501_v36 = vadd.f32 %v5207_v61, %v4461_v57  ;;  %v5231_v4 = vpop.f32.mrb[15].mxu1 }
 0x3ba   :  { %v4541_v9 = vadd.f32 %v5229_v1, %v4501_v36 }
 0x3bc   :  { %v5144_v41 = vmul.f32 -1.442695, %v4541_v9 }
 0x3be   :  { %5356 = vpow2.f32 %v5144_v41 }
 0x3c8   :  { %v5357_v5 = vpop.eup %5356 }
 0x3c9   :  { %v4549_v6 = vadd.f32 1.0, %v5357_v5 }
 0x3cb   :  { %5358 = vrcp.f32 %v4549_v6 }
 0x3d5   :  { %v5359_v7 = vpop.eup %5358 }
 0x3d6   :  { %4552 = vst [vmem:[#allocation2] sm:$0x3] %v5359_v7 }
 0x3d7   :  { %5371 = shalt.err (!%p5368_p4)
}
 0x3d8   :  { %s5372_s27 = scalar_lea.hbm %s7277_s5, 32 }
 0x3d9   :  { %p5373_p5 = scmp.ne.s32.totalorder %s7277_s5, %s5372_s27  ;;  %p5376_p6 = scmp.lt.u32.totalorder %s5372_s27, %s7277_s5 }
 0x3db   :  { %p5378_p7 = pnand %p5376_p6, %p5373_p5 }
 0x3dd   :  { %5381 = shalt.err (!%p5378_p7)
}
 0x3de   :  { %4562 = dma.vmem_to_hbm [thread:$0]  %s4560_s23, 32, %s7277_s5, [#allocation3]  }
 0x3df   :  { %5382 = dma.done.wait [#allocation3], 32  }
 0x3e0   :  { %5383 = vsyncadd [#allocation3], 4294967264 }
 0x3e1   :  { %4566 = vsyncpa [#allocation3], 1 }

// kernel: mlp_basic_forward.3
= control target key start
LH: loop header
LB: loop body
LE: loop exit
PB: predicated region body
PF: predicated region fallthrough
CT: control target
= control target key end

     0   :  { %8 = vsyncpa [#allocation3], 0  ;;  %s12313_s0 = inlined_call_operand.vmem [shape: bf16[2,4096], index: 0, kind: input, shape index: {}]   ;;  %s12314_s1 = inlined_call_operand.hbm [shape: bf16[4,4096,512], index: 1, kind: input, shape index: {}]   ;;  %s12315_s2 = inlined_call_operand.hbm [shape: f32[1,2048], index: 2, kind: input, shape index: {}]   ;;  %s12316_s3 = inlined_call_operand.vmem [shape: bf16[2,2048], index: 3, kind: output, shape index: {}]  }
   0x1   :  { %10 = vsyncpa [#allocation3 + $0x1], 0 }
   0x2   :  { %11 = vsyncpa [#allocation5], 0 }
   0x3   :  { %13 = vsyncpa [#allocation5 + $0x1], 0  ;;  %s10948_s12 = smov 0   ;;  %s10950_s13 = smov 0  }
   0x4   :  { %s10952_s14 = smov 0   ;;  %s10954_s15 = smov 0  }
   0x5 LB: > { %s8065_s16 = sadd.s32 4294967295, %s10921_s15   ;;  %s10968_s17 = sadd.s32 1, %s10921_s15   ;;  %s10921_s15 = sphi %s10954_s15, %s12327_s15   ;;  %s10917_s14 = sphi %s10952_s14, %s12326_s14   ;;  %s10913_s13 = sphi %s10950_s13, %s12325_s13   ;;  %s10909_s12 = sphi %s10948_s12, %s12324_s12  }
   0x6   : > { %s44_s18 = ssub.s32 %s10921_s15, %s10968_s17  ;;  %s47_s19 = sadd.s32 1, %s10917_s14 }
   0x7   : > { %p45_p0 = scmp.eq.s32.totalorder %s44_s18, 0  ;;  %p54_p1 = scmp.ne.s32.totalorder %s10917_s14, %s10913_s13 }
   0x8   : > { %p55_p2 = scmp.eq.s32.totalorder %s10921_s15, 0  ;;  %p60_p3 = scmp.ne.s32.totalorder %s10913_s13, %s10909_s12 }
   0x9   : > { %s10978_s20 = scalar_select %p45_p0, %s10917_s14, %s47_s19  }
   0xa   : > { %p56_p4 = por %p55_p2, %p54_p1  ;;  %p61_p5 = scmp.eq.s32.totalorder %s8065_s16, 0 }
   0xb   : > { %p9245_p6 = scmp.lt.s32.totalorder %s10921_s15, 4  ;;  %s10988_s22 = sand.u32 1, %s10917_s14  }
   0xc   : > { %p10983_p7 = por %p61_p5, %p60_p3  ;;  %s8069_s23 = sshll.u32 %s10988_s22, 13 }
   0xd   : > { %s9108_s24 = sshll.u32 %s10921_s15, 17  ;;  %s143_s28 = scalar_lea.vmem [#allocation2], %s8069_s23 }
   0xe   : > { %s12318_s21 = scalar_select %p10983_p7, 1, 0 }
   0xf   : > { %s10995_s27 = scalar_lea.hbm %s12314_s1, %s9108_s24  ;;  %s150_s29 = sshll.u32 %s143_s28, 4  ;;  %s10997_s29 = int_to_ptr.vmem [resolvable:$true] %s150_s29 }
  0x10   : > { %p10999_p8 = pnand %p9245_p6, %p56_p4  ;;  %s140_s4 = scalar_lea.sflag [#allocation3], %s10988_s22 }
  0x11   : > { %s10823_s5 = scalar_lea.hbm %s10995_s27, 131072  ;;  %s10828_s8 = scalar_lea.hbm %s12314_s1, 524288 }
  0x12   : > { %p10824_p10 = scmp.ne.s32.totalorder %s10995_s27, %s10823_s5  ;;  %p10825_p11 = pneg %p10999_p8 }
  0x13   : > { %p10829_p0 = scmp.lt.u32.totalorder %s10995_s27, %s12314_s1  ;;  %p10830_p1 = scmp.lt.u32.totalorder %s10828_s8, %s10823_s5 }
  0x14   : > { %p10826_p12 = pnand %p10825_p11, %p10824_p10  ;;  %p10832_p3 = scmp.lt.u32.totalorder %s10823_s5, %s10995_s27 }
  0x15   : > { %p10831_p2 = por %p10830_p1, %p10829_p0 }
  0x16   : > { %p10827_p13 = pneg %p10826_p12 }
  0x17   : > { %p10833_p4 = por %p10832_p3, %p10831_p2 }
  0x19   : > { %p10834_p5 = pnand %p10833_p4, %p10827_p13 }
  0x1b   : > { %10837 = shalt.err (!%p10834_p5)
}
  0x1c   : > { %s10838_s11 = scalar_lea.vmem %s10997_s29, 131072  ;;  %s10923_s12 = smov [#allocation2]  }
  0x1d   : > { %p10839_p6 = scmp.ne.s32.totalorder %s10997_s29, %s10838_s11  ;;  %s10843_s18 = sshll.u32 %s10923_s12, 4  ;;  %s10844_s18 = int_to_ptr.vmem [resolvable:$false] %s10843_s18 }
  0x1e   : > { %s10845_s19 = scalar_lea.vmem %s10844_s18, 262144  ;;  %p10846_p9 = scmp.lt.s32.totalorder %s10997_s29, %s10844_s18 }
  0x1f   : > { %p10841_p10 = pnand %p10839_p6, %p10825_p11  ;;  %p10847_p0 = scmp.lt.s32.totalorder %s10845_s19, %s10838_s11 }
  0x21   : > { %p10842_p12 = pneg %p10841_p10  ;;  %p10848_p1 = por %p10847_p0, %p10846_p9 }
  0x23   : > { %p10849_p2 = pnand %p10848_p1, %p10842_p12 }
  0x25   : > { %10852 = shalt.err (!%p10849_p2)
}
  0x26   : > { %s10924_s23 = smov 256   ;;  %s10925_s24 = smov 16  }
  0x27   : > { %9241 = dma.hbm_to_vmem [thread:$0]  (!%p10999_p8), %s10995_s27, 131072, %s10997_s29, %s140_s4, %s10924_s23, %s10924_s23, %s10925_s24  }
  0x28   : > { %p177_p13 = scmp.lt.s32.totalorder %s10921_s15, 5  ;;  %s8072_s25 = sshll.u32 %s10988_s22, 2 }
  0x29   : > { %s9109_s26 = sshll.u32 %s10921_s15, 6  ;;  %p12320_p9 = scmp.ge.s32.totalorder %s10921_s15, 1 }
  0x2a   : > { %s11044_s7 = scalar_lea.hbm %s12315_s2, %s9109_s26  ;;  %s164_s8 = scalar_lea.vmem [#allocation4], %s8072_s25 }
  0x2b   : > { %p11037_p3 = pnand %p12320_p9, %p177_p13  ;;  %s172_s9 = sshll.u32 %s164_s8, 4  ;;  %s173_s9 = int_to_ptr.vmem [resolvable:$true] %s172_s9 }
  0x2c   : > { %s161_s27 = scalar_lea.sflag [#allocation5], %s10988_s22  ;;  %s10853_s29 = scalar_lea.hbm %s11044_s7, 64 }
  0x2d   : > { %s12321_s28 = scalar_select %p11037_p3, 1, 0 }
  0x2e   : > { %p10854_p4 = scmp.ne.s32.totalorder %s11044_s7, %s10853_s29  ;;  %s10858_s11 = scalar_lea.hbm %s12315_s2, 256 }
  0x2f   : > { %p10859_p10 = scmp.lt.u32.totalorder %s11044_s7, %s12315_s2  ;;  %p10860_p12 = scmp.lt.u32.totalorder %s10858_s11, %s10853_s29 }
  0x30   : > { %p10856_p5 = pnand %p10854_p4, %p10825_p11  ;;  %p10862_p1 = scmp.lt.u32.totalorder %s10853_s29, %s11044_s7 }
  0x31   : > { %p10861_p0 = por %p10860_p12, %p10859_p10 }
  0x32   : > { %p10857_p6 = pneg %p10856_p5 }
  0x33   : > { %p10863_p2 = por %p10862_p1, %p10861_p0 }
  0x35   : > { %p10864_p13 = pnand %p10863_p2, %p10857_p6 }
  0x37   : > { %10867 = shalt.err (!%p10864_p13)
}
  0x38   : > { %s10868_s22 = scalar_lea.vmem %s173_s9, 64  ;;  %s10926_s19 = smov [#allocation4]  }
  0x39   : > { %p10869_p9 = scmp.ne.s32.totalorder %s173_s9, %s10868_s22  ;;  %s10873_s23 = sshll.u32 %s10926_s19, 4  ;;  %s10874_s23 = int_to_ptr.vmem [resolvable:$false] %s10873_s23 }
  0x3a   : > { %s10875_s24 = scalar_lea.vmem %s10874_s23, 128  ;;  %p10876_p7 = scmp.lt.s32.totalorder %s173_s9, %s10874_s23 }
  0x3b   : > { %p10871_p4 = pnand %p10869_p9, %p10825_p11  ;;  %p10877_p3 = scmp.lt.s32.totalorder %s10875_s24, %s10868_s22 }
  0x3d   : > { %p10872_p5 = pneg %p10871_p4  ;;  %p10878_p10 = por %p10877_p3, %p10876_p7 }
  0x3f   : > { %p10879_p12 = pnand %p10878_p10, %p10872_p5 }
  0x41   : > { %10882 = shalt.err (!%p10879_p12)
}
  0x42   : > { %9244 = dma.hbm_to_vmem [thread:$0]  (!%p10999_p8), %s11044_s7, 64, %s173_s9, %s161_s27  }
  0x43   : > { %p12322_p6 = scmp.ne.s32.totalorder %s12321_s28, 0 }
  0x44   : > { %s183_s25 = sand.u32 (!%p12322_p6), 1, %s10913_s13   ;;  %p12323_p11 = scmp.ne.s32.totalorder (!%p12322_p6), %s12318_s21, 0 }
  0x45   : > { %181 = sbr.rel (%p12322_p6) target bundleno = 1329 (0x531), region = 32  ;;  %s8076_s26 = sshll.u32 (!%p12322_p6), %s183_s25, 13 }
  0x46   : > { %s184_s5 = scalar_lea.sflag (!%p12322_p6), [#allocation3], %s183_s25  ;;  %s11069_s6 = scalar_lea.vmem (!%p12322_p6), [#allocation2], %s8076_s26 }
  0x4c   : > { %10900 = dma.done.wait (%p12323_p11), %s184_s5, 131072  }
  0x4d   : > { %10902 = vsyncadd (%p12323_p11), %s184_s5, 4294836224  ;;  %s8077_s8 = sshll.u32 %s183_s25, 2  ;;  %s193_s30 = scalar_lea.sflag [#allocation5], %s183_s25 }
  0x4e   : > { %s11075_s29 = scalar_lea.vmem [#allocation4], %s8077_s8 }
  0x4f   : > { %10904 = dma.done.wait (%p12323_p11), %s193_s30, 64  }
  0x50   : > { %10906 = vsyncadd (%p12323_p11), %s193_s30, 4294967232  ;;  %v9281_v0 = vld [vmem:[%s11069_s6 + $0x4] ss:$16 sps:$4 sm:$0xff]   ;;  %v9283_v1 = vld [vmem:[%s11069_s6 + $0xc] ss:$16 sps:$4 sm:$0xff]   ;;  %v1259_v36 = vlaneseq  ;;  %s8078_s22 = sshll.u32 %s8065_s16, 2 }
  0x51   : > { %6631 = vmatprep.subr.bf16.mxu0 %v9281_v0  ;;  %v9285_v2 = vld [vmem:[%s11069_s6] ss:$16 sps:$4 sm:$0xff]   ;;  %v9286_v3 = vld [vmem:[%s11069_s6 + $0x8] ss:$16 sps:$4 sm:$0xff]   ;;  %7287 = vmatprep.subr.bf16.mxu1 %v9283_v1  ;;  %v9287_v4 = vld [vmem:[%s11069_s6 + $0x24] ss:$16 sps:$4 sm:$0xff]  }
  0x52   : > { %6632 = vmatpush1.bf16.msra.mxu0 %v9285_v2  ;;  %7288 = vmatpush1.bf16.msra.mxu1 %v9286_v3  ;;  %v9289_v5 = vld [vmem:[%s11069_s6 + $0x2c] ss:$16 sps:$4 sm:$0xff]   ;;  %v9291_v6 = vld [vmem:[%s11069_s6 + $0x20] ss:$16 sps:$4 sm:$0xff]   ;;  %v9292_v7 = vld [vmem:[%s11069_s6 + $0x28] ss:$16 sps:$4 sm:$0xff]  }
  0x53   : > { %6633 = vmatprep.subr.bf16.mxu0 %v9287_v4  ;;  %7289 = vmatprep.subr.bf16.mxu1 %v9289_v5  ;;  %v9293_v8 = vld [vmem:[%s11069_s6 + $0x44] ss:$16 sps:$4 sm:$0xff]   ;;  %v9295_v9 = vld [vmem:[%s11069_s6 + $0x4c] ss:$16 sps:$4 sm:$0xff]   ;;  %v9297_v10 = vld [vmem:[%s11069_s6 + $0x40] ss:$16 sps:$4 sm:$0xff]  }
  0x54   : > { %v9298_v11 = vld [vmem:[%s11069_s6 + $0x48] ss:$16 sps:$4 sm:$0xff]   ;;  %v9299_v12 = vld [vmem:[%s11069_s6 + $0x64] ss:$16 sps:$4 sm:$0xff]   ;;  %v9301_v13 = vld [vmem:[%s11069_s6 + $0x6c] ss:$16 sps:$4 sm:$0xff]  }
  0x55   : > { %v9303_v14 = vld [vmem:[%s11069_s6 + $0x60] ss:$16 sps:$4 sm:$0xff]   ;;  %v9304_v15 = vld [vmem:[%s11069_s6 + $0x68] ss:$16 sps:$4 sm:$0xff]   ;;  %v9305_v16 = vld [vmem:[%s11069_s6 + $0x84] ss:$16 sps:$4 sm:$0xff]  }
  0x56   : > { %6634 = vmatpush1.bf16.msra.mxu0 %v9291_v6  ;;  %7290 = vmatpush1.bf16.msra.mxu1 %v9292_v7  ;;  %v9307_v17 = vld [vmem:[%s11069_s6 + $0x8c] ss:$16 sps:$4 sm:$0xff]   ;;  %v9309_v18 = vld [vmem:[%s11069_s6 + $0x80] ss:$16 sps:$4 sm:$0xff]   ;;  %v9310_v19 = vld [vmem:[%s11069_s6 + $0x88] ss:$16 sps:$4 sm:$0xff]  }
  0x57   : > { %6635 = vmatprep.subr.bf16.mxu0 %v9293_v8  ;;  %7291 = vmatprep.subr.bf16.mxu1 %v9295_v9  ;;  %v9311_v20 = vld [vmem:[%s11069_s6 + $0xa4] ss:$16 sps:$4 sm:$0xff]   ;;  %v9313_v21 = vld [vmem:[%s11069_s6 + $0xac] ss:$16 sps:$4 sm:$0xff]   ;;  %v9315_v22 = vld [vmem:[%s11069_s6 + $0xa0] ss:$16 sps:$4 sm:$0xff]  }
  0x58   : > { %v9316_v23 = vld [vmem:[%s11069_s6 + $0xa8] ss:$16 sps:$4 sm:$0xff]   ;;  %v9317_v24 = vld [vmem:[%s11069_s6 + $0xc4] ss:$16 sps:$4 sm:$0xff]   ;;  %v9319_v25 = vld [vmem:[%s11069_s6 + $0xcc] ss:$16 sps:$4 sm:$0xff]  }
  0x59   : > { %v9321_v26 = vld [vmem:[%s11069_s6 + $0xc0] ss:$16 sps:$4 sm:$0xff]   ;;  %v9322_v27 = vld [vmem:[%s11069_s6 + $0xc8] ss:$16 sps:$4 sm:$0xff]   ;;  %v9323_v28 = vld [vmem:[%s11069_s6 + $0xe4] ss:$16 sps:$4 sm:$0xff]  }
  0x5a   : > { %6636 = vmatpush1.bf16.msra.mxu0 %v9297_v10  ;;  %7292 = vmatpush1.bf16.msra.mxu1 %v9298_v11  ;;  %v9325_v29 = vld [vmem:[%s11069_s6 + $0xec] ss:$16 sps:$4 sm:$0xff]   ;;  %v9327_v30 = vld [vmem:[%s11069_s6 + $0xe0] ss:$16 sps:$4 sm:$0xff]   ;;  %v9328_v31 = vld [vmem:[%s11069_s6 + $0xe8] ss:$16 sps:$4 sm:$0xff]  }
  0x5b   : > { %6637 = vmatprep.subr.bf16.mxu0 %v9299_v12  ;;  %7293 = vmatprep.subr.bf16.mxu1 %v9301_v13  ;;  %v9329_v32 = vld [vmem:[%s11069_s6 + $0x104] ss:$16 sps:$4 sm:$0xff]   ;;  %v9331_v33 = vld [vmem:[%s11069_s6 + $0x10c] ss:$16 sps:$4 sm:$0xff]   ;;  %v9333_v34 = vld [vmem:[%s11069_s6 + $0x100] ss:$16 sps:$4 sm:$0xff]  }
  0x5c   : > { %v9334_v35 = vld [vmem:[%s11069_s6 + $0x108] ss:$16 sps:$4 sm:$0xff]   ;;  %v10927_v37 = vmov 1966171168   ;;  %v9335_v39 = vld [vmem:[%s11069_s6 + $0x124] ss:$16 sps:$4 sm:$0xff]  }
  0x5d   : > { %v1285_v38 = vunpack.c.l.s4 %v10927_v37  ;;  %v9337_v40 = vld [vmem:[%s11069_s6 + $0x12c] ss:$16 sps:$4 sm:$0xff]   ;;  %v9339_v41 = vld [vmem:[%s11069_s6 + $0x120] ss:$16 sps:$4 sm:$0xff]   ;;  %v11120_v42 = vshrl.u32 %v1259_v36, 7  ;;  %p225_p7 = scmp.lt.s32.totalorder %s8078_s22, 15 }
  0x5e   : > { %6638 = vmatpush1.bf16.msra.mxu0 %v9303_v14  ;;  %7294 = vmatpush1.bf16.msra.mxu1 %v9304_v15  ;;  %v9340_v44 = vld [vmem:[%s11069_s6 + $0x128] ss:$16 sps:$4 sm:$0xff]   ;;  %v9341_v45 = vld [vmem:[%s11069_s6 + $0x144] ss:$16 sps:$4 sm:$0xff]   ;;  %v9343_v46 = vld [vmem:[%s11069_s6 + $0x14c] ss:$16 sps:$4 sm:$0xff]  }
  0x5f   : > { %6639 = vmatprep.subr.bf16.mxu0 %v9305_v16  ;;  %7295 = vmatprep.subr.bf16.mxu1 %v9307_v17  ;;  %v1286_v43 = vunpack.c.0.s8 %v1285_v38  ;;  %v9345_v47 = vld [vmem:[%s11069_s6 + $0x140] ss:$16 sps:$4 sm:$0xff]   ;;  %v9346_v48 = vld [vmem:[%s11069_s6 + $0x148] ss:$16 sps:$4 sm:$0xff]   ;;  %v9347_v50 = vld [vmem:[%s11069_s6 + $0x164] ss:$16 sps:$4 sm:$0xff]  }
  0x60   : > { %v9349_v51 = vld [vmem:[%s11069_s6 + $0x16c] ss:$16 sps:$4 sm:$0xff]   ;;  %v11135_v52 = vld [vmem:[%s12313_s0] sm:$0xff]  ;;  %v9352_v55 = vld [vmem:[%s11069_s6 + $0x168] ss:$16 sps:$4 sm:$0xff]   ;;  %s12329_s22 = smov (!%p225_p7, %s8078_s22), 15 }
  0x61   : > { %v11128_v49 = vsub.s32 %v1286_v43, %v11120_v42  ;;  %v9351_v53 = vld [vmem:[%s11069_s6 + $0x160] ss:$16 sps:$4 sm:$0xff]   ;;  %v9353_v56 = vld [vmem:[%s11069_s6 + $0x184] ss:$16 sps:$4 sm:$0xff]   ;;  %v9355_v57 = vld [vmem:[%s11069_s6 + $0x18c] ss:$16 sps:$4 sm:$0xff]   ;;  %s227_s19 = scalar_lea.vmem %s12316_s3, %s12329_s22 }
  0x62   : > { %6640 = vmatpush1.bf16.msra.mxu0 %v9309_v18  ;;  %7296 = vmatpush1.bf16.msra.mxu1 %v9310_v19  ;;  %v9357_v59 = vld [vmem:[%s11069_s6 + $0x180] ss:$16 sps:$4 sm:$0xff]   ;;  %v9358_v61 = vld [vmem:[%s11069_s6 + $0x188] ss:$16 sps:$4 sm:$0xff]   ;;  %v9359_v62 = vld [vmem:[%s11069_s6 + $0x1a4] ss:$16 sps:$4 sm:$0xff]  }
  0x63   : > { %6641 = vmatprep.subr.bf16.mxu0 %v9311_v20  ;;  %7297 = vmatprep.subr.bf16.mxu1 %v9313_v21  ;;  %v1290_v54 = vrot.slane %v11135_v52, %v11128_v49  ;;  %v9361_v63 = vld [vmem:[%s11069_s6 + $0x1ac] ss:$16 sps:$4 sm:$0xff]   ;;  %v9363_v0 = vld [vmem:[%s11069_s6 + $0x1a0] ss:$16 sps:$4 sm:$0xff]   ;;  %v9364_v1 = vld [vmem:[%s11069_s6 + $0x1a8] ss:$16 sps:$4 sm:$0xff]  }
  0x64   : > { %v9365_v2 = vld [vmem:[%s11069_s6 + $0x1c4] ss:$16 sps:$4 sm:$0xff]   ;;  %v9367_v3 = vld [vmem:[%s11069_s6 + $0x1cc] ss:$16 sps:$4 sm:$0xff]   ;;  %v9369_v4 = vld [vmem:[%s11069_s6 + $0x1c0] ss:$16 sps:$4 sm:$0xff]  }
  0x65   : > { %v1298_v58 = vcombine.high %v1290_v54, %v1290_v54  ;;  %v9370_v5 = vld [vmem:[%s11069_s6 + $0x1c8] ss:$16 sps:$4 sm:$0xff]   ;;  %v9371_v6 = vld [vmem:[%s11069_s6 + $0x1e4] ss:$16 sps:$4 sm:$0xff]   ;;  %v9373_v7 = vld [vmem:[%s11069_s6 + $0x1ec] ss:$16 sps:$4 sm:$0xff]   ;;  %v11162_v13 = vrot.slane %v1290_v54, %v11128_v49 }
  0x66   : > { %6642 = vmatpush1.bf16.msra.mxu0 %v9315_v22  ;;  %7298 = vmatpush1.bf16.msra.mxu1 %v9316_v23  ;;  %v9375_v8 = vld [vmem:[%s11069_s6 + $0x1e0] ss:$16 sps:$4 sm:$0xff]   ;;  %v9376_v9 = vld [vmem:[%s11069_s6 + $0x1e8] ss:$16 sps:$4 sm:$0xff]   ;;  %v9379_v10 = vld [vmem:[%s11069_s6 + $0x204] ss:$16 sps:$4 sm:$0xff]  }
  0x67   : > { %6643 = vmatprep.subr.bf16.mxu0 %v9317_v24  ;;  %7299 = vmatprep.subr.bf16.mxu1 %v9319_v25  ;;  %v1320_v60 = vrot.slane %v1298_v58, %v11128_v49  ;;  %v9382_v11 = vld [vmem:[%s11069_s6 + $0x20c] ss:$16 sps:$4 sm:$0xff]   ;;  %v9377_v12 = vld [vmem:[%s11069_s6 + $0x200] ss:$16 sps:$4 sm:$0xff]   ;;  %v9380_v14 = vld [vmem:[%s11069_s6 + $0x208] ss:$16 sps:$4 sm:$0xff]  }
  0x68   : > { %v9385_v15 = vld [vmem:[%s11069_s6 + $0x224] ss:$16 sps:$4 sm:$0xff]   ;;  %v9388_v16 = vld [vmem:[%s11069_s6 + $0x22c] ss:$16 sps:$4 sm:$0xff]   ;;  %v9383_v18 = vld [vmem:[%s11069_s6 + $0x220] ss:$16 sps:$4 sm:$0xff]  }
  0x69   : > { %6663 = vmatprep.mubr.bf16.mxu0 %v1320_v60  ;;  %7319 = vmatprep.mubr.bf16.mxu1 %v1320_v60  ;;  %v1330_v17 = vcombine.high %v1320_v60, %v1320_v60  ;;  %v9386_v19 = vld [vmem:[%s11069_s6 + $0x228] ss:$16 sps:$4 sm:$0xff]   ;;  %v9391_v20 = vld [vmem:[%s11069_s6 + $0x244] ss:$16 sps:$4 sm:$0xff]   ;;  %v9394_v21 = vld [vmem:[%s11069_s6 + $0x24c] ss:$16 sps:$4 sm:$0xff]  }
  0x6a   : > { %6644 = vmatpush1.bf16.msra.mxu0 %v9321_v26  ;;  %7300 = vmatpush1.bf16.msra.mxu1 %v9322_v27  ;;  %v9389_v22 = vld [vmem:[%s11069_s6 + $0x240] ss:$16 sps:$4 sm:$0xff]   ;;  %v9392_v23 = vld [vmem:[%s11069_s6 + $0x248] ss:$16 sps:$4 sm:$0xff]   ;;  %v9397_v24 = vld [vmem:[%s11069_s6 + $0x264] ss:$16 sps:$4 sm:$0xff]  }
  0x6b   : > { %6645 = vmatprep.subr.bf16.mxu0 %v9323_v28  ;;  %7301 = vmatprep.subr.bf16.mxu1 %v9325_v29  ;;  %v9400_v25 = vld [vmem:[%s11069_s6 + $0x26c] ss:$16 sps:$4 sm:$0xff]   ;;  %v9395_v26 = vld [vmem:[%s11069_s6 + $0x260] ss:$16 sps:$4 sm:$0xff]   ;;  %v9398_v27 = vld [vmem:[%s11069_s6 + $0x268] ss:$16 sps:$4 sm:$0xff]  }
  0x6c   : > { %v9403_v28 = vld [vmem:[%s11069_s6 + $0x284] ss:$16 sps:$4 sm:$0xff]   ;;  %v9406_v29 = vld [vmem:[%s11069_s6 + $0x28c] ss:$16 sps:$4 sm:$0xff]   ;;  %v9413_v38 = vld [vmem:[%s11069_s6 + $0x2c0] ss:$16 sps:$4 sm:$0xff]  }
  0x6d   : > { %v9415_v36 = vld [vmem:[%s11069_s6 + $0x2c4] ss:$16 sps:$4 sm:$0xff]   ;;  %v9418_v37 = vld [vmem:[%s11069_s6 + $0x2cc] ss:$16 sps:$4 sm:$0xff]   ;;  %v9419_v43 = vld [vmem:[%s11069_s6 + $0x2e0] ss:$16 sps:$4 sm:$0xff]  }
  0x6e   : > { %6646 = vmatpush1.bf16.msra.mxu0 %v9327_v30  ;;  %7302 = vmatpush1.bf16.msra.mxu1 %v9328_v31  ;;  %v9401_v30 = vld [vmem:[%s11069_s6 + $0x280] ss:$16 sps:$4 sm:$0xff]   ;;  %v9404_v31 = vld [vmem:[%s11069_s6 + $0x288] ss:$16 sps:$4 sm:$0xff]   ;;  %v9448_v60 = vld [vmem:[%s11069_s6 + $0x36c] ss:$16 sps:$4 sm:$0xff]  }
  0x6f   : > { %6647 = vmatprep.subr.bf16.mxu0 %v9329_v32  ;;  %7303 = vmatprep.subr.bf16.mxu1 %v9331_v33  ;;  %v9409_v32 = vld [vmem:[%s11069_s6 + $0x2a4] ss:$16 sps:$4 sm:$0xff]   ;;  %v9412_v33 = vld [vmem:[%s11069_s6 + $0x2ac] ss:$16 sps:$4 sm:$0xff]   ;;  %v9434_v54 = vld [vmem:[%s11069_s6 + $0x328] ss:$16 sps:$4 sm:$0xff]  }
  0x70   : > { %v9440_v58 = vld [vmem:[%s11069_s6 + $0x348] ss:$16 sps:$4 sm:$0xff]  }
  0x72   : > { %6648 = vmatpush1.bf16.msra.mxu0 %v9333_v34  ;;  %7304 = vmatpush1.bf16.msra.mxu1 %v9334_v35  ;;  %v9407_v34 = vld [vmem:[%s11069_s6 + $0x2a0] ss:$16 sps:$4 sm:$0xff]   ;;  %v9410_v35 = vld [vmem:[%s11069_s6 + $0x2a8] ss:$16 sps:$4 sm:$0xff]  }
  0x73   : > { %6649 = vmatprep.subr.bf16.mxu0 %v9335_v39  ;;  %7305 = vmatprep.subr.bf16.mxu1 %v9337_v40  ;;  %v9416_v39 = vld [vmem:[%s11069_s6 + $0x2c8] ss:$16 sps:$4 sm:$0xff]   ;;  %v9421_v40 = vld [vmem:[%s11069_s6 + $0x2e4] ss:$16 sps:$4 sm:$0xff]  }
  0x76   : > { %6650 = vmatpush1.bf16.msra.mxu0 %v9339_v41  ;;  %7306 = vmatpush1.bf16.msra.mxu1 %v9340_v44  ;;  %v9424_v41 = vld [vmem:[%s11069_s6 + $0x2ec] ss:$16 sps:$4 sm:$0xff]   ;;  %v9422_v44 = vld [vmem:[%s11069_s6 + $0x2e8] ss:$16 sps:$4 sm:$0xff]  }
  0x77   : > { %6651 = vmatprep.subr.bf16.mxu0 %v9341_v45  ;;  %7307 = vmatprep.subr.bf16.mxu1 %v9343_v46  ;;  %v9427_v45 = vld [vmem:[%s11069_s6 + $0x304] ss:$16 sps:$4 sm:$0xff]   ;;  %v9430_v46 = vld [vmem:[%s11069_s6 + $0x30c] ss:$16 sps:$4 sm:$0xff]  }
  0x7a   : > { %6652 = vmatpush1.bf16.msra.mxu0 %v9345_v47  ;;  %7308 = vmatpush1.bf16.msra.mxu1 %v9346_v48  ;;  %v9425_v47 = vld [vmem:[%s11069_s6 + $0x300] ss:$16 sps:$4 sm:$0xff]   ;;  %v9428_v48 = vld [vmem:[%s11069_s6 + $0x308] ss:$16 sps:$4 sm:$0xff]  }
  0x7b   : > { %6653 = vmatprep.subr.bf16.mxu0 %v9347_v50  ;;  %7309 = vmatprep.subr.bf16.mxu1 %v9349_v51  ;;  %v9433_v50 = vld [vmem:[%s11069_s6 + $0x324] ss:$16 sps:$4 sm:$0xff]   ;;  %v9436_v51 = vld [vmem:[%s11069_s6 + $0x32c] ss:$16 sps:$4 sm:$0xff]  }
  0x7e   : > { %6654 = vmatpush1.bf16.msra.mxu0 %v9351_v53  ;;  %7310 = vmatpush1.bf16.msra.mxu1 %v9352_v55  ;;  %v9431_v53 = vld [vmem:[%s11069_s6 + $0x320] ss:$16 sps:$4 sm:$0xff]   ;;  %v9439_v55 = vld [vmem:[%s11069_s6 + $0x344] ss:$16 sps:$4 sm:$0xff]  }
  0x7f   : > { %6655 = vmatprep.subr.bf16.mxu0 %v9353_v56  ;;  %7311 = vmatprep.subr.bf16.mxu1 %v9355_v57  ;;  %v9442_v56 = vld [vmem:[%s11069_s6 + $0x34c] ss:$16 sps:$4 sm:$0xff]   ;;  %v9437_v57 = vld [vmem:[%s11069_s6 + $0x340] ss:$16 sps:$4 sm:$0xff]  }
  0x82   : > { %6656 = vmatpush1.bf16.msra.mxu0 %v9357_v59  ;;  %7312 = vmatpush1.bf16.msra.mxu1 %v9358_v61  ;;  %v9445_v59 = vld [vmem:[%s11069_s6 + $0x364] ss:$16 sps:$4 sm:$0xff]   ;;  %v9443_v61 = vld [vmem:[%s11069_s6 + $0x360] ss:$16 sps:$4 sm:$0xff]  }
  0x83   : > { %6657 = vmatprep.subr.bf16.mxu0 %v9359_v62  ;;  %7313 = vmatprep.subr.bf16.mxu1 %v9361_v63  ;;  %v9446_v62 = vld [vmem:[%s11069_s6 + $0x368] ss:$16 sps:$4 sm:$0xff]   ;;  %v9451_v63 = vld [vmem:[%s11069_s6 + $0x384] ss:$16 sps:$4 sm:$0xff]  }
  0x86   : > { %6658 = vmatpush1.bf16.msra.mxu0 %v9363_v0  ;;  %7314 = vmatpush1.bf16.msra.mxu1 %v9364_v1  ;;  %v9454_v0 = vld [vmem:[%s11069_s6 + $0x38c] ss:$16 sps:$4 sm:$0xff]   ;;  %v9449_v1 = vld [vmem:[%s11069_s6 + $0x380] ss:$16 sps:$4 sm:$0xff]  }
  0x87   : > { %6659 = vmatprep.subr.bf16.mxu0 %v9365_v2  ;;  %7315 = vmatprep.subr.bf16.mxu1 %v9367_v3  ;;  %v9452_v2 = vld [vmem:[%s11069_s6 + $0x388] ss:$16 sps:$4 sm:$0xff]   ;;  %v9457_v3 = vld [vmem:[%s11069_s6 + $0x3a4] ss:$16 sps:$4 sm:$0xff]  }
  0x8a   : > { %6660 = vmatpush1.bf16.msra.mxu0 %v9369_v4  ;;  %7316 = vmatpush1.bf16.msra.mxu1 %v9370_v5  ;;  %v9460_v4 = vld [vmem:[%s11069_s6 + $0x3ac] ss:$16 sps:$4 sm:$0xff]   ;;  %v9455_v5 = vld [vmem:[%s11069_s6 + $0x3a0] ss:$16 sps:$4 sm:$0xff]  }
  0x8b   : > { %6661 = vmatprep.subr.bf16.mxu0 %v9371_v6  ;;  %7317 = vmatprep.subr.bf16.mxu1 %v9373_v7  ;;  %v9458_v6 = vld [vmem:[%s11069_s6 + $0x3a8] ss:$16 sps:$4 sm:$0xff]   ;;  %v9463_v7 = vld [vmem:[%s11069_s6 + $0x3c4] ss:$16 sps:$4 sm:$0xff]  }
  0x8e   : > { %6662 = vmatpush1.bf16.msra.mxu0 %v9375_v8  ;;  %7318 = vmatpush1.bf16.msra.mxu1 %v9376_v9  ;;  %v9466_v8 = vld [vmem:[%s11069_s6 + $0x3cc] ss:$16 sps:$4 sm:$0xff]   ;;  %v1283_v9 = vcombine.high %v11135_v52, %v11135_v52  ;;  %v9470_v52 = vld [vmem:[%s11069_s6 + $0x3e8] ss:$16 sps:$4 sm:$0xff]  }
  0x8f   : > { %6672 = vmatprep.subr.bf16.mxu0 %v9379_v10  ;;  %7328 = vmatprep.subr.bf16.mxu1 %v9382_v11  ;;  %v9461_v10 = vld [vmem:[%s11069_s6 + $0x3c0] ss:$16 sps:$4 sm:$0xff]   ;;  %v9464_v11 = vld [vmem:[%s11069_s6 + $0x3c8] ss:$16 sps:$4 sm:$0xff]  }
  0x91   : > { %6664 = vmatmul.mubr.bf16.vlgmr.msra.gmra.mrb[0].mxu0 %v11162_v13  ;;  %7320 = vmatmul.mubr.bf16.vlgmr.msra.gmra.mrb[0].mxu1 %v11162_v13 }
  0x92   : > { %6673 = vmatpush1.bf16.msra.mxu0 %v9377_v12  ;;  %7329 = vmatpush1.bf16.msra.mxu1 %v9380_v14  ;;  %v9469_v12 = vld [vmem:[%s11069_s6 + $0x3e4] ss:$16 sps:$4 sm:$0xff]   ;;  %v9472_v14 = vld [vmem:[%s11069_s6 + $0x3ec] ss:$16 sps:$4 sm:$0xff]  }
  0x93   : > { %6674 = vmatprep.subr.bf16.mxu0 %v9385_v15  ;;  %7330 = vmatprep.subr.bf16.mxu1 %v9388_v16  ;;  %v11228_v15 = vrot.slane %v1283_v9, %v11128_v49  ;;  %v9467_v16 = vld [vmem:[%s11069_s6 + $0x3e0] ss:$16 sps:$4 sm:$0xff]   ;;  %v9548_v9 = vld [vmem:[%s11069_s6 + $0x588] ss:$16 sps:$4 sm:$0xff]  }
  0x94   : > { %6704 = vmatprep.mubr.bf16.mxu0 %v1330_v17  ;;  %7360 = vmatprep.mubr.bf16.mxu1 %v1330_v17  ;;  %v9475_v17 = vld [vmem:[%s11069_s6 + $0x404] ss:$16 sps:$4 sm:$0xff]  }
  0x96   : > { %6675 = vmatpush1.bf16.msra.mxu0 %v9383_v18  ;;  %7331 = vmatpush1.bf16.msra.mxu1 %v9386_v19  ;;  %v9478_v18 = vld [vmem:[%s11069_s6 + $0x40c] ss:$16 sps:$4 sm:$0xff]   ;;  %v1299_v19 = vcombine.high %v11228_v15, %v11228_v15 }
  0x97   : > { %6676 = vmatprep.subr.bf16.mxu0 %v9391_v20  ;;  %7332 = vmatprep.subr.bf16.mxu1 %v9394_v21  ;;  %v9473_v20 = vld [vmem:[%s11069_s6 + $0x400] ss:$16 sps:$4 sm:$0xff]   ;;  %v1328_v21 = vcombine.high %v11162_v13, %v11162_v13  ;;  %v9482_v13 = vld [vmem:[%s11069_s6 + $0x428] ss:$16 sps:$4 sm:$0xff]  }
  0x9a   : > { %6677 = vmatpush1.bf16.msra.mxu0 %v9389_v22  ;;  %7333 = vmatpush1.bf16.msra.mxu1 %v9392_v23  ;;  %v9476_v22 = vld [vmem:[%s11069_s6 + $0x408] ss:$16 sps:$4 sm:$0xff]   ;;  %v9481_v23 = vld [vmem:[%s11069_s6 + $0x424] ss:$16 sps:$4 sm:$0xff]  }
  0x9b   : > { %6678 = vmatprep.subr.bf16.mxu0 %v9397_v24  ;;  %7334 = vmatprep.subr.bf16.mxu1 %v9400_v25  ;;  %v9484_v24 = vld [vmem:[%s11069_s6 + $0x42c] ss:$16 sps:$4 sm:$0xff]   ;;  %v11243_v25 = vrot.slane %v1299_v19, %v11128_v49  ;;  %v9565_v19 = vld [vmem:[%s11069_s6 + $0x5e4] ss:$16 sps:$4 sm:$0xff]  }
  0x9e   : > { %6679 = vmatpush1.bf16.msra.mxu0 %v9395_v26  ;;  %7335 = vmatpush1.bf16.msra.mxu1 %v9398_v27  ;;  %v9479_v26 = vld [vmem:[%s11069_s6 + $0x420] ss:$16 sps:$4 sm:$0xff]   ;;  %v9487_v27 = vld [vmem:[%s11069_s6 + $0x444] ss:$16 sps:$4 sm:$0xff]  }
  0x9f   : > { %6680 = vmatprep.subr.bf16.mxu0 %v9403_v28  ;;  %7336 = vmatprep.subr.bf16.mxu1 %v9406_v29  ;;  %v9490_v28 = vld [vmem:[%s11069_s6 + $0x44c] ss:$16 sps:$4 sm:$0xff]   ;;  %v9485_v29 = vld [vmem:[%s11069_s6 + $0x440] ss:$16 sps:$4 sm:$0xff]  }
  0xa2   : > { %6681 = vmatpush1.bf16.msra.mxu0 %v9401_v30  ;;  %7337 = vmatpush1.bf16.msra.mxu1 %v9404_v31  ;;  %v9488_v30 = vld [vmem:[%s11069_s6 + $0x448] ss:$16 sps:$4 sm:$0xff]   ;;  %v9493_v31 = vld [vmem:[%s11069_s6 + $0x464] ss:$16 sps:$4 sm:$0xff]  }
  0xa3   : > { %6682 = vmatprep.subr.bf16.mxu0 %v9409_v32  ;;  %7338 = vmatprep.subr.bf16.mxu1 %v9412_v33  ;;  %v9496_v32 = vld [vmem:[%s11069_s6 + $0x46c] ss:$16 sps:$4 sm:$0xff]   ;;  %v9491_v33 = vld [vmem:[%s11069_s6 + $0x460] ss:$16 sps:$4 sm:$0xff]  }
  0xa6   : > { %6683 = vmatpush1.bf16.msra.mxu0 %v9407_v34  ;;  %7339 = vmatpush1.bf16.msra.mxu1 %v9410_v35  ;;  %v9494_v34 = vld [vmem:[%s11069_s6 + $0x468] ss:$16 sps:$4 sm:$0xff]   ;;  %v9499_v35 = vld [vmem:[%s11069_s6 + $0x484] ss:$16 sps:$4 sm:$0xff]  }
  0xa7   : > { %6684 = vmatprep.subr.bf16.mxu0 %v9415_v36  ;;  %7340 = vmatprep.subr.bf16.mxu1 %v9418_v37  ;;  %v9502_v36 = vld [vmem:[%s11069_s6 + $0x48c] ss:$16 sps:$4 sm:$0xff]   ;;  %v9497_v37 = vld [vmem:[%s11069_s6 + $0x480] ss:$16 sps:$4 sm:$0xff]  }
  0xaa   : > { %6685 = vmatpush1.bf16.msra.mxu0 %v9413_v38  ;;  %7341 = vmatpush1.bf16.msra.mxu1 %v9416_v39  ;;  %v9500_v38 = vld [vmem:[%s11069_s6 + $0x488] ss:$16 sps:$4 sm:$0xff]   ;;  %v9505_v39 = vld [vmem:[%s11069_s6 + $0x4a4] ss:$16 sps:$4 sm:$0xff]  }
  0xab   : > { %6686 = vmatprep.subr.bf16.mxu0 %v9421_v40  ;;  %7342 = vmatprep.subr.bf16.mxu1 %v9424_v41  ;;  %v9508_v40 = vld [vmem:[%s11069_s6 + $0x4ac] ss:$16 sps:$4 sm:$0xff]   ;;  %v9503_v41 = vld [vmem:[%s11069_s6 + $0x4a0] ss:$16 sps:$4 sm:$0xff]  }
  0xae   : > { %6687 = vmatpush1.bf16.msra.mxu0 %v9419_v43  ;;  %7343 = vmatpush1.bf16.msra.mxu1 %v9422_v44  ;;  %v9506_v43 = vld [vmem:[%s11069_s6 + $0x4a8] ss:$16 sps:$4 sm:$0xff]   ;;  %v9511_v44 = vld [vmem:[%s11069_s6 + $0x4c4] ss:$16 sps:$4 sm:$0xff]  }
  0xaf   : > { %6688 = vmatprep.subr.bf16.mxu0 %v9427_v45  ;;  %7344 = vmatprep.subr.bf16.mxu1 %v9430_v46  ;;  %v9514_v45 = vld [vmem:[%s11069_s6 + $0x4cc] ss:$16 sps:$4 sm:$0xff]   ;;  %v9509_v46 = vld [vmem:[%s11069_s6 + $0x4c0] ss:$16 sps:$4 sm:$0xff]  }
  0xb2   : > { %6689 = vmatpush1.bf16.msra.mxu0 %v9425_v47  ;;  %7345 = vmatpush1.bf16.msra.mxu1 %v9428_v48  ;;  %v9512_v47 = vld [vmem:[%s11069_s6 + $0x4c8] ss:$16 sps:$4 sm:$0xff]   ;;  %v9517_v48 = vld [vmem:[%s11069_s6 + $0x4e4] ss:$16 sps:$4 sm:$0xff]  }
  0xb3   : > { %6690 = vmatprep.subr.bf16.mxu0 %v9433_v50  ;;  %7346 = vmatprep.subr.bf16.mxu1 %v9436_v51  ;;  %v9520_v50 = vld [vmem:[%s11069_s6 + $0x4ec] ss:$16 sps:$4 sm:$0xff]   ;;  %v9515_v51 = vld [vmem:[%s11069_s6 + $0x4e0] ss:$16 sps:$4 sm:$0xff]  }
  0xb6   : > { %6691 = vmatpush1.bf16.msra.mxu0 %v9431_v53  ;;  %7347 = vmatpush1.bf16.msra.mxu1 %v9434_v54  ;;  %v9518_v53 = vld [vmem:[%s11069_s6 + $0x4e8] ss:$16 sps:$4 sm:$0xff]   ;;  %v9523_v54 = vld [vmem:[%s11069_s6 + $0x504] ss:$16 sps:$4 sm:$0xff]  }
  0xb7   : > { %6692 = vmatprep.subr.bf16.mxu0 %v9439_v55  ;;  %7348 = vmatprep.subr.bf16.mxu1 %v9442_v56  ;;  %v9526_v55 = vld [vmem:[%s11069_s6 + $0x50c] ss:$16 sps:$4 sm:$0xff]   ;;  %v9521_v56 = vld [vmem:[%s11069_s6 + $0x500] ss:$16 sps:$4 sm:$0xff]  }
  0xba   : > { %6693 = vmatpush1.bf16.msra.mxu0 %v9437_v57  ;;  %7349 = vmatpush1.bf16.msra.mxu1 %v9440_v58  ;;  %v9524_v57 = vld [vmem:[%s11069_s6 + $0x508] ss:$16 sps:$4 sm:$0xff]   ;;  %v9529_v58 = vld [vmem:[%s11069_s6 + $0x524] ss:$16 sps:$4 sm:$0xff]  }
  0xbb   : > { %6694 = vmatprep.subr.bf16.mxu0 %v9445_v59  ;;  %7350 = vmatprep.subr.bf16.mxu1 %v9448_v60  ;;  %v9532_v59 = vld [vmem:[%s11069_s6 + $0x52c] ss:$16 sps:$4 sm:$0xff]   ;;  %v9527_v60 = vld [vmem:[%s11069_s6 + $0x520] ss:$16 sps:$4 sm:$0xff]  }
  0xbe   : > { %6695 = vmatpush1.bf16.msra.mxu0 %v9443_v61  ;;  %7351 = vmatpush1.bf16.msra.mxu1 %v9446_v62  ;;  %v9530_v61 = vld [vmem:[%s11069_s6 + $0x528] ss:$16 sps:$4 sm:$0xff]   ;;  %v9535_v62 = vld [vmem:[%s11069_s6 + $0x544] ss:$16 sps:$4 sm:$0xff]  }
  0xbf   : > { %6696 = vmatprep.subr.bf16.mxu0 %v9451_v63  ;;  %7352 = vmatprep.subr.bf16.mxu1 %v9454_v0  ;;  %v9538_v63 = vld [vmem:[%s11069_s6 + $0x54c] ss:$16 sps:$4 sm:$0xff]   ;;  %v9533_v0 = vld [vmem:[%s11069_s6 + $0x540] ss:$16 sps:$4 sm:$0xff]  }
  0xc2   : > { %6697 = vmatpush1.bf16.msra.mxu0 %v9449_v1  ;;  %7353 = vmatpush1.bf16.msra.mxu1 %v9452_v2  ;;  %v9536_v1 = vld [vmem:[%s11069_s6 + $0x548] ss:$16 sps:$4 sm:$0xff]   ;;  %v9541_v2 = vld [vmem:[%s11069_s6 + $0x564] ss:$16 sps:$4 sm:$0xff]  }
  0xc3   : > { %6698 = vmatprep.subr.bf16.mxu0 %v9457_v3  ;;  %7354 = vmatprep.subr.bf16.mxu1 %v9460_v4  ;;  %v9544_v3 = vld [vmem:[%s11069_s6 + $0x56c] ss:$16 sps:$4 sm:$0xff]   ;;  %v9539_v4 = vld [vmem:[%s11069_s6 + $0x560] ss:$16 sps:$4 sm:$0xff]  }
  0xc6   : > { %6699 = vmatpush1.bf16.msra.mxu0 %v9455_v5  ;;  %7355 = vmatpush1.bf16.msra.mxu1 %v9458_v6  ;;  %v9542_v5 = vld [vmem:[%s11069_s6 + $0x568] ss:$16 sps:$4 sm:$0xff]   ;;  %v9547_v6 = vld [vmem:[%s11069_s6 + $0x584] ss:$16 sps:$4 sm:$0xff]  }
  0xc7   : > { %6700 = vmatprep.subr.bf16.mxu0 %v9463_v7  ;;  %7356 = vmatprep.subr.bf16.mxu1 %v9466_v8  ;;  %v9550_v7 = vld [vmem:[%s11069_s6 + $0x58c] ss:$16 sps:$4 sm:$0xff]   ;;  %v9545_v8 = vld [vmem:[%s11069_s6 + $0x580] ss:$16 sps:$4 sm:$0xff]  }
  0xca   : > { %6701 = vmatpush1.bf16.msra.mxu0 %v9461_v10  ;;  %7357 = vmatpush1.bf16.msra.mxu1 %v9464_v11  ;;  %v9553_v10 = vld [vmem:[%s11069_s6 + $0x5a4] ss:$16 sps:$4 sm:$0xff]   ;;  %v9556_v11 = vld [vmem:[%s11069_s6 + $0x5ac] ss:$16 sps:$4 sm:$0xff]  }
  0xcb   : > { %6702 = vmatprep.subr.bf16.mxu0 %v9469_v12  ;;  %7358 = vmatprep.subr.bf16.mxu1 %v9472_v14  ;;  %v9551_v12 = vld [vmem:[%s11069_s6 + $0x5a0] ss:$16 sps:$4 sm:$0xff]   ;;  %v9554_v14 = vld [vmem:[%s11069_s6 + $0x5a8] ss:$16 sps:$4 sm:$0xff]  }
  0xce   : > { %6703 = vmatpush1.bf16.msra.mxu0 %v9467_v16  ;;  %7359 = vmatpush1.bf16.msra.mxu1 %v9470_v52  ;;  %v9559_v16 = vld [vmem:[%s11069_s6 + $0x5c4] ss:$16 sps:$4 sm:$0xff]   ;;  %v9562_v52 = vld [vmem:[%s11069_s6 + $0x5cc] ss:$16 sps:$4 sm:$0xff]  }
  0xcf   : > { %6713 = vmatprep.subr.bf16.mxu0 %v9475_v17  ;;  %7369 = vmatprep.subr.bf16.mxu1 %v9478_v18  ;;  %v9557_v17 = vld [vmem:[%s11069_s6 + $0x5c0] ss:$16 sps:$4 sm:$0xff]   ;;  %v9560_v18 = vld [vmem:[%s11069_s6 + $0x5c8] ss:$16 sps:$4 sm:$0xff]  }
  0xd1   : > { %6705 = vmatmul.mubr.bf16.vlgmr.msra.gmra.mrb[0].mxu0 %v1328_v21  ;;  %7361 = vmatmul.mubr.bf16.vlgmr.msra.gmra.mrb[0].mxu1 %v1328_v21  ;;  %v9563_v21 = vld [vmem:[%s11069_s6 + $0x5e0] ss:$16 sps:$4 sm:$0xff]  }
  0xd2   : > { %6714 = vmatpush1.bf16.msra.mxu0 %v9473_v20  ;;  %7370 = vmatpush1.bf16.msra.mxu1 %v9476_v22  ;;  %v9568_v20 = vld [vmem:[%s11069_s6 + $0x5ec] ss:$16 sps:$4 sm:$0xff]   ;;  %v9566_v22 = vld [vmem:[%s11069_s6 + $0x5e8] ss:$16 sps:$4 sm:$0xff]  }
  0xd3   : > { %6715 = vmatprep.subr.bf16.mxu0 %v9481_v23  ;;  %7371 = vmatprep.subr.bf16.mxu1 %v9484_v24  ;;  %v9572_v23 = vld [vmem:[%s11069_s6 + $0x604] ss:$16 sps:$4 sm:$0xff]   ;;  %v9575_v24 = vld [vmem:[%s11069_s6 + $0x60c] ss:$16 sps:$4 sm:$0xff]  }
  0xd4   : > { %6745 = vmatprep.mubr.bf16.mxu0 %v11243_v25  ;;  %7401 = vmatprep.mubr.bf16.mxu1 %v11243_v25 }
  0xd6   : > { %6716 = vmatpush1.bf16.msra.mxu0 %v9479_v26  ;;  %7372 = vmatpush1.bf16.msra.mxu1 %v9482_v13  ;;  %v9570_v26 = vld [vmem:[%s11069_s6 + $0x600] ss:$16 sps:$4 sm:$0xff]   ;;  %v11310_v13 = vrot.slane %v11228_v15, %v11128_v49 }
  0xd7   : > { %6717 = vmatprep.subr.bf16.mxu0 %v9487_v27  ;;  %7373 = vmatprep.subr.bf16.mxu1 %v9490_v28  ;;  %v9573_v27 = vld [vmem:[%s11069_s6 + $0x608] ss:$16 sps:$4 sm:$0xff]   ;;  %v9578_v28 = vld [vmem:[%s11069_s6 + $0x624] ss:$16 sps:$4 sm:$0xff]   ;;  %v9576_v15 = vld [vmem:[%s11069_s6 + $0x620] ss:$16 sps:$4 sm:$0xff]  }
  0xda   : > { %6718 = vmatpush1.bf16.msra.mxu0 %v9485_v29  ;;  %7374 = vmatpush1.bf16.msra.mxu1 %v9488_v30  ;;  %v9581_v29 = vld [vmem:[%s11069_s6 + $0x62c] ss:$16 sps:$4 sm:$0xff]   ;;  %v1331_v30 = vcombine.high %v11243_v25, %v11243_v25  ;;  %v9582_v25 = vld [vmem:[%s11069_s6 + $0x640] ss:$16 sps:$4 sm:$0xff]  }
  0xdb   : > { %6719 = vmatprep.subr.bf16.mxu0 %v9493_v31  ;;  %7375 = vmatprep.subr.bf16.mxu1 %v9496_v32  ;;  %v9579_v31 = vld [vmem:[%s11069_s6 + $0x628] ss:$16 sps:$4 sm:$0xff]   ;;  %v9584_v32 = vld [vmem:[%s11069_s6 + $0x644] ss:$16 sps:$4 sm:$0xff]  }
  0xde   : > { %6720 = vmatpush1.bf16.msra.mxu0 %v9491_v33  ;;  %7376 = vmatpush1.bf16.msra.mxu1 %v9494_v34  ;;  %v9587_v33 = vld [vmem:[%s11069_s6 + $0x64c] ss:$16 sps:$4 sm:$0xff]   ;;  %v9585_v34 = vld [vmem:[%s11069_s6 + $0x648] ss:$16 sps:$4 sm:$0xff]  }
  0xdf   : > { %6721 = vmatprep.subr.bf16.mxu0 %v9499_v35  ;;  %7377 = vmatprep.subr.bf16.mxu1 %v9502_v36  ;;  %v9590_v35 = vld [vmem:[%s11069_s6 + $0x664] ss:$16 sps:$4 sm:$0xff]   ;;  %v9593_v36 = vld [vmem:[%s11069_s6 + $0x66c] ss:$16 sps:$4 sm:$0xff]  }
  0xe2   : > { %6722 = vmatpush1.bf16.msra.mxu0 %v9497_v37  ;;  %7378 = vmatpush1.bf16.msra.mxu1 %v9500_v38  ;;  %v9588_v37 = vld [vmem:[%s11069_s6 + $0x660] ss:$16 sps:$4 sm:$0xff]   ;;  %v9591_v38 = vld [vmem:[%s11069_s6 + $0x668] ss:$16 sps:$4 sm:$0xff]  }
  0xe3   : > { %6723 = vmatprep.subr.bf16.mxu0 %v9505_v39  ;;  %7379 = vmatprep.subr.bf16.mxu1 %v9508_v40  ;;  %v9596_v39 = vld [vmem:[%s11069_s6 + $0x684] ss:$16 sps:$4 sm:$0xff]   ;;  %v9599_v40 = vld [vmem:[%s11069_s6 + $0x68c] ss:$16 sps:$4 sm:$0xff]  }
  0xe6   : > { %6724 = vmatpush1.bf16.msra.mxu0 %v9503_v41  ;;  %7380 = vmatpush1.bf16.msra.mxu1 %v9506_v43  ;;  %v9594_v41 = vld [vmem:[%s11069_s6 + $0x680] ss:$16 sps:$4 sm:$0xff]   ;;  %v9597_v43 = vld [vmem:[%s11069_s6 + $0x688] ss:$16 sps:$4 sm:$0xff]  }
  0xe7   : > { %6725 = vmatprep.subr.bf16.mxu0 %v9511_v44  ;;  %7381 = vmatprep.subr.bf16.mxu1 %v9514_v45  ;;  %v9602_v44 = vld [vmem:[%s11069_s6 + $0x6a4] ss:$16 sps:$4 sm:$0xff]   ;;  %v9605_v45 = vld [vmem:[%s11069_s6 + $0x6ac] ss:$16 sps:$4 sm:$0xff]  }
  0xea   : > { %6726 = vmatpush1.bf16.msra.mxu0 %v9509_v46  ;;  %7382 = vmatpush1.bf16.msra.mxu1 %v9512_v47  ;;  %v9600_v46 = vld [vmem:[%s11069_s6 + $0x6a0] ss:$16 sps:$4 sm:$0xff]   ;;  %v9603_v47 = vld [vmem:[%s11069_s6 + $0x6a8] ss:$16 sps:$4 sm:$0xff]  }
  0xeb   : > { %6727 = vmatprep.subr.bf16.mxu0 %v9517_v48  ;;  %7383 = vmatprep.subr.bf16.mxu1 %v9520_v50  ;;  %v9608_v48 = vld [vmem:[%s11069_s6 + $0x6c4] ss:$16 sps:$4 sm:$0xff]   ;;  %v9611_v50 = vld [vmem:[%s11069_s6 + $0x6cc] ss:$16 sps:$4 sm:$0xff]  }
  0xee   : > { %6728 = vmatpush1.bf16.msra.mxu0 %v9515_v51  ;;  %7384 = vmatpush1.bf16.msra.mxu1 %v9518_v53  ;;  %v9606_v51 = vld [vmem:[%s11069_s6 + $0x6c0] ss:$16 sps:$4 sm:$0xff]   ;;  %v9609_v53 = vld [vmem:[%s11069_s6 + $0x6c8] ss:$16 sps:$4 sm:$0xff]  }
  0xef   : > { %6729 = vmatprep.subr.bf16.mxu0 %v9523_v54  ;;  %7385 = vmatprep.subr.bf16.mxu1 %v9526_v55  ;;  %v9614_v54 = vld [vmem:[%s11069_s6 + $0x6e4] ss:$16 sps:$4 sm:$0xff]   ;;  %v9617_v55 = vld [vmem:[%s11069_s6 + $0x6ec] ss:$16 sps:$4 sm:$0xff]  }
  0xf2   : > { %6730 = vmatpush1.bf16.msra.mxu0 %v9521_v56  ;;  %7386 = vmatpush1.bf16.msra.mxu1 %v9524_v57  ;;  %v9612_v56 = vld [vmem:[%s11069_s6 + $0x6e0] ss:$16 sps:$4 sm:$0xff]   ;;  %v9615_v57 = vld [vmem:[%s11069_s6 + $0x6e8] ss:$16 sps:$4 sm:$0xff]  }
  0xf3   : > { %6731 = vmatprep.subr.bf16.mxu0 %v9529_v58  ;;  %7387 = vmatprep.subr.bf16.mxu1 %v9532_v59  ;;  %v9620_v58 = vld [vmem:[%s11069_s6 + $0x704] ss:$16 sps:$4 sm:$0xff]   ;;  %v9623_v59 = vld [vmem:[%s11069_s6 + $0x70c] ss:$16 sps:$4 sm:$0xff]  }
  0xf6   : > { %6732 = vmatpush1.bf16.msra.mxu0 %v9527_v60  ;;  %7388 = vmatpush1.bf16.msra.mxu1 %v9530_v61  ;;  %v9618_v60 = vld [vmem:[%s11069_s6 + $0x700] ss:$16 sps:$4 sm:$0xff]   ;;  %v9621_v61 = vld [vmem:[%s11069_s6 + $0x708] ss:$16 sps:$4 sm:$0xff]  }
  0xf7   : > { %6733 = vmatprep.subr.bf16.mxu0 %v9535_v62  ;;  %7389 = vmatprep.subr.bf16.mxu1 %v9538_v63  ;;  %v9626_v62 = vld [vmem:[%s11069_s6 + $0x724] ss:$16 sps:$4 sm:$0xff]   ;;  %v9629_v63 = vld [vmem:[%s11069_s6 + $0x72c] ss:$16 sps:$4 sm:$0xff]  }
  0xfa   : > { %6734 = vmatpush1.bf16.msra.mxu0 %v9533_v0  ;;  %7390 = vmatpush1.bf16.msra.mxu1 %v9536_v1  ;;  %v9624_v0 = vld [vmem:[%s11069_s6 + $0x720] ss:$16 sps:$4 sm:$0xff]   ;;  %v9627_v1 = vld [vmem:[%s11069_s6 + $0x728] ss:$16 sps:$4 sm:$0xff]  }
  0xfb   : > { %6735 = vmatprep.subr.bf16.mxu0 %v9541_v2  ;;  %7391 = vmatprep.subr.bf16.mxu1 %v9544_v3  ;;  %v9632_v2 = vld [vmem:[%s11069_s6 + $0x744] ss:$16 sps:$4 sm:$0xff]   ;;  %v9635_v3 = vld [vmem:[%s11069_s6 + $0x74c] ss:$16 sps:$4 sm:$0xff]  }
  0xfe   : > { %6736 = vmatpush1.bf16.msra.mxu0 %v9539_v4  ;;  %7392 = vmatpush1.bf16.msra.mxu1 %v9542_v5  ;;  %v9630_v4 = vld [vmem:[%s11069_s6 + $0x740] ss:$16 sps:$4 sm:$0xff]   ;;  %v9633_v5 = vld [vmem:[%s11069_s6 + $0x748] ss:$16 sps:$4 sm:$0xff]  }
  0xff   : > { %6737 = vmatprep.subr.bf16.mxu0 %v9547_v6  ;;  %7393 = vmatprep.subr.bf16.mxu1 %v9550_v7  ;;  %v9638_v6 = vld [vmem:[%s11069_s6 + $0x764] ss:$16 sps:$4 sm:$0xff]   ;;  %v9641_v7 = vld [vmem:[%s11069_s6 + $0x76c] ss:$16 sps:$4 sm:$0xff]  }
 0x102   : > { %6738 = vmatpush1.bf16.msra.mxu0 %v9545_v8  ;;  %7394 = vmatpush1.bf16.msra.mxu1 %v9548_v9  ;;  %v9636_v8 = vld [vmem:[%s11069_s6 + $0x760] ss:$16 sps:$4 sm:$0xff]   ;;  %v9639_v9 = vld [vmem:[%s11069_s6 + $0x768] ss:$16 sps:$4 sm:$0xff]  }
 0x103   : > { %6739 = vmatprep.subr.bf16.mxu0 %v9553_v10  ;;  %7395 = vmatprep.subr.bf16.mxu1 %v9556_v11  ;;  %v9644_v10 = vld [vmem:[%s11069_s6 + $0x784] ss:$16 sps:$4 sm:$0xff]   ;;  %v9647_v11 = vld [vmem:[%s11069_s6 + $0x78c] ss:$16 sps:$4 sm:$0xff]  }
 0x106   : > { %6740 = vmatpush1.bf16.msra.mxu0 %v9551_v12  ;;  %7396 = vmatpush1.bf16.msra.mxu1 %v9554_v14  ;;  %v9642_v12 = vld [vmem:[%s11069_s6 + $0x780] ss:$16 sps:$4 sm:$0xff]   ;;  %v9645_v14 = vld [vmem:[%s11069_s6 + $0x788] ss:$16 sps:$4 sm:$0xff]  }
 0x107   : > { %6741 = vmatprep.subr.bf16.mxu0 %v9559_v16  ;;  %7397 = vmatprep.subr.bf16.mxu1 %v9562_v52  ;;  %v9650_v16 = vld [vmem:[%s11069_s6 + $0x7a4] ss:$16 sps:$4 sm:$0xff]   ;;  %v9653_v52 = vld [vmem:[%s11069_s6 + $0x7ac] ss:$16 sps:$4 sm:$0xff]  }
 0x10a   : > { %6742 = vmatpush1.bf16.msra.mxu0 %v9557_v17  ;;  %7398 = vmatpush1.bf16.msra.mxu1 %v9560_v18  ;;  %v9648_v17 = vld [vmem:[%s11069_s6 + $0x7a0] ss:$16 sps:$4 sm:$0xff]   ;;  %v9651_v18 = vld [vmem:[%s11069_s6 + $0x7a8] ss:$16 sps:$4 sm:$0xff]  }
 0x10b   : > { %6743 = vmatprep.subr.bf16.mxu0 %v9565_v19  ;;  %7399 = vmatprep.subr.bf16.mxu1 %v9568_v20  ;;  %v9656_v19 = vld [vmem:[%s11069_s6 + $0x7c4] ss:$16 sps:$4 sm:$0xff]   ;;  %v9659_v20 = vld [vmem:[%s11069_s6 + $0x7cc] ss:$16 sps:$4 sm:$0xff]  }
 0x10e   : > { %6744 = vmatpush1.bf16.msra.mxu0 %v9563_v21  ;;  %7400 = vmatpush1.bf16.msra.mxu1 %v9566_v22  ;;  %v11374_v21 = vld.sshfl [vmem:[%s12313_s0 + $0x8] sm:$0xff pattern:$0x75316420]  ;;  %v9654_v22 = vld [vmem:[%s11069_s6 + $0x7c0] ss:$16 sps:$4 sm:$0xff]  }
 0x10f   : > { %6754 = vmatprep.subr.bf16.mxu0 %v9572_v23  ;;  %7410 = vmatprep.subr.bf16.mxu1 %v9575_v24  ;;  %v9657_v23 = vld [vmem:[%s11069_s6 + $0x7c8] ss:$16 sps:$4 sm:$0xff]   ;;  %v9662_v24 = vld [vmem:[%s11069_s6 + $0x7e4] ss:$16 sps:$4 sm:$0xff]  }
 0x111   : > { %6746 = vmatmul.mubr.bf16.vlgmr.msra.gmra.mrb[0].mxu0 %v11310_v13  ;;  %7402 = vmatmul.mubr.bf16.vlgmr.msra.gmra.mrb[0].mxu1 %v11310_v13 }
 0x112   : > { %6755 = vmatpush1.bf16.msra.mxu0 %v9570_v26  ;;  %7411 = vmatpush1.bf16.msra.mxu1 %v9573_v27  ;;  %v9665_v26 = vld [vmem:[%s11069_s6 + $0x7ec] ss:$16 sps:$4 sm:$0xff]   ;;  %v9660_v27 = vld [vmem:[%s11069_s6 + $0x7e0] ss:$16 sps:$4 sm:$0xff]  }
 0x113   : > { %6756 = vmatprep.subr.bf16.mxu0 %v9578_v28  ;;  %7412 = vmatprep.subr.bf16.mxu1 %v9581_v29  ;;  %v9663_v28 = vld [vmem:[%s11069_s6 + $0x7e8] ss:$16 sps:$4 sm:$0xff]   ;;  %v9668_v29 = vld [vmem:[%s11069_s6 + $0x804] ss:$16 sps:$4 sm:$0xff]  }
 0x114   : > { %6786 = vmatprep.mubr.bf16.mxu0 %v1331_v30  ;;  %7442 = vmatprep.mubr.bf16.mxu1 %v1331_v30  ;;  %v9671_v30 = vld [vmem:[%s11069_s6 + $0x80c] ss:$16 sps:$4 sm:$0xff]  }
 0x116   : > { %6757 = vmatpush1.bf16.msra.mxu0 %v9576_v15  ;;  %7413 = vmatpush1.bf16.msra.mxu1 %v9579_v31  ;;  %v1347_v15 = vcombine.high %v11374_v21, %v11374_v21  ;;  %v1329_v31 = vcombine.high %v11310_v13, %v11310_v13  ;;  %v9672_v13 = vld [vmem:[%s11069_s6 + $0x820] ss:$16 sps:$4 sm:$0xff]  }
 0x117   : > { %6758 = vmatprep.subr.bf16.mxu0 %v9584_v32  ;;  %7414 = vmatprep.subr.bf16.mxu1 %v9587_v33  ;;  %v9666_v32 = vld [vmem:[%s11069_s6 + $0x800] ss:$16 sps:$4 sm:$0xff]   ;;  %v9669_v33 = vld [vmem:[%s11069_s6 + $0x808] ss:$16 sps:$4 sm:$0xff]  }
 0x11a   : > { %6759 = vmatpush1.bf16.msra.mxu0 %v9582_v25  ;;  %7415 = vmatpush1.bf16.msra.mxu1 %v9585_v34  ;;  %v9674_v25 = vld [vmem:[%s11069_s6 + $0x824] ss:$16 sps:$4 sm:$0xff]   ;;  %v9677_v34 = vld [vmem:[%s11069_s6 + $0x82c] ss:$16 sps:$4 sm:$0xff]  }
 0x11b   : > { %6760 = vmatprep.subr.bf16.mxu0 %v9590_v35  ;;  %7416 = vmatprep.subr.bf16.mxu1 %v9593_v36  ;;  %v11393_v35 = vrot.slane %v1347_v15, %v11128_v49  ;;  %v9675_v36 = vld [vmem:[%s11069_s6 + $0x828] ss:$16 sps:$4 sm:$0xff]   ;;  %v9758_v15 = vld [vmem:[%s11069_s6 + $0x9e4] ss:$16 sps:$4 sm:$0xff]  }
 0x11e   : > { %6761 = vmatpush1.bf16.msra.mxu0 %v9588_v37  ;;  %7417 = vmatpush1.bf16.msra.mxu1 %v9591_v38  ;;  %v9680_v37 = vld [vmem:[%s11069_s6 + $0x844] ss:$16 sps:$4 sm:$0xff]   ;;  %v9683_v38 = vld [vmem:[%s11069_s6 + $0x84c] ss:$16 sps:$4 sm:$0xff]  }
 0x11f   : > { %6762 = vmatprep.subr.bf16.mxu0 %v9596_v39  ;;  %7418 = vmatprep.subr.bf16.mxu1 %v9599_v40  ;;  %v9678_v39 = vld [vmem:[%s11069_s6 + $0x840] ss:$16 sps:$4 sm:$0xff]   ;;  %v9681_v40 = vld [vmem:[%s11069_s6 + $0x848] ss:$16 sps:$4 sm:$0xff]  }
 0x122   : > { %6763 = vmatpush1.bf16.msra.mxu0 %v9594_v41  ;;  %7419 = vmatpush1.bf16.msra.mxu1 %v9597_v43  ;;  %v9686_v41 = vld [vmem:[%s11069_s6 + $0x864] ss:$16 sps:$4 sm:$0xff]   ;;  %v9689_v43 = vld [vmem:[%s11069_s6 + $0x86c] ss:$16 sps:$4 sm:$0xff]  }
 0x123   : > { %6764 = vmatprep.subr.bf16.mxu0 %v9602_v44  ;;  %7420 = vmatprep.subr.bf16.mxu1 %v9605_v45  ;;  %v9684_v44 = vld [vmem:[%s11069_s6 + $0x860] ss:$16 sps:$4 sm:$0xff]   ;;  %v9687_v45 = vld [vmem:[%s11069_s6 + $0x868] ss:$16 sps:$4 sm:$0xff]  }
 0x126   : > { %6765 = vmatpush1.bf16.msra.mxu0 %v9600_v46  ;;  %7421 = vmatpush1.bf16.msra.mxu1 %v9603_v47  ;;  %v9692_v46 = vld [vmem:[%s11069_s6 + $0x884] ss:$16 sps:$4 sm:$0xff]   ;;  %v9695_v47 = vld [vmem:[%s11069_s6 + $0x88c] ss:$16 sps:$4 sm:$0xff]  }
 0x127   : > { %6766 = vmatprep.subr.bf16.mxu0 %v9608_v48  ;;  %7422 = vmatprep.subr.bf16.mxu1 %v9611_v50  ;;  %v9690_v48 = vld [vmem:[%s11069_s6 + $0x880] ss:$16 sps:$4 sm:$0xff]   ;;  %v9693_v50 = vld [vmem:[%s11069_s6 + $0x888] ss:$16 sps:$4 sm:$0xff]  }
 0x12a   : > { %6767 = vmatpush1.bf16.msra.mxu0 %v9606_v51  ;;  %7423 = vmatpush1.bf16.msra.mxu1 %v9609_v53  ;;  %v9698_v51 = vld [vmem:[%s11069_s6 + $0x8a4] ss:$16 sps:$4 sm:$0xff]   ;;  %v9701_v53 = vld [vmem:[%s11069_s6 + $0x8ac] ss:$16 sps:$4 sm:$0xff]  }
 0x12b   : > { %6768 = vmatprep.subr.bf16.mxu0 %v9614_v54  ;;  %7424 = vmatprep.subr.bf16.mxu1 %v9617_v55  ;;  %v9696_v54 = vld [vmem:[%s11069_s6 + $0x8a0] ss:$16 sps:$4 sm:$0xff]   ;;  %v9699_v55 = vld [vmem:[%s11069_s6 + $0x8a8] ss:$16 sps:$4 sm:$0xff]  }
 0x12e   : > { %6769 = vmatpush1.bf16.msra.mxu0 %v9612_v56  ;;  %7425 = vmatpush1.bf16.msra.mxu1 %v9615_v57  ;;  %v9704_v56 = vld [vmem:[%s11069_s6 + $0x8c4] ss:$16 sps:$4 sm:$0xff]   ;;  %v9707_v57 = vld [vmem:[%s11069_s6 + $0x8cc] ss:$16 sps:$4 sm:$0xff]  }
 0x12f   : > { %6770 = vmatprep.subr.bf16.mxu0 %v9620_v58  ;;  %7426 = vmatprep.subr.bf16.mxu1 %v9623_v59  ;;  %v9702_v58 = vld [vmem:[%s11069_s6 + $0x8c0] ss:$16 sps:$4 sm:$0xff]   ;;  %v9705_v59 = vld [vmem:[%s11069_s6 + $0x8c8] ss:$16 sps:$4 sm:$0xff]  }
 0x132   : > { %6771 = vmatpush1.bf16.msra.mxu0 %v9618_v60  ;;  %7427 = vmatpush1.bf16.msra.mxu1 %v9621_v61  ;;  %v9710_v60 = vld [vmem:[%s11069_s6 + $0x8e4] ss:$16 sps:$4 sm:$0xff]   ;;  %v9713_v61 = vld [vmem:[%s11069_s6 + $0x8ec] ss:$16 sps:$4 sm:$0xff]  }
 0x133   : > { %6772 = vmatprep.subr.bf16.mxu0 %v9626_v62  ;;  %7428 = vmatprep.subr.bf16.mxu1 %v9629_v63  ;;  %v9708_v62 = vld [vmem:[%s11069_s6 + $0x8e0] ss:$16 sps:$4 sm:$0xff]   ;;  %v9711_v63 = vld [vmem:[%s11069_s6 + $0x8e8] ss:$16 sps:$4 sm:$0xff]  }
 0x136   : > { %6773 = vmatpush1.bf16.msra.mxu0 %v9624_v0  ;;  %7429 = vmatpush1.bf16.msra.mxu1 %v9627_v1  ;;  %v9716_v0 = vld [vmem:[%s11069_s6 + $0x904] ss:$16 sps:$4 sm:$0xff]   ;;  %v9719_v1 = vld [vmem:[%s11069_s6 + $0x90c] ss:$16 sps:$4 sm:$0xff]  }
 0x137   : > { %6774 = vmatprep.subr.bf16.mxu0 %v9632_v2  ;;  %7430 = vmatprep.subr.bf16.mxu1 %v9635_v3  ;;  %v9714_v2 = vld [vmem:[%s11069_s6 + $0x900] ss:$16 sps:$4 sm:$0xff]   ;;  %v9717_v3 = vld [vmem:[%s11069_s6 + $0x908] ss:$16 sps:$4 sm:$0xff]  }
 0x13a   : > { %6775 = vmatpush1.bf16.msra.mxu0 %v9630_v4  ;;  %7431 = vmatpush1.bf16.msra.mxu1 %v9633_v5  ;;  %v9722_v4 = vld [vmem:[%s11069_s6 + $0x924] ss:$16 sps:$4 sm:$0xff]   ;;  %v9725_v5 = vld [vmem:[%s11069_s6 + $0x92c] ss:$16 sps:$4 sm:$0xff]  }
 0x13b   : > { %6776 = vmatprep.subr.bf16.mxu0 %v9638_v6  ;;  %7432 = vmatprep.subr.bf16.mxu1 %v9641_v7  ;;  %v9720_v6 = vld [vmem:[%s11069_s6 + $0x920] ss:$16 sps:$4 sm:$0xff]   ;;  %v9723_v7 = vld [vmem:[%s11069_s6 + $0x928] ss:$16 sps:$4 sm:$0xff]  }
 0x13e   : > { %6777 = vmatpush1.bf16.msra.mxu0 %v9636_v8  ;;  %7433 = vmatpush1.bf16.msra.mxu1 %v9639_v9  ;;  %v9728_v8 = vld [vmem:[%s11069_s6 + $0x944] ss:$16 sps:$4 sm:$0xff]   ;;  %v9731_v9 = vld [vmem:[%s11069_s6 + $0x94c] ss:$16 sps:$4 sm:$0xff]  }
 0x13f   : > { %6778 = vmatprep.subr.bf16.mxu0 %v9644_v10  ;;  %7434 = vmatprep.subr.bf16.mxu1 %v9647_v11  ;;  %v9726_v10 = vld [vmem:[%s11069_s6 + $0x940] ss:$16 sps:$4 sm:$0xff]   ;;  %v9729_v11 = vld [vmem:[%s11069_s6 + $0x948] ss:$16 sps:$4 sm:$0xff]  }
 0x142   : > { %6779 = vmatpush1.bf16.msra.mxu0 %v9642_v12  ;;  %7435 = vmatpush1.bf16.msra.mxu1 %v9645_v14  ;;  %v9734_v12 = vld [vmem:[%s11069_s6 + $0x964] ss:$16 sps:$4 sm:$0xff]   ;;  %v9737_v14 = vld [vmem:[%s11069_s6 + $0x96c] ss:$16 sps:$4 sm:$0xff]  }
 0x143   : > { %6780 = vmatprep.subr.bf16.mxu0 %v9650_v16  ;;  %7436 = vmatprep.subr.bf16.mxu1 %v9653_v52  ;;  %v9732_v16 = vld [vmem:[%s11069_s6 + $0x960] ss:$16 sps:$4 sm:$0xff]   ;;  %v9735_v52 = vld [vmem:[%s11069_s6 + $0x968] ss:$16 sps:$4 sm:$0xff]  }
 0x146   : > { %6781 = vmatpush1.bf16.msra.mxu0 %v9648_v17  ;;  %7437 = vmatpush1.bf16.msra.mxu1 %v9651_v18  ;;  %v9740_v17 = vld [vmem:[%s11069_s6 + $0x984] ss:$16 sps:$4 sm:$0xff]   ;;  %v9743_v18 = vld [vmem:[%s11069_s6 + $0x98c] ss:$16 sps:$4 sm:$0xff]  }
 0x147   : > { %6782 = vmatprep.subr.bf16.mxu0 %v9656_v19  ;;  %7438 = vmatprep.subr.bf16.mxu1 %v9659_v20  ;;  %v9738_v19 = vld [vmem:[%s11069_s6 + $0x980] ss:$16 sps:$4 sm:$0xff]   ;;  %v9741_v20 = vld [vmem:[%s11069_s6 + $0x988] ss:$16 sps:$4 sm:$0xff]  }
 0x14a   : > { %6783 = vmatpush1.bf16.msra.mxu0 %v9654_v22  ;;  %7439 = vmatpush1.bf16.msra.mxu1 %v9657_v23  ;;  %v9746_v22 = vld [vmem:[%s11069_s6 + $0x9a4] ss:$16 sps:$4 sm:$0xff]   ;;  %v9749_v23 = vld [vmem:[%s11069_s6 + $0x9ac] ss:$16 sps:$4 sm:$0xff]  }
 0x14b   : > { %6784 = vmatprep.subr.bf16.mxu0 %v9662_v24  ;;  %7440 = vmatprep.subr.bf16.mxu1 %v9665_v26  ;;  %v9744_v24 = vld [vmem:[%s11069_s6 + $0x9a0] ss:$16 sps:$4 sm:$0xff]   ;;  %v9747_v26 = vld [vmem:[%s11069_s6 + $0x9a8] ss:$16 sps:$4 sm:$0xff]  }
 0x14e   : > { %6785 = vmatpush1.bf16.msra.mxu0 %v9660_v27  ;;  %7441 = vmatpush1.bf16.msra.mxu1 %v9663_v28  ;;  %v9752_v27 = vld [vmem:[%s11069_s6 + $0x9c4] ss:$16 sps:$4 sm:$0xff]   ;;  %v9755_v28 = vld [vmem:[%s11069_s6 + $0x9cc] ss:$16 sps:$4 sm:$0xff]  }
 0x14f   : > { %6795 = vmatprep.subr.bf16.mxu0 %v9668_v29  ;;  %7451 = vmatprep.subr.bf16.mxu1 %v9671_v30  ;;  %v9750_v29 = vld [vmem:[%s11069_s6 + $0x9c0] ss:$16 sps:$4 sm:$0xff]   ;;  %v9753_v30 = vld [vmem:[%s11069_s6 + $0x9c8] ss:$16 sps:$4 sm:$0xff]  }
 0x151   : > { %6787 = vmatmul.mubr.bf16.vlgmr.msra.gmra.mrb[0].mxu0 %v1329_v31  ;;  %7443 = vmatmul.mubr.bf16.vlgmr.msra.gmra.mrb[0].mxu1 %v1329_v31  ;;  %v9761_v31 = vld [vmem:[%s11069_s6 + $0x9ec] ss:$16 sps:$4 sm:$0xff]  }
 0x152   : > { %6796 = vmatpush1.bf16.msra.mxu0 %v9666_v32  ;;  %7452 = vmatpush1.bf16.msra.mxu1 %v9669_v33  ;;  %v9756_v32 = vld [vmem:[%s11069_s6 + $0x9e0] ss:$16 sps:$4 sm:$0xff]   ;;  %v9759_v33 = vld [vmem:[%s11069_s6 + $0x9e8] ss:$16 sps:$4 sm:$0xff]  }
 0x153   : > { %6797 = vmatprep.subr.bf16.mxu0 %v9674_v25  ;;  %7453 = vmatprep.subr.bf16.mxu1 %v9677_v34  ;;  %v9764_v25 = vld [vmem:[%s11069_s6 + $0xa04] ss:$16 sps:$4 sm:$0xff]   ;;  %v9767_v34 = vld [vmem:[%s11069_s6 + $0xa0c] ss:$16 sps:$4 sm:$0xff]  }
 0x154   : > { %6827 = vmatprep.mubr.bf16.mxu0 %v11393_v35  ;;  %7483 = vmatprep.mubr.bf16.mxu1 %v11393_v35 }
 0x156   : > { %6798 = vmatpush1.bf16.msra.mxu0 %v9672_v13  ;;  %7454 = vmatpush1.bf16.msra.mxu1 %v9675_v36  ;;  %v11459_v13 = vrot.slane %v11374_v21, %v11128_v49  ;;  %v9762_v36 = vld [vmem:[%s11069_s6 + $0xa00] ss:$16 sps:$4 sm:$0xff]  }
 0x157   : > { %6799 = vmatprep.subr.bf16.mxu0 %v9680_v37  ;;  %7455 = vmatprep.subr.bf16.mxu1 %v9683_v38  ;;  %v9765_v37 = vld [vmem:[%s11069_s6 + $0xa08] ss:$16 sps:$4 sm:$0xff]   ;;  %v9770_v38 = vld [vmem:[%s11069_s6 + $0xa24] ss:$16 sps:$4 sm:$0xff]   ;;  %v9768_v21 = vld [vmem:[%s11069_s6 + $0xa20] ss:$16 sps:$4 sm:$0xff]  }
 0x15a   : > { %6800 = vmatpush1.bf16.msra.mxu0 %v9678_v39  ;;  %7456 = vmatpush1.bf16.msra.mxu1 %v9681_v40  ;;  %v9773_v39 = vld [vmem:[%s11069_s6 + $0xa2c] ss:$16 sps:$4 sm:$0xff]   ;;  %v1379_v40 = vcombine.high %v11393_v35, %v11393_v35  ;;  %v9774_v35 = vld [vmem:[%s11069_s6 + $0xa40] ss:$16 sps:$4 sm:$0xff]  }
 0x15b   : > { %6801 = vmatprep.subr.bf16.mxu0 %v9686_v41  ;;  %7457 = vmatprep.subr.bf16.mxu1 %v9689_v43  ;;  %v9771_v41 = vld [vmem:[%s11069_s6 + $0xa28] ss:$16 sps:$4 sm:$0xff]   ;;  %v9776_v43 = vld [vmem:[%s11069_s6 + $0xa44] ss:$16 sps:$4 sm:$0xff]  }
 0x15e   : > { %6802 = vmatpush1.bf16.msra.mxu0 %v9684_v44  ;;  %7458 = vmatpush1.bf16.msra.mxu1 %v9687_v45  ;;  %v9779_v44 = vld [vmem:[%s11069_s6 + $0xa4c] ss:$16 sps:$4 sm:$0xff]   ;;  %v9777_v45 = vld [vmem:[%s11069_s6 + $0xa48] ss:$16 sps:$4 sm:$0xff]  }
 0x15f   : > { %6803 = vmatprep.subr.bf16.mxu0 %v9692_v46  ;;  %7459 = vmatprep.subr.bf16.mxu1 %v9695_v47  ;;  %v9782_v46 = vld [vmem:[%s11069_s6 + $0xa64] ss:$16 sps:$4 sm:$0xff]   ;;  %v9785_v47 = vld [vmem:[%s11069_s6 + $0xa6c] ss:$16 sps:$4 sm:$0xff]  }
 0x162   : > { %6804 = vmatpush1.bf16.msra.mxu0 %v9690_v48  ;;  %7460 = vmatpush1.bf16.msra.mxu1 %v9693_v50  ;;  %v9780_v48 = vld [vmem:[%s11069_s6 + $0xa60] ss:$16 sps:$4 sm:$0xff]   ;;  %v9783_v50 = vld [vmem:[%s11069_s6 + $0xa68] ss:$16 sps:$4 sm:$0xff]  }
 0x163   : > { %6805 = vmatprep.subr.bf16.mxu0 %v9698_v51  ;;  %7461 = vmatprep.subr.bf16.mxu1 %v9701_v53  ;;  %v9788_v51 = vld [vmem:[%s11069_s6 + $0xa84] ss:$16 sps:$4 sm:$0xff]   ;;  %v9791_v53 = vld [vmem:[%s11069_s6 + $0xa8c] ss:$16 sps:$4 sm:$0xff]  }
 0x166   : > { %6806 = vmatpush1.bf16.msra.mxu0 %v9696_v54  ;;  %7462 = vmatpush1.bf16.msra.mxu1 %v9699_v55  ;;  %v9786_v54 = vld [vmem:[%s11069_s6 + $0xa80] ss:$16 sps:$4 sm:$0xff]   ;;  %v9789_v55 = vld [vmem:[%s11069_s6 + $0xa88] ss:$16 sps:$4 sm:$0xff]  }
 0x167   : > { %6807 = vmatprep.subr.bf16.mxu0 %v9704_v56  ;;  %7463 = vmatprep.subr.bf16.mxu1 %v9707_v57  ;;  %v9794_v56 = vld [vmem:[%s11069_s6 + $0xaa4] ss:$16 sps:$4 sm:$0xff]   ;;  %v9797_v57 = vld [vmem:[%s11069_s6 + $0xaac] ss:$16 sps:$4 sm:$0xff]  }
 0x16a   : > { %6808 = vmatpush1.bf16.msra.mxu0 %v9702_v58  ;;  %7464 = vmatpush1.bf16.msra.mxu1 %v9705_v59  ;;  %v9792_v58 = vld [vmem:[%s11069_s6 + $0xaa0] ss:$16 sps:$4 sm:$0xff]   ;;  %v9795_v59 = vld [vmem:[%s11069_s6 + $0xaa8] ss:$16 sps:$4 sm:$0xff]  }
 0x16b   : > { %6809 = vmatprep.subr.bf16.mxu0 %v9710_v60  ;;  %7465 = vmatprep.subr.bf16.mxu1 %v9713_v61  ;;  %v9800_v60 = vld [vmem:[%s11069_s6 + $0xac4] ss:$16 sps:$4 sm:$0xff]   ;;  %v9803_v61 = vld [vmem:[%s11069_s6 + $0xacc] ss:$16 sps:$4 sm:$0xff]  }
 0x16e   : > { %6810 = vmatpush1.bf16.msra.mxu0 %v9708_v62  ;;  %7466 = vmatpush1.bf16.msra.mxu1 %v9711_v63  ;;  %v9798_v62 = vld [vmem:[%s11069_s6 + $0xac0] ss:$16 sps:$4 sm:$0xff]   ;;  %v9801_v63 = vld [vmem:[%s11069_s6 + $0xac8] ss:$16 sps:$4 sm:$0xff]  }
 0x16f   : > { %6811 = vmatprep.subr.bf16.mxu0 %v9716_v0  ;;  %7467 = vmatprep.subr.bf16.mxu1 %v9719_v1  ;;  %v9806_v0 = vld [vmem:[%s11069_s6 + $0xae4] ss:$16 sps:$4 sm:$0xff]   ;;  %v9809_v1 = vld [vmem:[%s11069_s6 + $0xaec] ss:$16 sps:$4 sm:$0xff]  }
 0x172   : > { %6812 = vmatpush1.bf16.msra.mxu0 %v9714_v2  ;;  %7468 = vmatpush1.bf16.msra.mxu1 %v9717_v3  ;;  %v9804_v2 = vld [vmem:[%s11069_s6 + $0xae0] ss:$16 sps:$4 sm:$0xff]   ;;  %v9807_v3 = vld [vmem:[%s11069_s6 + $0xae8] ss:$16 sps:$4 sm:$0xff]  }
 0x173   : > { %6813 = vmatprep.subr.bf16.mxu0 %v9722_v4  ;;  %7469 = vmatprep.subr.bf16.mxu1 %v9725_v5  ;;  %v9812_v4 = vld [vmem:[%s11069_s6 + $0xb04] ss:$16 sps:$4 sm:$0xff]   ;;  %v9815_v5 = vld [vmem:[%s11069_s6 + $0xb0c] ss:$16 sps:$4 sm:$0xff]  }
 0x176   : > { %6814 = vmatpush1.bf16.msra.mxu0 %v9720_v6  ;;  %7470 = vmatpush1.bf16.msra.mxu1 %v9723_v7  ;;  %v9810_v6 = vld [vmem:[%s11069_s6 + $0xb00] ss:$16 sps:$4 sm:$0xff]   ;;  %v9813_v7 = vld [vmem:[%s11069_s6 + $0xb08] ss:$16 sps:$4 sm:$0xff]  }
 0x177   : > { %6815 = vmatprep.subr.bf16.mxu0 %v9728_v8  ;;  %7471 = vmatprep.subr.bf16.mxu1 %v9731_v9  ;;  %v9818_v8 = vld [vmem:[%s11069_s6 + $0xb24] ss:$16 sps:$4 sm:$0xff]   ;;  %v9821_v9 = vld [vmem:[%s11069_s6 + $0xb2c] ss:$16 sps:$4 sm:$0xff]  }
 0x17a   : > { %6816 = vmatpush1.bf16.msra.mxu0 %v9726_v10  ;;  %7472 = vmatpush1.bf16.msra.mxu1 %v9729_v11  ;;  %v9816_v10 = vld [vmem:[%s11069_s6 + $0xb20] ss:$16 sps:$4 sm:$0xff]   ;;  %v9819_v11 = vld [vmem:[%s11069_s6 + $0xb28] ss:$16 sps:$4 sm:$0xff]  }
 0x17b   : > { %6817 = vmatprep.subr.bf16.mxu0 %v9734_v12  ;;  %7473 = vmatprep.subr.bf16.mxu1 %v9737_v14  ;;  %v9824_v12 = vld [vmem:[%s11069_s6 + $0xb44] ss:$16 sps:$4 sm:$0xff]   ;;  %v9827_v14 = vld [vmem:[%s11069_s6 + $0xb4c] ss:$16 sps:$4 sm:$0xff]  }
 0x17e   : > { %6818 = vmatpush1.bf16.msra.mxu0 %v9732_v16  ;;  %7474 = vmatpush1.bf16.msra.mxu1 %v9735_v52  ;;  %v9822_v16 = vld [vmem:[%s11069_s6 + $0xb40] ss:$16 sps:$4 sm:$0xff]   ;;  %v9825_v52 = vld [vmem:[%s11069_s6 + $0xb48] ss:$16 sps:$4 sm:$0xff]  }
 0x17f   : > { %6819 = vmatprep.subr.bf16.mxu0 %v9740_v17  ;;  %7475 = vmatprep.subr.bf16.mxu1 %v9743_v18  ;;  %v9830_v17 = vld [vmem:[%s11069_s6 + $0xb64] ss:$16 sps:$4 sm:$0xff]   ;;  %v9833_v18 = vld [vmem:[%s11069_s6 + $0xb6c] ss:$16 sps:$4 sm:$0xff]  }
 0x182   : > { %6820 = vmatpush1.bf16.msra.mxu0 %v9738_v19  ;;  %7476 = vmatpush1.bf16.msra.mxu1 %v9741_v20  ;;  %v9828_v19 = vld [vmem:[%s11069_s6 + $0xb60] ss:$16 sps:$4 sm:$0xff]   ;;  %v9831_v20 = vld [vmem:[%s11069_s6 + $0xb68] ss:$16 sps:$4 sm:$0xff]  }
 0x183   : > { %6821 = vmatprep.subr.bf16.mxu0 %v9746_v22  ;;  %7477 = vmatprep.subr.bf16.mxu1 %v9749_v23  ;;  %v9836_v22 = vld [vmem:[%s11069_s6 + $0xb84] ss:$16 sps:$4 sm:$0xff]   ;;  %v9839_v23 = vld [vmem:[%s11069_s6 + $0xb8c] ss:$16 sps:$4 sm:$0xff]  }
 0x186   : > { %6822 = vmatpush1.bf16.msra.mxu0 %v9744_v24  ;;  %7478 = vmatpush1.bf16.msra.mxu1 %v9747_v26  ;;  %v9834_v24 = vld [vmem:[%s11069_s6 + $0xb80] ss:$16 sps:$4 sm:$0xff]   ;;  %v9837_v26 = vld [vmem:[%s11069_s6 + $0xb88] ss:$16 sps:$4 sm:$0xff]  }
 0x187   : > { %6823 = vmatprep.subr.bf16.mxu0 %v9752_v27  ;;  %7479 = vmatprep.subr.bf16.mxu1 %v9755_v28  ;;  %v9842_v27 = vld [vmem:[%s11069_s6 + $0xba4] ss:$16 sps:$4 sm:$0xff]   ;;  %v9845_v28 = vld [vmem:[%s11069_s6 + $0xbac] ss:$16 sps:$4 sm:$0xff]  }
 0x18a   : > { %6824 = vmatpush1.bf16.msra.mxu0 %v9750_v29  ;;  %7480 = vmatpush1.bf16.msra.mxu1 %v9753_v30  ;;  %v9840_v29 = vld [vmem:[%s11069_s6 + $0xba0] ss:$16 sps:$4 sm:$0xff]   ;;  %v9843_v30 = vld [vmem:[%s11069_s6 + $0xba8] ss:$16 sps:$4 sm:$0xff]  }
 0x18b   : > { %6825 = vmatprep.subr.bf16.mxu0 %v9758_v15  ;;  %7481 = vmatprep.subr.bf16.mxu1 %v9761_v31  ;;  %v9848_v15 = vld [vmem:[%s11069_s6 + $0xbc4] ss:$16 sps:$4 sm:$0xff]   ;;  %v9851_v31 = vld [vmem:[%s11069_s6 + $0xbcc] ss:$16 sps:$4 sm:$0xff]  }
 0x18e   : > { %6826 = vmatpush1.bf16.msra.mxu0 %v9756_v32  ;;  %7482 = vmatpush1.bf16.msra.mxu1 %v9759_v33  ;;  %v10821_v32 = vld [vmem:[%s12313_s0 + $0x8] sm:$0xff] }
 0x18f   : > { %6836 = vmatprep.subr.bf16.mxu0 %v9764_v25  ;;  %7492 = vmatprep.subr.bf16.mxu1 %v9767_v34  ;;  %v1332_v33 = vcombine.high %v10821_v32, %v10821_v32  ;;  %v9846_v25 = vld [vmem:[%s11069_s6 + $0xbc0] ss:$16 sps:$4 sm:$0xff]   ;;  %v9849_v34 = vld [vmem:[%s11069_s6 + $0xbc8] ss:$16 sps:$4 sm:$0xff]  }
 0x190   : > { %v9930_v32 = vld [vmem:[%s11069_s6 + $0xd80] ss:$16 sps:$4 sm:$0xff]  }
 0x191   : > { %6828 = vmatmul.mubr.bf16.vlgmr.msra.gmra.mrb[0].mxu0 %v11459_v13  ;;  %7484 = vmatmul.mubr.bf16.vlgmr.msra.gmra.mrb[0].mxu1 %v11459_v13 }
 0x192   : > { %6837 = vmatpush1.bf16.msra.mxu0 %v9762_v36  ;;  %7493 = vmatpush1.bf16.msra.mxu1 %v9765_v37  ;;  %v9854_v36 = vld [vmem:[%s11069_s6 + $0xbe4] ss:$16 sps:$4 sm:$0xff]   ;;  %v9857_v37 = vld [vmem:[%s11069_s6 + $0xbec] ss:$16 sps:$4 sm:$0xff]  }
 0x193   : > { %6838 = vmatprep.subr.bf16.mxu0 %v9770_v38  ;;  %7494 = vmatprep.subr.bf16.mxu1 %v9773_v39  ;;  %v11529_v38 = vrot.slane %v1332_v33, %v11128_v49  ;;  %v9852_v39 = vld [vmem:[%s11069_s6 + $0xbe0] ss:$16 sps:$4 sm:$0xff]   ;;  %v9933_v33 = vld [vmem:[%s11069_s6 + $0xd88] ss:$16 sps:$4 sm:$0xff]  }
 0x194   : > { %6868 = vmatprep.mubr.bf16.mxu0 %v1379_v40  ;;  %7524 = vmatprep.mubr.bf16.mxu1 %v1379_v40  ;;  %v9855_v40 = vld [vmem:[%s11069_s6 + $0xbe8] ss:$16 sps:$4 sm:$0xff]  }
 0x196   : > { %6839 = vmatpush1.bf16.msra.mxu0 %v9768_v21  ;;  %7495 = vmatpush1.bf16.msra.mxu1 %v9771_v41  ;;  %v9860_v21 = vld [vmem:[%s11069_s6 + $0xc04] ss:$16 sps:$4 sm:$0xff]   ;;  %v9863_v41 = vld [vmem:[%s11069_s6 + $0xc0c] ss:$16 sps:$4 sm:$0xff]  }
 0x197   : > { %6840 = vmatprep.subr.bf16.mxu0 %v9776_v43  ;;  %7496 = vmatprep.subr.bf16.mxu1 %v9779_v44  ;;  %v1348_v43 = vcombine.high %v11529_v38, %v11529_v38  ;;  %v1377_v44 = vcombine.high %v11459_v13, %v11459_v13  ;;  %v9864_v13 = vld [vmem:[%s11069_s6 + $0xc20] ss:$16 sps:$4 sm:$0xff]  }
 0x19a   : > { %6841 = vmatpush1.bf16.msra.mxu0 %v9774_v35  ;;  %7497 = vmatpush1.bf16.msra.mxu1 %v9777_v45  ;;  %v9858_v35 = vld [vmem:[%s11069_s6 + $0xc00] ss:$16 sps:$4 sm:$0xff]   ;;  %v9861_v45 = vld [vmem:[%s11069_s6 + $0xc08] ss:$16 sps:$4 sm:$0xff]  }
 0x19b   : > { %6842 = vmatprep.subr.bf16.mxu0 %v9782_v46  ;;  %7498 = vmatprep.subr.bf16.mxu1 %v9785_v47  ;;  %v9866_v46 = vld [vmem:[%s11069_s6 + $0xc24] ss:$16 sps:$4 sm:$0xff]   ;;  %v9869_v47 = vld [vmem:[%s11069_s6 + $0xc2c] ss:$16 sps:$4 sm:$0xff]  }
 0x19e   : > { %6843 = vmatpush1.bf16.msra.mxu0 %v9780_v48  ;;  %7499 = vmatpush1.bf16.msra.mxu1 %v9783_v50  ;;  %v11544_v48 = vrot.slane %v1348_v43, %v11128_v49  ;;  %v9867_v50 = vld [vmem:[%s11069_s6 + $0xc28] ss:$16 sps:$4 sm:$0xff]   ;;  %v9950_v43 = vld [vmem:[%s11069_s6 + $0xde4] ss:$16 sps:$4 sm:$0xff]  }
 0x19f   : > { %6844 = vmatprep.subr.bf16.mxu0 %v9788_v51  ;;  %7500 = vmatprep.subr.bf16.mxu1 %v9791_v53  ;;  %v9872_v51 = vld [vmem:[%s11069_s6 + $0xc44] ss:$16 sps:$4 sm:$0xff]   ;;  %v9875_v53 = vld [vmem:[%s11069_s6 + $0xc4c] ss:$16 sps:$4 sm:$0xff]  }
 0x1a2   : > { %6845 = vmatpush1.bf16.msra.mxu0 %v9786_v54  ;;  %7501 = vmatpush1.bf16.msra.mxu1 %v9789_v55  ;;  %v9870_v54 = vld [vmem:[%s11069_s6 + $0xc40] ss:$16 sps:$4 sm:$0xff]   ;;  %v9873_v55 = vld [vmem:[%s11069_s6 + $0xc48] ss:$16 sps:$4 sm:$0xff]  }
 0x1a3   : > { %6846 = vmatprep.subr.bf16.mxu0 %v9794_v56  ;;  %7502 = vmatprep.subr.bf16.mxu1 %v9797_v57  ;;  %v9878_v56 = vld [vmem:[%s11069_s6 + $0xc64] ss:$16 sps:$4 sm:$0xff]   ;;  %v9881_v57 = vld [vmem:[%s11069_s6 + $0xc6c] ss:$16 sps:$4 sm:$0xff]  }
 0x1a6   : > { %6847 = vmatpush1.bf16.msra.mxu0 %v9792_v58  ;;  %7503 = vmatpush1.bf16.msra.mxu1 %v9795_v59  ;;  %v9876_v58 = vld [vmem:[%s11069_s6 + $0xc60] ss:$16 sps:$4 sm:$0xff]   ;;  %v9879_v59 = vld [vmem:[%s11069_s6 + $0xc68] ss:$16 sps:$4 sm:$0xff]  }
 0x1a7   : > { %6848 = vmatprep.subr.bf16.mxu0 %v9800_v60  ;;  %7504 = vmatprep.subr.bf16.mxu1 %v9803_v61  ;;  %v9884_v60 = vld [vmem:[%s11069_s6 + $0xc84] ss:$16 sps:$4 sm:$0xff]   ;;  %v9887_v61 = vld [vmem:[%s11069_s6 + $0xc8c] ss:$16 sps:$4 sm:$0xff]  }
 0x1aa   : > { %6849 = vmatpush1.bf16.msra.mxu0 %v9798_v62  ;;  %7505 = vmatpush1.bf16.msra.mxu1 %v9801_v63  ;;  %v9882_v62 = vld [vmem:[%s11069_s6 + $0xc80] ss:$16 sps:$4 sm:$0xff]   ;;  %v9885_v63 = vld [vmem:[%s11069_s6 + $0xc88] ss:$16 sps:$4 sm:$0xff]  }
 0x1ab   : > { %6850 = vmatprep.subr.bf16.mxu0 %v9806_v0  ;;  %7506 = vmatprep.subr.bf16.mxu1 %v9809_v1  ;;  %v9890_v0 = vld [vmem:[%s11069_s6 + $0xca4] ss:$16 sps:$4 sm:$0xff]   ;;  %v9893_v1 = vld [vmem:[%s11069_s6 + $0xcac] ss:$16 sps:$4 sm:$0xff]  }
 0x1ae   : > { %6851 = vmatpush1.bf16.msra.mxu0 %v9804_v2  ;;  %7507 = vmatpush1.bf16.msra.mxu1 %v9807_v3  ;;  %v9888_v2 = vld [vmem:[%s11069_s6 + $0xca0] ss:$16 sps:$4 sm:$0xff]   ;;  %v9891_v3 = vld [vmem:[%s11069_s6 + $0xca8] ss:$16 sps:$4 sm:$0xff]  }
 0x1af   : > { %6852 = vmatprep.subr.bf16.mxu0 %v9812_v4  ;;  %7508 = vmatprep.subr.bf16.mxu1 %v9815_v5  ;;  %v9896_v4 = vld [vmem:[%s11069_s6 + $0xcc4] ss:$16 sps:$4 sm:$0xff]   ;;  %v9899_v5 = vld [vmem:[%s11069_s6 + $0xccc] ss:$16 sps:$4 sm:$0xff]  }
 0x1b2   : > { %6853 = vmatpush1.bf16.msra.mxu0 %v9810_v6  ;;  %7509 = vmatpush1.bf16.msra.mxu1 %v9813_v7  ;;  %v9894_v6 = vld [vmem:[%s11069_s6 + $0xcc0] ss:$16 sps:$4 sm:$0xff]   ;;  %v9897_v7 = vld [vmem:[%s11069_s6 + $0xcc8] ss:$16 sps:$4 sm:$0xff]  }
 0x1b3   : > { %6854 = vmatprep.subr.bf16.mxu0 %v9818_v8  ;;  %7510 = vmatprep.subr.bf16.mxu1 %v9821_v9  ;;  %v9902_v8 = vld [vmem:[%s11069_s6 + $0xce4] ss:$16 sps:$4 sm:$0xff]   ;;  %v9905_v9 = vld [vmem:[%s11069_s6 + $0xcec] ss:$16 sps:$4 sm:$0xff]  }
 0x1b6   : > { %6855 = vmatpush1.bf16.msra.mxu0 %v9816_v10  ;;  %7511 = vmatpush1.bf16.msra.mxu1 %v9819_v11  ;;  %v9900_v10 = vld [vmem:[%s11069_s6 + $0xce0] ss:$16 sps:$4 sm:$0xff]   ;;  %v9903_v11 = vld [vmem:[%s11069_s6 + $0xce8] ss:$16 sps:$4 sm:$0xff]  }
 0x1b7   : > { %6856 = vmatprep.subr.bf16.mxu0 %v9824_v12  ;;  %7512 = vmatprep.subr.bf16.mxu1 %v9827_v14  ;;  %v9908_v12 = vld [vmem:[%s11069_s6 + $0xd04] ss:$16 sps:$4 sm:$0xff]   ;;  %v9911_v14 = vld [vmem:[%s11069_s6 + $0xd0c] ss:$16 sps:$4 sm:$0xff]  }
 0x1ba   : > { %6857 = vmatpush1.bf16.msra.mxu0 %v9822_v16  ;;  %7513 = vmatpush1.bf16.msra.mxu1 %v9825_v52  ;;  %v9906_v16 = vld [vmem:[%s11069_s6 + $0xd00] ss:$16 sps:$4 sm:$0xff]   ;;  %v9909_v52 = vld [vmem:[%s11069_s6 + $0xd08] ss:$16 sps:$4 sm:$0xff]  }
 0x1bb   : > { %6858 = vmatprep.subr.bf16.mxu0 %v9830_v17  ;;  %7514 = vmatprep.subr.bf16.mxu1 %v9833_v18  ;;  %v9914_v17 = vld [vmem:[%s11069_s6 + $0xd24] ss:$16 sps:$4 sm:$0xff]   ;;  %v9917_v18 = vld [vmem:[%s11069_s6 + $0xd2c] ss:$16 sps:$4 sm:$0xff]  }
 0x1be   : > { %6859 = vmatpush1.bf16.msra.mxu0 %v9828_v19  ;;  %7515 = vmatpush1.bf16.msra.mxu1 %v9831_v20  ;;  %v9912_v19 = vld [vmem:[%s11069_s6 + $0xd20] ss:$16 sps:$4 sm:$0xff]   ;;  %v9915_v20 = vld [vmem:[%s11069_s6 + $0xd28] ss:$16 sps:$4 sm:$0xff]  }
 0x1bf   : > { %6860 = vmatprep.subr.bf16.mxu0 %v9836_v22  ;;  %7516 = vmatprep.subr.bf16.mxu1 %v9839_v23  ;;  %v9920_v22 = vld [vmem:[%s11069_s6 + $0xd44] ss:$16 sps:$4 sm:$0xff]   ;;  %v9923_v23 = vld [vmem:[%s11069_s6 + $0xd4c] ss:$16 sps:$4 sm:$0xff]  }
 0x1c2   : > { %6861 = vmatpush1.bf16.msra.mxu0 %v9834_v24  ;;  %7517 = vmatpush1.bf16.msra.mxu1 %v9837_v26  ;;  %v9918_v24 = vld [vmem:[%s11069_s6 + $0xd40] ss:$16 sps:$4 sm:$0xff]   ;;  %v9921_v26 = vld [vmem:[%s11069_s6 + $0xd48] ss:$16 sps:$4 sm:$0xff]  }
 0x1c3   : > { %6862 = vmatprep.subr.bf16.mxu0 %v9842_v27  ;;  %7518 = vmatprep.subr.bf16.mxu1 %v9845_v28  ;;  %v9926_v27 = vld [vmem:[%s11069_s6 + $0xd64] ss:$16 sps:$4 sm:$0xff]   ;;  %v9929_v28 = vld [vmem:[%s11069_s6 + $0xd6c] ss:$16 sps:$4 sm:$0xff]  }
 0x1c6   : > { %6863 = vmatpush1.bf16.msra.mxu0 %v9840_v29  ;;  %7519 = vmatpush1.bf16.msra.mxu1 %v9843_v30  ;;  %v9924_v29 = vld [vmem:[%s11069_s6 + $0xd60] ss:$16 sps:$4 sm:$0xff]   ;;  %v9927_v30 = vld [vmem:[%s11069_s6 + $0xd68] ss:$16 sps:$4 sm:$0xff]  }
 0x1c7   : > { %6864 = vmatprep.subr.bf16.mxu0 %v9848_v15  ;;  %7520 = vmatprep.subr.bf16.mxu1 %v9851_v31  ;;  %v9932_v15 = vld [vmem:[%s11069_s6 + $0xd84] ss:$16 sps:$4 sm:$0xff]   ;;  %v9935_v31 = vld [vmem:[%s11069_s6 + $0xd8c] ss:$16 sps:$4 sm:$0xff]  }
 0x1ca   : > { %6865 = vmatpush1.bf16.msra.mxu0 %v9846_v25  ;;  %7521 = vmatpush1.bf16.msra.mxu1 %v9849_v34  ;;  %v9938_v25 = vld [vmem:[%s11069_s6 + $0xda4] ss:$16 sps:$4 sm:$0xff]   ;;  %v9941_v34 = vld [vmem:[%s11069_s6 + $0xdac] ss:$16 sps:$4 sm:$0xff]  }
 0x1cb   : > { %6866 = vmatprep.subr.bf16.mxu0 %v9854_v36  ;;  %7522 = vmatprep.subr.bf16.mxu1 %v9857_v37  ;;  %v9936_v36 = vld [vmem:[%s11069_s6 + $0xda0] ss:$16 sps:$4 sm:$0xff]   ;;  %v9939_v37 = vld [vmem:[%s11069_s6 + $0xda8] ss:$16 sps:$4 sm:$0xff]  }
 0x1ce   : > { %6867 = vmatpush1.bf16.msra.mxu0 %v9852_v39  ;;  %7523 = vmatpush1.bf16.msra.mxu1 %v9855_v40  ;;  %v9944_v39 = vld [vmem:[%s11069_s6 + $0xdc4] ss:$16 sps:$4 sm:$0xff]   ;;  %v9947_v40 = vld [vmem:[%s11069_s6 + $0xdcc] ss:$16 sps:$4 sm:$0xff]  }
 0x1cf   : > { %6877 = vmatprep.subr.bf16.mxu0 %v9860_v21  ;;  %7533 = vmatprep.subr.bf16.mxu1 %v9863_v41  ;;  %v9942_v21 = vld [vmem:[%s11069_s6 + $0xdc0] ss:$16 sps:$4 sm:$0xff]   ;;  %v9945_v41 = vld [vmem:[%s11069_s6 + $0xdc8] ss:$16 sps:$4 sm:$0xff]  }
 0x1d1   : > { %6869 = vmatmul.mubr.bf16.vlgmr.msra.gmra.mrb[0].mxu0 %v1377_v44  ;;  %7525 = vmatmul.mubr.bf16.vlgmr.msra.gmra.mrb[0].mxu1 %v1377_v44  ;;  %v9953_v44 = vld [vmem:[%s11069_s6 + $0xdec] ss:$16 sps:$4 sm:$0xff]  }
 0x1d2   : > { %6878 = vmatpush1.bf16.msra.mxu0 %v9858_v35  ;;  %7534 = vmatpush1.bf16.msra.mxu1 %v9861_v45  ;;  %v9948_v35 = vld [vmem:[%s11069_s6 + $0xde0] ss:$16 sps:$4 sm:$0xff]   ;;  %v9951_v45 = vld [vmem:[%s11069_s6 + $0xde8] ss:$16 sps:$4 sm:$0xff]  }
 0x1d3   : > { %6879 = vmatprep.subr.bf16.mxu0 %v9866_v46  ;;  %7535 = vmatprep.subr.bf16.mxu1 %v9869_v47  ;;  %v9957_v46 = vld [vmem:[%s11069_s6 + $0xe04] ss:$16 sps:$4 sm:$0xff]   ;;  %v9960_v47 = vld [vmem:[%s11069_s6 + $0xe0c] ss:$16 sps:$4 sm:$0xff]  }
 0x1d4   : > { %6909 = vmatprep.mubr.bf16.mxu0 %v11544_v48  ;;  %7565 = vmatprep.mubr.bf16.mxu1 %v11544_v48 }
 0x1d6   : > { %6880 = vmatpush1.bf16.msra.mxu0 %v9864_v13  ;;  %7536 = vmatpush1.bf16.msra.mxu1 %v9867_v50  ;;  %v11610_v13 = vrot.slane %v11529_v38, %v11128_v49  ;;  %v9955_v50 = vld [vmem:[%s11069_s6 + $0xe00] ss:$16 sps:$4 sm:$0xff]  }
 0x1d7   : > { %6881 = vmatprep.subr.bf16.mxu0 %v9872_v51  ;;  %7537 = vmatprep.subr.bf16.mxu1 %v9875_v53  ;;  %v9958_v51 = vld [vmem:[%s11069_s6 + $0xe08] ss:$16 sps:$4 sm:$0xff]   ;;  %v9963_v53 = vld [vmem:[%s11069_s6 + $0xe24] ss:$16 sps:$4 sm:$0xff]   ;;  %v9961_v38 = vld [vmem:[%s11069_s6 + $0xe20] ss:$16 sps:$4 sm:$0xff]  }
 0x1da   : > { %6882 = vmatpush1.bf16.msra.mxu0 %v9870_v54  ;;  %7538 = vmatpush1.bf16.msra.mxu1 %v9873_v55  ;;  %v9966_v54 = vld [vmem:[%s11069_s6 + $0xe2c] ss:$16 sps:$4 sm:$0xff]   ;;  %v1380_v55 = vcombine.high %v11544_v48, %v11544_v48  ;;  %v9967_v48 = vld [vmem:[%s11069_s6 + $0xe40] ss:$16 sps:$4 sm:$0xff]  }
 0x1db   : > { %6883 = vmatprep.subr.bf16.mxu0 %v9878_v56  ;;  %7539 = vmatprep.subr.bf16.mxu1 %v9881_v57  ;;  %v9964_v56 = vld [vmem:[%s11069_s6 + $0xe28] ss:$16 sps:$4 sm:$0xff]   ;;  %v9969_v57 = vld [vmem:[%s11069_s6 + $0xe44] ss:$16 sps:$4 sm:$0xff]  }
 0x1de   : > { %6884 = vmatpush1.bf16.msra.mxu0 %v9876_v58  ;;  %7540 = vmatpush1.bf16.msra.mxu1 %v9879_v59  ;;  %v9972_v58 = vld [vmem:[%s11069_s6 + $0xe4c] ss:$16 sps:$4 sm:$0xff]   ;;  %v9970_v59 = vld [vmem:[%s11069_s6 + $0xe48] ss:$16 sps:$4 sm:$0xff]  }
 0x1df   : > { %6885 = vmatprep.subr.bf16.mxu0 %v9884_v60  ;;  %7541 = vmatprep.subr.bf16.mxu1 %v9887_v61  ;;  %v9975_v60 = vld [vmem:[%s11069_s6 + $0xe64] ss:$16 sps:$4 sm:$0xff]   ;;  %v9978_v61 = vld [vmem:[%s11069_s6 + $0xe6c] ss:$16 sps:$4 sm:$0xff]  }
 0x1e2   : > { %6886 = vmatpush1.bf16.msra.mxu0 %v9882_v62  ;;  %7542 = vmatpush1.bf16.msra.mxu1 %v9885_v63  ;;  %v9973_v62 = vld [vmem:[%s11069_s6 + $0xe60] ss:$16 sps:$4 sm:$0xff]   ;;  %v9976_v63 = vld [vmem:[%s11069_s6 + $0xe68] ss:$16 sps:$4 sm:$0xff]  }
 0x1e3   : > { %6887 = vmatprep.subr.bf16.mxu0 %v9890_v0  ;;  %7543 = vmatprep.subr.bf16.mxu1 %v9893_v1  ;;  %v9981_v0 = vld [vmem:[%s11069_s6 + $0xe84] ss:$16 sps:$4 sm:$0xff]   ;;  %v9984_v1 = vld [vmem:[%s11069_s6 + $0xe8c] ss:$16 sps:$4 sm:$0xff]  }
 0x1e6   : > { %6888 = vmatpush1.bf16.msra.mxu0 %v9888_v2  ;;  %7544 = vmatpush1.bf16.msra.mxu1 %v9891_v3  ;;  %v9979_v2 = vld [vmem:[%s11069_s6 + $0xe80] ss:$16 sps:$4 sm:$0xff]   ;;  %v9982_v3 = vld [vmem:[%s11069_s6 + $0xe88] ss:$16 sps:$4 sm:$0xff]  }
 0x1e7   : > { %6889 = vmatprep.subr.bf16.mxu0 %v9896_v4  ;;  %7545 = vmatprep.subr.bf16.mxu1 %v9899_v5  ;;  %v9987_v4 = vld [vmem:[%s11069_s6 + $0xea4] ss:$16 sps:$4 sm:$0xff]   ;;  %v9990_v5 = vld [vmem:[%s11069_s6 + $0xeac] ss:$16 sps:$4 sm:$0xff]  }
 0x1ea   : > { %6890 = vmatpush1.bf16.msra.mxu0 %v9894_v6  ;;  %7546 = vmatpush1.bf16.msra.mxu1 %v9897_v7  ;;  %v9985_v6 = vld [vmem:[%s11069_s6 + $0xea0] ss:$16 sps:$4 sm:$0xff]   ;;  %v9988_v7 = vld [vmem:[%s11069_s6 + $0xea8] ss:$16 sps:$4 sm:$0xff]  }
 0x1eb   : > { %6891 = vmatprep.subr.bf16.mxu0 %v9902_v8  ;;  %7547 = vmatprep.subr.bf16.mxu1 %v9905_v9  ;;  %v9993_v8 = vld [vmem:[%s11069_s6 + $0xec4] ss:$16 sps:$4 sm:$0xff]   ;;  %v9996_v9 = vld [vmem:[%s11069_s6 + $0xecc] ss:$16 sps:$4 sm:$0xff]  }
 0x1ee   : > { %6892 = vmatpush1.bf16.msra.mxu0 %v9900_v10  ;;  %7548 = vmatpush1.bf16.msra.mxu1 %v9903_v11  ;;  %v9991_v10 = vld [vmem:[%s11069_s6 + $0xec0] ss:$16 sps:$4 sm:$0xff]   ;;  %v9994_v11 = vld [vmem:[%s11069_s6 + $0xec8] ss:$16 sps:$4 sm:$0xff]  }
 0x1ef   : > { %6893 = vmatprep.subr.bf16.mxu0 %v9908_v12  ;;  %7549 = vmatprep.subr.bf16.mxu1 %v9911_v14  ;;  %v9999_v12 = vld [vmem:[%s11069_s6 + $0xee4] ss:$16 sps:$4 sm:$0xff]   ;;  %v10002_v14 = vld [vmem:[%s11069_s6 + $0xeec] ss:$16 sps:$4 sm:$0xff]  }
 0x1f2   : > { %6894 = vmatpush1.bf16.msra.mxu0 %v9906_v16  ;;  %7550 = vmatpush1.bf16.msra.mxu1 %v9909_v52  ;;  %v9997_v16 = vld [vmem:[%s11069_s6 + $0xee0] ss:$16 sps:$4 sm:$0xff]   ;;  %v10000_v52 = vld [vmem:[%s11069_s6 + $0xee8] ss:$16 sps:$4 sm:$0xff]  }
 0x1f3   : > { %6895 = vmatprep.subr.bf16.mxu0 %v9914_v17  ;;  %7551 = vmatprep.subr.bf16.mxu1 %v9917_v18  ;;  %v10005_v17 = vld [vmem:[%s11069_s6 + $0xf04] ss:$16 sps:$4 sm:$0xff]   ;;  %v10008_v18 = vld [vmem:[%s11069_s6 + $0xf0c] ss:$16 sps:$4 sm:$0xff]  }
 0x1f6   : > { %6896 = vmatpush1.bf16.msra.mxu0 %v9912_v19  ;;  %7552 = vmatpush1.bf16.msra.mxu1 %v9915_v20  ;;  %v10003_v19 = vld [vmem:[%s11069_s6 + $0xf00] ss:$16 sps:$4 sm:$0xff]   ;;  %v10006_v20 = vld [vmem:[%s11069_s6 + $0xf08] ss:$16 sps:$4 sm:$0xff]  }
 0x1f7   : > { %6897 = vmatprep.subr.bf16.mxu0 %v9920_v22  ;;  %7553 = vmatprep.subr.bf16.mxu1 %v9923_v23  ;;  %v10011_v22 = vld [vmem:[%s11069_s6 + $0xf24] ss:$16 sps:$4 sm:$0xff]   ;;  %v10014_v23 = vld [vmem:[%s11069_s6 + $0xf2c] ss:$16 sps:$4 sm:$0xff]  }
 0x1fa   : > { %6898 = vmatpush1.bf16.msra.mxu0 %v9918_v24  ;;  %7554 = vmatpush1.bf16.msra.mxu1 %v9921_v26  ;;  %v10009_v24 = vld [vmem:[%s11069_s6 + $0xf20] ss:$16 sps:$4 sm:$0xff]   ;;  %v10012_v26 = vld [vmem:[%s11069_s6 + $0xf28] ss:$16 sps:$4 sm:$0xff]  }
 0x1fb   : > { %6899 = vmatprep.subr.bf16.mxu0 %v9926_v27  ;;  %7555 = vmatprep.subr.bf16.mxu1 %v9929_v28  ;;  %v10017_v27 = vld [vmem:[%s11069_s6 + $0xf44] ss:$16 sps:$4 sm:$0xff]   ;;  %v10020_v28 = vld [vmem:[%s11069_s6 + $0xf4c] ss:$16 sps:$4 sm:$0xff]  }
 0x1fe   : > { %6900 = vmatpush1.bf16.msra.mxu0 %v9924_v29  ;;  %7556 = vmatpush1.bf16.msra.mxu1 %v9927_v30  ;;  %v10015_v29 = vld [vmem:[%s11069_s6 + $0xf40] ss:$16 sps:$4 sm:$0xff]   ;;  %v10018_v30 = vld [vmem:[%s11069_s6 + $0xf48] ss:$16 sps:$4 sm:$0xff]  }
 0x1ff   : > { %6901 = vmatprep.subr.bf16.mxu0 %v9932_v15  ;;  %7557 = vmatprep.subr.bf16.mxu1 %v9935_v31  ;;  %v10023_v15 = vld [vmem:[%s11069_s6 + $0xf64] ss:$16 sps:$4 sm:$0xff]   ;;  %v10026_v31 = vld [vmem:[%s11069_s6 + $0xf6c] ss:$16 sps:$4 sm:$0xff]  }
 0x202   : > { %6902 = vmatpush1.bf16.msra.mxu0 %v9930_v32  ;;  %7558 = vmatpush1.bf16.msra.mxu1 %v9933_v33  ;;  %v10021_v32 = vld [vmem:[%s11069_s6 + $0xf60] ss:$16 sps:$4 sm:$0xff]   ;;  %v10024_v33 = vld [vmem:[%s11069_s6 + $0xf68] ss:$16 sps:$4 sm:$0xff]  }
 0x203   : > { %6903 = vmatprep.subr.bf16.mxu0 %v9938_v25  ;;  %7559 = vmatprep.subr.bf16.mxu1 %v9941_v34  ;;  %v10029_v25 = vld [vmem:[%s11069_s6 + $0xf84] ss:$16 sps:$4 sm:$0xff]   ;;  %v10032_v34 = vld [vmem:[%s11069_s6 + $0xf8c] ss:$16 sps:$4 sm:$0xff]  }
 0x206   : > { %6904 = vmatpush1.bf16.msra.mxu0 %v9936_v36  ;;  %7560 = vmatpush1.bf16.msra.mxu1 %v9939_v37  ;;  %v10027_v36 = vld [vmem:[%s11069_s6 + $0xf80] ss:$16 sps:$4 sm:$0xff]   ;;  %v10030_v37 = vld [vmem:[%s11069_s6 + $0xf88] ss:$16 sps:$4 sm:$0xff]  }
 0x207   : > { %6905 = vmatprep.subr.bf16.mxu0 %v9944_v39  ;;  %7561 = vmatprep.subr.bf16.mxu1 %v9947_v40  ;;  %v10035_v39 = vld [vmem:[%s11069_s6 + $0xfa4] ss:$16 sps:$4 sm:$0xff]   ;;  %v10038_v40 = vld [vmem:[%s11069_s6 + $0xfac] ss:$16 sps:$4 sm:$0xff]  }
 0x20a   : > { %6906 = vmatpush1.bf16.msra.mxu0 %v9942_v21  ;;  %7562 = vmatpush1.bf16.msra.mxu1 %v9945_v41  ;;  %v10033_v21 = vld [vmem:[%s11069_s6 + $0xfa0] ss:$16 sps:$4 sm:$0xff]   ;;  %v10036_v41 = vld [vmem:[%s11069_s6 + $0xfa8] ss:$16 sps:$4 sm:$0xff]  }
 0x20b   : > { %6907 = vmatprep.subr.bf16.mxu0 %v9950_v43  ;;  %7563 = vmatprep.subr.bf16.mxu1 %v9953_v44  ;;  %v10041_v43 = vld [vmem:[%s11069_s6 + $0xfc4] ss:$16 sps:$4 sm:$0xff]   ;;  %v10044_v44 = vld [vmem:[%s11069_s6 + $0xfcc] ss:$16 sps:$4 sm:$0xff]  }
 0x20e   : > { %6908 = vmatpush1.bf16.msra.mxu0 %v9948_v35  ;;  %7564 = vmatpush1.bf16.msra.mxu1 %v9951_v45  ;;  %v11675_v35 = vld [vmem:[%s12313_s0 + $0x10] sm:$0xff] }
 0x20f   : > { %6918 = vmatprep.subr.bf16.mxu0 %v9957_v46  ;;  %7574 = vmatprep.subr.bf16.mxu1 %v9960_v47  ;;  %v10039_v45 = vld [vmem:[%s11069_s6 + $0xfc0] ss:$16 sps:$4 sm:$0xff]   ;;  %v10042_v46 = vld [vmem:[%s11069_s6 + $0xfc8] ss:$16 sps:$4 sm:$0xff]   ;;  %v10047_v47 = vld [vmem:[%s11069_s6 + $0xfe4] ss:$16 sps:$4 sm:$0xff]  }
 0x211   : > { %6910 = vmatmul.mubr.bf16.vlgmr.msra.gmra.mrb[0].mxu0 %v11610_v13  ;;  %7566 = vmatmul.mubr.bf16.vlgmr.msra.gmra.mrb[0].mxu1 %v11610_v13 }
 0x212   : > { %6919 = vmatpush1.bf16.msra.mxu0 %v9955_v50  ;;  %7575 = vmatpush1.bf16.msra.mxu1 %v9958_v51  ;;  %v10050_v50 = vld [vmem:[%s11069_s6 + $0xfec] ss:$16 sps:$4 sm:$0xff]   ;;  %v11683_v51 = vrot.slane %v11675_v35, %v11128_v49 }
 0x213   : > { %6920 = vmatprep.subr.bf16.mxu0 %v9963_v53  ;;  %7576 = vmatprep.subr.bf16.mxu1 %v9966_v54  ;;  %v10045_v53 = vld [vmem:[%s11069_s6 + $0xfe0] ss:$16 sps:$4 sm:$0xff]   ;;  %v10048_v54 = vld [vmem:[%s11069_s6 + $0xfe8] ss:$16 sps:$4 sm:$0xff]  }
 0x214   : > { %6950 = vmatprep.mubr.bf16.mxu0 %v1380_v55  ;;  %7606 = vmatprep.mubr.bf16.mxu1 %v1380_v55  ;;  %v10053_v55 = vld [vmem:[%s11069_s6 + $0x1004] ss:$16 sps:$4 sm:$0xff]  }
 0x216   : > { %6921 = vmatpush1.bf16.msra.mxu0 %v9961_v38  ;;  %7577 = vmatpush1.bf16.msra.mxu1 %v9964_v56  ;;  %v10056_v38 = vld [vmem:[%s11069_s6 + $0x100c] ss:$16 sps:$4 sm:$0xff]   ;;  %v1396_v56 = vcombine.high %v11683_v51, %v11683_v51 }
 0x217   : > { %6922 = vmatprep.subr.bf16.mxu0 %v9969_v57  ;;  %7578 = vmatprep.subr.bf16.mxu1 %v9972_v58  ;;  %v1378_v57 = vcombine.high %v11610_v13, %v11610_v13  ;;  %v10051_v58 = vld [vmem:[%s11069_s6 + $0x1000] ss:$16 sps:$4 sm:$0xff]  }
 0x218   : > { %v10057_v13 = vld [vmem:[%s11069_s6 + $0x1020] ss:$16 sps:$4 sm:$0xff]  }
 0x21a   : > { %6923 = vmatpush1.bf16.msra.mxu0 %v9967_v48  ;;  %7579 = vmatpush1.bf16.msra.mxu1 %v9970_v59  ;;  %v10054_v48 = vld [vmem:[%s11069_s6 + $0x1008] ss:$16 sps:$4 sm:$0xff]   ;;  %v10059_v59 = vld [vmem:[%s11069_s6 + $0x1024] ss:$16 sps:$4 sm:$0xff]  }
 0x21b   : > { %6924 = vmatprep.subr.bf16.mxu0 %v9975_v60  ;;  %7580 = vmatprep.subr.bf16.mxu1 %v9978_v61  ;;  %v10062_v60 = vld [vmem:[%s11069_s6 + $0x102c] ss:$16 sps:$4 sm:$0xff]   ;;  %v11698_v61 = vrot.slane %v1396_v56, %v11128_v49  ;;  %v10138_v56 = vld [vmem:[%s11069_s6 + $0x11c8] ss:$16 sps:$4 sm:$0xff]  }
 0x21e   : > { %6925 = vmatpush1.bf16.msra.mxu0 %v9973_v62  ;;  %7581 = vmatpush1.bf16.msra.mxu1 %v9976_v63  ;;  %v10060_v62 = vld [vmem:[%s11069_s6 + $0x1028] ss:$16 sps:$4 sm:$0xff]   ;;  %v10065_v63 = vld [vmem:[%s11069_s6 + $0x1044] ss:$16 sps:$4 sm:$0xff]  }
 0x21f   : > { %6926 = vmatprep.subr.bf16.mxu0 %v9981_v0  ;;  %7582 = vmatprep.subr.bf16.mxu1 %v9984_v1  ;;  %v10068_v0 = vld [vmem:[%s11069_s6 + $0x104c] ss:$16 sps:$4 sm:$0xff]   ;;  %v10063_v1 = vld [vmem:[%s11069_s6 + $0x1040] ss:$16 sps:$4 sm:$0xff]  }
 0x222   : > { %6927 = vmatpush1.bf16.msra.mxu0 %v9979_v2  ;;  %7583 = vmatpush1.bf16.msra.mxu1 %v9982_v3  ;;  %v10066_v2 = vld [vmem:[%s11069_s6 + $0x1048] ss:$16 sps:$4 sm:$0xff]   ;;  %v10071_v3 = vld [vmem:[%s11069_s6 + $0x1064] ss:$16 sps:$4 sm:$0xff]  }
 0x223   : > { %6928 = vmatprep.subr.bf16.mxu0 %v9987_v4  ;;  %7584 = vmatprep.subr.bf16.mxu1 %v9990_v5  ;;  %v10074_v4 = vld [vmem:[%s11069_s6 + $0x106c] ss:$16 sps:$4 sm:$0xff]   ;;  %v10069_v5 = vld [vmem:[%s11069_s6 + $0x1060] ss:$16 sps:$4 sm:$0xff]  }
 0x226   : > { %6929 = vmatpush1.bf16.msra.mxu0 %v9985_v6  ;;  %7585 = vmatpush1.bf16.msra.mxu1 %v9988_v7  ;;  %v10072_v6 = vld [vmem:[%s11069_s6 + $0x1068] ss:$16 sps:$4 sm:$0xff]   ;;  %v10077_v7 = vld [vmem:[%s11069_s6 + $0x1084] ss:$16 sps:$4 sm:$0xff]  }
 0x227   : > { %6930 = vmatprep.subr.bf16.mxu0 %v9993_v8  ;;  %7586 = vmatprep.subr.bf16.mxu1 %v9996_v9  ;;  %v10080_v8 = vld [vmem:[%s11069_s6 + $0x108c] ss:$16 sps:$4 sm:$0xff]   ;;  %v10075_v9 = vld [vmem:[%s11069_s6 + $0x1080] ss:$16 sps:$4 sm:$0xff]  }
 0x22a   : > { %6931 = vmatpush1.bf16.msra.mxu0 %v9991_v10  ;;  %7587 = vmatpush1.bf16.msra.mxu1 %v9994_v11  ;;  %v10078_v10 = vld [vmem:[%s11069_s6 + $0x1088] ss:$16 sps:$4 sm:$0xff]   ;;  %v10083_v11 = vld [vmem:[%s11069_s6 + $0x10a4] ss:$16 sps:$4 sm:$0xff]  }
 0x22b   : > { %6932 = vmatprep.subr.bf16.mxu0 %v9999_v12  ;;  %7588 = vmatprep.subr.bf16.mxu1 %v10002_v14  ;;  %v10086_v12 = vld [vmem:[%s11069_s6 + $0x10ac] ss:$16 sps:$4 sm:$0xff]   ;;  %v10081_v14 = vld [vmem:[%s11069_s6 + $0x10a0] ss:$16 sps:$4 sm:$0xff]  }
 0x22e   : > { %6933 = vmatpush1.bf16.msra.mxu0 %v9997_v16  ;;  %7589 = vmatpush1.bf16.msra.mxu1 %v10000_v52  ;;  %v10084_v16 = vld [vmem:[%s11069_s6 + $0x10a8] ss:$16 sps:$4 sm:$0xff]   ;;  %v10089_v52 = vld [vmem:[%s11069_s6 + $0x10c4] ss:$16 sps:$4 sm:$0xff]  }
 0x22f   : > { %6934 = vmatprep.subr.bf16.mxu0 %v10005_v17  ;;  %7590 = vmatprep.subr.bf16.mxu1 %v10008_v18  ;;  %v10092_v17 = vld [vmem:[%s11069_s6 + $0x10cc] ss:$16 sps:$4 sm:$0xff]   ;;  %v10087_v18 = vld [vmem:[%s11069_s6 + $0x10c0] ss:$16 sps:$4 sm:$0xff]  }
 0x232   : > { %6935 = vmatpush1.bf16.msra.mxu0 %v10003_v19  ;;  %7591 = vmatpush1.bf16.msra.mxu1 %v10006_v20  ;;  %v10090_v19 = vld [vmem:[%s11069_s6 + $0x10c8] ss:$16 sps:$4 sm:$0xff]   ;;  %v10095_v20 = vld [vmem:[%s11069_s6 + $0x10e4] ss:$16 sps:$4 sm:$0xff]  }
 0x233   : > { %6936 = vmatprep.subr.bf16.mxu0 %v10011_v22  ;;  %7592 = vmatprep.subr.bf16.mxu1 %v10014_v23  ;;  %v10098_v22 = vld [vmem:[%s11069_s6 + $0x10ec] ss:$16 sps:$4 sm:$0xff]   ;;  %v10093_v23 = vld [vmem:[%s11069_s6 + $0x10e0] ss:$16 sps:$4 sm:$0xff]  }
 0x236   : > { %6937 = vmatpush1.bf16.msra.mxu0 %v10009_v24  ;;  %7593 = vmatpush1.bf16.msra.mxu1 %v10012_v26  ;;  %v10096_v24 = vld [vmem:[%s11069_s6 + $0x10e8] ss:$16 sps:$4 sm:$0xff]   ;;  %v10101_v26 = vld [vmem:[%s11069_s6 + $0x1104] ss:$16 sps:$4 sm:$0xff]  }
 0x237   : > { %6938 = vmatprep.subr.bf16.mxu0 %v10017_v27  ;;  %7594 = vmatprep.subr.bf16.mxu1 %v10020_v28  ;;  %v10104_v27 = vld [vmem:[%s11069_s6 + $0x110c] ss:$16 sps:$4 sm:$0xff]   ;;  %v10099_v28 = vld [vmem:[%s11069_s6 + $0x1100] ss:$16 sps:$4 sm:$0xff]  }
 0x23a   : > { %6939 = vmatpush1.bf16.msra.mxu0 %v10015_v29  ;;  %7595 = vmatpush1.bf16.msra.mxu1 %v10018_v30  ;;  %v10102_v29 = vld [vmem:[%s11069_s6 + $0x1108] ss:$16 sps:$4 sm:$0xff]   ;;  %v10107_v30 = vld [vmem:[%s11069_s6 + $0x1124] ss:$16 sps:$4 sm:$0xff]  }
 0x23b   : > { %6940 = vmatprep.subr.bf16.mxu0 %v10023_v15  ;;  %7596 = vmatprep.subr.bf16.mxu1 %v10026_v31  ;;  %v10110_v15 = vld [vmem:[%s11069_s6 + $0x112c] ss:$16 sps:$4 sm:$0xff]   ;;  %v10105_v31 = vld [vmem:[%s11069_s6 + $0x1120] ss:$16 sps:$4 sm:$0xff]  }
 0x23e   : > { %6941 = vmatpush1.bf16.msra.mxu0 %v10021_v32  ;;  %7597 = vmatpush1.bf16.msra.mxu1 %v10024_v33  ;;  %v10108_v32 = vld [vmem:[%s11069_s6 + $0x1128] ss:$16 sps:$4 sm:$0xff]   ;;  %v10113_v33 = vld [vmem:[%s11069_s6 + $0x1144] ss:$16 sps:$4 sm:$0xff]  }
 0x23f   : > { %6942 = vmatprep.subr.bf16.mxu0 %v10029_v25  ;;  %7598 = vmatprep.subr.bf16.mxu1 %v10032_v34  ;;  %v10116_v25 = vld [vmem:[%s11069_s6 + $0x114c] ss:$16 sps:$4 sm:$0xff]   ;;  %v10111_v34 = vld [vmem:[%s11069_s6 + $0x1140] ss:$16 sps:$4 sm:$0xff]  }
 0x242   : > { %6943 = vmatpush1.bf16.msra.mxu0 %v10027_v36  ;;  %7599 = vmatpush1.bf16.msra.mxu1 %v10030_v37  ;;  %v10114_v36 = vld [vmem:[%s11069_s6 + $0x1148] ss:$16 sps:$4 sm:$0xff]   ;;  %v10119_v37 = vld [vmem:[%s11069_s6 + $0x1164] ss:$16 sps:$4 sm:$0xff]  }
 0x243   : > { %6944 = vmatprep.subr.bf16.mxu0 %v10035_v39  ;;  %7600 = vmatprep.subr.bf16.mxu1 %v10038_v40  ;;  %v10122_v39 = vld [vmem:[%s11069_s6 + $0x116c] ss:$16 sps:$4 sm:$0xff]   ;;  %v10117_v40 = vld [vmem:[%s11069_s6 + $0x1160] ss:$16 sps:$4 sm:$0xff]  }
 0x246   : > { %6945 = vmatpush1.bf16.msra.mxu0 %v10033_v21  ;;  %7601 = vmatpush1.bf16.msra.mxu1 %v10036_v41  ;;  %v10120_v21 = vld [vmem:[%s11069_s6 + $0x1168] ss:$16 sps:$4 sm:$0xff]   ;;  %v10125_v41 = vld [vmem:[%s11069_s6 + $0x1184] ss:$16 sps:$4 sm:$0xff]  }
 0x247   : > { %6946 = vmatprep.subr.bf16.mxu0 %v10041_v43  ;;  %7602 = vmatprep.subr.bf16.mxu1 %v10044_v44  ;;  %v10128_v43 = vld [vmem:[%s11069_s6 + $0x118c] ss:$16 sps:$4 sm:$0xff]   ;;  %v10123_v44 = vld [vmem:[%s11069_s6 + $0x1180] ss:$16 sps:$4 sm:$0xff]  }
 0x24a   : > { %6947 = vmatpush1.bf16.msra.mxu0 %v10039_v45  ;;  %7603 = vmatpush1.bf16.msra.mxu1 %v10042_v46  ;;  %v10126_v45 = vld [vmem:[%s11069_s6 + $0x1188] ss:$16 sps:$4 sm:$0xff]   ;;  %v10131_v46 = vld [vmem:[%s11069_s6 + $0x11a4] ss:$16 sps:$4 sm:$0xff]  }
 0x24b   : > { %6948 = vmatprep.subr.bf16.mxu0 %v10047_v47  ;;  %7604 = vmatprep.subr.bf16.mxu1 %v10050_v50  ;;  %v10134_v47 = vld [vmem:[%s11069_s6 + $0x11ac] ss:$16 sps:$4 sm:$0xff]   ;;  %v10129_v50 = vld [vmem:[%s11069_s6 + $0x11a0] ss:$16 sps:$4 sm:$0xff]  }
 0x24e   : > { %6949 = vmatpush1.bf16.msra.mxu0 %v10045_v53  ;;  %7605 = vmatpush1.bf16.msra.mxu1 %v10048_v54  ;;  %v10132_v53 = vld [vmem:[%s11069_s6 + $0x11a8] ss:$16 sps:$4 sm:$0xff]   ;;  %v10137_v54 = vld [vmem:[%s11069_s6 + $0x11c4] ss:$16 sps:$4 sm:$0xff]  }
 0x24f   : > { %6959 = vmatprep.subr.bf16.mxu0 %v10053_v55  ;;  %7615 = vmatprep.subr.bf16.mxu1 %v10056_v38  ;;  %v10140_v55 = vld [vmem:[%s11069_s6 + $0x11cc] ss:$16 sps:$4 sm:$0xff]   ;;  %v10135_v38 = vld [vmem:[%s11069_s6 + $0x11c0] ss:$16 sps:$4 sm:$0xff]  }
 0x251   : > { %6951 = vmatmul.mubr.bf16.vlgmr.msra.gmra.mrb[0].mxu0 %v1378_v57  ;;  %7607 = vmatmul.mubr.bf16.vlgmr.msra.gmra.mrb[0].mxu1 %v1378_v57  ;;  %v10143_v57 = vld [vmem:[%s11069_s6 + $0x11e4] ss:$16 sps:$4 sm:$0xff]  }
 0x252   : > { %6960 = vmatpush1.bf16.msra.mxu0 %v10051_v58  ;;  %7616 = vmatpush1.bf16.msra.mxu1 %v10054_v48  ;;  %v10146_v58 = vld [vmem:[%s11069_s6 + $0x11ec] ss:$16 sps:$4 sm:$0xff]   ;;  %v10141_v48 = vld [vmem:[%s11069_s6 + $0x11e0] ss:$16 sps:$4 sm:$0xff]  }
 0x253   : > { %6961 = vmatprep.subr.bf16.mxu0 %v10059_v59  ;;  %7617 = vmatprep.subr.bf16.mxu1 %v10062_v60  ;;  %v10144_v59 = vld [vmem:[%s11069_s6 + $0x11e8] ss:$16 sps:$4 sm:$0xff]   ;;  %v10149_v60 = vld [vmem:[%s11069_s6 + $0x1204] ss:$16 sps:$4 sm:$0xff]  }
 0x254   : > { %6991 = vmatprep.mubr.bf16.mxu0 %v11698_v61  ;;  %7647 = vmatprep.mubr.bf16.mxu1 %v11698_v61 }
 0x256   : > { %6962 = vmatpush1.bf16.msra.mxu0 %v10057_v13  ;;  %7618 = vmatpush1.bf16.msra.mxu1 %v10060_v62  ;;  %v10152_v13 = vld [vmem:[%s11069_s6 + $0x120c] ss:$16 sps:$4 sm:$0xff]   ;;  %v11764_v62 = vrot.slane %v11683_v51, %v11128_v49  ;;  %v10153_v51 = vld [vmem:[%s11069_s6 + $0x1220] ss:$16 sps:$4 sm:$0xff]  }
 0x257   : > { %6963 = vmatprep.subr.bf16.mxu0 %v10065_v63  ;;  %7619 = vmatprep.subr.bf16.mxu1 %v10068_v0  ;;  %v10147_v63 = vld [vmem:[%s11069_s6 + $0x1200] ss:$16 sps:$4 sm:$0xff]   ;;  %v10150_v0 = vld [vmem:[%s11069_s6 + $0x1208] ss:$16 sps:$4 sm:$0xff]  }
 0x25a   : > { %6964 = vmatpush1.bf16.msra.mxu0 %v10063_v1  ;;  %7620 = vmatpush1.bf16.msra.mxu1 %v10066_v2  ;;  %v10155_v1 = vld [vmem:[%s11069_s6 + $0x1224] ss:$16 sps:$4 sm:$0xff]   ;;  %v10158_v2 = vld [vmem:[%s11069_s6 + $0x122c] ss:$16 sps:$4 sm:$0xff]  }
 0x25b   : > { %6965 = vmatprep.subr.bf16.mxu0 %v10071_v3  ;;  %7621 = vmatprep.subr.bf16.mxu1 %v10074_v4  ;;  %v1428_v3 = vcombine.high %v11698_v61, %v11698_v61  ;;  %v10156_v4 = vld [vmem:[%s11069_s6 + $0x1228] ss:$16 sps:$4 sm:$0xff]   ;;  %v10159_v61 = vld [vmem:[%s11069_s6 + $0x1240] ss:$16 sps:$4 sm:$0xff]  }
 0x25e   : > { %6966 = vmatpush1.bf16.msra.mxu0 %v10069_v5  ;;  %7622 = vmatpush1.bf16.msra.mxu1 %v10072_v6  ;;  %v10161_v5 = vld [vmem:[%s11069_s6 + $0x1244] ss:$16 sps:$4 sm:$0xff]   ;;  %v10164_v6 = vld [vmem:[%s11069_s6 + $0x124c] ss:$16 sps:$4 sm:$0xff]  }
 0x25f   : > { %6967 = vmatprep.subr.bf16.mxu0 %v10077_v7  ;;  %7623 = vmatprep.subr.bf16.mxu1 %v10080_v8  ;;  %v10162_v7 = vld [vmem:[%s11069_s6 + $0x1248] ss:$16 sps:$4 sm:$0xff]   ;;  %v10167_v8 = vld [vmem:[%s11069_s6 + $0x1264] ss:$16 sps:$4 sm:$0xff]  }
 0x262   : > { %6968 = vmatpush1.bf16.msra.mxu0 %v10075_v9  ;;  %7624 = vmatpush1.bf16.msra.mxu1 %v10078_v10  ;;  %v10170_v9 = vld [vmem:[%s11069_s6 + $0x126c] ss:$16 sps:$4 sm:$0xff]   ;;  %v10165_v10 = vld [vmem:[%s11069_s6 + $0x1260] ss:$16 sps:$4 sm:$0xff]  }
 0x263   : > { %6969 = vmatprep.subr.bf16.mxu0 %v10083_v11  ;;  %7625 = vmatprep.subr.bf16.mxu1 %v10086_v12  ;;  %v10168_v11 = vld [vmem:[%s11069_s6 + $0x1268] ss:$16 sps:$4 sm:$0xff]   ;;  %v10173_v12 = vld [vmem:[%s11069_s6 + $0x1284] ss:$16 sps:$4 sm:$0xff]  }
 0x266   : > { %6970 = vmatpush1.bf16.msra.mxu0 %v10081_v14  ;;  %7626 = vmatpush1.bf16.msra.mxu1 %v10084_v16  ;;  %v10176_v14 = vld [vmem:[%s11069_s6 + $0x128c] ss:$16 sps:$4 sm:$0xff]   ;;  %v10171_v16 = vld [vmem:[%s11069_s6 + $0x1280] ss:$16 sps:$4 sm:$0xff]  }
 0x267   : > { %6971 = vmatprep.subr.bf16.mxu0 %v10089_v52  ;;  %7627 = vmatprep.subr.bf16.mxu1 %v10092_v17  ;;  %v10174_v52 = vld [vmem:[%s11069_s6 + $0x1288] ss:$16 sps:$4 sm:$0xff]   ;;  %v10179_v17 = vld [vmem:[%s11069_s6 + $0x12a4] ss:$16 sps:$4 sm:$0xff]  }
 0x26a   : > { %6972 = vmatpush1.bf16.msra.mxu0 %v10087_v18  ;;  %7628 = vmatpush1.bf16.msra.mxu1 %v10090_v19  ;;  %v10182_v18 = vld [vmem:[%s11069_s6 + $0x12ac] ss:$16 sps:$4 sm:$0xff]   ;;  %v10177_v19 = vld [vmem:[%s11069_s6 + $0x12a0] ss:$16 sps:$4 sm:$0xff]  }
 0x26b   : > { %6973 = vmatprep.subr.bf16.mxu0 %v10095_v20  ;;  %7629 = vmatprep.subr.bf16.mxu1 %v10098_v22  ;;  %v10180_v20 = vld [vmem:[%s11069_s6 + $0x12a8] ss:$16 sps:$4 sm:$0xff]   ;;  %v10185_v22 = vld [vmem:[%s11069_s6 + $0x12c4] ss:$16 sps:$4 sm:$0xff]  }
 0x26e   : > { %6974 = vmatpush1.bf16.msra.mxu0 %v10093_v23  ;;  %7630 = vmatpush1.bf16.msra.mxu1 %v10096_v24  ;;  %v10188_v23 = vld [vmem:[%s11069_s6 + $0x12cc] ss:$16 sps:$4 sm:$0xff]   ;;  %v10183_v24 = vld [vmem:[%s11069_s6 + $0x12c0] ss:$16 sps:$4 sm:$0xff]  }
 0x26f   : > { %6975 = vmatprep.subr.bf16.mxu0 %v10101_v26  ;;  %7631 = vmatprep.subr.bf16.mxu1 %v10104_v27  ;;  %v10186_v26 = vld [vmem:[%s11069_s6 + $0x12c8] ss:$16 sps:$4 sm:$0xff]   ;;  %v10191_v27 = vld [vmem:[%s11069_s6 + $0x12e4] ss:$16 sps:$4 sm:$0xff]  }
 0x272   : > { %6976 = vmatpush1.bf16.msra.mxu0 %v10099_v28  ;;  %7632 = vmatpush1.bf16.msra.mxu1 %v10102_v29  ;;  %v10194_v28 = vld [vmem:[%s11069_s6 + $0x12ec] ss:$16 sps:$4 sm:$0xff]   ;;  %v10189_v29 = vld [vmem:[%s11069_s6 + $0x12e0] ss:$16 sps:$4 sm:$0xff]  }
 0x273   : > { %6977 = vmatprep.subr.bf16.mxu0 %v10107_v30  ;;  %7633 = vmatprep.subr.bf16.mxu1 %v10110_v15  ;;  %v10192_v30 = vld [vmem:[%s11069_s6 + $0x12e8] ss:$16 sps:$4 sm:$0xff]   ;;  %v10197_v15 = vld [vmem:[%s11069_s6 + $0x1304] ss:$16 sps:$4 sm:$0xff]  }
 0x276   : > { %6978 = vmatpush1.bf16.msra.mxu0 %v10105_v31  ;;  %7634 = vmatpush1.bf16.msra.mxu1 %v10108_v32  ;;  %v10200_v31 = vld [vmem:[%s11069_s6 + $0x130c] ss:$16 sps:$4 sm:$0xff]   ;;  %v10195_v32 = vld [vmem:[%s11069_s6 + $0x1300] ss:$16 sps:$4 sm:$0xff]  }
 0x277   : > { %6979 = vmatprep.subr.bf16.mxu0 %v10113_v33  ;;  %7635 = vmatprep.subr.bf16.mxu1 %v10116_v25  ;;  %v10198_v33 = vld [vmem:[%s11069_s6 + $0x1308] ss:$16 sps:$4 sm:$0xff]   ;;  %v10203_v25 = vld [vmem:[%s11069_s6 + $0x1324] ss:$16 sps:$4 sm:$0xff]  }
 0x27a   : > { %6980 = vmatpush1.bf16.msra.mxu0 %v10111_v34  ;;  %7636 = vmatpush1.bf16.msra.mxu1 %v10114_v36  ;;  %v10206_v34 = vld [vmem:[%s11069_s6 + $0x132c] ss:$16 sps:$4 sm:$0xff]   ;;  %v10201_v36 = vld [vmem:[%s11069_s6 + $0x1320] ss:$16 sps:$4 sm:$0xff]  }
 0x27b   : > { %6981 = vmatprep.subr.bf16.mxu0 %v10119_v37  ;;  %7637 = vmatprep.subr.bf16.mxu1 %v10122_v39  ;;  %v10204_v37 = vld [vmem:[%s11069_s6 + $0x1328] ss:$16 sps:$4 sm:$0xff]   ;;  %v10209_v39 = vld [vmem:[%s11069_s6 + $0x1344] ss:$16 sps:$4 sm:$0xff]  }
 0x27e   : > { %6982 = vmatpush1.bf16.msra.mxu0 %v10117_v40  ;;  %7638 = vmatpush1.bf16.msra.mxu1 %v10120_v21  ;;  %v10212_v40 = vld [vmem:[%s11069_s6 + $0x134c] ss:$16 sps:$4 sm:$0xff]   ;;  %v10207_v21 = vld [vmem:[%s11069_s6 + $0x1340] ss:$16 sps:$4 sm:$0xff]  }
 0x27f   : > { %6983 = vmatprep.subr.bf16.mxu0 %v10125_v41  ;;  %7639 = vmatprep.subr.bf16.mxu1 %v10128_v43  ;;  %v10210_v41 = vld [vmem:[%s11069_s6 + $0x1348] ss:$16 sps:$4 sm:$0xff]   ;;  %v10215_v43 = vld [vmem:[%s11069_s6 + $0x1364] ss:$16 sps:$4 sm:$0xff]  }
 0x282   : > { %6984 = vmatpush1.bf16.msra.mxu0 %v10123_v44  ;;  %7640 = vmatpush1.bf16.msra.mxu1 %v10126_v45  ;;  %v10218_v44 = vld [vmem:[%s11069_s6 + $0x136c] ss:$16 sps:$4 sm:$0xff]   ;;  %v10213_v45 = vld [vmem:[%s11069_s6 + $0x1360] ss:$16 sps:$4 sm:$0xff]  }
 0x283   : > { %6985 = vmatprep.subr.bf16.mxu0 %v10131_v46  ;;  %7641 = vmatprep.subr.bf16.mxu1 %v10134_v47  ;;  %v10216_v46 = vld [vmem:[%s11069_s6 + $0x1368] ss:$16 sps:$4 sm:$0xff]   ;;  %v10221_v47 = vld [vmem:[%s11069_s6 + $0x1384] ss:$16 sps:$4 sm:$0xff]  }
 0x286   : > { %6986 = vmatpush1.bf16.msra.mxu0 %v10129_v50  ;;  %7642 = vmatpush1.bf16.msra.mxu1 %v10132_v53  ;;  %v10224_v50 = vld [vmem:[%s11069_s6 + $0x138c] ss:$16 sps:$4 sm:$0xff]   ;;  %v10219_v53 = vld [vmem:[%s11069_s6 + $0x1380] ss:$16 sps:$4 sm:$0xff]  }
 0x287   : > { %6987 = vmatprep.subr.bf16.mxu0 %v10137_v54  ;;  %7643 = vmatprep.subr.bf16.mxu1 %v10140_v55  ;;  %v10222_v54 = vld [vmem:[%s11069_s6 + $0x1388] ss:$16 sps:$4 sm:$0xff]   ;;  %v10227_v55 = vld [vmem:[%s11069_s6 + $0x13a4] ss:$16 sps:$4 sm:$0xff]  }
 0x28a   : > { %6988 = vmatpush1.bf16.msra.mxu0 %v10135_v38  ;;  %7644 = vmatpush1.bf16.msra.mxu1 %v10138_v56  ;;  %v10230_v38 = vld [vmem:[%s11069_s6 + $0x13ac] ss:$16 sps:$4 sm:$0xff]   ;;  %v10225_v56 = vld [vmem:[%s11069_s6 + $0x13a0] ss:$16 sps:$4 sm:$0xff]  }
 0x28b   : > { %6989 = vmatprep.subr.bf16.mxu0 %v10143_v57  ;;  %7645 = vmatprep.subr.bf16.mxu1 %v10146_v58  ;;  %v10228_v57 = vld [vmem:[%s11069_s6 + $0x13a8] ss:$16 sps:$4 sm:$0xff]   ;;  %v10233_v58 = vld [vmem:[%s11069_s6 + $0x13c4] ss:$16 sps:$4 sm:$0xff]  }
 0x28e   : > { %6990 = vmatpush1.bf16.msra.mxu0 %v10141_v48  ;;  %7646 = vmatpush1.bf16.msra.mxu1 %v10144_v59  ;;  %v10236_v48 = vld [vmem:[%s11069_s6 + $0x13cc] ss:$16 sps:$4 sm:$0xff]   ;;  %v1381_v59 = vcombine.high %v11675_v35, %v11675_v35  ;;  %v10237_v35 = vld [vmem:[%s11069_s6 + $0x13e0] ss:$16 sps:$4 sm:$0xff]  }
 0x28f   : > { %7000 = vmatprep.subr.bf16.mxu0 %v10149_v60  ;;  %7656 = vmatprep.subr.bf16.mxu1 %v10152_v13  ;;  %v10231_v60 = vld [vmem:[%s11069_s6 + $0x13c0] ss:$16 sps:$4 sm:$0xff]   ;;  %v10234_v13 = vld [vmem:[%s11069_s6 + $0x13c8] ss:$16 sps:$4 sm:$0xff]  }
 0x291   : > { %6992 = vmatmul.mubr.bf16.vlgmr.msra.gmra.mrb[0].mxu0 %v11764_v62  ;;  %7648 = vmatmul.mubr.bf16.vlgmr.msra.gmra.mrb[0].mxu1 %v11764_v62 }
 0x292   : > { %7001 = vmatpush1.bf16.msra.mxu0 %v10147_v63  ;;  %7657 = vmatpush1.bf16.msra.mxu1 %v10150_v0  ;;  %v10239_v63 = vld [vmem:[%s11069_s6 + $0x13e4] ss:$16 sps:$4 sm:$0xff]   ;;  %v10242_v0 = vld [vmem:[%s11069_s6 + $0x13ec] ss:$16 sps:$4 sm:$0xff]  }
 0x293   : > { %7002 = vmatprep.subr.bf16.mxu0 %v10155_v1  ;;  %7658 = vmatprep.subr.bf16.mxu1 %v10158_v2  ;;  %v11833_v1 = vrot.slane %v1381_v59, %v11128_v49  ;;  %v10240_v2 = vld [vmem:[%s11069_s6 + $0x13e8] ss:$16 sps:$4 sm:$0xff]  }
 0x294   : > { %7032 = vmatprep.mubr.bf16.mxu0 %v1428_v3  ;;  %7688 = vmatprep.mubr.bf16.mxu1 %v1428_v3  ;;  %v10245_v3 = vld [vmem:[%s11069_s6 + $0x1404] ss:$16 sps:$4 sm:$0xff]   ;;  %v10318_v59 = vld [vmem:[%s11069_s6 + $0x1588] ss:$16 sps:$4 sm:$0xff]  }
 0x296   : > { %7003 = vmatpush1.bf16.msra.mxu0 %v10153_v51  ;;  %7659 = vmatpush1.bf16.msra.mxu1 %v10156_v4  ;;  %v10248_v51 = vld [vmem:[%s11069_s6 + $0x140c] ss:$16 sps:$4 sm:$0xff]   ;;  %v1397_v4 = vcombine.high %v11833_v1, %v11833_v1 }
 0x297   : > { %7004 = vmatprep.subr.bf16.mxu0 %v10161_v5  ;;  %7660 = vmatprep.subr.bf16.mxu1 %v10164_v6  ;;  %v1426_v5 = vcombine.high %v11764_v62, %v11764_v62  ;;  %v10243_v6 = vld [vmem:[%s11069_s6 + $0x1400] ss:$16 sps:$4 sm:$0xff]  }
 0x298   : > { %v10249_v62 = vld [vmem:[%s11069_s6 + $0x1420] ss:$16 sps:$4 sm:$0xff]  }
 0x29a   : > { %7005 = vmatpush1.bf16.msra.mxu0 %v10159_v61  ;;  %7661 = vmatpush1.bf16.msra.mxu1 %v10162_v7  ;;  %v10246_v61 = vld [vmem:[%s11069_s6 + $0x1408] ss:$16 sps:$4 sm:$0xff]   ;;  %v10251_v7 = vld [vmem:[%s11069_s6 + $0x1424] ss:$16 sps:$4 sm:$0xff]  }
 0x29b   : > { %7006 = vmatprep.subr.bf16.mxu0 %v10167_v8  ;;  %7662 = vmatprep.subr.bf16.mxu1 %v10170_v9  ;;  %v10254_v8 = vld [vmem:[%s11069_s6 + $0x142c] ss:$16 sps:$4 sm:$0xff]   ;;  %v11848_v9 = vrot.slane %v1397_v4, %v11128_v49  ;;  %v10335_v4 = vld [vmem:[%s11069_s6 + $0x15e4] ss:$16 sps:$4 sm:$0xff]  }
 0x29e   : > { %7007 = vmatpush1.bf16.msra.mxu0 %v10165_v10  ;;  %7663 = vmatpush1.bf16.msra.mxu1 %v10168_v11  ;;  %v10252_v10 = vld [vmem:[%s11069_s6 + $0x1428] ss:$16 sps:$4 sm:$0xff]   ;;  %v10257_v11 = vld [vmem:[%s11069_s6 + $0x1444] ss:$16 sps:$4 sm:$0xff]  }
 0x29f   : > { %7008 = vmatprep.subr.bf16.mxu0 %v10173_v12  ;;  %7664 = vmatprep.subr.bf16.mxu1 %v10176_v14  ;;  %v10260_v12 = vld [vmem:[%s11069_s6 + $0x144c] ss:$16 sps:$4 sm:$0xff]   ;;  %v10255_v14 = vld [vmem:[%s11069_s6 + $0x1440] ss:$16 sps:$4 sm:$0xff]  }
 0x2a2   : > { %7009 = vmatpush1.bf16.msra.mxu0 %v10171_v16  ;;  %7665 = vmatpush1.bf16.msra.mxu1 %v10174_v52  ;;  %v10258_v16 = vld [vmem:[%s11069_s6 + $0x1448] ss:$16 sps:$4 sm:$0xff]   ;;  %v10263_v52 = vld [vmem:[%s11069_s6 + $0x1464] ss:$16 sps:$4 sm:$0xff]  }
 0x2a3   : > { %7010 = vmatprep.subr.bf16.mxu0 %v10179_v17  ;;  %7666 = vmatprep.subr.bf16.mxu1 %v10182_v18  ;;  %v10266_v17 = vld [vmem:[%s11069_s6 + $0x146c] ss:$16 sps:$4 sm:$0xff]   ;;  %v10261_v18 = vld [vmem:[%s11069_s6 + $0x1460] ss:$16 sps:$4 sm:$0xff]  }
 0x2a6   : > { %7011 = vmatpush1.bf16.msra.mxu0 %v10177_v19  ;;  %7667 = vmatpush1.bf16.msra.mxu1 %v10180_v20  ;;  %v10264_v19 = vld [vmem:[%s11069_s6 + $0x1468] ss:$16 sps:$4 sm:$0xff]   ;;  %v10269_v20 = vld [vmem:[%s11069_s6 + $0x1484] ss:$16 sps:$4 sm:$0xff]  }
 0x2a7   : > { %7012 = vmatprep.subr.bf16.mxu0 %v10185_v22  ;;  %7668 = vmatprep.subr.bf16.mxu1 %v10188_v23  ;;  %v10272_v22 = vld [vmem:[%s11069_s6 + $0x148c] ss:$16 sps:$4 sm:$0xff]   ;;  %v10267_v23 = vld [vmem:[%s11069_s6 + $0x1480] ss:$16 sps:$4 sm:$0xff]  }
 0x2aa   : > { %7013 = vmatpush1.bf16.msra.mxu0 %v10183_v24  ;;  %7669 = vmatpush1.bf16.msra.mxu1 %v10186_v26  ;;  %v10270_v24 = vld [vmem:[%s11069_s6 + $0x1488] ss:$16 sps:$4 sm:$0xff]   ;;  %v10275_v26 = vld [vmem:[%s11069_s6 + $0x14a4] ss:$16 sps:$4 sm:$0xff]  }
 0x2ab   : > { %7014 = vmatprep.subr.bf16.mxu0 %v10191_v27  ;;  %7670 = vmatprep.subr.bf16.mxu1 %v10194_v28  ;;  %v10278_v27 = vld [vmem:[%s11069_s6 + $0x14ac] ss:$16 sps:$4 sm:$0xff]   ;;  %v10273_v28 = vld [vmem:[%s11069_s6 + $0x14a0] ss:$16 sps:$4 sm:$0xff]  }
 0x2ae   : > { %7015 = vmatpush1.bf16.msra.mxu0 %v10189_v29  ;;  %7671 = vmatpush1.bf16.msra.mxu1 %v10192_v30  ;;  %v10276_v29 = vld [vmem:[%s11069_s6 + $0x14a8] ss:$16 sps:$4 sm:$0xff]   ;;  %v10281_v30 = vld [vmem:[%s11069_s6 + $0x14c4] ss:$16 sps:$4 sm:$0xff]  }
 0x2af   : > { %7016 = vmatprep.subr.bf16.mxu0 %v10197_v15  ;;  %7672 = vmatprep.subr.bf16.mxu1 %v10200_v31  ;;  %v10284_v15 = vld [vmem:[%s11069_s6 + $0x14cc] ss:$16 sps:$4 sm:$0xff]   ;;  %v10279_v31 = vld [vmem:[%s11069_s6 + $0x14c0] ss:$16 sps:$4 sm:$0xff]  }
 0x2b2   : > { %7017 = vmatpush1.bf16.msra.mxu0 %v10195_v32  ;;  %7673 = vmatpush1.bf16.msra.mxu1 %v10198_v33  ;;  %v10282_v32 = vld [vmem:[%s11069_s6 + $0x14c8] ss:$16 sps:$4 sm:$0xff]   ;;  %v10287_v33 = vld [vmem:[%s11069_s6 + $0x14e4] ss:$16 sps:$4 sm:$0xff]  }
 0x2b3   : > { %7018 = vmatprep.subr.bf16.mxu0 %v10203_v25  ;;  %7674 = vmatprep.subr.bf16.mxu1 %v10206_v34  ;;  %v10290_v25 = vld [vmem:[%s11069_s6 + $0x14ec] ss:$16 sps:$4 sm:$0xff]   ;;  %v10285_v34 = vld [vmem:[%s11069_s6 + $0x14e0] ss:$16 sps:$4 sm:$0xff]  }
 0x2b6   : > { %7019 = vmatpush1.bf16.msra.mxu0 %v10201_v36  ;;  %7675 = vmatpush1.bf16.msra.mxu1 %v10204_v37  ;;  %v10288_v36 = vld [vmem:[%s11069_s6 + $0x14e8] ss:$16 sps:$4 sm:$0xff]   ;;  %v10293_v37 = vld [vmem:[%s11069_s6 + $0x1504] ss:$16 sps:$4 sm:$0xff]  }
 0x2b7   : > { %7020 = vmatprep.subr.bf16.mxu0 %v10209_v39  ;;  %7676 = vmatprep.subr.bf16.mxu1 %v10212_v40  ;;  %v10296_v39 = vld [vmem:[%s11069_s6 + $0x150c] ss:$16 sps:$4 sm:$0xff]   ;;  %v10291_v40 = vld [vmem:[%s11069_s6 + $0x1500] ss:$16 sps:$4 sm:$0xff]  }
 0x2ba   : > { %7021 = vmatpush1.bf16.msra.mxu0 %v10207_v21  ;;  %7677 = vmatpush1.bf16.msra.mxu1 %v10210_v41  ;;  %v10294_v21 = vld [vmem:[%s11069_s6 + $0x1508] ss:$16 sps:$4 sm:$0xff]   ;;  %v10299_v41 = vld [vmem:[%s11069_s6 + $0x1524] ss:$16 sps:$4 sm:$0xff]  }
 0x2bb   : > { %7022 = vmatprep.subr.bf16.mxu0 %v10215_v43  ;;  %7678 = vmatprep.subr.bf16.mxu1 %v10218_v44  ;;  %v10302_v43 = vld [vmem:[%s11069_s6 + $0x152c] ss:$16 sps:$4 sm:$0xff]   ;;  %v10297_v44 = vld [vmem:[%s11069_s6 + $0x1520] ss:$16 sps:$4 sm:$0xff]  }
 0x2be   : > { %7023 = vmatpush1.bf16.msra.mxu0 %v10213_v45  ;;  %7679 = vmatpush1.bf16.msra.mxu1 %v10216_v46  ;;  %v10300_v45 = vld [vmem:[%s11069_s6 + $0x1528] ss:$16 sps:$4 sm:$0xff]   ;;  %v10305_v46 = vld [vmem:[%s11069_s6 + $0x1544] ss:$16 sps:$4 sm:$0xff]  }
 0x2bf   : > { %7024 = vmatprep.subr.bf16.mxu0 %v10221_v47  ;;  %7680 = vmatprep.subr.bf16.mxu1 %v10224_v50  ;;  %v10308_v47 = vld [vmem:[%s11069_s6 + $0x154c] ss:$16 sps:$4 sm:$0xff]   ;;  %v10303_v50 = vld [vmem:[%s11069_s6 + $0x1540] ss:$16 sps:$4 sm:$0xff]  }
 0x2c2   : > { %7025 = vmatpush1.bf16.msra.mxu0 %v10219_v53  ;;  %7681 = vmatpush1.bf16.msra.mxu1 %v10222_v54  ;;  %v10306_v53 = vld [vmem:[%s11069_s6 + $0x1548] ss:$16 sps:$4 sm:$0xff]   ;;  %v10311_v54 = vld [vmem:[%s11069_s6 + $0x1564] ss:$16 sps:$4 sm:$0xff]  }
 0x2c3   : > { %7026 = vmatprep.subr.bf16.mxu0 %v10227_v55  ;;  %7682 = vmatprep.subr.bf16.mxu1 %v10230_v38  ;;  %v10314_v55 = vld [vmem:[%s11069_s6 + $0x156c] ss:$16 sps:$4 sm:$0xff]   ;;  %v10309_v38 = vld [vmem:[%s11069_s6 + $0x1560] ss:$16 sps:$4 sm:$0xff]  }
 0x2c6   : > { %7027 = vmatpush1.bf16.msra.mxu0 %v10225_v56  ;;  %7683 = vmatpush1.bf16.msra.mxu1 %v10228_v57  ;;  %v10312_v56 = vld [vmem:[%s11069_s6 + $0x1568] ss:$16 sps:$4 sm:$0xff]   ;;  %v10317_v57 = vld [vmem:[%s11069_s6 + $0x1584] ss:$16 sps:$4 sm:$0xff]  }
 0x2c7   : > { %7028 = vmatprep.subr.bf16.mxu0 %v10233_v58  ;;  %7684 = vmatprep.subr.bf16.mxu1 %v10236_v48  ;;  %v10320_v58 = vld [vmem:[%s11069_s6 + $0x158c] ss:$16 sps:$4 sm:$0xff]   ;;  %v10315_v48 = vld [vmem:[%s11069_s6 + $0x1580] ss:$16 sps:$4 sm:$0xff]  }
 0x2ca   : > { %7029 = vmatpush1.bf16.msra.mxu0 %v10231_v60  ;;  %7685 = vmatpush1.bf16.msra.mxu1 %v10234_v13  ;;  %v10323_v60 = vld [vmem:[%s11069_s6 + $0x15a4] ss:$16 sps:$4 sm:$0xff]   ;;  %v10326_v13 = vld [vmem:[%s11069_s6 + $0x15ac] ss:$16 sps:$4 sm:$0xff]  }
 0x2cb   : > { %7030 = vmatprep.subr.bf16.mxu0 %v10239_v63  ;;  %7686 = vmatprep.subr.bf16.mxu1 %v10242_v0  ;;  %v10321_v63 = vld [vmem:[%s11069_s6 + $0x15a0] ss:$16 sps:$4 sm:$0xff]   ;;  %v10324_v0 = vld [vmem:[%s11069_s6 + $0x15a8] ss:$16 sps:$4 sm:$0xff]  }
 0x2ce   : > { %7031 = vmatpush1.bf16.msra.mxu0 %v10237_v35  ;;  %7687 = vmatpush1.bf16.msra.mxu1 %v10240_v2  ;;  %v10329_v35 = vld [vmem:[%s11069_s6 + $0x15c4] ss:$16 sps:$4 sm:$0xff]   ;;  %v10332_v2 = vld [vmem:[%s11069_s6 + $0x15cc] ss:$16 sps:$4 sm:$0xff]  }
 0x2cf   : > { %7041 = vmatprep.subr.bf16.mxu0 %v10245_v3  ;;  %7697 = vmatprep.subr.bf16.mxu1 %v10248_v51  ;;  %v10327_v3 = vld [vmem:[%s11069_s6 + $0x15c0] ss:$16 sps:$4 sm:$0xff]   ;;  %v10330_v51 = vld [vmem:[%s11069_s6 + $0x15c8] ss:$16 sps:$4 sm:$0xff]  }
 0x2d1   : > { %7033 = vmatmul.mubr.bf16.vlgmr.msra.gmra.mrb[0].mxu0 %v1426_v5  ;;  %7689 = vmatmul.mubr.bf16.vlgmr.msra.gmra.mrb[0].mxu1 %v1426_v5  ;;  %v10338_v5 = vld [vmem:[%s11069_s6 + $0x15ec] ss:$16 sps:$4 sm:$0xff]  }
 0x2d2   : > { %7042 = vmatpush1.bf16.msra.mxu0 %v10243_v6  ;;  %7698 = vmatpush1.bf16.msra.mxu1 %v10246_v61  ;;  %v10333_v6 = vld [vmem:[%s11069_s6 + $0x15e0] ss:$16 sps:$4 sm:$0xff]   ;;  %v10336_v61 = vld [vmem:[%s11069_s6 + $0x15e8] ss:$16 sps:$4 sm:$0xff]  }
 0x2d3   : > { %7043 = vmatprep.subr.bf16.mxu0 %v10251_v7  ;;  %7699 = vmatprep.subr.bf16.mxu1 %v10254_v8  ;;  %v10342_v7 = vld [vmem:[%s11069_s6 + $0x1604] ss:$16 sps:$4 sm:$0xff]   ;;  %v10345_v8 = vld [vmem:[%s11069_s6 + $0x160c] ss:$16 sps:$4 sm:$0xff]  }
 0x2d4   : > { %7073 = vmatprep.mubr.bf16.mxu0 %v11848_v9  ;;  %7729 = vmatprep.mubr.bf16.mxu1 %v11848_v9 }
 0x2d6   : > { %7044 = vmatpush1.bf16.msra.mxu0 %v10249_v62  ;;  %7700 = vmatpush1.bf16.msra.mxu1 %v10252_v10  ;;  %v11914_v62 = vrot.slane %v11833_v1, %v11128_v49  ;;  %v10340_v10 = vld [vmem:[%s11069_s6 + $0x1600] ss:$16 sps:$4 sm:$0xff]  }
 0x2d7   : > { %7045 = vmatprep.subr.bf16.mxu0 %v10257_v11  ;;  %7701 = vmatprep.subr.bf16.mxu1 %v10260_v12  ;;  %v10343_v11 = vld [vmem:[%s11069_s6 + $0x1608] ss:$16 sps:$4 sm:$0xff]   ;;  %v10348_v12 = vld [vmem:[%s11069_s6 + $0x1624] ss:$16 sps:$4 sm:$0xff]   ;;  %v10346_v1 = vld [vmem:[%s11069_s6 + $0x1620] ss:$16 sps:$4 sm:$0xff]  }
 0x2da   : > { %7046 = vmatpush1.bf16.msra.mxu0 %v10255_v14  ;;  %7702 = vmatpush1.bf16.msra.mxu1 %v10258_v16  ;;  %v10351_v14 = vld [vmem:[%s11069_s6 + $0x162c] ss:$16 sps:$4 sm:$0xff]   ;;  %v1429_v16 = vcombine.high %v11848_v9, %v11848_v9  ;;  %v10352_v9 = vld [vmem:[%s11069_s6 + $0x1640] ss:$16 sps:$4 sm:$0xff]  }
 0x2db   : > { %7047 = vmatprep.subr.bf16.mxu0 %v10263_v52  ;;  %7703 = vmatprep.subr.bf16.mxu1 %v10266_v17  ;;  %v10349_v52 = vld [vmem:[%s11069_s6 + $0x1628] ss:$16 sps:$4 sm:$0xff]   ;;  %v10354_v17 = vld [vmem:[%s11069_s6 + $0x1644] ss:$16 sps:$4 sm:$0xff]  }
 0x2de   : > { %7048 = vmatpush1.bf16.msra.mxu0 %v10261_v18  ;;  %7704 = vmatpush1.bf16.msra.mxu1 %v10264_v19  ;;  %v10357_v18 = vld [vmem:[%s11069_s6 + $0x164c] ss:$16 sps:$4 sm:$0xff]   ;;  %v10355_v19 = vld [vmem:[%s11069_s6 + $0x1648] ss:$16 sps:$4 sm:$0xff]  }
 0x2df   : > { %7049 = vmatprep.subr.bf16.mxu0 %v10269_v20  ;;  %7705 = vmatprep.subr.bf16.mxu1 %v10272_v22  ;;  %v10360_v20 = vld [vmem:[%s11069_s6 + $0x1664] ss:$16 sps:$4 sm:$0xff]   ;;  %v10363_v22 = vld [vmem:[%s11069_s6 + $0x166c] ss:$16 sps:$4 sm:$0xff]  }
 0x2e2   : > { %7050 = vmatpush1.bf16.msra.mxu0 %v10267_v23  ;;  %7706 = vmatpush1.bf16.msra.mxu1 %v10270_v24  ;;  %v10358_v23 = vld [vmem:[%s11069_s6 + $0x1660] ss:$16 sps:$4 sm:$0xff]   ;;  %v10361_v24 = vld [vmem:[%s11069_s6 + $0x1668] ss:$16 sps:$4 sm:$0xff]  }
 0x2e3   : > { %7051 = vmatprep.subr.bf16.mxu0 %v10275_v26  ;;  %7707 = vmatprep.subr.bf16.mxu1 %v10278_v27  ;;  %v10366_v26 = vld [vmem:[%s11069_s6 + $0x1684] ss:$16 sps:$4 sm:$0xff]   ;;  %v10369_v27 = vld [vmem:[%s11069_s6 + $0x168c] ss:$16 sps:$4 sm:$0xff]  }
 0x2e6   : > { %7052 = vmatpush1.bf16.msra.mxu0 %v10273_v28  ;;  %7708 = vmatpush1.bf16.msra.mxu1 %v10276_v29  ;;  %v10364_v28 = vld [vmem:[%s11069_s6 + $0x1680] ss:$16 sps:$4 sm:$0xff]   ;;  %v10367_v29 = vld [vmem:[%s11069_s6 + $0x1688] ss:$16 sps:$4 sm:$0xff]  }
 0x2e7   : > { %7053 = vmatprep.subr.bf16.mxu0 %v10281_v30  ;;  %7709 = vmatprep.subr.bf16.mxu1 %v10284_v15  ;;  %v10372_v30 = vld [vmem:[%s11069_s6 + $0x16a4] ss:$16 sps:$4 sm:$0xff]   ;;  %v10375_v15 = vld [vmem:[%s11069_s6 + $0x16ac] ss:$16 sps:$4 sm:$0xff]  }
 0x2ea   : > { %7054 = vmatpush1.bf16.msra.mxu0 %v10279_v31  ;;  %7710 = vmatpush1.bf16.msra.mxu1 %v10282_v32  ;;  %v10370_v31 = vld [vmem:[%s11069_s6 + $0x16a0] ss:$16 sps:$4 sm:$0xff]   ;;  %v10373_v32 = vld [vmem:[%s11069_s6 + $0x16a8] ss:$16 sps:$4 sm:$0xff]  }
 0x2eb   : > { %7055 = vmatprep.subr.bf16.mxu0 %v10287_v33  ;;  %7711 = vmatprep.subr.bf16.mxu1 %v10290_v25  ;;  %v10378_v33 = vld [vmem:[%s11069_s6 + $0x16c4] ss:$16 sps:$4 sm:$0xff]   ;;  %v10381_v25 = vld [vmem:[%s11069_s6 + $0x16cc] ss:$16 sps:$4 sm:$0xff]  }
 0x2ee   : > { %7056 = vmatpush1.bf16.msra.mxu0 %v10285_v34  ;;  %7712 = vmatpush1.bf16.msra.mxu1 %v10288_v36  ;;  %v10376_v34 = vld [vmem:[%s11069_s6 + $0x16c0] ss:$16 sps:$4 sm:$0xff]   ;;  %v10379_v36 = vld [vmem:[%s11069_s6 + $0x16c8] ss:$16 sps:$4 sm:$0xff]  }
 0x2ef   : > { %7057 = vmatprep.subr.bf16.mxu0 %v10293_v37  ;;  %7713 = vmatprep.subr.bf16.mxu1 %v10296_v39  ;;  %v10384_v37 = vld [vmem:[%s11069_s6 + $0x16e4] ss:$16 sps:$4 sm:$0xff]   ;;  %v10387_v39 = vld [vmem:[%s11069_s6 + $0x16ec] ss:$16 sps:$4 sm:$0xff]  }
 0x2f2   : > { %7058 = vmatpush1.bf16.msra.mxu0 %v10291_v40  ;;  %7714 = vmatpush1.bf16.msra.mxu1 %v10294_v21  ;;  %v10382_v40 = vld [vmem:[%s11069_s6 + $0x16e0] ss:$16 sps:$4 sm:$0xff]   ;;  %v10385_v21 = vld [vmem:[%s11069_s6 + $0x16e8] ss:$16 sps:$4 sm:$0xff]  }
 0x2f3   : > { %7059 = vmatprep.subr.bf16.mxu0 %v10299_v41  ;;  %7715 = vmatprep.subr.bf16.mxu1 %v10302_v43  ;;  %v10390_v41 = vld [vmem:[%s11069_s6 + $0x1704] ss:$16 sps:$4 sm:$0xff]   ;;  %v10393_v43 = vld [vmem:[%s11069_s6 + $0x170c] ss:$16 sps:$4 sm:$0xff]  }
 0x2f6   : > { %7060 = vmatpush1.bf16.msra.mxu0 %v10297_v44  ;;  %7716 = vmatpush1.bf16.msra.mxu1 %v10300_v45  ;;  %v10388_v44 = vld [vmem:[%s11069_s6 + $0x1700] ss:$16 sps:$4 sm:$0xff]   ;;  %v10391_v45 = vld [vmem:[%s11069_s6 + $0x1708] ss:$16 sps:$4 sm:$0xff]  }
 0x2f7   : > { %7061 = vmatprep.subr.bf16.mxu0 %v10305_v46  ;;  %7717 = vmatprep.subr.bf16.mxu1 %v10308_v47  ;;  %v10396_v46 = vld [vmem:[%s11069_s6 + $0x1724] ss:$16 sps:$4 sm:$0xff]   ;;  %v10399_v47 = vld [vmem:[%s11069_s6 + $0x172c] ss:$16 sps:$4 sm:$0xff]  }
 0x2fa   : > { %7062 = vmatpush1.bf16.msra.mxu0 %v10303_v50  ;;  %7718 = vmatpush1.bf16.msra.mxu1 %v10306_v53  ;;  %v10394_v50 = vld [vmem:[%s11069_s6 + $0x1720] ss:$16 sps:$4 sm:$0xff]   ;;  %v10397_v53 = vld [vmem:[%s11069_s6 + $0x1728] ss:$16 sps:$4 sm:$0xff]  }
 0x2fb   : > { %7063 = vmatprep.subr.bf16.mxu0 %v10311_v54  ;;  %7719 = vmatprep.subr.bf16.mxu1 %v10314_v55  ;;  %v10402_v54 = vld [vmem:[%s11069_s6 + $0x1744] ss:$16 sps:$4 sm:$0xff]   ;;  %v10405_v55 = vld [vmem:[%s11069_s6 + $0x174c] ss:$16 sps:$4 sm:$0xff]  }
 0x2fe   : > { %7064 = vmatpush1.bf16.msra.mxu0 %v10309_v38  ;;  %7720 = vmatpush1.bf16.msra.mxu1 %v10312_v56  ;;  %v10400_v38 = vld [vmem:[%s11069_s6 + $0x1740] ss:$16 sps:$4 sm:$0xff]   ;;  %v10403_v56 = vld [vmem:[%s11069_s6 + $0x1748] ss:$16 sps:$4 sm:$0xff]  }
 0x2ff   : > { %7065 = vmatprep.subr.bf16.mxu0 %v10317_v57  ;;  %7721 = vmatprep.subr.bf16.mxu1 %v10320_v58  ;;  %v10408_v57 = vld [vmem:[%s11069_s6 + $0x1764] ss:$16 sps:$4 sm:$0xff]   ;;  %v10411_v58 = vld [vmem:[%s11069_s6 + $0x176c] ss:$16 sps:$4 sm:$0xff]  }
 0x302   : > { %7066 = vmatpush1.bf16.msra.mxu0 %v10315_v48  ;;  %7722 = vmatpush1.bf16.msra.mxu1 %v10318_v59  ;;  %v10406_v48 = vld [vmem:[%s11069_s6 + $0x1760] ss:$16 sps:$4 sm:$0xff]   ;;  %v10409_v59 = vld [vmem:[%s11069_s6 + $0x1768] ss:$16 sps:$4 sm:$0xff]  }
 0x303   : > { %7067 = vmatprep.subr.bf16.mxu0 %v10323_v60  ;;  %7723 = vmatprep.subr.bf16.mxu1 %v10326_v13  ;;  %v10414_v60 = vld [vmem:[%s11069_s6 + $0x1784] ss:$16 sps:$4 sm:$0xff]   ;;  %v10417_v13 = vld [vmem:[%s11069_s6 + $0x178c] ss:$16 sps:$4 sm:$0xff]  }
 0x306   : > { %7068 = vmatpush1.bf16.msra.mxu0 %v10321_v63  ;;  %7724 = vmatpush1.bf16.msra.mxu1 %v10324_v0  ;;  %v10412_v63 = vld [vmem:[%s11069_s6 + $0x1780] ss:$16 sps:$4 sm:$0xff]   ;;  %v10415_v0 = vld [vmem:[%s11069_s6 + $0x1788] ss:$16 sps:$4 sm:$0xff]  }
 0x307   : > { %7069 = vmatprep.subr.bf16.mxu0 %v10329_v35  ;;  %7725 = vmatprep.subr.bf16.mxu1 %v10332_v2  ;;  %v10420_v35 = vld [vmem:[%s11069_s6 + $0x17a4] ss:$16 sps:$4 sm:$0xff]   ;;  %v10423_v2 = vld [vmem:[%s11069_s6 + $0x17ac] ss:$16 sps:$4 sm:$0xff]  }
 0x30a   : > { %7070 = vmatpush1.bf16.msra.mxu0 %v10327_v3  ;;  %7726 = vmatpush1.bf16.msra.mxu1 %v10330_v51  ;;  %v10418_v3 = vld [vmem:[%s11069_s6 + $0x17a0] ss:$16 sps:$4 sm:$0xff]   ;;  %v10421_v51 = vld [vmem:[%s11069_s6 + $0x17a8] ss:$16 sps:$4 sm:$0xff]  }
 0x30b   : > { %7071 = vmatprep.subr.bf16.mxu0 %v10335_v4  ;;  %7727 = vmatprep.subr.bf16.mxu1 %v10338_v5  ;;  %v10426_v4 = vld [vmem:[%s11069_s6 + $0x17c4] ss:$16 sps:$4 sm:$0xff]   ;;  %v10429_v5 = vld [vmem:[%s11069_s6 + $0x17cc] ss:$16 sps:$4 sm:$0xff]  }
 0x30e   : > { %7072 = vmatpush1.bf16.msra.mxu0 %v10333_v6  ;;  %7728 = vmatpush1.bf16.msra.mxu1 %v10336_v61  ;;  %v11979_v6 = vld [vmem:[%s12313_s0 + $0x18] sm:$0xff]  ;;  %v10424_v61 = vld [vmem:[%s11069_s6 + $0x17c0] ss:$16 sps:$4 sm:$0xff]  }
 0x30f   : > { %7082 = vmatprep.subr.bf16.mxu0 %v10342_v7  ;;  %7738 = vmatprep.subr.bf16.mxu1 %v10345_v8  ;;  %v10427_v7 = vld [vmem:[%s11069_s6 + $0x17c8] ss:$16 sps:$4 sm:$0xff]   ;;  %v10432_v8 = vld [vmem:[%s11069_s6 + $0x17e4] ss:$16 sps:$4 sm:$0xff]  }
 0x311   : > { %7074 = vmatmul.mubr.bf16.vlgmr.msra.gmra.mrb[0].mxu0 %v11914_v62  ;;  %7730 = vmatmul.mubr.bf16.vlgmr.msra.gmra.mrb[0].mxu1 %v11914_v62 }
 0x312   : > { %7083 = vmatpush1.bf16.msra.mxu0 %v10340_v10  ;;  %7739 = vmatpush1.bf16.msra.mxu1 %v10343_v11  ;;  %v10435_v10 = vld [vmem:[%s11069_s6 + $0x17ec] ss:$16 sps:$4 sm:$0xff]   ;;  %v11987_v11 = vrot.slane %v11979_v6, %v11128_v49 }
 0x313   : > { %7084 = vmatprep.subr.bf16.mxu0 %v10348_v12  ;;  %7740 = vmatprep.subr.bf16.mxu1 %v10351_v14  ;;  %v10430_v12 = vld [vmem:[%s11069_s6 + $0x17e0] ss:$16 sps:$4 sm:$0xff]   ;;  %v10433_v14 = vld [vmem:[%s11069_s6 + $0x17e8] ss:$16 sps:$4 sm:$0xff]  }
 0x314   : > { %7114 = vmatprep.mubr.bf16.mxu0 %v1429_v16  ;;  %7770 = vmatprep.mubr.bf16.mxu1 %v1429_v16  ;;  %v10438_v16 = vld [vmem:[%s11069_s6 + $0x1804] ss:$16 sps:$4 sm:$0xff]  }
 0x316   : > { %7085 = vmatpush1.bf16.msra.mxu0 %v10346_v1  ;;  %7741 = vmatpush1.bf16.msra.mxu1 %v10349_v52  ;;  %v10441_v1 = vld [vmem:[%s11069_s6 + $0x180c] ss:$16 sps:$4 sm:$0xff]   ;;  %v1445_v52 = vcombine.high %v11987_v11, %v11987_v11 }
 0x317   : > { %7086 = vmatprep.subr.bf16.mxu0 %v10354_v17  ;;  %7742 = vmatprep.subr.bf16.mxu1 %v10357_v18  ;;  %v1427_v17 = vcombine.high %v11914_v62, %v11914_v62  ;;  %v10436_v18 = vld [vmem:[%s11069_s6 + $0x1800] ss:$16 sps:$4 sm:$0xff]  }
 0x318   : > { %v10442_v62 = vld [vmem:[%s11069_s6 + $0x1820] ss:$16 sps:$4 sm:$0xff]  }
 0x31a   : > { %7087 = vmatpush1.bf16.msra.mxu0 %v10352_v9  ;;  %7743 = vmatpush1.bf16.msra.mxu1 %v10355_v19  ;;  %v10439_v9 = vld [vmem:[%s11069_s6 + $0x1808] ss:$16 sps:$4 sm:$0xff]   ;;  %v10444_v19 = vld [vmem:[%s11069_s6 + $0x1824] ss:$16 sps:$4 sm:$0xff]  }
 0x31b   : > { %7088 = vmatprep.subr.bf16.mxu0 %v10360_v20  ;;  %7744 = vmatprep.subr.bf16.mxu1 %v10363_v22  ;;  %v10447_v20 = vld [vmem:[%s11069_s6 + $0x182c] ss:$16 sps:$4 sm:$0xff]   ;;  %v12002_v22 = vrot.slane %v1445_v52, %v11128_v49  ;;  %v10523_v52 = vld [vmem:[%s11069_s6 + $0x19c8] ss:$16 sps:$4 sm:$0xff]  }
 0x31e   : > { %7089 = vmatpush1.bf16.msra.mxu0 %v10358_v23  ;;  %7745 = vmatpush1.bf16.msra.mxu1 %v10361_v24  ;;  %v10445_v23 = vld [vmem:[%s11069_s6 + $0x1828] ss:$16 sps:$4 sm:$0xff]   ;;  %v10450_v24 = vld [vmem:[%s11069_s6 + $0x1844] ss:$16 sps:$4 sm:$0xff]  }
 0x31f   : > { %7090 = vmatprep.subr.bf16.mxu0 %v10366_v26  ;;  %7746 = vmatprep.subr.bf16.mxu1 %v10369_v27  ;;  %v10453_v26 = vld [vmem:[%s11069_s6 + $0x184c] ss:$16 sps:$4 sm:$0xff]   ;;  %v10448_v27 = vld [vmem:[%s11069_s6 + $0x1840] ss:$16 sps:$4 sm:$0xff]  }
 0x322   : > { %7091 = vmatpush1.bf16.msra.mxu0 %v10364_v28  ;;  %7747 = vmatpush1.bf16.msra.mxu1 %v10367_v29  ;;  %v10451_v28 = vld [vmem:[%s11069_s6 + $0x1848] ss:$16 sps:$4 sm:$0xff]   ;;  %v10456_v29 = vld [vmem:[%s11069_s6 + $0x1864] ss:$16 sps:$4 sm:$0xff]  }
 0x323   : > { %7092 = vmatprep.subr.bf16.mxu0 %v10372_v30  ;;  %7748 = vmatprep.subr.bf16.mxu1 %v10375_v15  ;;  %v10459_v30 = vld [vmem:[%s11069_s6 + $0x186c] ss:$16 sps:$4 sm:$0xff]   ;;  %v10454_v15 = vld [vmem:[%s11069_s6 + $0x1860] ss:$16 sps:$4 sm:$0xff]  }
 0x326   : > { %7093 = vmatpush1.bf16.msra.mxu0 %v10370_v31  ;;  %7749 = vmatpush1.bf16.msra.mxu1 %v10373_v32  ;;  %v10457_v31 = vld [vmem:[%s11069_s6 + $0x1868] ss:$16 sps:$4 sm:$0xff]   ;;  %v10462_v32 = vld [vmem:[%s11069_s6 + $0x1884] ss:$16 sps:$4 sm:$0xff]  }
 0x327   : > { %7094 = vmatprep.subr.bf16.mxu0 %v10378_v33  ;;  %7750 = vmatprep.subr.bf16.mxu1 %v10381_v25  ;;  %v10465_v33 = vld [vmem:[%s11069_s6 + $0x188c] ss:$16 sps:$4 sm:$0xff]   ;;  %v10460_v25 = vld [vmem:[%s11069_s6 + $0x1880] ss:$16 sps:$4 sm:$0xff]  }
 0x32a   : > { %7095 = vmatpush1.bf16.msra.mxu0 %v10376_v34  ;;  %7751 = vmatpush1.bf16.msra.mxu1 %v10379_v36  ;;  %v10463_v34 = vld [vmem:[%s11069_s6 + $0x1888] ss:$16 sps:$4 sm:$0xff]   ;;  %v10468_v36 = vld [vmem:[%s11069_s6 + $0x18a4] ss:$16 sps:$4 sm:$0xff]  }
 0x32b   : > { %7096 = vmatprep.subr.bf16.mxu0 %v10384_v37  ;;  %7752 = vmatprep.subr.bf16.mxu1 %v10387_v39  ;;  %v10471_v37 = vld [vmem:[%s11069_s6 + $0x18ac] ss:$16 sps:$4 sm:$0xff]   ;;  %v10466_v39 = vld [vmem:[%s11069_s6 + $0x18a0] ss:$16 sps:$4 sm:$0xff]  }
 0x32e   : > { %7097 = vmatpush1.bf16.msra.mxu0 %v10382_v40  ;;  %7753 = vmatpush1.bf16.msra.mxu1 %v10385_v21  ;;  %v10469_v40 = vld [vmem:[%s11069_s6 + $0x18a8] ss:$16 sps:$4 sm:$0xff]   ;;  %v10474_v21 = vld [vmem:[%s11069_s6 + $0x18c4] ss:$16 sps:$4 sm:$0xff]  }
 0x32f   : > { %7098 = vmatprep.subr.bf16.mxu0 %v10390_v41  ;;  %7754 = vmatprep.subr.bf16.mxu1 %v10393_v43  ;;  %v10477_v41 = vld [vmem:[%s11069_s6 + $0x18cc] ss:$16 sps:$4 sm:$0xff]   ;;  %v10472_v43 = vld [vmem:[%s11069_s6 + $0x18c0] ss:$16 sps:$4 sm:$0xff]  }
 0x332   : > { %7099 = vmatpush1.bf16.msra.mxu0 %v10388_v44  ;;  %7755 = vmatpush1.bf16.msra.mxu1 %v10391_v45  ;;  %v10475_v44 = vld [vmem:[%s11069_s6 + $0x18c8] ss:$16 sps:$4 sm:$0xff]   ;;  %v10480_v45 = vld [vmem:[%s11069_s6 + $0x18e4] ss:$16 sps:$4 sm:$0xff]  }
 0x333   : > { %7100 = vmatprep.subr.bf16.mxu0 %v10396_v46  ;;  %7756 = vmatprep.subr.bf16.mxu1 %v10399_v47  ;;  %v10483_v46 = vld [vmem:[%s11069_s6 + $0x18ec] ss:$16 sps:$4 sm:$0xff]   ;;  %v10478_v47 = vld [vmem:[%s11069_s6 + $0x18e0] ss:$16 sps:$4 sm:$0xff]  }
 0x336   : > { %7101 = vmatpush1.bf16.msra.mxu0 %v10394_v50  ;;  %7757 = vmatpush1.bf16.msra.mxu1 %v10397_v53  ;;  %v10481_v50 = vld [vmem:[%s11069_s6 + $0x18e8] ss:$16 sps:$4 sm:$0xff]   ;;  %v10486_v53 = vld [vmem:[%s11069_s6 + $0x1904] ss:$16 sps:$4 sm:$0xff]  }
 0x337   : > { %7102 = vmatprep.subr.bf16.mxu0 %v10402_v54  ;;  %7758 = vmatprep.subr.bf16.mxu1 %v10405_v55  ;;  %v10489_v54 = vld [vmem:[%s11069_s6 + $0x190c] ss:$16 sps:$4 sm:$0xff]   ;;  %v10484_v55 = vld [vmem:[%s11069_s6 + $0x1900] ss:$16 sps:$4 sm:$0xff]  }
 0x33a   : > { %7103 = vmatpush1.bf16.msra.mxu0 %v10400_v38  ;;  %7759 = vmatpush1.bf16.msra.mxu1 %v10403_v56  ;;  %v10487_v38 = vld [vmem:[%s11069_s6 + $0x1908] ss:$16 sps:$4 sm:$0xff]   ;;  %v10492_v56 = vld [vmem:[%s11069_s6 + $0x1924] ss:$16 sps:$4 sm:$0xff]  }
 0x33b   : > { %7104 = vmatprep.subr.bf16.mxu0 %v10408_v57  ;;  %7760 = vmatprep.subr.bf16.mxu1 %v10411_v58  ;;  %v10495_v57 = vld [vmem:[%s11069_s6 + $0x192c] ss:$16 sps:$4 sm:$0xff]   ;;  %v10490_v58 = vld [vmem:[%s11069_s6 + $0x1920] ss:$16 sps:$4 sm:$0xff]  }
 0x33e   : > { %7105 = vmatpush1.bf16.msra.mxu0 %v10406_v48  ;;  %7761 = vmatpush1.bf16.msra.mxu1 %v10409_v59  ;;  %v10493_v48 = vld [vmem:[%s11069_s6 + $0x1928] ss:$16 sps:$4 sm:$0xff]   ;;  %v10498_v59 = vld [vmem:[%s11069_s6 + $0x1944] ss:$16 sps:$4 sm:$0xff]  }
 0x33f   : > { %7106 = vmatprep.subr.bf16.mxu0 %v10414_v60  ;;  %7762 = vmatprep.subr.bf16.mxu1 %v10417_v13  ;;  %v10501_v60 = vld [vmem:[%s11069_s6 + $0x194c] ss:$16 sps:$4 sm:$0xff]   ;;  %v10496_v13 = vld [vmem:[%s11069_s6 + $0x1940] ss:$16 sps:$4 sm:$0xff]  }
 0x342   : > { %7107 = vmatpush1.bf16.msra.mxu0 %v10412_v63  ;;  %7763 = vmatpush1.bf16.msra.mxu1 %v10415_v0  ;;  %v10499_v63 = vld [vmem:[%s11069_s6 + $0x1948] ss:$16 sps:$4 sm:$0xff]   ;;  %v10504_v0 = vld [vmem:[%s11069_s6 + $0x1964] ss:$16 sps:$4 sm:$0xff]  }
 0x343   : > { %7108 = vmatprep.subr.bf16.mxu0 %v10420_v35  ;;  %7764 = vmatprep.subr.bf16.mxu1 %v10423_v2  ;;  %v10507_v35 = vld [vmem:[%s11069_s6 + $0x196c] ss:$16 sps:$4 sm:$0xff]   ;;  %v10502_v2 = vld [vmem:[%s11069_s6 + $0x1960] ss:$16 sps:$4 sm:$0xff]  }
 0x346   : > { %7109 = vmatpush1.bf16.msra.mxu0 %v10418_v3  ;;  %7765 = vmatpush1.bf16.msra.mxu1 %v10421_v51  ;;  %v10505_v3 = vld [vmem:[%s11069_s6 + $0x1968] ss:$16 sps:$4 sm:$0xff]   ;;  %v10510_v51 = vld [vmem:[%s11069_s6 + $0x1984] ss:$16 sps:$4 sm:$0xff]  }
 0x347   : > { %7110 = vmatprep.subr.bf16.mxu0 %v10426_v4  ;;  %7766 = vmatprep.subr.bf16.mxu1 %v10429_v5  ;;  %v10513_v4 = vld [vmem:[%s11069_s6 + $0x198c] ss:$16 sps:$4 sm:$0xff]   ;;  %v10508_v5 = vld [vmem:[%s11069_s6 + $0x1980] ss:$16 sps:$4 sm:$0xff]  }
 0x34a   : > { %7111 = vmatpush1.bf16.msra.mxu0 %v10424_v61  ;;  %7767 = vmatpush1.bf16.msra.mxu1 %v10427_v7  ;;  %v10511_v61 = vld [vmem:[%s11069_s6 + $0x1988] ss:$16 sps:$4 sm:$0xff]   ;;  %v10516_v7 = vld [vmem:[%s11069_s6 + $0x19a4] ss:$16 sps:$4 sm:$0xff]  }
 0x34b   : > { %7112 = vmatprep.subr.bf16.mxu0 %v10432_v8  ;;  %7768 = vmatprep.subr.bf16.mxu1 %v10435_v10  ;;  %v10519_v8 = vld [vmem:[%s11069_s6 + $0x19ac] ss:$16 sps:$4 sm:$0xff]   ;;  %v10514_v10 = vld [vmem:[%s11069_s6 + $0x19a0] ss:$16 sps:$4 sm:$0xff]  }
 0x34e   : > { %7113 = vmatpush1.bf16.msra.mxu0 %v10430_v12  ;;  %7769 = vmatpush1.bf16.msra.mxu1 %v10433_v14  ;;  %v10517_v12 = vld [vmem:[%s11069_s6 + $0x19a8] ss:$16 sps:$4 sm:$0xff]   ;;  %v10522_v14 = vld [vmem:[%s11069_s6 + $0x19c4] ss:$16 sps:$4 sm:$0xff]  }
 0x34f   : > { %7123 = vmatprep.subr.bf16.mxu0 %v10438_v16  ;;  %7779 = vmatprep.subr.bf16.mxu1 %v10441_v1  ;;  %v10525_v16 = vld [vmem:[%s11069_s6 + $0x19cc] ss:$16 sps:$4 sm:$0xff]   ;;  %v10520_v1 = vld [vmem:[%s11069_s6 + $0x19c0] ss:$16 sps:$4 sm:$0xff]  }
 0x351   : > { %7115 = vmatmul.mubr.bf16.vlgmr.msra.gmra.mrb[0].mxu0 %v1427_v17  ;;  %7771 = vmatmul.mubr.bf16.vlgmr.msra.gmra.mrb[0].mxu1 %v1427_v17  ;;  %v10528_v17 = vld [vmem:[%s11069_s6 + $0x19e4] ss:$16 sps:$4 sm:$0xff]  }
 0x352   : > { %7124 = vmatpush1.bf16.msra.mxu0 %v10436_v18  ;;  %7780 = vmatpush1.bf16.msra.mxu1 %v10439_v9  ;;  %v10531_v18 = vld [vmem:[%s11069_s6 + $0x19ec] ss:$16 sps:$4 sm:$0xff]   ;;  %v10526_v9 = vld [vmem:[%s11069_s6 + $0x19e0] ss:$16 sps:$4 sm:$0xff]  }
 0x353   : > { %7125 = vmatprep.subr.bf16.mxu0 %v10444_v19  ;;  %7781 = vmatprep.subr.bf16.mxu1 %v10447_v20  ;;  %v10529_v19 = vld [vmem:[%s11069_s6 + $0x19e8] ss:$16 sps:$4 sm:$0xff]   ;;  %v10534_v20 = vld [vmem:[%s11069_s6 + $0x1a04] ss:$16 sps:$4 sm:$0xff]  }
 0x354   : > { %7155 = vmatprep.mubr.bf16.mxu0 %v12002_v22  ;;  %7811 = vmatprep.mubr.bf16.mxu1 %v12002_v22 }
 0x356   : > { %7126 = vmatpush1.bf16.msra.mxu0 %v10442_v62  ;;  %7782 = vmatpush1.bf16.msra.mxu1 %v10445_v23  ;;  %v10537_v62 = vld [vmem:[%s11069_s6 + $0x1a0c] ss:$16 sps:$4 sm:$0xff]   ;;  %v12068_v23 = vrot.slane %v11987_v11, %v11128_v49  ;;  %v10538_v11 = vld [vmem:[%s11069_s6 + $0x1a20] ss:$16 sps:$4 sm:$0xff]  }
 0x357   : > { %7127 = vmatprep.subr.bf16.mxu0 %v10450_v24  ;;  %7783 = vmatprep.subr.bf16.mxu1 %v10453_v26  ;;  %v10532_v24 = vld [vmem:[%s11069_s6 + $0x1a00] ss:$16 sps:$4 sm:$0xff]   ;;  %v10535_v26 = vld [vmem:[%s11069_s6 + $0x1a08] ss:$16 sps:$4 sm:$0xff]  }
 0x35a   : > { %7128 = vmatpush1.bf16.msra.mxu0 %v10448_v27  ;;  %7784 = vmatpush1.bf16.msra.mxu1 %v10451_v28  ;;  %v10540_v27 = vld [vmem:[%s11069_s6 + $0x1a24] ss:$16 sps:$4 sm:$0xff]   ;;  %v10543_v28 = vld [vmem:[%s11069_s6 + $0x1a2c] ss:$16 sps:$4 sm:$0xff]  }
 0x35b   : > { %7129 = vmatprep.subr.bf16.mxu0 %v10456_v29  ;;  %7785 = vmatprep.subr.bf16.mxu1 %v10459_v30  ;;  %v1477_v29 = vcombine.high %v12002_v22, %v12002_v22  ;;  %v10541_v30 = vld [vmem:[%s11069_s6 + $0x1a28] ss:$16 sps:$4 sm:$0xff]   ;;  %v10544_v22 = vld [vmem:[%s11069_s6 + $0x1a40] ss:$16 sps:$4 sm:$0xff]  }
 0x35e   : > { %7130 = vmatpush1.bf16.msra.mxu0 %v10454_v15  ;;  %7786 = vmatpush1.bf16.msra.mxu1 %v10457_v31  ;;  %v10546_v15 = vld [vmem:[%s11069_s6 + $0x1a44] ss:$16 sps:$4 sm:$0xff]   ;;  %v10549_v31 = vld [vmem:[%s11069_s6 + $0x1a4c] ss:$16 sps:$4 sm:$0xff]  }
 0x35f   : > { %7131 = vmatprep.subr.bf16.mxu0 %v10462_v32  ;;  %7787 = vmatprep.subr.bf16.mxu1 %v10465_v33  ;;  %v10547_v32 = vld [vmem:[%s11069_s6 + $0x1a48] ss:$16 sps:$4 sm:$0xff]   ;;  %v10552_v33 = vld [vmem:[%s11069_s6 + $0x1a64] ss:$16 sps:$4 sm:$0xff]  }
 0x362   : > { %7132 = vmatpush1.bf16.msra.mxu0 %v10460_v25  ;;  %7788 = vmatpush1.bf16.msra.mxu1 %v10463_v34  ;;  %v10555_v25 = vld [vmem:[%s11069_s6 + $0x1a6c] ss:$16 sps:$4 sm:$0xff]   ;;  %v10550_v34 = vld [vmem:[%s11069_s6 + $0x1a60] ss:$16 sps:$4 sm:$0xff]  }
 0x363   : > { %7133 = vmatprep.subr.bf16.mxu0 %v10468_v36  ;;  %7789 = vmatprep.subr.bf16.mxu1 %v10471_v37  ;;  %v10553_v36 = vld [vmem:[%s11069_s6 + $0x1a68] ss:$16 sps:$4 sm:$0xff]   ;;  %v10558_v37 = vld [vmem:[%s11069_s6 + $0x1a84] ss:$16 sps:$4 sm:$0xff]  }
 0x366   : > { %7134 = vmatpush1.bf16.msra.mxu0 %v10466_v39  ;;  %7790 = vmatpush1.bf16.msra.mxu1 %v10469_v40  ;;  %v10561_v39 = vld [vmem:[%s11069_s6 + $0x1a8c] ss:$16 sps:$4 sm:$0xff]   ;;  %v10556_v40 = vld [vmem:[%s11069_s6 + $0x1a80] ss:$16 sps:$4 sm:$0xff]  }
 0x367   : > { %7135 = vmatprep.subr.bf16.mxu0 %v10474_v21  ;;  %7791 = vmatprep.subr.bf16.mxu1 %v10477_v41  ;;  %v10559_v21 = vld [vmem:[%s11069_s6 + $0x1a88] ss:$16 sps:$4 sm:$0xff]   ;;  %v10564_v41 = vld [vmem:[%s11069_s6 + $0x1aa4] ss:$16 sps:$4 sm:$0xff]  }
 0x36a   : > { %7136 = vmatpush1.bf16.msra.mxu0 %v10472_v43  ;;  %7792 = vmatpush1.bf16.msra.mxu1 %v10475_v44  ;;  %v10567_v43 = vld [vmem:[%s11069_s6 + $0x1aac] ss:$16 sps:$4 sm:$0xff]   ;;  %v10562_v44 = vld [vmem:[%s11069_s6 + $0x1aa0] ss:$16 sps:$4 sm:$0xff]  }
 0x36b   : > { %7137 = vmatprep.subr.bf16.mxu0 %v10480_v45  ;;  %7793 = vmatprep.subr.bf16.mxu1 %v10483_v46  ;;  %v10565_v45 = vld [vmem:[%s11069_s6 + $0x1aa8] ss:$16 sps:$4 sm:$0xff]   ;;  %v10570_v46 = vld [vmem:[%s11069_s6 + $0x1ac4] ss:$16 sps:$4 sm:$0xff]  }
 0x36e   : > { %7138 = vmatpush1.bf16.msra.mxu0 %v10478_v47  ;;  %7794 = vmatpush1.bf16.msra.mxu1 %v10481_v50  ;;  %v10573_v47 = vld [vmem:[%s11069_s6 + $0x1acc] ss:$16 sps:$4 sm:$0xff]   ;;  %v10568_v50 = vld [vmem:[%s11069_s6 + $0x1ac0] ss:$16 sps:$4 sm:$0xff]  }
 0x36f   : > { %7139 = vmatprep.subr.bf16.mxu0 %v10486_v53  ;;  %7795 = vmatprep.subr.bf16.mxu1 %v10489_v54  ;;  %v10571_v53 = vld [vmem:[%s11069_s6 + $0x1ac8] ss:$16 sps:$4 sm:$0xff]   ;;  %v10576_v54 = vld [vmem:[%s11069_s6 + $0x1ae4] ss:$16 sps:$4 sm:$0xff]  }
 0x372   : > { %7140 = vmatpush1.bf16.msra.mxu0 %v10484_v55  ;;  %7796 = vmatpush1.bf16.msra.mxu1 %v10487_v38  ;;  %v10579_v55 = vld [vmem:[%s11069_s6 + $0x1aec] ss:$16 sps:$4 sm:$0xff]   ;;  %v10574_v38 = vld [vmem:[%s11069_s6 + $0x1ae0] ss:$16 sps:$4 sm:$0xff]  }
 0x373   : > { %7141 = vmatprep.subr.bf16.mxu0 %v10492_v56  ;;  %7797 = vmatprep.subr.bf16.mxu1 %v10495_v57  ;;  %v10577_v56 = vld [vmem:[%s11069_s6 + $0x1ae8] ss:$16 sps:$4 sm:$0xff]   ;;  %v10582_v57 = vld [vmem:[%s11069_s6 + $0x1b04] ss:$16 sps:$4 sm:$0xff]  }
 0x376   : > { %7142 = vmatpush1.bf16.msra.mxu0 %v10490_v58  ;;  %7798 = vmatpush1.bf16.msra.mxu1 %v10493_v48  ;;  %v10585_v58 = vld [vmem:[%s11069_s6 + $0x1b0c] ss:$16 sps:$4 sm:$0xff]   ;;  %v10580_v48 = vld [vmem:[%s11069_s6 + $0x1b00] ss:$16 sps:$4 sm:$0xff]  }
 0x377   : > { %7143 = vmatprep.subr.bf16.mxu0 %v10498_v59  ;;  %7799 = vmatprep.subr.bf16.mxu1 %v10501_v60  ;;  %v10583_v59 = vld [vmem:[%s11069_s6 + $0x1b08] ss:$16 sps:$4 sm:$0xff]   ;;  %v10588_v60 = vld [vmem:[%s11069_s6 + $0x1b24] ss:$16 sps:$4 sm:$0xff]  }
 0x37a   : > { %7144 = vmatpush1.bf16.msra.mxu0 %v10496_v13  ;;  %7800 = vmatpush1.bf16.msra.mxu1 %v10499_v63  ;;  %v10591_v13 = vld [vmem:[%s11069_s6 + $0x1b2c] ss:$16 sps:$4 sm:$0xff]   ;;  %v10586_v63 = vld [vmem:[%s11069_s6 + $0x1b20] ss:$16 sps:$4 sm:$0xff]  }
 0x37b   : > { %7145 = vmatprep.subr.bf16.mxu0 %v10504_v0  ;;  %7801 = vmatprep.subr.bf16.mxu1 %v10507_v35  ;;  %v10589_v0 = vld [vmem:[%s11069_s6 + $0x1b28] ss:$16 sps:$4 sm:$0xff]   ;;  %v10594_v35 = vld [vmem:[%s11069_s6 + $0x1b44] ss:$16 sps:$4 sm:$0xff]  }
 0x37e   : > { %7146 = vmatpush1.bf16.msra.mxu0 %v10502_v2  ;;  %7802 = vmatpush1.bf16.msra.mxu1 %v10505_v3  ;;  %v10597_v2 = vld [vmem:[%s11069_s6 + $0x1b4c] ss:$16 sps:$4 sm:$0xff]   ;;  %v10592_v3 = vld [vmem:[%s11069_s6 + $0x1b40] ss:$16 sps:$4 sm:$0xff]  }
 0x37f   : > { %7147 = vmatprep.subr.bf16.mxu0 %v10510_v51  ;;  %7803 = vmatprep.subr.bf16.mxu1 %v10513_v4  ;;  %v10595_v51 = vld [vmem:[%s11069_s6 + $0x1b48] ss:$16 sps:$4 sm:$0xff]   ;;  %v10600_v4 = vld [vmem:[%s11069_s6 + $0x1b64] ss:$16 sps:$4 sm:$0xff]  }
 0x382   : > { %7148 = vmatpush1.bf16.msra.mxu0 %v10508_v5  ;;  %7804 = vmatpush1.bf16.msra.mxu1 %v10511_v61  ;;  %v10603_v5 = vld [vmem:[%s11069_s6 + $0x1b6c] ss:$16 sps:$4 sm:$0xff]   ;;  %v10598_v61 = vld [vmem:[%s11069_s6 + $0x1b60] ss:$16 sps:$4 sm:$0xff]  }
 0x383   : > { %7149 = vmatprep.subr.bf16.mxu0 %v10516_v7  ;;  %7805 = vmatprep.subr.bf16.mxu1 %v10519_v8  ;;  %v10601_v7 = vld [vmem:[%s11069_s6 + $0x1b68] ss:$16 sps:$4 sm:$0xff]   ;;  %v10606_v8 = vld [vmem:[%s11069_s6 + $0x1b84] ss:$16 sps:$4 sm:$0xff]  }
 0x386   : > { %7150 = vmatpush1.bf16.msra.mxu0 %v10514_v10  ;;  %7806 = vmatpush1.bf16.msra.mxu1 %v10517_v12  ;;  %v10609_v10 = vld [vmem:[%s11069_s6 + $0x1b8c] ss:$16 sps:$4 sm:$0xff]   ;;  %v10604_v12 = vld [vmem:[%s11069_s6 + $0x1b80] ss:$16 sps:$4 sm:$0xff]  }
 0x387   : > { %7151 = vmatprep.subr.bf16.mxu0 %v10522_v14  ;;  %7807 = vmatprep.subr.bf16.mxu1 %v10525_v16  ;;  %v10607_v14 = vld [vmem:[%s11069_s6 + $0x1b88] ss:$16 sps:$4 sm:$0xff]   ;;  %v10612_v16 = vld [vmem:[%s11069_s6 + $0x1ba4] ss:$16 sps:$4 sm:$0xff]  }
 0x38a   : > { %7152 = vmatpush1.bf16.msra.mxu0 %v10520_v1  ;;  %7808 = vmatpush1.bf16.msra.mxu1 %v10523_v52  ;;  %v10615_v1 = vld [vmem:[%s11069_s6 + $0x1bac] ss:$16 sps:$4 sm:$0xff]   ;;  %v10610_v52 = vld [vmem:[%s11069_s6 + $0x1ba0] ss:$16 sps:$4 sm:$0xff]  }
 0x38b   : > { %7153 = vmatprep.subr.bf16.mxu0 %v10528_v17  ;;  %7809 = vmatprep.subr.bf16.mxu1 %v10531_v18  ;;  %v10613_v17 = vld [vmem:[%s11069_s6 + $0x1ba8] ss:$16 sps:$4 sm:$0xff]   ;;  %v10618_v18 = vld [vmem:[%s11069_s6 + $0x1bc4] ss:$16 sps:$4 sm:$0xff]  }
 0x38e   : > { %7154 = vmatpush1.bf16.msra.mxu0 %v10526_v9  ;;  %7810 = vmatpush1.bf16.msra.mxu1 %v10529_v19  ;;  %v10621_v9 = vld [vmem:[%s11069_s6 + $0x1bcc] ss:$16 sps:$4 sm:$0xff]   ;;  %v1430_v19 = vcombine.high %v11979_v6, %v11979_v6  ;;  %v10622_v6 = vld [vmem:[%s11069_s6 + $0x1be0] ss:$16 sps:$4 sm:$0xff]  }
 0x38f   : > { %7164 = vmatprep.subr.bf16.mxu0 %v10534_v20  ;;  %7820 = vmatprep.subr.bf16.mxu1 %v10537_v62  ;;  %v10616_v20 = vld [vmem:[%s11069_s6 + $0x1bc0] ss:$16 sps:$4 sm:$0xff]   ;;  %v10619_v62 = vld [vmem:[%s11069_s6 + $0x1bc8] ss:$16 sps:$4 sm:$0xff]  }
 0x391   : > { %7156 = vmatmul.mubr.bf16.vlgmr.msra.gmra.mrb[0].mxu0 %v12068_v23  ;;  %7812 = vmatmul.mubr.bf16.vlgmr.msra.gmra.mrb[0].mxu1 %v12068_v23 }
 0x392   : > { %7165 = vmatpush1.bf16.msra.mxu0 %v10532_v24  ;;  %7821 = vmatpush1.bf16.msra.mxu1 %v10535_v26  ;;  %v10624_v24 = vld [vmem:[%s11069_s6 + $0x1be4] ss:$16 sps:$4 sm:$0xff]   ;;  %v10627_v26 = vld [vmem:[%s11069_s6 + $0x1bec] ss:$16 sps:$4 sm:$0xff]  }
 0x393   : > { %7166 = vmatprep.subr.bf16.mxu0 %v10540_v27  ;;  %7822 = vmatprep.subr.bf16.mxu1 %v10543_v28  ;;  %v12137_v27 = vrot.slane %v1430_v19, %v11128_v49  ;;  %v10625_v28 = vld [vmem:[%s11069_s6 + $0x1be8] ss:$16 sps:$4 sm:$0xff]  }
 0x394   : > { %7196 = vmatprep.mubr.bf16.mxu0 %v1477_v29  ;;  %7852 = vmatprep.mubr.bf16.mxu1 %v1477_v29  ;;  %v10630_v29 = vld [vmem:[%s11069_s6 + $0x1c04] ss:$16 sps:$4 sm:$0xff]   ;;  %v10703_v19 = vld [vmem:[%s11069_s6 + $0x1d88] ss:$16 sps:$4 sm:$0xff]  }
 0x396   : > { %7167 = vmatpush1.bf16.msra.mxu0 %v10538_v11  ;;  %7823 = vmatpush1.bf16.msra.mxu1 %v10541_v30  ;;  %v10633_v11 = vld [vmem:[%s11069_s6 + $0x1c0c] ss:$16 sps:$4 sm:$0xff]   ;;  %v1446_v30 = vcombine.high %v12137_v27, %v12137_v27 }
 0x397   : > { %7168 = vmatprep.subr.bf16.mxu0 %v10546_v15  ;;  %7824 = vmatprep.subr.bf16.mxu1 %v10549_v31  ;;  %v1475_v15 = vcombine.high %v12068_v23, %v12068_v23  ;;  %v10628_v31 = vld [vmem:[%s11069_s6 + $0x1c00] ss:$16 sps:$4 sm:$0xff]  }
 0x398   : > { %v10634_v23 = vld [vmem:[%s11069_s6 + $0x1c20] ss:$16 sps:$4 sm:$0xff]  }
 0x39a   : > { %7169 = vmatpush1.bf16.msra.mxu0 %v10544_v22  ;;  %7825 = vmatpush1.bf16.msra.mxu1 %v10547_v32  ;;  %v10631_v22 = vld [vmem:[%s11069_s6 + $0x1c08] ss:$16 sps:$4 sm:$0xff]   ;;  %v10636_v32 = vld [vmem:[%s11069_s6 + $0x1c24] ss:$16 sps:$4 sm:$0xff]  }
 0x39b   : > { %7170 = vmatprep.subr.bf16.mxu0 %v10552_v33  ;;  %7826 = vmatprep.subr.bf16.mxu1 %v10555_v25  ;;  %v10639_v33 = vld [vmem:[%s11069_s6 + $0x1c2c] ss:$16 sps:$4 sm:$0xff]   ;;  %v12152_v25 = vrot.slane %v1446_v30, %v11128_v49  ;;  %v10720_v30 = vld [vmem:[%s11069_s6 + $0x1de4] ss:$16 sps:$4 sm:$0xff]  }
 0x39e   : > { %7171 = vmatpush1.bf16.msra.mxu0 %v10550_v34  ;;  %7827 = vmatpush1.bf16.msra.mxu1 %v10553_v36  ;;  %v10637_v34 = vld [vmem:[%s11069_s6 + $0x1c28] ss:$16 sps:$4 sm:$0xff]   ;;  %v10642_v36 = vld [vmem:[%s11069_s6 + $0x1c44] ss:$16 sps:$4 sm:$0xff]  }
 0x39f   : > { %7172 = vmatprep.subr.bf16.mxu0 %v10558_v37  ;;  %7828 = vmatprep.subr.bf16.mxu1 %v10561_v39  ;;  %v10645_v37 = vld [vmem:[%s11069_s6 + $0x1c4c] ss:$16 sps:$4 sm:$0xff]   ;;  %v10640_v39 = vld [vmem:[%s11069_s6 + $0x1c40] ss:$16 sps:$4 sm:$0xff]  }
 0x3a2   : > { %7173 = vmatpush1.bf16.msra.mxu0 %v10556_v40  ;;  %7829 = vmatpush1.bf16.msra.mxu1 %v10559_v21  ;;  %v10643_v40 = vld [vmem:[%s11069_s6 + $0x1c48] ss:$16 sps:$4 sm:$0xff]   ;;  %v10648_v21 = vld [vmem:[%s11069_s6 + $0x1c64] ss:$16 sps:$4 sm:$0xff]  }
 0x3a3   : > { %7174 = vmatprep.subr.bf16.mxu0 %v10564_v41  ;;  %7830 = vmatprep.subr.bf16.mxu1 %v10567_v43  ;;  %v10651_v41 = vld [vmem:[%s11069_s6 + $0x1c6c] ss:$16 sps:$4 sm:$0xff]   ;;  %v10646_v43 = vld [vmem:[%s11069_s6 + $0x1c60] ss:$16 sps:$4 sm:$0xff]  }
 0x3a6   : > { %7175 = vmatpush1.bf16.msra.mxu0 %v10562_v44  ;;  %7831 = vmatpush1.bf16.msra.mxu1 %v10565_v45  ;;  %v10649_v44 = vld [vmem:[%s11069_s6 + $0x1c68] ss:$16 sps:$4 sm:$0xff]   ;;  %v10654_v45 = vld [vmem:[%s11069_s6 + $0x1c84] ss:$16 sps:$4 sm:$0xff]  }
 0x3a7   : > { %7176 = vmatprep.subr.bf16.mxu0 %v10570_v46  ;;  %7832 = vmatprep.subr.bf16.mxu1 %v10573_v47  ;;  %v10657_v46 = vld [vmem:[%s11069_s6 + $0x1c8c] ss:$16 sps:$4 sm:$0xff]   ;;  %v10652_v47 = vld [vmem:[%s11069_s6 + $0x1c80] ss:$16 sps:$4 sm:$0xff]  }
 0x3aa   : > { %7177 = vmatpush1.bf16.msra.mxu0 %v10568_v50  ;;  %7833 = vmatpush1.bf16.msra.mxu1 %v10571_v53  ;;  %v10655_v50 = vld [vmem:[%s11069_s6 + $0x1c88] ss:$16 sps:$4 sm:$0xff]   ;;  %v10660_v53 = vld [vmem:[%s11069_s6 + $0x1ca4] ss:$16 sps:$4 sm:$0xff]  }
 0x3ab   : > { %7178 = vmatprep.subr.bf16.mxu0 %v10576_v54  ;;  %7834 = vmatprep.subr.bf16.mxu1 %v10579_v55  ;;  %v10663_v54 = vld [vmem:[%s11069_s6 + $0x1cac] ss:$16 sps:$4 sm:$0xff]   ;;  %v10658_v55 = vld [vmem:[%s11069_s6 + $0x1ca0] ss:$16 sps:$4 sm:$0xff]  }
 0x3ae   : > { %7179 = vmatpush1.bf16.msra.mxu0 %v10574_v38  ;;  %7835 = vmatpush1.bf16.msra.mxu1 %v10577_v56  ;;  %v10661_v38 = vld [vmem:[%s11069_s6 + $0x1ca8] ss:$16 sps:$4 sm:$0xff]   ;;  %v10666_v56 = vld [vmem:[%s11069_s6 + $0x1cc4] ss:$16 sps:$4 sm:$0xff]  }
 0x3af   : > { %7180 = vmatprep.subr.bf16.mxu0 %v10582_v57  ;;  %7836 = vmatprep.subr.bf16.mxu1 %v10585_v58  ;;  %v10669_v57 = vld [vmem:[%s11069_s6 + $0x1ccc] ss:$16 sps:$4 sm:$0xff]   ;;  %v10664_v58 = vld [vmem:[%s11069_s6 + $0x1cc0] ss:$16 sps:$4 sm:$0xff]  }
 0x3b2   : > { %7181 = vmatpush1.bf16.msra.mxu0 %v10580_v48  ;;  %7837 = vmatpush1.bf16.msra.mxu1 %v10583_v59  ;;  %v10667_v48 = vld [vmem:[%s11069_s6 + $0x1cc8] ss:$16 sps:$4 sm:$0xff]   ;;  %v10672_v59 = vld [vmem:[%s11069_s6 + $0x1ce4] ss:$16 sps:$4 sm:$0xff]  }
 0x3b3   : > { %7182 = vmatprep.subr.bf16.mxu0 %v10588_v60  ;;  %7838 = vmatprep.subr.bf16.mxu1 %v10591_v13  ;;  %v10675_v60 = vld [vmem:[%s11069_s6 + $0x1cec] ss:$16 sps:$4 sm:$0xff]   ;;  %v10670_v13 = vld [vmem:[%s11069_s6 + $0x1ce0] ss:$16 sps:$4 sm:$0xff]  }
 0x3b6   : > { %7183 = vmatpush1.bf16.msra.mxu0 %v10586_v63  ;;  %7839 = vmatpush1.bf16.msra.mxu1 %v10589_v0  ;;  %v10673_v63 = vld [vmem:[%s11069_s6 + $0x1ce8] ss:$16 sps:$4 sm:$0xff]   ;;  %v10678_v0 = vld [vmem:[%s11069_s6 + $0x1d04] ss:$16 sps:$4 sm:$0xff]  }
 0x3b7   : > { %7184 = vmatprep.subr.bf16.mxu0 %v10594_v35  ;;  %7840 = vmatprep.subr.bf16.mxu1 %v10597_v2  ;;  %v10681_v35 = vld [vmem:[%s11069_s6 + $0x1d0c] ss:$16 sps:$4 sm:$0xff]   ;;  %v10676_v2 = vld [vmem:[%s11069_s6 + $0x1d00] ss:$16 sps:$4 sm:$0xff]  }
 0x3ba   : > { %7185 = vmatpush1.bf16.msra.mxu0 %v10592_v3  ;;  %7841 = vmatpush1.bf16.msra.mxu1 %v10595_v51  ;;  %v10679_v3 = vld [vmem:[%s11069_s6 + $0x1d08] ss:$16 sps:$4 sm:$0xff]   ;;  %v10684_v51 = vld [vmem:[%s11069_s6 + $0x1d24] ss:$16 sps:$4 sm:$0xff]  }
 0x3bb   : > { %7186 = vmatprep.subr.bf16.mxu0 %v10600_v4  ;;  %7842 = vmatprep.subr.bf16.mxu1 %v10603_v5  ;;  %v10687_v4 = vld [vmem:[%s11069_s6 + $0x1d2c] ss:$16 sps:$4 sm:$0xff]   ;;  %v10682_v5 = vld [vmem:[%s11069_s6 + $0x1d20] ss:$16 sps:$4 sm:$0xff]  }
 0x3be   : > { %7187 = vmatpush1.bf16.msra.mxu0 %v10598_v61  ;;  %7843 = vmatpush1.bf16.msra.mxu1 %v10601_v7  ;;  %v10685_v61 = vld [vmem:[%s11069_s6 + $0x1d28] ss:$16 sps:$4 sm:$0xff]   ;;  %v10690_v7 = vld [vmem:[%s11069_s6 + $0x1d44] ss:$16 sps:$4 sm:$0xff]  }
 0x3bf   : > { %7188 = vmatprep.subr.bf16.mxu0 %v10606_v8  ;;  %7844 = vmatprep.subr.bf16.mxu1 %v10609_v10  ;;  %v10693_v8 = vld [vmem:[%s11069_s6 + $0x1d4c] ss:$16 sps:$4 sm:$0xff]   ;;  %v10688_v10 = vld [vmem:[%s11069_s6 + $0x1d40] ss:$16 sps:$4 sm:$0xff]  }
 0x3c2   : > { %7189 = vmatpush1.bf16.msra.mxu0 %v10604_v12  ;;  %7845 = vmatpush1.bf16.msra.mxu1 %v10607_v14  ;;  %v10691_v12 = vld [vmem:[%s11069_s6 + $0x1d48] ss:$16 sps:$4 sm:$0xff]   ;;  %v10696_v14 = vld [vmem:[%s11069_s6 + $0x1d64] ss:$16 sps:$4 sm:$0xff]  }
 0x3c3   : > { %7190 = vmatprep.subr.bf16.mxu0 %v10612_v16  ;;  %7846 = vmatprep.subr.bf16.mxu1 %v10615_v1  ;;  %v10699_v16 = vld [vmem:[%s11069_s6 + $0x1d6c] ss:$16 sps:$4 sm:$0xff]   ;;  %v10694_v1 = vld [vmem:[%s11069_s6 + $0x1d60] ss:$16 sps:$4 sm:$0xff]  }
 0x3c6   : > { %7191 = vmatpush1.bf16.msra.mxu0 %v10610_v52  ;;  %7847 = vmatpush1.bf16.msra.mxu1 %v10613_v17  ;;  %v10697_v52 = vld [vmem:[%s11069_s6 + $0x1d68] ss:$16 sps:$4 sm:$0xff]   ;;  %v10702_v17 = vld [vmem:[%s11069_s6 + $0x1d84] ss:$16 sps:$4 sm:$0xff]  }
 0x3c7   : > { %7192 = vmatprep.subr.bf16.mxu0 %v10618_v18  ;;  %7848 = vmatprep.subr.bf16.mxu1 %v10621_v9  ;;  %v10705_v18 = vld [vmem:[%s11069_s6 + $0x1d8c] ss:$16 sps:$4 sm:$0xff]   ;;  %v10700_v9 = vld [vmem:[%s11069_s6 + $0x1d80] ss:$16 sps:$4 sm:$0xff]  }
 0x3ca   : > { %7193 = vmatpush1.bf16.msra.mxu0 %v10616_v20  ;;  %7849 = vmatpush1.bf16.msra.mxu1 %v10619_v62  ;;  %v10708_v20 = vld [vmem:[%s11069_s6 + $0x1da4] ss:$16 sps:$4 sm:$0xff]   ;;  %v10711_v62 = vld [vmem:[%s11069_s6 + $0x1dac] ss:$16 sps:$4 sm:$0xff]  }
 0x3cb   : > { %7194 = vmatprep.subr.bf16.mxu0 %v10624_v24  ;;  %7850 = vmatprep.subr.bf16.mxu1 %v10627_v26  ;;  %v10706_v24 = vld [vmem:[%s11069_s6 + $0x1da0] ss:$16 sps:$4 sm:$0xff]   ;;  %v10709_v26 = vld [vmem:[%s11069_s6 + $0x1da8] ss:$16 sps:$4 sm:$0xff]  }
 0x3ce   : > { %7195 = vmatpush1.bf16.msra.mxu0 %v10622_v6  ;;  %7851 = vmatpush1.bf16.msra.mxu1 %v10625_v28  ;;  %v10714_v6 = vld [vmem:[%s11069_s6 + $0x1dc4] ss:$16 sps:$4 sm:$0xff]   ;;  %v10717_v28 = vld [vmem:[%s11069_s6 + $0x1dcc] ss:$16 sps:$4 sm:$0xff]  }
 0x3cf   : > { %7205 = vmatprep.subr.bf16.mxu0 %v10630_v29  ;;  %7861 = vmatprep.subr.bf16.mxu1 %v10633_v11  ;;  %v10712_v29 = vld [vmem:[%s11069_s6 + $0x1dc0] ss:$16 sps:$4 sm:$0xff]   ;;  %v10715_v11 = vld [vmem:[%s11069_s6 + $0x1dc8] ss:$16 sps:$4 sm:$0xff]  }
 0x3d1   : > { %7197 = vmatmul.mubr.bf16.vlgmr.msra.gmra.mrb[0].mxu0 %v1475_v15  ;;  %7853 = vmatmul.mubr.bf16.vlgmr.msra.gmra.mrb[0].mxu1 %v1475_v15  ;;  %v10723_v15 = vld [vmem:[%s11069_s6 + $0x1dec] ss:$16 sps:$4 sm:$0xff]  }
 0x3d2   : > { %7206 = vmatpush1.bf16.msra.mxu0 %v10628_v31  ;;  %7862 = vmatpush1.bf16.msra.mxu1 %v10631_v22  ;;  %v10718_v31 = vld [vmem:[%s11069_s6 + $0x1de0] ss:$16 sps:$4 sm:$0xff]   ;;  %v10721_v22 = vld [vmem:[%s11069_s6 + $0x1de8] ss:$16 sps:$4 sm:$0xff]  }
 0x3d3   : > { %7207 = vmatprep.subr.bf16.mxu0 %v10636_v32  ;;  %7863 = vmatprep.subr.bf16.mxu1 %v10639_v33  ;;  %v10727_v32 = vld [vmem:[%s11069_s6 + $0x1e04] ss:$16 sps:$4 sm:$0xff]   ;;  %v10730_v33 = vld [vmem:[%s11069_s6 + $0x1e0c] ss:$16 sps:$4 sm:$0xff]  }
 0x3d4   : > { %7237 = vmatprep.mubr.bf16.mxu0 %v12152_v25  ;;  %7893 = vmatprep.mubr.bf16.mxu1 %v12152_v25 }
 0x3d6   : > { %7208 = vmatpush1.bf16.msra.mxu0 %v10634_v23  ;;  %7864 = vmatpush1.bf16.msra.mxu1 %v10637_v34  ;;  %v12218_v23 = vrot.slane %v12137_v27, %v11128_v49  ;;  %v10725_v34 = vld [vmem:[%s11069_s6 + $0x1e00] ss:$16 sps:$4 sm:$0xff]  }
 0x3d7   : > { %7209 = vmatprep.subr.bf16.mxu0 %v10642_v36  ;;  %7865 = vmatprep.subr.bf16.mxu1 %v10645_v37  ;;  %v10728_v36 = vld [vmem:[%s11069_s6 + $0x1e08] ss:$16 sps:$4 sm:$0xff]   ;;  %v10733_v37 = vld [vmem:[%s11069_s6 + $0x1e24] ss:$16 sps:$4 sm:$0xff]   ;;  %v10731_v27 = vld [vmem:[%s11069_s6 + $0x1e20] ss:$16 sps:$4 sm:$0xff]  }
 0x3da   : > { %7210 = vmatpush1.bf16.msra.mxu0 %v10640_v39  ;;  %7866 = vmatpush1.bf16.msra.mxu1 %v10643_v40  ;;  %v10736_v39 = vld [vmem:[%s11069_s6 + $0x1e2c] ss:$16 sps:$4 sm:$0xff]   ;;  %v1478_v40 = vcombine.high %v12152_v25, %v12152_v25  ;;  %v10737_v25 = vld [vmem:[%s11069_s6 + $0x1e40] ss:$16 sps:$4 sm:$0xff]  }
 0x3db   : > { %7211 = vmatprep.subr.bf16.mxu0 %v10648_v21  ;;  %7867 = vmatprep.subr.bf16.mxu1 %v10651_v41  ;;  %v10734_v21 = vld [vmem:[%s11069_s6 + $0x1e28] ss:$16 sps:$4 sm:$0xff]   ;;  %v10739_v41 = vld [vmem:[%s11069_s6 + $0x1e44] ss:$16 sps:$4 sm:$0xff]  }
 0x3de   : > { %7212 = vmatpush1.bf16.msra.mxu0 %v10646_v43  ;;  %7868 = vmatpush1.bf16.msra.mxu1 %v10649_v44  ;;  %v10742_v43 = vld [vmem:[%s11069_s6 + $0x1e4c] ss:$16 sps:$4 sm:$0xff]   ;;  %v10740_v44 = vld [vmem:[%s11069_s6 + $0x1e48] ss:$16 sps:$4 sm:$0xff]  }
 0x3df   : > { %7213 = vmatprep.subr.bf16.mxu0 %v10654_v45  ;;  %7869 = vmatprep.subr.bf16.mxu1 %v10657_v46  ;;  %v10745_v45 = vld [vmem:[%s11069_s6 + $0x1e64] ss:$16 sps:$4 sm:$0xff]   ;;  %v10748_v46 = vld [vmem:[%s11069_s6 + $0x1e6c] ss:$16 sps:$4 sm:$0xff]  }
 0x3e2   : > { %7214 = vmatpush1.bf16.msra.mxu0 %v10652_v47  ;;  %7870 = vmatpush1.bf16.msra.mxu1 %v10655_v50  ;;  %v10743_v47 = vld [vmem:[%s11069_s6 + $0x1e60] ss:$16 sps:$4 sm:$0xff]   ;;  %v10746_v50 = vld [vmem:[%s11069_s6 + $0x1e68] ss:$16 sps:$4 sm:$0xff]  }
 0x3e3   : > { %7215 = vmatprep.subr.bf16.mxu0 %v10660_v53  ;;  %7871 = vmatprep.subr.bf16.mxu1 %v10663_v54  ;;  %v10751_v53 = vld [vmem:[%s11069_s6 + $0x1e84] ss:$16 sps:$4 sm:$0xff]   ;;  %v10754_v54 = vld [vmem:[%s11069_s6 + $0x1e8c] ss:$16 sps:$4 sm:$0xff]  }
 0x3e6   : > { %7216 = vmatpush1.bf16.msra.mxu0 %v10658_v55  ;;  %7872 = vmatpush1.bf16.msra.mxu1 %v10661_v38  ;;  %v10749_v55 = vld [vmem:[%s11069_s6 + $0x1e80] ss:$16 sps:$4 sm:$0xff]   ;;  %v10752_v38 = vld [vmem:[%s11069_s6 + $0x1e88] ss:$16 sps:$4 sm:$0xff]  }
 0x3e7   : > { %7217 = vmatprep.subr.bf16.mxu0 %v10666_v56  ;;  %7873 = vmatprep.subr.bf16.mxu1 %v10669_v57  ;;  %v10757_v56 = vld [vmem:[%s11069_s6 + $0x1ea4] ss:$16 sps:$4 sm:$0xff]   ;;  %v10760_v57 = vld [vmem:[%s11069_s6 + $0x1eac] ss:$16 sps:$4 sm:$0xff]  }
 0x3ea   : > { %7218 = vmatpush1.bf16.msra.mxu0 %v10664_v58  ;;  %7874 = vmatpush1.bf16.msra.mxu1 %v10667_v48  ;;  %v10755_v58 = vld [vmem:[%s11069_s6 + $0x1ea0] ss:$16 sps:$4 sm:$0xff]   ;;  %v10758_v48 = vld [vmem:[%s11069_s6 + $0x1ea8] ss:$16 sps:$4 sm:$0xff]  }
 0x3eb   : > { %7219 = vmatprep.subr.bf16.mxu0 %v10672_v59  ;;  %7875 = vmatprep.subr.bf16.mxu1 %v10675_v60  ;;  %v10763_v59 = vld [vmem:[%s11069_s6 + $0x1ec4] ss:$16 sps:$4 sm:$0xff]   ;;  %v10766_v60 = vld [vmem:[%s11069_s6 + $0x1ecc] ss:$16 sps:$4 sm:$0xff]  }
 0x3ee   : > { %7220 = vmatpush1.bf16.msra.mxu0 %v10670_v13  ;;  %7876 = vmatpush1.bf16.msra.mxu1 %v10673_v63  ;;  %v10761_v13 = vld [vmem:[%s11069_s6 + $0x1ec0] ss:$16 sps:$4 sm:$0xff]   ;;  %v10764_v63 = vld [vmem:[%s11069_s6 + $0x1ec8] ss:$16 sps:$4 sm:$0xff]  }
 0x3ef   : > { %7221 = vmatprep.subr.bf16.mxu0 %v10678_v0  ;;  %7877 = vmatprep.subr.bf16.mxu1 %v10681_v35  ;;  %v10769_v0 = vld [vmem:[%s11069_s6 + $0x1ee4] ss:$16 sps:$4 sm:$0xff]   ;;  %v10772_v35 = vld [vmem:[%s11069_s6 + $0x1eec] ss:$16 sps:$4 sm:$0xff]  }
 0x3f2   : > { %7222 = vmatpush1.bf16.msra.mxu0 %v10676_v2  ;;  %7878 = vmatpush1.bf16.msra.mxu1 %v10679_v3  ;;  %v10767_v2 = vld [vmem:[%s11069_s6 + $0x1ee0] ss:$16 sps:$4 sm:$0xff]   ;;  %v10770_v3 = vld [vmem:[%s11069_s6 + $0x1ee8] ss:$16 sps:$4 sm:$0xff]  }
 0x3f3   : > { %7223 = vmatprep.subr.bf16.mxu0 %v10684_v51  ;;  %7879 = vmatprep.subr.bf16.mxu1 %v10687_v4  ;;  %v10775_v51 = vld [vmem:[%s11069_s6 + $0x1f04] ss:$16 sps:$4 sm:$0xff]   ;;  %v10778_v4 = vld [vmem:[%s11069_s6 + $0x1f0c] ss:$16 sps:$4 sm:$0xff]  }
 0x3f6   : > { %7224 = vmatpush1.bf16.msra.mxu0 %v10682_v5  ;;  %7880 = vmatpush1.bf16.msra.mxu1 %v10685_v61  ;;  %v10773_v5 = vld [vmem:[%s11069_s6 + $0x1f00] ss:$16 sps:$4 sm:$0xff]   ;;  %v10776_v61 = vld [vmem:[%s11069_s6 + $0x1f08] ss:$16 sps:$4 sm:$0xff]  }
 0x3f7   : > { %7225 = vmatprep.subr.bf16.mxu0 %v10690_v7  ;;  %7881 = vmatprep.subr.bf16.mxu1 %v10693_v8  ;;  %v10781_v7 = vld [vmem:[%s11069_s6 + $0x1f24] ss:$16 sps:$4 sm:$0xff]   ;;  %v10784_v8 = vld [vmem:[%s11069_s6 + $0x1f2c] ss:$16 sps:$4 sm:$0xff]  }
 0x3fa   : > { %7226 = vmatpush1.bf16.msra.mxu0 %v10688_v10  ;;  %7882 = vmatpush1.bf16.msra.mxu1 %v10691_v12  ;;  %v10779_v10 = vld [vmem:[%s11069_s6 + $0x1f20] ss:$16 sps:$4 sm:$0xff]   ;;  %v10782_v12 = vld [vmem:[%s11069_s6 + $0x1f28] ss:$16 sps:$4 sm:$0xff]  }
 0x3fb   : > { %7227 = vmatprep.subr.bf16.mxu0 %v10696_v14  ;;  %7883 = vmatprep.subr.bf16.mxu1 %v10699_v16  ;;  %v10787_v14 = vld [vmem:[%s11069_s6 + $0x1f44] ss:$16 sps:$4 sm:$0xff]   ;;  %v10790_v16 = vld [vmem:[%s11069_s6 + $0x1f4c] ss:$16 sps:$4 sm:$0xff]  }
 0x3fe   : > { %7228 = vmatpush1.bf16.msra.mxu0 %v10694_v1  ;;  %7884 = vmatpush1.bf16.msra.mxu1 %v10697_v52  ;;  %v10785_v1 = vld [vmem:[%s11069_s6 + $0x1f40] ss:$16 sps:$4 sm:$0xff]   ;;  %v10788_v52 = vld [vmem:[%s11069_s6 + $0x1f48] ss:$16 sps:$4 sm:$0xff]  }
 0x3ff   : > { %7229 = vmatprep.subr.bf16.mxu0 %v10702_v17  ;;  %7885 = vmatprep.subr.bf16.mxu1 %v10705_v18  ;;  %v10793_v17 = vld [vmem:[%s11069_s6 + $0x1f64] ss:$16 sps:$4 sm:$0xff]   ;;  %v10796_v18 = vld [vmem:[%s11069_s6 + $0x1f6c] ss:$16 sps:$4 sm:$0xff]  }
 0x402   : > { %7230 = vmatpush1.bf16.msra.mxu0 %v10700_v9  ;;  %7886 = vmatpush1.bf16.msra.mxu1 %v10703_v19  ;;  %v10791_v9 = vld [vmem:[%s11069_s6 + $0x1f60] ss:$16 sps:$4 sm:$0xff]   ;;  %v10794_v19 = vld [vmem:[%s11069_s6 + $0x1f68] ss:$16 sps:$4 sm:$0xff]  }
 0x403   : > { %7231 = vmatprep.subr.bf16.mxu0 %v10708_v20  ;;  %7887 = vmatprep.subr.bf16.mxu1 %v10711_v62  ;;  %v10799_v20 = vld [vmem:[%s11069_s6 + $0x1f84] ss:$16 sps:$4 sm:$0xff]   ;;  %v10802_v62 = vld [vmem:[%s11069_s6 + $0x1f8c] ss:$16 sps:$4 sm:$0xff]  }
 0x406   : > { %7232 = vmatpush1.bf16.msra.mxu0 %v10706_v24  ;;  %7888 = vmatpush1.bf16.msra.mxu1 %v10709_v26  ;;  %v10797_v24 = vld [vmem:[%s11069_s6 + $0x1f80] ss:$16 sps:$4 sm:$0xff]   ;;  %v10800_v26 = vld [vmem:[%s11069_s6 + $0x1f88] ss:$16 sps:$4 sm:$0xff]  }
 0x407   : > { %7233 = vmatprep.subr.bf16.mxu0 %v10714_v6  ;;  %7889 = vmatprep.subr.bf16.mxu1 %v10717_v28  ;;  %v10805_v6 = vld [vmem:[%s11069_s6 + $0x1fa4] ss:$16 sps:$4 sm:$0xff]   ;;  %v10808_v28 = vld [vmem:[%s11069_s6 + $0x1fac] ss:$16 sps:$4 sm:$0xff]  }
 0x40a   : > { %7234 = vmatpush1.bf16.msra.mxu0 %v10712_v29  ;;  %7890 = vmatpush1.bf16.msra.mxu1 %v10715_v11  ;;  %v10803_v29 = vld [vmem:[%s11069_s6 + $0x1fa0] ss:$16 sps:$4 sm:$0xff]   ;;  %v10806_v11 = vld [vmem:[%s11069_s6 + $0x1fa8] ss:$16 sps:$4 sm:$0xff]  }
 0x40b   : > { %7235 = vmatprep.subr.bf16.mxu0 %v10720_v30  ;;  %7891 = vmatprep.subr.bf16.mxu1 %v10723_v15  ;;  %v10811_v30 = vld [vmem:[%s11069_s6 + $0x1fc4] ss:$16 sps:$4 sm:$0xff]   ;;  %v10814_v15 = vld [vmem:[%s11069_s6 + $0x1fcc] ss:$16 sps:$4 sm:$0xff]  }
 0x40e   : > { %7236 = vmatpush1.bf16.msra.mxu0 %v10718_v31  ;;  %7892 = vmatpush1.bf16.msra.mxu1 %v10721_v22  ;;  %v10809_v31 = vld [vmem:[%s11069_s6 + $0x1fc0] ss:$16 sps:$4 sm:$0xff]   ;;  %v10812_v22 = vld [vmem:[%s11069_s6 + $0x1fc8] ss:$16 sps:$4 sm:$0xff]  }
 0x40f   : > { %7246 = vmatprep.subr.bf16.mxu0 %v10727_v32  ;;  %7902 = vmatprep.subr.bf16.mxu1 %v10730_v33  ;;  %v10817_v32 = vld [vmem:[%s11069_s6 + $0x1fe4] ss:$16 sps:$4 sm:$0xff]   ;;  %v10820_v33 = vld [vmem:[%s11069_s6 + $0x1fec] ss:$16 sps:$4 sm:$0xff]  }
 0x411   : > { %7238 = vmatmul.mubr.bf16.vlgmr.msra.gmra.mrb[0].mxu0 %v12218_v23  ;;  %7894 = vmatmul.mubr.bf16.vlgmr.msra.gmra.mrb[0].mxu1 %v12218_v23 }
 0x412   : > { %7247 = vmatpush1.bf16.msra.mxu0 %v10725_v34  ;;  %7903 = vmatpush1.bf16.msra.mxu1 %v10728_v36  ;;  %v10815_v34 = vld [vmem:[%s11069_s6 + $0x1fe0] ss:$16 sps:$4 sm:$0xff]   ;;  %v10818_v36 = vld [vmem:[%s11069_s6 + $0x1fe8] ss:$16 sps:$4 sm:$0xff]  }
 0x413   : > { %7248 = vmatprep.subr.bf16.mxu0 %v10733_v37  ;;  %7904 = vmatprep.subr.bf16.mxu1 %v10736_v39  ;;  %v1476_v37 = vcombine.high %v12218_v23, %v12218_v23  ;;  %v1261_v39 = vsub.s32 0, %v11120_v42 }
 0x414   : > { %7278 = vmatprep.mubr.bf16.mxu0 %v1478_v40  ;;  %7934 = vmatprep.mubr.bf16.mxu1 %v1478_v40  ;;  %v1269_v40 = vsub.s32 2, %v11120_v42 }
 0x416   : > { %7249 = vmatpush1.bf16.msra.mxu0 %v10731_v27  ;;  %7905 = vmatpush1.bf16.msra.mxu1 %v10734_v21  ;;  %v1257_v27 = vld [vmem:[%s11075_s29] sm:$0xf]  ;;  %v1265_v21 = vsub.s32 1, %v11120_v42 }
 0x417   : > { %7250 = vmatprep.subr.bf16.mxu0 %v10739_v41  ;;  %7906 = vmatprep.subr.bf16.mxu1 %v10742_v43  ;;  %v1273_v41 = vsub.s32 3, %v11120_v42  ;;  %v1262_v43 = vrot.slane %v1257_v27, %v1261_v39 }
 0x41a   : > { %7251 = vmatpush1.bf16.msra.mxu0 %v10737_v25  ;;  %7907 = vmatpush1.bf16.msra.mxu1 %v10740_v44  ;;  %v1270_v25 = vrot.slane %v1257_v27, %v1269_v40  ;;  %v1266_v44 = vrot.slane %v1257_v27, %v1265_v21 }
 0x41b   : > { %7252 = vmatprep.subr.bf16.mxu0 %v10745_v45  ;;  %7908 = vmatprep.subr.bf16.mxu1 %v10748_v46  ;;  %v1274_v45 = vrot.slane %v1257_v27, %v1273_v41 }
 0x41e   : > { %7253 = vmatpush1.bf16.msra.mxu0 %v10743_v47  ;;  %7909 = vmatpush1.bf16.msra.mxu1 %v10746_v50 }
 0x41f   : > { %7254 = vmatprep.subr.bf16.mxu0 %v10751_v53  ;;  %7910 = vmatprep.subr.bf16.mxu1 %v10754_v54 }
 0x422   : > { %7255 = vmatpush1.bf16.msra.mxu0 %v10749_v55  ;;  %7911 = vmatpush1.bf16.msra.mxu1 %v10752_v38 }
 0x423   : > { %7256 = vmatprep.subr.bf16.mxu0 %v10757_v56  ;;  %7912 = vmatprep.subr.bf16.mxu1 %v10760_v57 }
 0x426   : > { %7257 = vmatpush1.bf16.msra.mxu0 %v10755_v58  ;;  %7913 = vmatpush1.bf16.msra.mxu1 %v10758_v48 }
 0x427   : > { %7258 = vmatprep.subr.bf16.mxu0 %v10763_v59  ;;  %7914 = vmatprep.subr.bf16.mxu1 %v10766_v60 }
 0x42a   : > { %7259 = vmatpush1.bf16.msra.mxu0 %v10761_v13  ;;  %7915 = vmatpush1.bf16.msra.mxu1 %v10764_v63 }
 0x42b   : > { %7260 = vmatprep.subr.bf16.mxu0 %v10769_v0  ;;  %7916 = vmatprep.subr.bf16.mxu1 %v10772_v35 }
 0x42e   : > { %7261 = vmatpush1.bf16.msra.mxu0 %v10767_v2  ;;  %7917 = vmatpush1.bf16.msra.mxu1 %v10770_v3 }
 0x42f   : > { %7262 = vmatprep.subr.bf16.mxu0 %v10775_v51  ;;  %7918 = vmatprep.subr.bf16.mxu1 %v10778_v4 }
 0x432   : > { %7263 = vmatpush1.bf16.msra.mxu0 %v10773_v5  ;;  %7919 = vmatpush1.bf16.msra.mxu1 %v10776_v61 }
 0x433   : > { %7264 = vmatprep.subr.bf16.mxu0 %v10781_v7  ;;  %7920 = vmatprep.subr.bf16.mxu1 %v10784_v8 }
 0x436   : > { %7265 = vmatpush1.bf16.msra.mxu0 %v10779_v10  ;;  %7921 = vmatpush1.bf16.msra.mxu1 %v10782_v12 }
 0x437   : > { %7266 = vmatprep.subr.bf16.mxu0 %v10787_v14  ;;  %7922 = vmatprep.subr.bf16.mxu1 %v10790_v16 }
 0x43a   : > { %7267 = vmatpush1.bf16.msra.mxu0 %v10785_v1  ;;  %7923 = vmatpush1.bf16.msra.mxu1 %v10788_v52 }
 0x43b   : > { %7268 = vmatprep.subr.bf16.mxu0 %v10793_v17  ;;  %7924 = vmatprep.subr.bf16.mxu1 %v10796_v18 }
 0x43e   : > { %7269 = vmatpush1.bf16.msra.mxu0 %v10791_v9  ;;  %7925 = vmatpush1.bf16.msra.mxu1 %v10794_v19 }
 0x43f   : > { %7270 = vmatprep.subr.bf16.mxu0 %v10799_v20  ;;  %7926 = vmatprep.subr.bf16.mxu1 %v10802_v62 }
 0x442   : > { %7271 = vmatpush1.bf16.msra.mxu0 %v10797_v24  ;;  %7927 = vmatpush1.bf16.msra.mxu1 %v10800_v26 }
 0x443   : > { %7272 = vmatprep.subr.bf16.mxu0 %v10805_v6  ;;  %7928 = vmatprep.subr.bf16.mxu1 %v10808_v28 }
 0x446   : > { %7273 = vmatpush1.bf16.msra.mxu0 %v10803_v29  ;;  %7929 = vmatpush1.bf16.msra.mxu1 %v10806_v11 }
 0x447   : > { %7274 = vmatprep.subr.bf16.mxu0 %v10811_v30  ;;  %7930 = vmatprep.subr.bf16.mxu1 %v10814_v15 }
 0x44a   : > { %7275 = vmatpush1.bf16.msra.mxu0 %v10809_v31  ;;  %7931 = vmatpush1.bf16.msra.mxu1 %v10812_v22 }
 0x44b   : > { %7276 = vmatprep.subr.bf16.mxu0 %v10817_v32  ;;  %7932 = vmatprep.subr.bf16.mxu1 %v10820_v33 }
 0x44e   : > { %7277 = vmatpush1.bf16.msra.mxu0 %v10815_v34  ;;  %7933 = vmatpush1.bf16.msra.mxu1 %v10818_v36 }
 0x451   : > { %7279 = vmatmul.mubr.bf16.vlgmr.msra.gmra.mrb[0].mxu0 %v1476_v37  ;;  %7935 = vmatmul.mubr.bf16.vlgmr.msra.gmra.mrb[0].mxu1 %v1476_v37 }
 0x524   : > { %v7280_v23 = vpop.f32.mrb[0].mxu0  ;;  %v7936_v46 = vpop.f32.mrb[0].mxu1 }
 0x525   : > { %v9110_v47 = vadd.f32 %v7280_v23, %v1262_v43  ;;  %v9112_v50 = vadd.f32 %v7936_v46, %v1270_v25  ;;  %v7282_v53 = vpop.f32.mrb[1].mxu0  ;;  %v7938_v54 = vpop.f32.mrb[1].mxu1 }
 0x526   : > { %v9111_v55 = vadd.f32 %v7282_v53, %v1266_v44  ;;  %v9113_v38 = vadd.f32 %v7938_v54, %v1274_v45  ;;  %v7284_v56 = vpop.f32.mrb[2].mxu0  ;;  %v7940_v57 = vpop.f32.mrb[2].mxu1 }
 0x527   : > { %v7943_v58 = vmax.f32 %v9110_v47, 0.0  ;;  %v7945_v48 = vmax.f32 %v9112_v50, 0.0  ;;  %v7285_v42 = vpop.f32.mrb[3].mxu0  ;;  %v7941_v59 = vpop.f32.mrb[3].mxu1 }
 0x528   : > { %v7944_v60 = vmax.f32 %v9111_v55, 0.0  ;;  %v7946_v13 = vmax.f32 %v9113_v38, 0.0 }
 0x52a   : > { %v9103_v63 = vpack.c.bf16 %v7944_v60, %v7943_v58  ;;  %v9104_v0 = vpack.c.bf16 %v7946_v13, %v7945_v48 }
 0x52c   : > { %v7963_v35 = vrot.slane %v9103_v63, %v11128_v49  ;;  %v7970_v2 = vrot.slane %v9104_v0, %v11128_v49 }
 0x52e   : > { %v7971_v3 = vcombine.low %v7963_v35, %v7970_v2 }
 0x530   : > { %9105 = vst.sshfl [vmem:[%s227_s19] sm:$0x55 pattern:$0x73625140] %v7971_v3 }
 0x531 PF: > { %p16_p8 = scmp.ge.s32.totalorder %s10968_s17, 6   ;;  %s12324_s12 = smov %s10913_s13 }
 0x532   : > { %s12325_s13 = smov %s10917_s14  ;;  %s12326_s14 = smov %s10978_s20 }
 0x533   : > { %s12327_s15 = smov %s10968_s17  ;;  %18 = sbr.rel (!%p16_p8) target bundleno = 5 (0x5), region = 85 }
 0x53a   :  { %8001 = vsyncpa [#allocation3], 1 }
 0x53b   :  { %8003 = vsyncpa [#allocation3 + $0x1], 1 }
 0x53c   :  { %8004 = vsyncpa [#allocation5], 1 }
 0x53d   :  { %8006 = vsyncpa [#allocation5 + $0x1], 1 }

</bundles_post_ra>
